<compile_context>
chip_gen: v7x
topology: tpu7x:2x2x1
jax: 0.10.0
libtpu: 0.0.40
codegen_flags: <defaults>
</compile_context>

<pallas_src>
import jax
import jax.numpy as jnp
import numpy as np
from jax.experimental import pallas as pl
from jax.experimental.pallas import tpu as pltpu

C_PAD = 128                    # lane-padded channel count (lane-dense loads/stores)
M_CHUNK = 128                  # GEMM rows per chunk: 16-vreg f32 accumulator
COMPUTE_DTYPE = jnp.float32    # flip to jnp.bfloat16 on v6e/v7x (~2x MXU, looser tol)
NEG_SLOPE = 0.05               # F.leaky_relu slope used by Conv3XC


# ----------------------------------------------------------------------------
# Parameter construction: Conv3XC.__init__ sub-convs + update_params() merge
# ----------------------------------------------------------------------------
def _uniform(key, shape, fan_in):
    bound = 1.0 / jnp.sqrt(jnp.float32(fan_in))
    return jax.random.uniform(key, shape, jnp.float32, -bound, bound)


def make_conv3xc_params(key, c_in, c_out):
    """Deterministically init the sub-convs (gain1=1) and collapse to one 3x3."""
    ks = jax.random.split(key, 8)
    w1 = _uniform(ks[0], (c_in, c_in, 1, 1), c_in)          # conv[0]: 1x1
    b1 = _uniform(ks[1], (c_in,), c_in)
    w2 = _uniform(ks[2], (c_out, c_in, 3, 3), c_in * 9)     # conv[1]: 3x3
    b2 = _uniform(ks[3], (c_out,), c_in * 9)
    w3 = _uniform(ks[4], (c_out, c_out, 1, 1), c_out)       # conv[2]: 1x1
    b3 = _uniform(ks[5], (c_out,), c_out)
    sk_w = _uniform(ks[6], (c_out, c_in, 1, 1), c_in)       # sk: 1x1 skip
    sk_b = _uniform(ks[7], (c_out,), c_in)

    # Conv3XC.update_params(): compose 1x1 * 3x3 * 1x1 into one 3x3 kernel.
    w = jnp.einsum("on,nmhw,mi->oihw", w3[:, :, 0, 0], w2, w1[:, :, 0, 0])
    b_mid = jnp.einsum("nmhw,m->n", w2, b1) + b2
    b = w3[:, :, 0, 0] @ b_mid + b3
    w = w.at[:, :, 1, 1].add(sk_w[:, :, 0, 0])               # 1x1 skip at center tap
    b = b + sk_b
    return w, b  # (Cout, Cin, 3, 3), (Cout,)


def pack_conv3xc_taps(w_oihw, bias):
    """(Cout,Cin,3,3)+(Cout,) -> per-tap (9, 128, 128) weight, (1, 128) f32 bias."""
    c_out, c_in = w_oihw.shape[0], w_oihw.shape[1]
    wt = jnp.transpose(w_oihw, (2, 3, 1, 0)).reshape(9, c_in, c_out)
    wt = jnp.pad(wt, ((0, 0), (0, C_PAD - c_in), (0, C_PAD - c_out)))
    bt = jnp.pad(bias, (0, C_PAD - c_out)).reshape(1, C_PAD)
    return wt.astype(COMPUTE_DTYPE), bt.astype(jnp.float32)


def pack_conv3xc_k27(w_oihw, bias):
    """Layer-0 fused weight (Kpad, 128): one GEMM over the wrapper-side im2col."""
    c_out, c_in = w_oihw.shape[0], w_oihw.shape[1]
    k = 9 * c_in
    k_pad = -(-k // 8) * 8                                    # 27 -> 32
    wt = jnp.transpose(w_oihw, (2, 3, 1, 0)).reshape(k, c_out)  # row = (kh*3+kw)*Cin+ci
    wt = jnp.pad(wt, ((0, k_pad - k), (0, C_PAD - c_out)))
    bt = jnp.pad(bias, (0, C_PAD - c_out)).reshape(1, C_PAD)
    return wt.astype(COMPUTE_DTYPE), bt.astype(jnp.float32)


# ----------------------------------------------------------------------------
# Fused encoder forward
# ----------------------------------------------------------------------------
def rgb_encoder6_apply(packed_params, x_nchw, *, out_ch):
    (w0, b0), (w1, b1), (w2, b2), (w3, b3) = packed_params
    N, c_in, H, W = x_nchw.shape
    k27 = w0.shape[0]

    # ---- static geometry (python ints) --------------------------------------
    H0p, W0p = H + 4, W + 4                      # pad-2 frame; also pad-1 frames of act0/c1
    c1h, c1w = H + 2, W + 2                      # act0 and c1 spatial size
    c2h, c2w = (c1h - 1) // 3 + 1, (c1w - 1) // 3 + 1    # stride-3 conv output
    c3h, c3w = (c2h - 1) // 2 + 1, (c2w - 1) // 2 + 1    # stride-2 conv output
    H3p, W3p = c2h + 2, c2w + 2                  # pad-1 frame around c2
    F0, F3 = H0p * W0p, H3p * W3p                # flat frame rows per batch element
    Ma = (H0p - 3) * W0p + c1w                   # GEMM rows for the full-size convs
    Mb = (H3p - 3) * W3p + c2w                   # GEMM rows for the last conv
    BRD = W0p + 1                                # top/bottom border strip of f1/c1f frames
    assert F0 - BRD - Ma == BRD                  # tail strip has the same height

    # column-validity masks: zero the wrap-around / right-pad garbage rows; they land
    # exactly on the left/right border columns of the destination frame.
    def col_mask(m, wp, wo):
        r = np.arange(m)
        return ((r % wp) < wo).astype(np.float32)[:, None]

    mask_a = jnp.asarray(col_mask(Ma, W0p, c1w))
    mask_b = jnp.asarray(col_mask(Mb, W3p, c2w))

    # ---- wrapper glue: NCHW -> pad-2 NHWC frame -> 9-tap im2col for layer 0 --
    x_nhwc = jnp.transpose(x_nchw, (0, 2, 3, 1)).astype(jnp.float32)
    x_pad = jnp.pad(x_nhwc, ((0, 0), (2, 2), (2, 2), (0, 0)))        # (N,H0p,W0p,Cin)
    x_ext = jnp.pad(x_pad, ((0, 0), (0, 2), (0, 2), (0, 0)))
    taps = [x_ext[:, kh:kh + H0p, kw:kw + W0p, :]
            for kh in range(3) for kw in range(3)]
    x_im = jnp.concatenate(taps, axis=-1)                            # (N,H0p,W0p,9*Cin)
    x_im = jnp.pad(x_im, ((0, 0), (0, 0), (0, 0), (0, k27 - 9 * c_in)))
    x_flat = x_im.reshape(N * F0, k27)

    # ---- the fused kernel ----------------------------------------------------
    def kernel(x_ref, w0_ref, b0_ref, w1_ref, b1_ref, w2_ref, b2_ref,
               w3_ref, b3_ref, ma_ref, mb_ref,
               c1f_ref, c2f_ref, c3f_ref,          # outputs (padded frames)
               f1_ref, f2_ref):                    # VMEM scratch frames

        def epilogue_store(acc, b_ref, mask_ref, r0, rows, dst, dst_off):
            y = acc + b_ref[...]
            y = jnp.where(y >= 0.0, y, NEG_SLOPE * y)      # F.leaky_relu(y, 0.05)
            y = y * mask_ref[r0:r0 + rows, :]              # zero wrap/right-pad rows
            dst[dst_off + r0:dst_off + r0 + rows, :] = y   # single store per chunk

        def conv3x3_s1(src, dst, w_ref, b_ref, mask_ref, wp, m, dst_off):
            # 3x3/stride-1 conv + bias + leaky_relu over a flat (hp*wp, C) frame.
            # Output rows processed in M_CHUNK-row chunks so the 9-tap accumulator
            # lives in vregs (no VMEM read-modify-write).
            for r0 in range(0, m, M_CHUNK):
                rows = min(M_CHUNK, m - r0)
                acc = None
                for t in range(9):
                    kh, kw = divmod(t, 3)
                    off = kh * wp + kw + r0
                    lhs = src[off:off + rows, :]
                    if lhs.dtype != COMPUTE_DTYPE:
                        lhs = lhs.astype(COMPUTE_DTYPE)
                    prod = jnp.dot(lhs, w_ref[t], preferred_element_type=jnp.float32)
                    acc = prod if acc is None else acc + prod
                epilogue_store(acc, b_ref, mask_ref, r0, rows, dst, dst_off)

        def conv_fused_k(src, dst, w_ref, b_ref, mask_ref, m, dst_off):
            # layer 0: ONE GEMM per chunk, K = 9*Cin (im2col done in the wrapper).
            for r0 in range(0, m, M_CHUNK):
                rows = min(M_CHUNK, m - r0)
                lhs = src[r0:r0 + rows, :]
                if lhs.dtype != COMPUTE_DTYPE:
                    lhs = lhs.astype(COMPUTE_DTYPE)
                acc = jnp.dot(lhs, w_ref[...], preferred_element_type=jnp.float32)
                epilogue_store(acc, b_ref, mask_ref, r0, rows, dst, dst_off)

        # Zero only the border strips that are read as conv halo (review item 2).
        # Left/right border columns are zeroed by the column mask at store time;
        # c3f needs no zeroing (border never read, wrapper slices written interior).
        zeros_brd = jnp.zeros((BRD, C_PAD), jnp.float32)
        f1_ref[0:BRD, :] = zeros_brd
        f1_ref[BRD + Ma:F0, :] = zeros_brd
        c1f_ref[0:BRD, :] = zeros_brd
        c1f_ref[BRD + Ma:F0, :] = zeros_brd
        c2f_ref[...] = jnp.zeros((F3, C_PAD), jnp.float32)

        # initial_layer: pad=2, s=1   (im2col'd input -> act0 frame, one GEMM/chunk)
        conv_fused_k(x_ref, f1_ref, w0_ref, b0_ref, ma_ref, Ma, BRD)
        # test_layer:    pad=1, s=1   (act0 frame -> c1 frame)
        conv3x3_s1(f1_ref, c1f_ref, w1_ref, b1_ref, ma_ref, W0p, Ma, BRD)
        # test_layer_2:  pad=1, s=3   (stride-1 conv, then strided-row subsample)
        conv3x3_s1(c1f_ref, f2_ref, w2_ref, b2_ref, ma_ref, W0p, Ma, BRD)
        for i in range(c2h):
            c2f_ref[(i + 1) * W3p + 1:(i + 1) * W3p + 1 + c2w, :] = (
                f2_ref[pl.ds((3 * i + 1) * W0p + 1, c2w, stride=3), :])
        # test_layer_3:  pad=1, s=2   (stride-1 conv; wrapper picks every 2nd pixel)
        conv3x3_s1(c2f_ref, c3f_ref, w3_ref, b3_ref, mb_ref, W3p, Mb, W3p + 1)

    def batch_spec(shape):
        return pl.BlockSpec(shape, lambda bidx: (bidx,) + (0,) * (len(shape) - 1))

    def shared_spec(shape):
        return pl.BlockSpec(shape, lambda bidx: (0,) * len(shape))

    c1f, c2f, c3f = pl.pallas_call(
        kernel,
        out_shape=(
            jax.ShapeDtypeStruct((N * F0, C_PAD), jnp.float32),   # c1 (1-padded frame)
            jax.ShapeDtypeStruct((N * F3, C_PAD), jnp.float32),   # c2 (1-padded frame)
            jax.ShapeDtypeStruct((N * F3, C_PAD), jnp.float32),   # c3 at stride 1
        ),
        grid=(N,),
        in_specs=[
            batch_spec((F0, k27)),
            shared_spec(tuple(w0.shape)), shared_spec(tuple(b0.shape)),
            shared_spec(tuple(w1.shape)), shared_spec(tuple(b1.shape)),
            shared_spec(tuple(w2.shape)), shared_spec(tuple(b2.shape)),
            shared_spec(tuple(w3.shape)), shared_spec(tuple(b3.shape)),
            shared_spec((Ma, 1)), shared_spec((Mb, 1)),
        ],
        out_specs=(
            batch_spec((F0, C_PAD)),
            batch_spec((F3, C_PAD)),
            batch_spec((F3, C_PAD)),
        ),
        scratch_shapes=[
            pltpu.VMEM((F0, C_PAD), jnp.float32),        # act0 frame
            pltpu.VMEM((F0, C_PAD), jnp.float32),        # layer-2 stride-1 result frame
        ],
        compiler_params=pltpu.CompilerParams(dimension_semantics=("parallel",)),
    )(x_flat, w0, b0, w1, b1, w2, b2, w3, b3, mask_a, mask_b)

    # ---- wrapper glue: extract interiors, drop channel padding, back to NCHW -
    c1 = c1f.reshape(N, H0p, W0p, C_PAD)[:, 1:1 + c1h, 1:1 + c1w, :out_ch]
    c2 = c2f.reshape(N, H3p, W3p, C_PAD)[:, 1:1 + c2h, 1:1 + c2w, :out_ch]
    c3 = c3f.reshape(N, H3p, W3p, C_PAD)[:, 1:1 + 2 * c3h:2, 1:1 + 2 * c3w:2, :out_ch]
    return [jnp.transpose(c, (0, 3, 1, 2)) for c in (c1, c2, c3)]


# ----------------------------------------------------------------------------
# Pure-JAX reference (for correctness check)
# ----------------------------------------------------------------------------
def _conv_ref(x_nhwc, w_oihw, bias, stride, padding, relu):
    out = jax.lax.conv_general_dilated(
        x_nhwc,
        jnp.transpose(w_oihw, (2, 3, 1, 0)),
        window_strides=(stride, stride),
        padding=[(padding, padding), (padding, padding)],
        dimension_numbers=("NHWC", "HWIO", "NHWC"),
        precision=jax.lax.Precision.HIGHEST,
    )
    out = out + bias
    if relu:
        out = jnp.where(out >= 0.0, out, NEG_SLOPE * out)
    return out


if __name__ == "__main__":
    key = jax.random.PRNGKey(0)
    kx, k0, k1, k2, k3 = jax.random.split(key, 5)

    in_ch, out_ch = 3, 64
    x_nchw = jax.random.normal(kx, (2, in_ch, 16, 16), jnp.float32)

    raw = [
        make_conv3xc_params(k0, in_ch, out_ch),    # initial_layer (pad=2, s=1)
        make_conv3xc_params(k1, out_ch, out_ch),   # test_layer    (pad=1, s=1)
        make_conv3xc_params(k2, out_ch, out_ch),   # test_layer_2  (pad=1, s=3)
        make_conv3xc_params(k3, out_ch, out_ch),   # test_layer_3  (pad=1, s=2)
    ]
    packed = ([pack_conv3xc_k27(*raw[0])]
              + [pack_conv3xc_taps(w, b) for (w, b) in raw[1:]])

    fwd = jax.jit(lambda xin: rgb_encoder6_apply(packed, xin, out_ch=out_ch))
    outs = jax.block_until_ready(fwd(x_nchw))

    def encoder_ref(x):
        xh = jnp.transpose(x, (0, 2, 3, 1))
        a = _conv_ref(xh, *raw[0], 1, 2, True)
        r1 = _conv_ref(a, *raw[1], 1, 1, True)
        r2 = _conv_ref(r1, *raw[2], 3, 1, True)
        r3 = _conv_ref(r2, *raw[3], 2, 1, True)
        return [jnp.transpose(c, (0, 3, 1, 2)) for c in (r1, r2, r3)]

    refs = encoder_ref(x_nchw)
    expected = [(2, out_ch, 18, 18), (2, out_ch, 6, 6), (2, out_ch, 3, 3)]
    # f32 compute path: tightened from 2e-3 to 5e-4 (review); bf16 operand path
    # (COMPUTE_DTYPE=bfloat16 on v6e/v7x) needs a ~3e-2 budget.
    tol = 5e-4 if COMPUTE_DTYPE == jnp.float32 else 3e-2
    for o, r, s in zip(outs, refs, expected):
        assert o.shape == s, (o.shape, s)
        err = float(jnp.max(jnp.abs(o - r)))
        assert jnp.allclose(o, r, atol=tol, rtol=tol), err

    print("KERNEL_OK")
</pallas_src>

<mosaic_0001>
module attributes {stable_mosaic.version = 11 : i64} {
  func.func @kernel(%arg0: i32, %arg1: memref<400x32xf32, #tpu.memory_space<vmem>>, %arg2: memref<32x128xf32, #tpu.memory_space<vmem>>, %arg3: memref<1x128xf32, #tpu.memory_space<vmem>>, %arg4: memref<9x128x128xf32, #tpu.memory_space<vmem>>, %arg5: memref<1x128xf32, #tpu.memory_space<vmem>>, %arg6: memref<9x128x128xf32, #tpu.memory_space<vmem>>, %arg7: memref<1x128xf32, #tpu.memory_space<vmem>>, %arg8: memref<9x128x128xf32, #tpu.memory_space<vmem>>, %arg9: memref<1x128xf32, #tpu.memory_space<vmem>>, %arg10: memref<358x1xf32, #tpu.memory_space<vmem>>, %arg11: memref<46x1xf32, #tpu.memory_space<vmem>>, %arg12: memref<400x128xf32, #tpu.memory_space<vmem>>, %arg13: memref<64x128xf32, #tpu.memory_space<vmem>>, %arg14: memref<64x128xf32, #tpu.memory_space<vmem>>, %arg15: memref<400x128xf32, #tpu.memory_space<vmem>>, %arg16: memref<400x128xf32, #tpu.memory_space<vmem>>) attributes {dimension_semantics = [#tpu.dimension_semantics<parallel>], iteration_bounds = array<i64: 2>, scalar_prefetch = 0 : i64, scratch_operands = 2 : i64, tpu.core_type = #tpu.core_type<tc>, window_params = [{transform_indices = @transform_0, window_bounds = array<i64: 400, 32>}, {pipeline_mode = #tpu.pipeline_mode<synchronous>, transform_indices = @transform_1, window_bounds = array<i64: 32, 128>}, {pipeline_mode = #tpu.pipeline_mode<synchronous>, transform_indices = @transform_2, window_bounds = array<i64: 1, 128>}, {pipeline_mode = #tpu.pipeline_mode<synchronous>, transform_indices = @transform_3, window_bounds = array<i64: 9, 128, 128>}, {pipeline_mode = #tpu.pipeline_mode<synchronous>, transform_indices = @transform_4, window_bounds = array<i64: 1, 128>}, {pipeline_mode = #tpu.pipeline_mode<synchronous>, transform_indices = @transform_5, window_bounds = array<i64: 9, 128, 128>}, {pipeline_mode = #tpu.pipeline_mode<synchronous>, transform_indices = @transform_6, window_bounds = array<i64: 1, 128>}, {pipeline_mode = #tpu.pipeline_mode<synchronous>, transform_indices = @transform_7, window_bounds = array<i64: 9, 128, 128>}, {pipeline_mode = #tpu.pipeline_mode<synchronous>, transform_indices = @transform_8, window_bounds = array<i64: 1, 128>}, {pipeline_mode = #tpu.pipeline_mode<synchronous>, transform_indices = @transform_9, window_bounds = array<i64: 358, 1>}, {pipeline_mode = #tpu.pipeline_mode<synchronous>, transform_indices = @transform_10, window_bounds = array<i64: 46, 1>}, {transform_indices = @transform_11, window_bounds = array<i64: 400, 128>}, {transform_indices = @transform_12, window_bounds = array<i64: 64, 128>}, {transform_indices = @transform_13, window_bounds = array<i64: 64, 128>}]} {
    %cst = arith.constant 0.000000e+00 : f32
    %0 = vector.broadcast %cst : f32 to vector<21x128xf32>
    %c0 = arith.constant 0 : index
    %c0_0 = arith.constant 0 : index
    %1 = vector.load %arg15[%c0, %c0_0] : memref<400x128xf32, #tpu.memory_space<vmem>>, vector<21x128xf32>
    tpu.vector_store %arg15[%c0, %c0_0], %0 {strides = array<i32>} : memref<400x128xf32, #tpu.memory_space<vmem>>, vector<21x128xf32>,
    %c379 = arith.constant 379 : index
    %c0_1 = arith.constant 0 : index
    %2 = vector.load %arg15[%c379, %c0_1] : memref<400x128xf32, #tpu.memory_space<vmem>>, vector<21x128xf32>
    tpu.vector_store %arg15[%c379, %c0_1], %0 {strides = array<i32>} : memref<400x128xf32, #tpu.memory_space<vmem>>, vector<21x128xf32>,
    %c0_2 = arith.constant 0 : index
    %c0_3 = arith.constant 0 : index
    %3 = vector.load %arg12[%c0_2, %c0_3] : memref<400x128xf32, #tpu.memory_space<vmem>>, vector<21x128xf32>
    tpu.vector_store %arg12[%c0_2, %c0_3], %0 {strides = array<i32>} : memref<400x128xf32, #tpu.memory_space<vmem>>, vector<21x128xf32>,
    %c379_4 = arith.constant 379 : index
    %c0_5 = arith.constant 0 : index
    %4 = vector.load %arg12[%c379_4, %c0_5] : memref<400x128xf32, #tpu.memory_space<vmem>>, vector<21x128xf32>
    tpu.vector_store %arg12[%c379_4, %c0_5], %0 {strides = array<i32>} : memref<400x128xf32, #tpu.memory_space<vmem>>, vector<21x128xf32>,
    %cst_6 = arith.constant 0.000000e+00 : f32
    %5 = vector.broadcast %cst_6 : f32 to vector<64x128xf32>
    %c0_7 = arith.constant 0 : index
    %c0_8 = arith.constant 0 : index
    %6 = vector.load %arg13[%c0_7, %c0_8] : memref<64x128xf32, #tpu.memory_space<vmem>>, vector<64x128xf32>
    tpu.vector_store %arg13[%c0_7, %c0_8], %5 {strides = array<i32>} : memref<64x128xf32, #tpu.memory_space<vmem>>, vector<64x128xf32>,
    %c0_9 = arith.constant 0 : index
    %c0_10 = arith.constant 0 : index
    %7 = vector.load %arg1[%c0_9, %c0_10] : memref<400x32xf32, #tpu.memory_space<vmem>>, vector<128x32xf32>
    %c0_11 = arith.constant 0 : index
    %c0_12 = arith.constant 0 : index
    %8 = vector.load %arg2[%c0_11, %c0_12] : memref<32x128xf32, #tpu.memory_space<vmem>>, vector<32x128xf32>
    %cst_13 = arith.constant dense<0.000000e+00> : vector<128x128xf32>
    %9 = tpu.matmul %7, %8, %cst_13 {dimension_numbers = #tpu.dot_dimension_numbers<[1], [0], [0], [1], [0, 0, 1, 1], [], []>} : vector<128x32xf32>, vector<32x128xf32>, vector<128x128xf32> -> vector<128x128xf32>
    %c0_14 = arith.constant 0 : index
    %c0_15 = arith.constant 0 : index
    %10 = vector.load %arg3[%c0_14, %c0_15] : memref<1x128xf32, #tpu.memory_space<vmem>>, vector<1x128xf32>
    %11 = vector.broadcast %10 : vector<1x128xf32> to vector<128x128xf32>
    %12 = arith.addf %9, %11 : vector<128x128xf32>
    %cst_16 = arith.constant 0.000000e+00 : f32
    %13 = vector.broadcast %cst_16 : f32 to vector<128x128xf32>
    %14 = arith.cmpf oge, %12, %13 : vector<128x128xf32>
    %cst_17 = arith.constant 5.000000e-02 : f32
    %15 = vector.broadcast %cst_17 : f32 to vector<128x128xf32>
    %16 = arith.mulf %15, %12 : vector<128x128xf32>
    %17 = arith.select %14, %12, %16 : vector<128x128xi1>, vector<128x128xf32>
    %c0_18 = arith.constant 0 : index
    %c0_19 = arith.constant 0 : index
    %18 = vector.load %arg10[%c0_18, %c0_19] : memref<358x1xf32, #tpu.memory_space<vmem>>, vector<128x1xf32>
    %19 = vector.broadcast %18 : vector<128x1xf32> to vector<128x128xf32>
    %20 = arith.mulf %17, %19 : vector<128x128xf32>
    %c21 = arith.constant 21 : index
    %c0_20 = arith.constant 0 : index
    %21 = vector.load %arg15[%c21, %c0_20] : memref<400x128xf32, #tpu.memory_space<vmem>>, vector<128x128xf32>
    tpu.vector_store %arg15[%c21, %c0_20], %20 {strides = array<i32>} : memref<400x128xf32, #tpu.memory_space<vmem>>, vector<128x128xf32>,
    %c128 = arith.constant 128 : index
    %c0_21 = arith.constant 0 : index
    %22 = vector.load %arg1[%c128, %c0_21] : memref<400x32xf32, #tpu.memory_space<vmem>>, vector<128x32xf32>
    %c0_22 = arith.constant 0 : index
    %c0_23 = arith.constant 0 : index
    %23 = vector.load %arg2[%c0_22, %c0_23] : memref<32x128xf32, #tpu.memory_space<vmem>>, vector<32x128xf32>
    %cst_24 = arith.constant dense<0.000000e+00> : vector<128x128xf32>
    %24 = tpu.matmul %22, %23, %cst_24 {dimension_numbers = #tpu.dot_dimension_numbers<[1], [0], [0], [1], [0, 0, 1, 1], [], []>} : vector<128x32xf32>, vector<32x128xf32>, vector<128x128xf32> -> vector<128x128xf32>
    %c0_25 = arith.constant 0 : index
    %c0_26 = arith.constant 0 : index
    %25 = vector.load %arg3[%c0_25, %c0_26] : memref<1x128xf32, #tpu.memory_space<vmem>>, vector<1x128xf32>
    %26 = vector.broadcast %25 : vector<1x128xf32> to vector<128x128xf32>
    %27 = arith.addf %24, %26 : vector<128x128xf32>
    %cst_27 = arith.constant 0.000000e+00 : f32
    %28 = vector.broadcast %cst_27 : f32 to vector<128x128xf32>
    %29 = arith.cmpf oge, %27, %28 : vector<128x128xf32>
    %cst_28 = arith.constant 5.000000e-02 : f32
    %30 = vector.broadcast %cst_28 : f32 to vector<128x128xf32>
    %31 = arith.mulf %30, %27 : vector<128x128xf32>
    %32 = arith.select %29, %27, %31 : vector<128x128xi1>, vector<128x128xf32>
    %c128_29 = arith.constant 128 : index
    %c0_30 = arith.constant 0 : index
    %33 = vector.load %arg10[%c128_29, %c0_30] : memref<358x1xf32, #tpu.memory_space<vmem>>, vector<128x1xf32>
    %34 = vector.broadcast %33 : vector<128x1xf32> to vector<128x128xf32>
    %35 = arith.mulf %32, %34 : vector<128x128xf32>
    %c149 = arith.constant 149 : index
    %c0_31 = arith.constant 0 : index
    %36 = vector.load %arg15[%c149, %c0_31] : memref<400x128xf32, #tpu.memory_space<vmem>>, vector<128x128xf32>
    tpu.vector_store %arg15[%c149, %c0_31], %35 {strides = array<i32>} : memref<400x128xf32, #tpu.memory_space<vmem>>, vector<128x128xf32>,
    %c256 = arith.constant 256 : index
    %c0_32 = arith.constant 0 : index
    %37 = vector.load %arg1[%c256, %c0_32] : memref<400x32xf32, #tpu.memory_space<vmem>>, vector<102x32xf32>
    %c0_33 = arith.constant 0 : index
    %c0_34 = arith.constant 0 : index
    %38 = vector.load %arg2[%c0_33, %c0_34] : memref<32x128xf32, #tpu.memory_space<vmem>>, vector<32x128xf32>
    %cst_35 = arith.constant dense<0.000000e+00> : vector<102x128xf32>
    %39 = tpu.matmul %37, %38, %cst_35 {dimension_numbers = #tpu.dot_dimension_numbers<[1], [0], [0], [1], [0, 0, 1, 1], [], []>} : vector<102x32xf32>, vector<32x128xf32>, vector<102x128xf32> -> vector<102x128xf32>
    %c0_36 = arith.constant 0 : index
    %c0_37 = arith.constant 0 : index
    %40 = vector.load %arg3[%c0_36, %c0_37] : memref<1x128xf32, #tpu.memory_space<vmem>>, vector<1x128xf32>
    %41 = vector.broadcast %40 : vector<1x128xf32> to vector<102x128xf32>
    %42 = arith.addf %39, %41 : vector<102x128xf32>
    %cst_38 = arith.constant 0.000000e+00 : f32
    %43 = vector.broadcast %cst_38 : f32 to vector<102x128xf32>
    %44 = arith.cmpf oge, %42, %43 : vector<102x128xf32>
    %cst_39 = arith.constant 5.000000e-02 : f32
    %45 = vector.broadcast %cst_39 : f32 to vector<102x128xf32>
    %46 = arith.mulf %45, %42 : vector<102x128xf32>
    %47 = arith.select %44, %42, %46 : vector<102x128xi1>, vector<102x128xf32>
    %c256_40 = arith.constant 256 : index
    %c0_41 = arith.constant 0 : index
    %48 = vector.load %arg10[%c256_40, %c0_41] : memref<358x1xf32, #tpu.memory_space<vmem>>, vector<102x1xf32>
    %49 = vector.broadcast %48 : vector<102x1xf32> to vector<102x128xf32>
    %50 = arith.mulf %47, %49 : vector<102x128xf32>
    %c277 = arith.constant 277 : index
    %c0_42 = arith.constant 0 : index
    %51 = vector.load %arg15[%c277, %c0_42] : memref<400x128xf32, #tpu.memory_space<vmem>>, vector<102x128xf32>
    tpu.vector_store %arg15[%c277, %c0_42], %50 {strides = array<i32>} : memref<400x128xf32, #tpu.memory_space<vmem>>, vector<102x128xf32>,
    %c0_43 = arith.constant 0 : index
    %c0_44 = arith.constant 0 : index
    %52 = vector.load %arg15[%c0_43, %c0_44] : memref<400x128xf32, #tpu.memory_space<vmem>>, vector<128x128xf32>
    %c0_45 = arith.constant 0 : index
    %c0_46 = arith.constant 0 : index
    %c0_47 = arith.constant 0 : index
    %53 = vector.load %arg4[%c0_45, %c0_46, %c0_47] : memref<9x128x128xf32, #tpu.memory_space<vmem>>, vector<1x128x128xf32>
    %54 = vector.shape_cast %53 : vector<1x128x128xf32> to vector<128x128xf32>
    %cst_48 = arith.constant dense<0.000000e+00> : vector<128x128xf32>
    %55 = tpu.matmul %52, %54, %cst_48 {dimension_numbers = #tpu.dot_dimension_numbers<[1], [0], [0], [1], [0, 0, 1, 1], [], []>} : vector<128x128xf32>, vector<128x128xf32>, vector<128x128xf32> -> vector<128x128xf32>
    %c1 = arith.constant 1 : index
    %c0_49 = arith.constant 0 : index
    %56 = vector.load %arg15[%c1, %c0_49] : memref<400x128xf32, #tpu.memory_space<vmem>>, vector<128x128xf32>
    %c1_50 = arith.constant 1 : index
    %c0_51 = arith.constant 0 : index
    %c0_52 = arith.constant 0 : index
    %57 = vector.load %arg4[%c1_50, %c0_51, %c0_52] : memref<9x128x128xf32, #tpu.memory_space<vmem>>, vector<1x128x128xf32>
    %58 = vector.shape_cast %57 : vector<1x128x128xf32> to vector<128x128xf32>
    %cst_53 = arith.constant dense<0.000000e+00> : vector<128x128xf32>
    %59 = tpu.matmul %56, %58, %cst_53 {dimension_numbers = #tpu.dot_dimension_numbers<[1], [0], [0], [1], [0, 0, 1, 1], [], []>} : vector<128x128xf32>, vector<128x128xf32>, vector<128x128xf32> -> vector<128x128xf32>
    %60 = arith.addf %55, %59 : vector<128x128xf32>
    %c2 = arith.constant 2 : index
    %c0_54 = arith.constant 0 : index
    %61 = vector.load %arg15[%c2, %c0_54] : memref<400x128xf32, #tpu.memory_space<vmem>>, vector<128x128xf32>
    %c2_55 = arith.constant 2 : index
    %c0_56 = arith.constant 0 : index
    %c0_57 = arith.constant 0 : index
    %62 = vector.load %arg4[%c2_55, %c0_56, %c0_57] : memref<9x128x128xf32, #tpu.memory_space<vmem>>, vector<1x128x128xf32>
    %63 = vector.shape_cast %62 : vector<1x128x128xf32> to vector<128x128xf32>
    %cst_58 = arith.constant dense<0.000000e+00> : vector<128x128xf32>
    %64 = tpu.matmul %61, %63, %cst_58 {dimension_numbers = #tpu.dot_dimension_numbers<[1], [0], [0], [1], [0, 0, 1, 1], [], []>} : vector<128x128xf32>, vector<128x128xf32>, vector<128x128xf32> -> vector<128x128xf32>
    %65 = arith.addf %60, %64 : vector<128x128xf32>
    %c20 = arith.constant 20 : index
    %c0_59 = arith.constant 0 : index
    %66 = vector.load %arg15[%c20, %c0_59] : memref<400x128xf32, #tpu.memory_space<vmem>>, vector<128x128xf32>
    %c3 = arith.constant 3 : index
    %c0_60 = arith.constant 0 : index
    %c0_61 = arith.constant 0 : index
    %67 = vector.load %arg4[%c3, %c0_60, %c0_61] : memref<9x128x128xf32, #tpu.memory_space<vmem>>, vector<1x128x128xf32>
    %68 = vector.shape_cast %67 : vector<1x128x128xf32> to vector<128x128xf32>
    %cst_62 = arith.constant dense<0.000000e+00> : vector<128x128xf32>
    %69 = tpu.matmul %66, %68, %cst_62 {dimension_numbers = #tpu.dot_dimension_numbers<[1], [0], [0], [1], [0, 0, 1, 1], [], []>} : vector<128x128xf32>, vector<128x128xf32>, vector<128x128xf32> -> vector<128x128xf32>
    %70 = arith.addf %65, %69 : vector<128x128xf32>
    %c21_63 = arith.constant 21 : index
    %c0_64 = arith.constant 0 : index
    %71 = vector.load %arg15[%c21_63, %c0_64] : memref<400x128xf32, #tpu.memory_space<vmem>>, vector<128x128xf32>
    %c4 = arith.constant 4 : index
    %c0_65 = arith.constant 0 : index
    %c0_66 = arith.constant 0 : index
    %72 = vector.load %arg4[%c4, %c0_65, %c0_66] : memref<9x128x128xf32, #tpu.memory_space<vmem>>, vector<1x128x128xf32>
    %73 = vector.shape_cast %72 : vector<1x128x128xf32> to vector<128x128xf32>
    %cst_67 = arith.constant dense<0.000000e+00> : vector<128x128xf32>
    %74 = tpu.matmul %71, %73, %cst_67 {dimension_numbers = #tpu.dot_dimension_numbers<[1], [0], [0], [1], [0, 0, 1, 1], [], []>} : vector<128x128xf32>, vector<128x128xf32>, vector<128x128xf32> -> vector<128x128xf32>
    %75 = arith.addf %70, %74 : vector<128x128xf32>
    %c22 = arith.constant 22 : index
    %c0_68 = arith.constant 0 : index
    %76 = vector.load %arg15[%c22, %c0_68] : memref<400x128xf32, #tpu.memory_space<vmem>>, vector<128x128xf32>
    %c5 = arith.constant 5 : index
    %c0_69 = arith.constant 0 : index
    %c0_70 = arith.constant 0 : index
    %77 = vector.load %arg4[%c5, %c0_69, %c0_70] : memref<9x128x128xf32, #tpu.memory_space<vmem>>, vector<1x128x128xf32>
    %78 = vector.shape_cast %77 : vector<1x128x128xf32> to vector<128x128xf32>
    %cst_71 = arith.constant dense<0.000000e+00> : vector<128x128xf32>
    %79 = tpu.matmul %76, %78, %cst_71 {dimension_numbers = #tpu.dot_dimension_numbers<[1], [0], [0], [1], [0, 0, 1, 1], [], []>} : vector<128x128xf32>, vector<128x128xf32>, vector<128x128xf32> -> vector<128x128xf32>
    %80 = arith.addf %75, %79 : vector<128x128xf32>
    %c40 = arith.constant 40 : index
    %c0_72 = arith.constant 0 : index
    %81 = vector.load %arg15[%c40, %c0_72] : memref<400x128xf32, #tpu.memory_space<vmem>>, vector<128x128xf32>
    %c6 = arith.constant 6 : index
    %c0_73 = arith.constant 0 : index
    %c0_74 = arith.constant 0 : index
    %82 = vector.load %arg4[%c6, %c0_73, %c0_74] : memref<9x128x128xf32, #tpu.memory_space<vmem>>, vector<1x128x128xf32>
    %83 = vector.shape_cast %82 : vector<1x128x128xf32> to vector<128x128xf32>
    %cst_75 = arith.constant dense<0.000000e+00> : vector<128x128xf32>
    %84 = tpu.matmul %81, %83, %cst_75 {dimension_numbers = #tpu.dot_dimension_numbers<[1], [0], [0], [1], [0, 0, 1, 1], [], []>} : vector<128x128xf32>, vector<128x128xf32>, vector<128x128xf32> -> vector<128x128xf32>
    %85 = arith.addf %80, %84 : vector<128x128xf32>
    %c41 = arith.constant 41 : index
    %c0_76 = arith.constant 0 : index
    %86 = vector.load %arg15[%c41, %c0_76] : memref<400x128xf32, #tpu.memory_space<vmem>>, vector<128x128xf32>
    %c7 = arith.constant 7 : index
    %c0_77 = arith.constant 0 : index
    %c0_78 = arith.constant 0 : index
    %87 = vector.load %arg4[%c7, %c0_77, %c0_78] : memref<9x128x128xf32, #tpu.memory_space<vmem>>, vector<1x128x128xf32>
    %88 = vector.shape_cast %87 : vector<1x128x128xf32> to vector<128x128xf32>
    %cst_79 = arith.constant dense<0.000000e+00> : vector<128x128xf32>
    %89 = tpu.matmul %86, %88, %cst_79 {dimension_numbers = #tpu.dot_dimension_numbers<[1], [0], [0], [1], [0, 0, 1, 1], [], []>} : vector<128x128xf32>, vector<128x128xf32>, vector<128x128xf32> -> vector<128x128xf32>
    %90 = arith.addf %85, %89 : vector<128x128xf32>
    %c42 = arith.constant 42 : index
    %c0_80 = arith.constant 0 : index
    %91 = vector.load %arg15[%c42, %c0_80] : memref<400x128xf32, #tpu.memory_space<vmem>>, vector<128x128xf32>
    %c8 = arith.constant 8 : index
    %c0_81 = arith.constant 0 : index
    %c0_82 = arith.constant 0 : index
    %92 = vector.load %arg4[%c8, %c0_81, %c0_82] : memref<9x128x128xf32, #tpu.memory_space<vmem>>, vector<1x128x128xf32>
    %93 = vector.shape_cast %92 : vector<1x128x128xf32> to vector<128x128xf32>
    %cst_83 = arith.constant dense<0.000000e+00> : vector<128x128xf32>
    %94 = tpu.matmul %91, %93, %cst_83 {dimension_numbers = #tpu.dot_dimension_numbers<[1], [0], [0], [1], [0, 0, 1, 1], [], []>} : vector<128x128xf32>, vector<128x128xf32>, vector<128x128xf32> -> vector<128x128xf32>
    %95 = arith.addf %90, %94 : vector<128x128xf32>
    %c0_84 = arith.constant 0 : index
    %c0_85 = arith.constant 0 : index
    %96 = vector.load %arg5[%c0_84, %c0_85] : memref<1x128xf32, #tpu.memory_space<vmem>>, vector<1x128xf32>
    %97 = vector.broadcast %96 : vector<1x128xf32> to vector<128x128xf32>
    %98 = arith.addf %95, %97 : vector<128x128xf32>
    %cst_86 = arith.constant 0.000000e+00 : f32
    %99 = vector.broadcast %cst_86 : f32 to vector<128x128xf32>
    %100 = arith.cmpf oge, %98, %99 : vector<128x128xf32>
    %cst_87 = arith.constant 5.000000e-02 : f32
    %101 = vector.broadcast %cst_87 : f32 to vector<128x128xf32>
    %102 = arith.mulf %101, %98 : vector<128x128xf32>
    %103 = arith.select %100, %98, %102 : vector<128x128xi1>, vector<128x128xf32>
    %c0_88 = arith.constant 0 : index
    %c0_89 = arith.constant 0 : index
    %104 = vector.load %arg10[%c0_88, %c0_89] : memref<358x1xf32, #tpu.memory_space<vmem>>, vector<128x1xf32>
    %105 = vector.broadcast %104 : vector<128x1xf32> to vector<128x128xf32>
    %106 = arith.mulf %103, %105 : vector<128x128xf32>
    %c21_90 = arith.constant 21 : index
    %c0_91 = arith.constant 0 : index
    %107 = vector.load %arg12[%c21_90, %c0_91] : memref<400x128xf32, #tpu.memory_space<vmem>>, vector<128x128xf32>
    tpu.vector_store %arg12[%c21_90, %c0_91], %106 {strides = array<i32>} : memref<400x128xf32, #tpu.memory_space<vmem>>, vector<128x128xf32>,
    %c128_92 = arith.constant 128 : index
    %c0_93 = arith.constant 0 : index
    %108 = vector.load %arg15[%c128_92, %c0_93] : memref<400x128xf32, #tpu.memory_space<vmem>>, vector<128x128xf32>
    %c0_94 = arith.constant 0 : index
    %c0_95 = arith.constant 0 : index
    %c0_96 = arith.constant 0 : index
    %109 = vector.load %arg4[%c0_94, %c0_95, %c0_96] : memref<9x128x128xf32, #tpu.memory_space<vmem>>, vector<1x128x128xf32>
    %110 = vector.shape_cast %109 : vector<1x128x128xf32> to vector<128x128xf32>
    %cst_97 = arith.constant dense<0.000000e+00> : vector<128x128xf32>
    %111 = tpu.matmul %108, %110, %cst_97 {dimension_numbers = #tpu.dot_dimension_numbers<[1], [0], [0], [1], [0, 0, 1, 1], [], []>} : vector<128x128xf32>, vector<128x128xf32>, vector<128x128xf32> -> vector<128x128xf32>
    %c129 = arith.constant 129 : index
    %c0_98 = arith.constant 0 : index
    %112 = vector.load %arg15[%c129, %c0_98] : memref<400x128xf32, #tpu.memory_space<vmem>>, vector<128x128xf32>
    %c1_99 = arith.constant 1 : index
    %c0_100 = arith.constant 0 : index
    %c0_101 = arith.constant 0 : index
    %113 = vector.load %arg4[%c1_99, %c0_100, %c0_101] : memref<9x128x128xf32, #tpu.memory_space<vmem>>, vector<1x128x128xf32>
    %114 = vector.shape_cast %113 : vector<1x128x128xf32> to vector<128x128xf32>
    %cst_102 = arith.constant dense<0.000000e+00> : vector<128x128xf32>
    %115 = tpu.matmul %112, %114, %cst_102 {dimension_numbers = #tpu.dot_dimension_numbers<[1], [0], [0], [1], [0, 0, 1, 1], [], []>} : vector<128x128xf32>, vector<128x128xf32>, vector<128x128xf32> -> vector<128x128xf32>
    %116 = arith.addf %111, %115 : vector<128x128xf32>
    %c130 = arith.constant 130 : index
    %c0_103 = arith.constant 0 : index
    %117 = vector.load %arg15[%c130, %c0_103] : memref<400x128xf32, #tpu.memory_space<vmem>>, vector<128x128xf32>
    %c2_104 = arith.constant 2 : index
    %c0_105 = arith.constant 0 : index
    %c0_106 = arith.constant 0 : index
    %118 = vector.load %arg4[%c2_104, %c0_105, %c0_106] : memref<9x128x128xf32, #tpu.memory_space<vmem>>, vector<1x128x128xf32>
    %119 = vector.shape_cast %118 : vector<1x128x128xf32> to vector<128x128xf32>
    %cst_107 = arith.constant dense<0.000000e+00> : vector<128x128xf32>
    %120 = tpu.matmul %117, %119, %cst_107 {dimension_numbers = #tpu.dot_dimension_numbers<[1], [0], [0], [1], [0, 0, 1, 1], [], []>} : vector<128x128xf32>, vector<128x128xf32>, vector<128x128xf32> -> vector<128x128xf32>
    %121 = arith.addf %116, %120 : vector<128x128xf32>
    %c148 = arith.constant 148 : index
    %c0_108 = arith.constant 0 : index
    %122 = vector.load %arg15[%c148, %c0_108] : memref<400x128xf32, #tpu.memory_space<vmem>>, vector<128x128xf32>
    %c3_109 = arith.constant 3 : index
    %c0_110 = arith.constant 0 : index
    %c0_111 = arith.constant 0 : index
    %123 = vector.load %arg4[%c3_109, %c0_110, %c0_111] : memref<9x128x128xf32, #tpu.memory_space<vmem>>, vector<1x128x128xf32>
    %124 = vector.shape_cast %123 : vector<1x128x128xf32> to vector<128x128xf32>
    %cst_112 = arith.constant dense<0.000000e+00> : vector<128x128xf32>
    %125 = tpu.matmul %122, %124, %cst_112 {dimension_numbers = #tpu.dot_dimension_numbers<[1], [0], [0], [1], [0, 0, 1, 1], [], []>} : vector<128x128xf32>, vector<128x128xf32>, vector<128x128xf32> -> vector<128x128xf32>
    %126 = arith.addf %121, %125 : vector<128x128xf32>
    %c149_113 = arith.constant 149 : index
    %c0_114 = arith.constant 0 : index
    %127 = vector.load %arg15[%c149_113, %c0_114] : memref<400x128xf32, #tpu.memory_space<vmem>>, vector<128x128xf32>
    %c4_115 = arith.constant 4 : index
    %c0_116 = arith.constant 0 : index
    %c0_117 = arith.constant 0 : index
    %128 = vector.load %arg4[%c4_115, %c0_116, %c0_117] : memref<9x128x128xf32, #tpu.memory_space<vmem>>, vector<1x128x128xf32>
    %129 = vector.shape_cast %128 : vector<1x128x128xf32> to vector<128x128xf32>
    %cst_118 = arith.constant dense<0.000000e+00> : vector<128x128xf32>
    %130 = tpu.matmul %127, %129, %cst_118 {dimension_numbers = #tpu.dot_dimension_numbers<[1], [0], [0], [1], [0, 0, 1, 1], [], []>} : vector<128x128xf32>, vector<128x128xf32>, vector<128x128xf32> -> vector<128x128xf32>
    %131 = arith.addf %126, %130 : vector<128x128xf32>
    %c150 = arith.constant 150 : index
    %c0_119 = arith.constant 0 : index
    %132 = vector.load %arg15[%c150, %c0_119] : memref<400x128xf32, #tpu.memory_space<vmem>>, vector<128x128xf32>
    %c5_120 = arith.constant 5 : index
    %c0_121 = arith.constant 0 : index
    %c0_122 = arith.constant 0 : index
    %133 = vector.load %arg4[%c5_120, %c0_121, %c0_122] : memref<9x128x128xf32, #tpu.memory_space<vmem>>, vector<1x128x128xf32>
    %134 = vector.shape_cast %133 : vector<1x128x128xf32> to vector<128x128xf32>
    %cst_123 = arith.constant dense<0.000000e+00> : vector<128x128xf32>
    %135 = tpu.matmul %132, %134, %cst_123 {dimension_numbers = #tpu.dot_dimension_numbers<[1], [0], [0], [1], [0, 0, 1, 1], [], []>} : vector<128x128xf32>, vector<128x128xf32>, vector<128x128xf32> -> vector<128x128xf32>
    %136 = arith.addf %131, %135 : vector<128x128xf32>
    %c168 = arith.constant 168 : index
    %c0_124 = arith.constant 0 : index
    %137 = vector.load %arg15[%c168, %c0_124] : memref<400x128xf32, #tpu.memory_space<vmem>>, vector<128x128xf32>
    %c6_125 = arith.constant 6 : index
    %c0_126 = arith.constant 0 : index
    %c0_127 = arith.constant 0 : index
    %138 = vector.load %arg4[%c6_125, %c0_126, %c0_127] : memref<9x128x128xf32, #tpu.memory_space<vmem>>, vector<1x128x128xf32>
    %139 = vector.shape_cast %138 : vector<1x128x128xf32> to vector<128x128xf32>
    %cst_128 = arith.constant dense<0.000000e+00> : vector<128x128xf32>
    %140 = tpu.matmul %137, %139, %cst_128 {dimension_numbers = #tpu.dot_dimension_numbers<[1], [0], [0], [1], [0, 0, 1, 1], [], []>} : vector<128x128xf32>, vector<128x128xf32>, vector<128x128xf32> -> vector<128x128xf32>
    %141 = arith.addf %136, %140 : vector<128x128xf32>
    %c169 = arith.constant 169 : index
    %c0_129 = arith.constant 0 : index
    %142 = vector.load %arg15[%c169, %c0_129] : memref<400x128xf32, #tpu.memory_space<vmem>>, vector<128x128xf32>
    %c7_130 = arith.constant 7 : index
    %c0_131 = arith.constant 0 : index
    %c0_132 = arith.constant 0 : index
    %143 = vector.load %arg4[%c7_130, %c0_131, %c0_132] : memref<9x128x128xf32, #tpu.memory_space<vmem>>, vector<1x128x128xf32>
    %144 = vector.shape_cast %143 : vector<1x128x128xf32> to vector<128x128xf32>
    %cst_133 = arith.constant dense<0.000000e+00> : vector<128x128xf32>
    %145 = tpu.matmul %142, %144, %cst_133 {dimension_numbers = #tpu.dot_dimension_numbers<[1], [0], [0], [1], [0, 0, 1, 1], [], []>} : vector<128x128xf32>, vector<128x128xf32>, vector<128x128xf32> -> vector<128x128xf32>
    %146 = arith.addf %141, %145 : vector<128x128xf32>
    %c170 = arith.constant 170 : index
    %c0_134 = arith.constant 0 : index
    %147 = vector.load %arg15[%c170, %c0_134] : memref<400x128xf32, #tpu.memory_space<vmem>>, vector<128x128xf32>
    %c8_135 = arith.constant 8 : index
    %c0_136 = arith.constant 0 : index
    %c0_137 = arith.constant 0 : index
    %148 = vector.load %arg4[%c8_135, %c0_136, %c0_137] : memref<9x128x128xf32, #tpu.memory_space<vmem>>, vector<1x128x128xf32>
    %149 = vector.shape_cast %148 : vector<1x128x128xf32> to vector<128x128xf32>
    %cst_138 = arith.constant dense<0.000000e+00> : vector<128x128xf32>
    %150 = tpu.matmul %147, %149, %cst_138 {dimension_numbers = #tpu.dot_dimension_numbers<[1], [0], [0], [1], [0, 0, 1, 1], [], []>} : vector<128x128xf32>, vector<128x128xf32>, vector<128x128xf32> -> vector<128x128xf32>
    %151 = arith.addf %146, %150 : vector<128x128xf32>
    %c0_139 = arith.constant 0 : index
    %c0_140 = arith.constant 0 : index
    %152 = vector.load %arg5[%c0_139, %c0_140] : memref<1x128xf32, #tpu.memory_space<vmem>>, vector<1x128xf32>
    %153 = vector.broadcast %152 : vector<1x128xf32> to vector<128x128xf32>
    %154 = arith.addf %151, %153 : vector<128x128xf32>
    %cst_141 = arith.constant 0.000000e+00 : f32
    %155 = vector.broadcast %cst_141 : f32 to vector<128x128xf32>
    %156 = arith.cmpf oge, %154, %155 : vector<128x128xf32>
    %cst_142 = arith.constant 5.000000e-02 : f32
    %157 = vector.broadcast %cst_142 : f32 to vector<128x128xf32>
    %158 = arith.mulf %157, %154 : vector<128x128xf32>
    %159 = arith.select %156, %154, %158 : vector<128x128xi1>, vector<128x128xf32>
    %c128_143 = arith.constant 128 : index
    %c0_144 = arith.constant 0 : index
    %160 = vector.load %arg10[%c128_143, %c0_144] : memref<358x1xf32, #tpu.memory_space<vmem>>, vector<128x1xf32>
    %161 = vector.broadcast %160 : vector<128x1xf32> to vector<128x128xf32>
    %162 = arith.mulf %159, %161 : vector<128x128xf32>
    %c149_145 = arith.constant 149 : index
    %c0_146 = arith.constant 0 : index
    %163 = vector.load %arg12[%c149_145, %c0_146] : memref<400x128xf32, #tpu.memory_space<vmem>>, vector<128x128xf32>
    tpu.vector_store %arg12[%c149_145, %c0_146], %162 {strides = array<i32>} : memref<400x128xf32, #tpu.memory_space<vmem>>, vector<128x128xf32>,
    %c256_147 = arith.constant 256 : index
    %c0_148 = arith.constant 0 : index
    %164 = vector.load %arg15[%c256_147, %c0_148] : memref<400x128xf32, #tpu.memory_space<vmem>>, vector<102x128xf32>
    %c0_149 = arith.constant 0 : index
    %c0_150 = arith.constant 0 : index
    %c0_151 = arith.constant 0 : index
    %165 = vector.load %arg4[%c0_149, %c0_150, %c0_151] : memref<9x128x128xf32, #tpu.memory_space<vmem>>, vector<1x128x128xf32>
    %166 = vector.shape_cast %165 : vector<1x128x128xf32> to vector<128x128xf32>
    %cst_152 = arith.constant dense<0.000000e+00> : vector<102x128xf32>
    %167 = tpu.matmul %164, %166, %cst_152 {dimension_numbers = #tpu.dot_dimension_numbers<[1], [0], [0], [1], [0, 0, 1, 1], [], []>} : vector<102x128xf32>, vector<128x128xf32>, vector<102x128xf32> -> vector<102x128xf32>
    %c257 = arith.constant 257 : index
    %c0_153 = arith.constant 0 : index
    %168 = vector.load %arg15[%c257, %c0_153] : memref<400x128xf32, #tpu.memory_space<vmem>>, vector<102x128xf32>
    %c1_154 = arith.constant 1 : index
    %c0_155 = arith.constant 0 : index
    %c0_156 = arith.constant 0 : index
    %169 = vector.load %arg4[%c1_154, %c0_155, %c0_156] : memref<9x128x128xf32, #tpu.memory_space<vmem>>, vector<1x128x128xf32>
    %170 = vector.shape_cast %169 : vector<1x128x128xf32> to vector<128x128xf32>
    %cst_157 = arith.constant dense<0.000000e+00> : vector<102x128xf32>
    %171 = tpu.matmul %168, %170, %cst_157 {dimension_numbers = #tpu.dot_dimension_numbers<[1], [0], [0], [1], [0, 0, 1, 1], [], []>} : vector<102x128xf32>, vector<128x128xf32>, vector<102x128xf32> -> vector<102x128xf32>
    %172 = arith.addf %167, %171 : vector<102x128xf32>
    %c258 = arith.constant 258 : index
    %c0_158 = arith.constant 0 : index
    %173 = vector.load %arg15[%c258, %c0_158] : memref<400x128xf32, #tpu.memory_space<vmem>>, vector<102x128xf32>
    %c2_159 = arith.constant 2 : index
    %c0_160 = arith.constant 0 : index
    %c0_161 = arith.constant 0 : index
    %174 = vector.load %arg4[%c2_159, %c0_160, %c0_161] : memref<9x128x128xf32, #tpu.memory_space<vmem>>, vector<1x128x128xf32>
    %175 = vector.shape_cast %174 : vector<1x128x128xf32> to vector<128x128xf32>
    %cst_162 = arith.constant dense<0.000000e+00> : vector<102x128xf32>
    %176 = tpu.matmul %173, %175, %cst_162 {dimension_numbers = #tpu.dot_dimension_numbers<[1], [0], [0], [1], [0, 0, 1, 1], [], []>} : vector<102x128xf32>, vector<128x128xf32>, vector<102x128xf32> -> vector<102x128xf32>
    %177 = arith.addf %172, %176 : vector<102x128xf32>
    %c276 = arith.constant 276 : index
    %c0_163 = arith.constant 0 : index
    %178 = vector.load %arg15[%c276, %c0_163] : memref<400x128xf32, #tpu.memory_space<vmem>>, vector<102x128xf32>
    %c3_164 = arith.constant 3 : index
    %c0_165 = arith.constant 0 : index
    %c0_166 = arith.constant 0 : index
    %179 = vector.load %arg4[%c3_164, %c0_165, %c0_166] : memref<9x128x128xf32, #tpu.memory_space<vmem>>, vector<1x128x128xf32>
    %180 = vector.shape_cast %179 : vector<1x128x128xf32> to vector<128x128xf32>
    %cst_167 = arith.constant dense<0.000000e+00> : vector<102x128xf32>
    %181 = tpu.matmul %178, %180, %cst_167 {dimension_numbers = #tpu.dot_dimension_numbers<[1], [0], [0], [1], [0, 0, 1, 1], [], []>} : vector<102x128xf32>, vector<128x128xf32>, vector<102x128xf32> -> vector<102x128xf32>
    %182 = arith.addf %177, %181 : vector<102x128xf32>
    %c277_168 = arith.constant 277 : index
    %c0_169 = arith.constant 0 : index
    %183 = vector.load %arg15[%c277_168, %c0_169] : memref<400x128xf32, #tpu.memory_space<vmem>>, vector<102x128xf32>
    %c4_170 = arith.constant 4 : index
    %c0_171 = arith.constant 0 : index
    %c0_172 = arith.constant 0 : index
    %184 = vector.load %arg4[%c4_170, %c0_171, %c0_172] : memref<9x128x128xf32, #tpu.memory_space<vmem>>, vector<1x128x128xf32>
    %185 = vector.shape_cast %184 : vector<1x128x128xf32> to vector<128x128xf32>
    %cst_173 = arith.constant dense<0.000000e+00> : vector<102x128xf32>
    %186 = tpu.matmul %183, %185, %cst_173 {dimension_numbers = #tpu.dot_dimension_numbers<[1], [0], [0], [1], [0, 0, 1, 1], [], []>} : vector<102x128xf32>, vector<128x128xf32>, vector<102x128xf32> -> vector<102x128xf32>
    %187 = arith.addf %182, %186 : vector<102x128xf32>
    %c278 = arith.constant 278 : index
    %c0_174 = arith.constant 0 : index
    %188 = vector.load %arg15[%c278, %c0_174] : memref<400x128xf32, #tpu.memory_space<vmem>>, vector<102x128xf32>
    %c5_175 = arith.constant 5 : index
    %c0_176 = arith.constant 0 : index
    %c0_177 = arith.constant 0 : index
    %189 = vector.load %arg4[%c5_175, %c0_176, %c0_177] : memref<9x128x128xf32, #tpu.memory_space<vmem>>, vector<1x128x128xf32>
    %190 = vector.shape_cast %189 : vector<1x128x128xf32> to vector<128x128xf32>
    %cst_178 = arith.constant dense<0.000000e+00> : vector<102x128xf32>
    %191 = tpu.matmul %188, %190, %cst_178 {dimension_numbers = #tpu.dot_dimension_numbers<[1], [0], [0], [1], [0, 0, 1, 1], [], []>} : vector<102x128xf32>, vector<128x128xf32>, vector<102x128xf32> -> vector<102x128xf32>
    %192 = arith.addf %187, %191 : vector<102x128xf32>
    %c296 = arith.constant 296 : index
    %c0_179 = arith.constant 0 : index
    %193 = vector.load %arg15[%c296, %c0_179] : memref<400x128xf32, #tpu.memory_space<vmem>>, vector<102x128xf32>
    %c6_180 = arith.constant 6 : index
    %c0_181 = arith.constant 0 : index
    %c0_182 = arith.constant 0 : index
    %194 = vector.load %arg4[%c6_180, %c0_181, %c0_182] : memref<9x128x128xf32, #tpu.memory_space<vmem>>, vector<1x128x128xf32>
    %195 = vector.shape_cast %194 : vector<1x128x128xf32> to vector<128x128xf32>
    %cst_183 = arith.constant dense<0.000000e+00> : vector<102x128xf32>
    %196 = tpu.matmul %193, %195, %cst_183 {dimension_numbers = #tpu.dot_dimension_numbers<[1], [0], [0], [1], [0, 0, 1, 1], [], []>} : vector<102x128xf32>, vector<128x128xf32>, vector<102x128xf32> -> vector<102x128xf32>
    %197 = arith.addf %192, %196 : vector<102x128xf32>
    %c297 = arith.constant 297 : index
    %c0_184 = arith.constant 0 : index
    %198 = vector.load %arg15[%c297, %c0_184] : memref<400x128xf32, #tpu.memory_space<vmem>>, vector<102x128xf32>
    %c7_185 = arith.constant 7 : index
    %c0_186 = arith.constant 0 : index
    %c0_187 = arith.constant 0 : index
    %199 = vector.load %arg4[%c7_185, %c0_186, %c0_187] : memref<9x128x128xf32, #tpu.memory_space<vmem>>, vector<1x128x128xf32>
    %200 = vector.shape_cast %199 : vector<1x128x128xf32> to vector<128x128xf32>
    %cst_188 = arith.constant dense<0.000000e+00> : vector<102x128xf32>
    %201 = tpu.matmul %198, %200, %cst_188 {dimension_numbers = #tpu.dot_dimension_numbers<[1], [0], [0], [1], [0, 0, 1, 1], [], []>} : vector<102x128xf32>, vector<128x128xf32>, vector<102x128xf32> -> vector<102x128xf32>
    %202 = arith.addf %197, %201 : vector<102x128xf32>
    %c298 = arith.constant 298 : index
    %c0_189 = arith.constant 0 : index
    %203 = vector.load %arg15[%c298, %c0_189] : memref<400x128xf32, #tpu.memory_space<vmem>>, vector<102x128xf32>
    %c8_190 = arith.constant 8 : index
    %c0_191 = arith.constant 0 : index
    %c0_192 = arith.constant 0 : index
    %204 = vector.load %arg4[%c8_190, %c0_191, %c0_192] : memref<9x128x128xf32, #tpu.memory_space<vmem>>, vector<1x128x128xf32>
    %205 = vector.shape_cast %204 : vector<1x128x128xf32> to vector<128x128xf32>
    %cst_193 = arith.constant dense<0.000000e+00> : vector<102x128xf32>
    %206 = tpu.matmul %203, %205, %cst_193 {dimension_numbers = #tpu.dot_dimension_numbers<[1], [0], [0], [1], [0, 0, 1, 1], [], []>} : vector<102x128xf32>, vector<128x128xf32>, vector<102x128xf32> -> vector<102x128xf32>
    %207 = arith.addf %202, %206 : vector<102x128xf32>
    %c0_194 = arith.constant 0 : index
    %c0_195 = arith.constant 0 : index
    %208 = vector.load %arg5[%c0_194, %c0_195] : memref<1x128xf32, #tpu.memory_space<vmem>>, vector<1x128xf32>
    %209 = vector.broadcast %208 : vector<1x128xf32> to vector<102x128xf32>
    %210 = arith.addf %207, %209 : vector<102x128xf32>
    %cst_196 = arith.constant 0.000000e+00 : f32
    %211 = vector.broadcast %cst_196 : f32 to vector<102x128xf32>
    %212 = arith.cmpf oge, %210, %211 : vector<102x128xf32>
    %cst_197 = arith.constant 5.000000e-02 : f32
    %213 = vector.broadcast %cst_197 : f32 to vector<102x128xf32>
    %214 = arith.mulf %213, %210 : vector<102x128xf32>
    %215 = arith.select %212, %210, %214 : vector<102x128xi1>, vector<102x128xf32>
    %c256_198 = arith.constant 256 : index
    %c0_199 = arith.constant 0 : index
    %216 = vector.load %arg10[%c256_198, %c0_199] : memref<358x1xf32, #tpu.memory_space<vmem>>, vector<102x1xf32>
    %217 = vector.broadcast %216 : vector<102x1xf32> to vector<102x128xf32>
    %218 = arith.mulf %215, %217 : vector<102x128xf32>
    %c277_200 = arith.constant 277 : index
    %c0_201 = arith.constant 0 : index
    %219 = vector.load %arg12[%c277_200, %c0_201] : memref<400x128xf32, #tpu.memory_space<vmem>>, vector<102x128xf32>
    tpu.vector_store %arg12[%c277_200, %c0_201], %218 {strides = array<i32>} : memref<400x128xf32, #tpu.memory_space<vmem>>, vector<102x128xf32>,
    %c0_202 = arith.constant 0 : index
    %c0_203 = arith.constant 0 : index
    %220 = vector.load %arg12[%c0_202, %c0_203] : memref<400x128xf32, #tpu.memory_space<vmem>>, vector<128x128xf32>
    %c0_204 = arith.constant 0 : index
    %c0_205 = arith.constant 0 : index
    %c0_206 = arith.constant 0 : index
    %221 = vector.load %arg6[%c0_204, %c0_205, %c0_206] : memref<9x128x128xf32, #tpu.memory_space<vmem>>, vector<1x128x128xf32>
    %222 = vector.shape_cast %221 : vector<1x128x128xf32> to vector<128x128xf32>
    %cst_207 = arith.constant dense<0.000000e+00> : vector<128x128xf32>
    %223 = tpu.matmul %220, %222, %cst_207 {dimension_numbers = #tpu.dot_dimension_numbers<[1], [0], [0], [1], [0, 0, 1, 1], [], []>} : vector<128x128xf32>, vector<128x128xf32>, vector<128x128xf32> -> vector<128x128xf32>
    %c1_208 = arith.constant 1 : index
    %c0_209 = arith.constant 0 : index
    %224 = vector.load %arg12[%c1_208, %c0_209] : memref<400x128xf32, #tpu.memory_space<vmem>>, vector<128x128xf32>
    %c1_210 = arith.constant 1 : index
    %c0_211 = arith.constant 0 : index
    %c0_212 = arith.constant 0 : index
    %225 = vector.load %arg6[%c1_210, %c0_211, %c0_212] : memref<9x128x128xf32, #tpu.memory_space<vmem>>, vector<1x128x128xf32>
    %226 = vector.shape_cast %225 : vector<1x128x128xf32> to vector<128x128xf32>
    %cst_213 = arith.constant dense<0.000000e+00> : vector<128x128xf32>
    %227 = tpu.matmul %224, %226, %cst_213 {dimension_numbers = #tpu.dot_dimension_numbers<[1], [0], [0], [1], [0, 0, 1, 1], [], []>} : vector<128x128xf32>, vector<128x128xf32>, vector<128x128xf32> -> vector<128x128xf32>
    %228 = arith.addf %223, %227 : vector<128x128xf32>
    %c2_214 = arith.constant 2 : index
    %c0_215 = arith.constant 0 : index
    %229 = vector.load %arg12[%c2_214, %c0_215] : memref<400x128xf32, #tpu.memory_space<vmem>>, vector<128x128xf32>
    %c2_216 = arith.constant 2 : index
    %c0_217 = arith.constant 0 : index
    %c0_218 = arith.constant 0 : index
    %230 = vector.load %arg6[%c2_216, %c0_217, %c0_218] : memref<9x128x128xf32, #tpu.memory_space<vmem>>, vector<1x128x128xf32>
    %231 = vector.shape_cast %230 : vector<1x128x128xf32> to vector<128x128xf32>
    %cst_219 = arith.constant dense<0.000000e+00> : vector<128x128xf32>
    %232 = tpu.matmul %229, %231, %cst_219 {dimension_numbers = #tpu.dot_dimension_numbers<[1], [0], [0], [1], [0, 0, 1, 1], [], []>} : vector<128x128xf32>, vector<128x128xf32>, vector<128x128xf32> -> vector<128x128xf32>
    %233 = arith.addf %228, %232 : vector<128x128xf32>
    %c20_220 = arith.constant 20 : index
    %c0_221 = arith.constant 0 : index
    %234 = vector.load %arg12[%c20_220, %c0_221] : memref<400x128xf32, #tpu.memory_space<vmem>>, vector<128x128xf32>
    %c3_222 = arith.constant 3 : index
    %c0_223 = arith.constant 0 : index
    %c0_224 = arith.constant 0 : index
    %235 = vector.load %arg6[%c3_222, %c0_223, %c0_224] : memref<9x128x128xf32, #tpu.memory_space<vmem>>, vector<1x128x128xf32>
    %236 = vector.shape_cast %235 : vector<1x128x128xf32> to vector<128x128xf32>
    %cst_225 = arith.constant dense<0.000000e+00> : vector<128x128xf32>
    %237 = tpu.matmul %234, %236, %cst_225 {dimension_numbers = #tpu.dot_dimension_numbers<[1], [0], [0], [1], [0, 0, 1, 1], [], []>} : vector<128x128xf32>, vector<128x128xf32>, vector<128x128xf32> -> vector<128x128xf32>
    %238 = arith.addf %233, %237 : vector<128x128xf32>
    %c21_226 = arith.constant 21 : index
    %c0_227 = arith.constant 0 : index
    %239 = vector.load %arg12[%c21_226, %c0_227] : memref<400x128xf32, #tpu.memory_space<vmem>>, vector<128x128xf32>
    %c4_228 = arith.constant 4 : index
    %c0_229 = arith.constant 0 : index
    %c0_230 = arith.constant 0 : index
    %240 = vector.load %arg6[%c4_228, %c0_229, %c0_230] : memref<9x128x128xf32, #tpu.memory_space<vmem>>, vector<1x128x128xf32>
    %241 = vector.shape_cast %240 : vector<1x128x128xf32> to vector<128x128xf32>
    %cst_231 = arith.constant dense<0.000000e+00> : vector<128x128xf32>
    %242 = tpu.matmul %239, %241, %cst_231 {dimension_numbers = #tpu.dot_dimension_numbers<[1], [0], [0], [1], [0, 0, 1, 1], [], []>} : vector<128x128xf32>, vector<128x128xf32>, vector<128x128xf32> -> vector<128x128xf32>
    %243 = arith.addf %238, %242 : vector<128x128xf32>
    %c22_232 = arith.constant 22 : index
    %c0_233 = arith.constant 0 : index
    %244 = vector.load %arg12[%c22_232, %c0_233] : memref<400x128xf32, #tpu.memory_space<vmem>>, vector<128x128xf32>
    %c5_234 = arith.constant 5 : index
    %c0_235 = arith.constant 0 : index
    %c0_236 = arith.constant 0 : index
    %245 = vector.load %arg6[%c5_234, %c0_235, %c0_236] : memref<9x128x128xf32, #tpu.memory_space<vmem>>, vector<1x128x128xf32>
    %246 = vector.shape_cast %245 : vector<1x128x128xf32> to vector<128x128xf32>
    %cst_237 = arith.constant dense<0.000000e+00> : vector<128x128xf32>
    %247 = tpu.matmul %244, %246, %cst_237 {dimension_numbers = #tpu.dot_dimension_numbers<[1], [0], [0], [1], [0, 0, 1, 1], [], []>} : vector<128x128xf32>, vector<128x128xf32>, vector<128x128xf32> -> vector<128x128xf32>
    %248 = arith.addf %243, %247 : vector<128x128xf32>
    %c40_238 = arith.constant 40 : index
    %c0_239 = arith.constant 0 : index
    %249 = vector.load %arg12[%c40_238, %c0_239] : memref<400x128xf32, #tpu.memory_space<vmem>>, vector<128x128xf32>
    %c6_240 = arith.constant 6 : index
    %c0_241 = arith.constant 0 : index
    %c0_242 = arith.constant 0 : index
    %250 = vector.load %arg6[%c6_240, %c0_241, %c0_242] : memref<9x128x128xf32, #tpu.memory_space<vmem>>, vector<1x128x128xf32>
    %251 = vector.shape_cast %250 : vector<1x128x128xf32> to vector<128x128xf32>
    %cst_243 = arith.constant dense<0.000000e+00> : vector<128x128xf32>
    %252 = tpu.matmul %249, %251, %cst_243 {dimension_numbers = #tpu.dot_dimension_numbers<[1], [0], [0], [1], [0, 0, 1, 1], [], []>} : vector<128x128xf32>, vector<128x128xf32>, vector<128x128xf32> -> vector<128x128xf32>
    %253 = arith.addf %248, %252 : vector<128x128xf32>
    %c41_244 = arith.constant 41 : index
    %c0_245 = arith.constant 0 : index
    %254 = vector.load %arg12[%c41_244, %c0_245] : memref<400x128xf32, #tpu.memory_space<vmem>>, vector<128x128xf32>
    %c7_246 = arith.constant 7 : index
    %c0_247 = arith.constant 0 : index
    %c0_248 = arith.constant 0 : index
    %255 = vector.load %arg6[%c7_246, %c0_247, %c0_248] : memref<9x128x128xf32, #tpu.memory_space<vmem>>, vector<1x128x128xf32>
    %256 = vector.shape_cast %255 : vector<1x128x128xf32> to vector<128x128xf32>
    %cst_249 = arith.constant dense<0.000000e+00> : vector<128x128xf32>
    %257 = tpu.matmul %254, %256, %cst_249 {dimension_numbers = #tpu.dot_dimension_numbers<[1], [0], [0], [1], [0, 0, 1, 1], [], []>} : vector<128x128xf32>, vector<128x128xf32>, vector<128x128xf32> -> vector<128x128xf32>
    %258 = arith.addf %253, %257 : vector<128x128xf32>
    %c42_250 = arith.constant 42 : index
    %c0_251 = arith.constant 0 : index
    %259 = vector.load %arg12[%c42_250, %c0_251] : memref<400x128xf32, #tpu.memory_space<vmem>>, vector<128x128xf32>
    %c8_252 = arith.constant 8 : index
    %c0_253 = arith.constant 0 : index
    %c0_254 = arith.constant 0 : index
    %260 = vector.load %arg6[%c8_252, %c0_253, %c0_254] : memref<9x128x128xf32, #tpu.memory_space<vmem>>, vector<1x128x128xf32>
    %261 = vector.shape_cast %260 : vector<1x128x128xf32> to vector<128x128xf32>
    %cst_255 = arith.constant dense<0.000000e+00> : vector<128x128xf32>
    %262 = tpu.matmul %259, %261, %cst_255 {dimension_numbers = #tpu.dot_dimension_numbers<[1], [0], [0], [1], [0, 0, 1, 1], [], []>} : vector<128x128xf32>, vector<128x128xf32>, vector<128x128xf32> -> vector<128x128xf32>
    %263 = arith.addf %258, %262 : vector<128x128xf32>
    %c0_256 = arith.constant 0 : index
    %c0_257 = arith.constant 0 : index
    %264 = vector.load %arg7[%c0_256, %c0_257] : memref<1x128xf32, #tpu.memory_space<vmem>>, vector<1x128xf32>
    %265 = vector.broadcast %264 : vector<1x128xf32> to vector<128x128xf32>
    %266 = arith.addf %263, %265 : vector<128x128xf32>
    %cst_258 = arith.constant 0.000000e+00 : f32
    %267 = vector.broadcast %cst_258 : f32 to vector<128x128xf32>
    %268 = arith.cmpf oge, %266, %267 : vector<128x128xf32>
    %cst_259 = arith.constant 5.000000e-02 : f32
    %269 = vector.broadcast %cst_259 : f32 to vector<128x128xf32>
    %270 = arith.mulf %269, %266 : vector<128x128xf32>
    %271 = arith.select %268, %266, %270 : vector<128x128xi1>, vector<128x128xf32>
    %c0_260 = arith.constant 0 : index
    %c0_261 = arith.constant 0 : index
    %272 = vector.load %arg10[%c0_260, %c0_261] : memref<358x1xf32, #tpu.memory_space<vmem>>, vector<128x1xf32>
    %273 = vector.broadcast %272 : vector<128x1xf32> to vector<128x128xf32>
    %274 = arith.mulf %271, %273 : vector<128x128xf32>
    %c21_262 = arith.constant 21 : index
    %c0_263 = arith.constant 0 : index
    %275 = vector.load %arg16[%c21_262, %c0_263] : memref<400x128xf32, #tpu.memory_space<vmem>>, vector<128x128xf32>
    tpu.vector_store %arg16[%c21_262, %c0_263], %274 {strides = array<i32>} : memref<400x128xf32, #tpu.memory_space<vmem>>, vector<128x128xf32>,
    %c128_264 = arith.constant 128 : index
    %c0_265 = arith.constant 0 : index
    %276 = vector.load %arg12[%c128_264, %c0_265] : memref<400x128xf32, #tpu.memory_space<vmem>>, vector<128x128xf32>
    %c0_266 = arith.constant 0 : index
    %c0_267 = arith.constant 0 : index
    %c0_268 = arith.constant 0 : index
    %277 = vector.load %arg6[%c0_266, %c0_267, %c0_268] : memref<9x128x128xf32, #tpu.memory_space<vmem>>, vector<1x128x128xf32>
    %278 = vector.shape_cast %277 : vector<1x128x128xf32> to vector<128x128xf32>
    %cst_269 = arith.constant dense<0.000000e+00> : vector<128x128xf32>
    %279 = tpu.matmul %276, %278, %cst_269 {dimension_numbers = #tpu.dot_dimension_numbers<[1], [0], [0], [1], [0, 0, 1, 1], [], []>} : vector<128x128xf32>, vector<128x128xf32>, vector<128x128xf32> -> vector<128x128xf32>
    %c129_270 = arith.constant 129 : index
    %c0_271 = arith.constant 0 : index
    %280 = vector.load %arg12[%c129_270, %c0_271] : memref<400x128xf32, #tpu.memory_space<vmem>>, vector<128x128xf32>
    %c1_272 = arith.constant 1 : index
    %c0_273 = arith.constant 0 : index
    %c0_274 = arith.constant 0 : index
    %281 = vector.load %arg6[%c1_272, %c0_273, %c0_274] : memref<9x128x128xf32, #tpu.memory_space<vmem>>, vector<1x128x128xf32>
    %282 = vector.shape_cast %281 : vector<1x128x128xf32> to vector<128x128xf32>
    %cst_275 = arith.constant dense<0.000000e+00> : vector<128x128xf32>
    %283 = tpu.matmul %280, %282, %cst_275 {dimension_numbers = #tpu.dot_dimension_numbers<[1], [0], [0], [1], [0, 0, 1, 1], [], []>} : vector<128x128xf32>, vector<128x128xf32>, vector<128x128xf32> -> vector<128x128xf32>
    %284 = arith.addf %279, %283 : vector<128x128xf32>
    %c130_276 = arith.constant 130 : index
    %c0_277 = arith.constant 0 : index
    %285 = vector.load %arg12[%c130_276, %c0_277] : memref<400x128xf32, #tpu.memory_space<vmem>>, vector<128x128xf32>
    %c2_278 = arith.constant 2 : index
    %c0_279 = arith.constant 0 : index
    %c0_280 = arith.constant 0 : index
    %286 = vector.load %arg6[%c2_278, %c0_279, %c0_280] : memref<9x128x128xf32, #tpu.memory_space<vmem>>, vector<1x128x128xf32>
    %287 = vector.shape_cast %286 : vector<1x128x128xf32> to vector<128x128xf32>
    %cst_281 = arith.constant dense<0.000000e+00> : vector<128x128xf32>
    %288 = tpu.matmul %285, %287, %cst_281 {dimension_numbers = #tpu.dot_dimension_numbers<[1], [0], [0], [1], [0, 0, 1, 1], [], []>} : vector<128x128xf32>, vector<128x128xf32>, vector<128x128xf32> -> vector<128x128xf32>
    %289 = arith.addf %284, %288 : vector<128x128xf32>
    %c148_282 = arith.constant 148 : index
    %c0_283 = arith.constant 0 : index
    %290 = vector.load %arg12[%c148_282, %c0_283] : memref<400x128xf32, #tpu.memory_space<vmem>>, vector<128x128xf32>
    %c3_284 = arith.constant 3 : index
    %c0_285 = arith.constant 0 : index
    %c0_286 = arith.constant 0 : index
    %291 = vector.load %arg6[%c3_284, %c0_285, %c0_286] : memref<9x128x128xf32, #tpu.memory_space<vmem>>, vector<1x128x128xf32>
    %292 = vector.shape_cast %291 : vector<1x128x128xf32> to vector<128x128xf32>
    %cst_287 = arith.constant dense<0.000000e+00> : vector<128x128xf32>
    %293 = tpu.matmul %290, %292, %cst_287 {dimension_numbers = #tpu.dot_dimension_numbers<[1], [0], [0], [1], [0, 0, 1, 1], [], []>} : vector<128x128xf32>, vector<128x128xf32>, vector<128x128xf32> -> vector<128x128xf32>
    %294 = arith.addf %289, %293 : vector<128x128xf32>
    %c149_288 = arith.constant 149 : index
    %c0_289 = arith.constant 0 : index
    %295 = vector.load %arg12[%c149_288, %c0_289] : memref<400x128xf32, #tpu.memory_space<vmem>>, vector<128x128xf32>
    %c4_290 = arith.constant 4 : index
    %c0_291 = arith.constant 0 : index
    %c0_292 = arith.constant 0 : index
    %296 = vector.load %arg6[%c4_290, %c0_291, %c0_292] : memref<9x128x128xf32, #tpu.memory_space<vmem>>, vector<1x128x128xf32>
    %297 = vector.shape_cast %296 : vector<1x128x128xf32> to vector<128x128xf32>
    %cst_293 = arith.constant dense<0.000000e+00> : vector<128x128xf32>
    %298 = tpu.matmul %295, %297, %cst_293 {dimension_numbers = #tpu.dot_dimension_numbers<[1], [0], [0], [1], [0, 0, 1, 1], [], []>} : vector<128x128xf32>, vector<128x128xf32>, vector<128x128xf32> -> vector<128x128xf32>
    %299 = arith.addf %294, %298 : vector<128x128xf32>
    %c150_294 = arith.constant 150 : index
    %c0_295 = arith.constant 0 : index
    %300 = vector.load %arg12[%c150_294, %c0_295] : memref<400x128xf32, #tpu.memory_space<vmem>>, vector<128x128xf32>
    %c5_296 = arith.constant 5 : index
    %c0_297 = arith.constant 0 : index
    %c0_298 = arith.constant 0 : index
    %301 = vector.load %arg6[%c5_296, %c0_297, %c0_298] : memref<9x128x128xf32, #tpu.memory_space<vmem>>, vector<1x128x128xf32>
    %302 = vector.shape_cast %301 : vector<1x128x128xf32> to vector<128x128xf32>
    %cst_299 = arith.constant dense<0.000000e+00> : vector<128x128xf32>
    %303 = tpu.matmul %300, %302, %cst_299 {dimension_numbers = #tpu.dot_dimension_numbers<[1], [0], [0], [1], [0, 0, 1, 1], [], []>} : vector<128x128xf32>, vector<128x128xf32>, vector<128x128xf32> -> vector<128x128xf32>
    %304 = arith.addf %299, %303 : vector<128x128xf32>
    %c168_300 = arith.constant 168 : index
    %c0_301 = arith.constant 0 : index
    %305 = vector.load %arg12[%c168_300, %c0_301] : memref<400x128xf32, #tpu.memory_space<vmem>>, vector<128x128xf32>
    %c6_302 = arith.constant 6 : index
    %c0_303 = arith.constant 0 : index
    %c0_304 = arith.constant 0 : index
    %306 = vector.load %arg6[%c6_302, %c0_303, %c0_304] : memref<9x128x128xf32, #tpu.memory_space<vmem>>, vector<1x128x128xf32>
    %307 = vector.shape_cast %306 : vector<1x128x128xf32> to vector<128x128xf32>
    %cst_305 = arith.constant dense<0.000000e+00> : vector<128x128xf32>
    %308 = tpu.matmul %305, %307, %cst_305 {dimension_numbers = #tpu.dot_dimension_numbers<[1], [0], [0], [1], [0, 0, 1, 1], [], []>} : vector<128x128xf32>, vector<128x128xf32>, vector<128x128xf32> -> vector<128x128xf32>
    %309 = arith.addf %304, %308 : vector<128x128xf32>
    %c169_306 = arith.constant 169 : index
    %c0_307 = arith.constant 0 : index
    %310 = vector.load %arg12[%c169_306, %c0_307] : memref<400x128xf32, #tpu.memory_space<vmem>>, vector<128x128xf32>
    %c7_308 = arith.constant 7 : index
    %c0_309 = arith.constant 0 : index
    %c0_310 = arith.constant 0 : index
    %311 = vector.load %arg6[%c7_308, %c0_309, %c0_310] : memref<9x128x128xf32, #tpu.memory_space<vmem>>, vector<1x128x128xf32>
    %312 = vector.shape_cast %311 : vector<1x128x128xf32> to vector<128x128xf32>
    %cst_311 = arith.constant dense<0.000000e+00> : vector<128x128xf32>
    %313 = tpu.matmul %310, %312, %cst_311 {dimension_numbers = #tpu.dot_dimension_numbers<[1], [0], [0], [1], [0, 0, 1, 1], [], []>} : vector<128x128xf32>, vector<128x128xf32>, vector<128x128xf32> -> vector<128x128xf32>
    %314 = arith.addf %309, %313 : vector<128x128xf32>
    %c170_312 = arith.constant 170 : index
    %c0_313 = arith.constant 0 : index
    %315 = vector.load %arg12[%c170_312, %c0_313] : memref<400x128xf32, #tpu.memory_space<vmem>>, vector<128x128xf32>
    %c8_314 = arith.constant 8 : index
    %c0_315 = arith.constant 0 : index
    %c0_316 = arith.constant 0 : index
    %316 = vector.load %arg6[%c8_314, %c0_315, %c0_316] : memref<9x128x128xf32, #tpu.memory_space<vmem>>, vector<1x128x128xf32>
    %317 = vector.shape_cast %316 : vector<1x128x128xf32> to vector<128x128xf32>
    %cst_317 = arith.constant dense<0.000000e+00> : vector<128x128xf32>
    %318 = tpu.matmul %315, %317, %cst_317 {dimension_numbers = #tpu.dot_dimension_numbers<[1], [0], [0], [1], [0, 0, 1, 1], [], []>} : vector<128x128xf32>, vector<128x128xf32>, vector<128x128xf32> -> vector<128x128xf32>
    %319 = arith.addf %314, %318 : vector<128x128xf32>
    %c0_318 = arith.constant 0 : index
    %c0_319 = arith.constant 0 : index
    %320 = vector.load %arg7[%c0_318, %c0_319] : memref<1x128xf32, #tpu.memory_space<vmem>>, vector<1x128xf32>
    %321 = vector.broadcast %320 : vector<1x128xf32> to vector<128x128xf32>
    %322 = arith.addf %319, %321 : vector<128x128xf32>
    %cst_320 = arith.constant 0.000000e+00 : f32
    %323 = vector.broadcast %cst_320 : f32 to vector<128x128xf32>
    %324 = arith.cmpf oge, %322, %323 : vector<128x128xf32>
    %cst_321 = arith.constant 5.000000e-02 : f32
    %325 = vector.broadcast %cst_321 : f32 to vector<128x128xf32>
    %326 = arith.mulf %325, %322 : vector<128x128xf32>
    %327 = arith.select %324, %322, %326 : vector<128x128xi1>, vector<128x128xf32>
    %c128_322 = arith.constant 128 : index
    %c0_323 = arith.constant 0 : index
    %328 = vector.load %arg10[%c128_322, %c0_323] : memref<358x1xf32, #tpu.memory_space<vmem>>, vector<128x1xf32>
    %329 = vector.broadcast %328 : vector<128x1xf32> to vector<128x128xf32>
    %330 = arith.mulf %327, %329 : vector<128x128xf32>
    %c149_324 = arith.constant 149 : index
    %c0_325 = arith.constant 0 : index
    %331 = vector.load %arg16[%c149_324, %c0_325] : memref<400x128xf32, #tpu.memory_space<vmem>>, vector<128x128xf32>
    tpu.vector_store %arg16[%c149_324, %c0_325], %330 {strides = array<i32>} : memref<400x128xf32, #tpu.memory_space<vmem>>, vector<128x128xf32>,
    %c256_326 = arith.constant 256 : index
    %c0_327 = arith.constant 0 : index
    %332 = vector.load %arg12[%c256_326, %c0_327] : memref<400x128xf32, #tpu.memory_space<vmem>>, vector<102x128xf32>
    %c0_328 = arith.constant 0 : index
    %c0_329 = arith.constant 0 : index
    %c0_330 = arith.constant 0 : index
    %333 = vector.load %arg6[%c0_328, %c0_329, %c0_330] : memref<9x128x128xf32, #tpu.memory_space<vmem>>, vector<1x128x128xf32>
    %334 = vector.shape_cast %333 : vector<1x128x128xf32> to vector<128x128xf32>
    %cst_331 = arith.constant dense<0.000000e+00> : vector<102x128xf32>
    %335 = tpu.matmul %332, %334, %cst_331 {dimension_numbers = #tpu.dot_dimension_numbers<[1], [0], [0], [1], [0, 0, 1, 1], [], []>} : vector<102x128xf32>, vector<128x128xf32>, vector<102x128xf32> -> vector<102x128xf32>
    %c257_332 = arith.constant 257 : index
    %c0_333 = arith.constant 0 : index
    %336 = vector.load %arg12[%c257_332, %c0_333] : memref<400x128xf32, #tpu.memory_space<vmem>>, vector<102x128xf32>
    %c1_334 = arith.constant 1 : index
    %c0_335 = arith.constant 0 : index
    %c0_336 = arith.constant 0 : index
    %337 = vector.load %arg6[%c1_334, %c0_335, %c0_336] : memref<9x128x128xf32, #tpu.memory_space<vmem>>, vector<1x128x128xf32>
    %338 = vector.shape_cast %337 : vector<1x128x128xf32> to vector<128x128xf32>
    %cst_337 = arith.constant dense<0.000000e+00> : vector<102x128xf32>
    %339 = tpu.matmul %336, %338, %cst_337 {dimension_numbers = #tpu.dot_dimension_numbers<[1], [0], [0], [1], [0, 0, 1, 1], [], []>} : vector<102x128xf32>, vector<128x128xf32>, vector<102x128xf32> -> vector<102x128xf32>
    %340 = arith.addf %335, %339 : vector<102x128xf32>
    %c258_338 = arith.constant 258 : index
    %c0_339 = arith.constant 0 : index
    %341 = vector.load %arg12[%c258_338, %c0_339] : memref<400x128xf32, #tpu.memory_space<vmem>>, vector<102x128xf32>
    %c2_340 = arith.constant 2 : index
    %c0_341 = arith.constant 0 : index
    %c0_342 = arith.constant 0 : index
    %342 = vector.load %arg6[%c2_340, %c0_341, %c0_342] : memref<9x128x128xf32, #tpu.memory_space<vmem>>, vector<1x128x128xf32>
    %343 = vector.shape_cast %342 : vector<1x128x128xf32> to vector<128x128xf32>
    %cst_343 = arith.constant dense<0.000000e+00> : vector<102x128xf32>
    %344 = tpu.matmul %341, %343, %cst_343 {dimension_numbers = #tpu.dot_dimension_numbers<[1], [0], [0], [1], [0, 0, 1, 1], [], []>} : vector<102x128xf32>, vector<128x128xf32>, vector<102x128xf32> -> vector<102x128xf32>
    %345 = arith.addf %340, %344 : vector<102x128xf32>
    %c276_344 = arith.constant 276 : index
    %c0_345 = arith.constant 0 : index
    %346 = vector.load %arg12[%c276_344, %c0_345] : memref<400x128xf32, #tpu.memory_space<vmem>>, vector<102x128xf32>
    %c3_346 = arith.constant 3 : index
    %c0_347 = arith.constant 0 : index
    %c0_348 = arith.constant 0 : index
    %347 = vector.load %arg6[%c3_346, %c0_347, %c0_348] : memref<9x128x128xf32, #tpu.memory_space<vmem>>, vector<1x128x128xf32>
    %348 = vector.shape_cast %347 : vector<1x128x128xf32> to vector<128x128xf32>
    %cst_349 = arith.constant dense<0.000000e+00> : vector<102x128xf32>
    %349 = tpu.matmul %346, %348, %cst_349 {dimension_numbers = #tpu.dot_dimension_numbers<[1], [0], [0], [1], [0, 0, 1, 1], [], []>} : vector<102x128xf32>, vector<128x128xf32>, vector<102x128xf32> -> vector<102x128xf32>
    %350 = arith.addf %345, %349 : vector<102x128xf32>
    %c277_350 = arith.constant 277 : index
    %c0_351 = arith.constant 0 : index
    %351 = vector.load %arg12[%c277_350, %c0_351] : memref<400x128xf32, #tpu.memory_space<vmem>>, vector<102x128xf32>
    %c4_352 = arith.constant 4 : index
    %c0_353 = arith.constant 0 : index
    %c0_354 = arith.constant 0 : index
    %352 = vector.load %arg6[%c4_352, %c0_353, %c0_354] : memref<9x128x128xf32, #tpu.memory_space<vmem>>, vector<1x128x128xf32>
    %353 = vector.shape_cast %352 : vector<1x128x128xf32> to vector<128x128xf32>
    %cst_355 = arith.constant dense<0.000000e+00> : vector<102x128xf32>
    %354 = tpu.matmul %351, %353, %cst_355 {dimension_numbers = #tpu.dot_dimension_numbers<[1], [0], [0], [1], [0, 0, 1, 1], [], []>} : vector<102x128xf32>, vector<128x128xf32>, vector<102x128xf32> -> vector<102x128xf32>
    %355 = arith.addf %350, %354 : vector<102x128xf32>
    %c278_356 = arith.constant 278 : index
    %c0_357 = arith.constant 0 : index
    %356 = vector.load %arg12[%c278_356, %c0_357] : memref<400x128xf32, #tpu.memory_space<vmem>>, vector<102x128xf32>
    %c5_358 = arith.constant 5 : index
    %c0_359 = arith.constant 0 : index
    %c0_360 = arith.constant 0 : index
    %357 = vector.load %arg6[%c5_358, %c0_359, %c0_360] : memref<9x128x128xf32, #tpu.memory_space<vmem>>, vector<1x128x128xf32>
    %358 = vector.shape_cast %357 : vector<1x128x128xf32> to vector<128x128xf32>
    %cst_361 = arith.constant dense<0.000000e+00> : vector<102x128xf32>
    %359 = tpu.matmul %356, %358, %cst_361 {dimension_numbers = #tpu.dot_dimension_numbers<[1], [0], [0], [1], [0, 0, 1, 1], [], []>} : vector<102x128xf32>, vector<128x128xf32>, vector<102x128xf32> -> vector<102x128xf32>
    %360 = arith.addf %355, %359 : vector<102x128xf32>
    %c296_362 = arith.constant 296 : index
    %c0_363 = arith.constant 0 : index
    %361 = vector.load %arg12[%c296_362, %c0_363] : memref<400x128xf32, #tpu.memory_space<vmem>>, vector<102x128xf32>
    %c6_364 = arith.constant 6 : index
    %c0_365 = arith.constant 0 : index
    %c0_366 = arith.constant 0 : index
    %362 = vector.load %arg6[%c6_364, %c0_365, %c0_366] : memref<9x128x128xf32, #tpu.memory_space<vmem>>, vector<1x128x128xf32>
    %363 = vector.shape_cast %362 : vector<1x128x128xf32> to vector<128x128xf32>
    %cst_367 = arith.constant dense<0.000000e+00> : vector<102x128xf32>
    %364 = tpu.matmul %361, %363, %cst_367 {dimension_numbers = #tpu.dot_dimension_numbers<[1], [0], [0], [1], [0, 0, 1, 1], [], []>} : vector<102x128xf32>, vector<128x128xf32>, vector<102x128xf32> -> vector<102x128xf32>
    %365 = arith.addf %360, %364 : vector<102x128xf32>
    %c297_368 = arith.constant 297 : index
    %c0_369 = arith.constant 0 : index
    %366 = vector.load %arg12[%c297_368, %c0_369] : memref<400x128xf32, #tpu.memory_space<vmem>>, vector<102x128xf32>
    %c7_370 = arith.constant 7 : index
    %c0_371 = arith.constant 0 : index
    %c0_372 = arith.constant 0 : index
    %367 = vector.load %arg6[%c7_370, %c0_371, %c0_372] : memref<9x128x128xf32, #tpu.memory_space<vmem>>, vector<1x128x128xf32>
    %368 = vector.shape_cast %367 : vector<1x128x128xf32> to vector<128x128xf32>
    %cst_373 = arith.constant dense<0.000000e+00> : vector<102x128xf32>
    %369 = tpu.matmul %366, %368, %cst_373 {dimension_numbers = #tpu.dot_dimension_numbers<[1], [0], [0], [1], [0, 0, 1, 1], [], []>} : vector<102x128xf32>, vector<128x128xf32>, vector<102x128xf32> -> vector<102x128xf32>
    %370 = arith.addf %365, %369 : vector<102x128xf32>
    %c298_374 = arith.constant 298 : index
    %c0_375 = arith.constant 0 : index
    %371 = vector.load %arg12[%c298_374, %c0_375] : memref<400x128xf32, #tpu.memory_space<vmem>>, vector<102x128xf32>
    %c8_376 = arith.constant 8 : index
    %c0_377 = arith.constant 0 : index
    %c0_378 = arith.constant 0 : index
    %372 = vector.load %arg6[%c8_376, %c0_377, %c0_378] : memref<9x128x128xf32, #tpu.memory_space<vmem>>, vector<1x128x128xf32>
    %373 = vector.shape_cast %372 : vector<1x128x128xf32> to vector<128x128xf32>
    %cst_379 = arith.constant dense<0.000000e+00> : vector<102x128xf32>
    %374 = tpu.matmul %371, %373, %cst_379 {dimension_numbers = #tpu.dot_dimension_numbers<[1], [0], [0], [1], [0, 0, 1, 1], [], []>} : vector<102x128xf32>, vector<128x128xf32>, vector<102x128xf32> -> vector<102x128xf32>
    %375 = arith.addf %370, %374 : vector<102x128xf32>
    %c0_380 = arith.constant 0 : index
    %c0_381 = arith.constant 0 : index
    %376 = vector.load %arg7[%c0_380, %c0_381] : memref<1x128xf32, #tpu.memory_space<vmem>>, vector<1x128xf32>
    %377 = vector.broadcast %376 : vector<1x128xf32> to vector<102x128xf32>
    %378 = arith.addf %375, %377 : vector<102x128xf32>
    %cst_382 = arith.constant 0.000000e+00 : f32
    %379 = vector.broadcast %cst_382 : f32 to vector<102x128xf32>
    %380 = arith.cmpf oge, %378, %379 : vector<102x128xf32>
    %cst_383 = arith.constant 5.000000e-02 : f32
    %381 = vector.broadcast %cst_383 : f32 to vector<102x128xf32>
    %382 = arith.mulf %381, %378 : vector<102x128xf32>
    %383 = arith.select %380, %378, %382 : vector<102x128xi1>, vector<102x128xf32>
    %c256_384 = arith.constant 256 : index
    %c0_385 = arith.constant 0 : index
    %384 = vector.load %arg10[%c256_384, %c0_385] : memref<358x1xf32, #tpu.memory_space<vmem>>, vector<102x1xf32>
    %385 = vector.broadcast %384 : vector<102x1xf32> to vector<102x128xf32>
    %386 = arith.mulf %383, %385 : vector<102x128xf32>
    %c277_386 = arith.constant 277 : index
    %c0_387 = arith.constant 0 : index
    %387 = vector.load %arg16[%c277_386, %c0_387] : memref<400x128xf32, #tpu.memory_space<vmem>>, vector<102x128xf32>
    tpu.vector_store %arg16[%c277_386, %c0_387], %386 {strides = array<i32>} : memref<400x128xf32, #tpu.memory_space<vmem>>, vector<102x128xf32>,
    %c21_388 = arith.constant 21 : index
    %c0_389 = arith.constant 0 : index
    %388 = tpu.strided_load %arg16[%c21_388, %c0_389] {strides = array<i32: 3, 1>} : memref<400x128xf32, #tpu.memory_space<vmem>>, vector<6x128xf32>
    %c9 = arith.constant 9 : index
    %c0_390 = arith.constant 0 : index
    %389 = vector.load %arg13[%c9, %c0_390] : memref<64x128xf32, #tpu.memory_space<vmem>>, vector<6x128xf32>
    tpu.vector_store %arg13[%c9, %c0_390], %388 {strides = array<i32>} : memref<64x128xf32, #tpu.memory_space<vmem>>, vector<6x128xf32>,
    %c81 = arith.constant 81 : index
    %c0_391 = arith.constant 0 : index
    %390 = tpu.strided_load %arg16[%c81, %c0_391] {strides = array<i32: 3, 1>} : memref<400x128xf32, #tpu.memory_space<vmem>>, vector<6x128xf32>
    %c17 = arith.constant 17 : index
    %c0_392 = arith.constant 0 : index
    %391 = vector.load %arg13[%c17, %c0_392] : memref<64x128xf32, #tpu.memory_space<vmem>>, vector<6x128xf32>
    tpu.vector_store %arg13[%c17, %c0_392], %390 {strides = array<i32>} : memref<64x128xf32, #tpu.memory_space<vmem>>, vector<6x128xf32>,
    %c141 = arith.constant 141 : index
    %c0_393 = arith.constant 0 : index
    %392 = tpu.strided_load %arg16[%c141, %c0_393] {strides = array<i32: 3, 1>} : memref<400x128xf32, #tpu.memory_space<vmem>>, vector<6x128xf32>
    %c25 = arith.constant 25 : index
    %c0_394 = arith.constant 0 : index
    %393 = vector.load %arg13[%c25, %c0_394] : memref<64x128xf32, #tpu.memory_space<vmem>>, vector<6x128xf32>
    tpu.vector_store %arg13[%c25, %c0_394], %392 {strides = array<i32>} : memref<64x128xf32, #tpu.memory_space<vmem>>, vector<6x128xf32>,
    %c201 = arith.constant 201 : index
    %c0_395 = arith.constant 0 : index
    %394 = tpu.strided_load %arg16[%c201, %c0_395] {strides = array<i32: 3, 1>} : memref<400x128xf32, #tpu.memory_space<vmem>>, vector<6x128xf32>
    %c33 = arith.constant 33 : index
    %c0_396 = arith.constant 0 : index
    %395 = vector.load %arg13[%c33, %c0_396] : memref<64x128xf32, #tpu.memory_space<vmem>>, vector<6x128xf32>
    tpu.vector_store %arg13[%c33, %c0_396], %394 {strides = array<i32>} : memref<64x128xf32, #tpu.memory_space<vmem>>, vector<6x128xf32>,
    %c261 = arith.constant 261 : index
    %c0_397 = arith.constant 0 : index
    %396 = tpu.strided_load %arg16[%c261, %c0_397] {strides = array<i32: 3, 1>} : memref<400x128xf32, #tpu.memory_space<vmem>>, vector<6x128xf32>
    %c41_398 = arith.constant 41 : index
    %c0_399 = arith.constant 0 : index
    %397 = vector.load %arg13[%c41_398, %c0_399] : memref<64x128xf32, #tpu.memory_space<vmem>>, vector<6x128xf32>
    tpu.vector_store %arg13[%c41_398, %c0_399], %396 {strides = array<i32>} : memref<64x128xf32, #tpu.memory_space<vmem>>, vector<6x128xf32>,
    %c321 = arith.constant 321 : index
    %c0_400 = arith.constant 0 : index
    %398 = tpu.strided_load %arg16[%c321, %c0_400] {strides = array<i32: 3, 1>} : memref<400x128xf32, #tpu.memory_space<vmem>>, vector<6x128xf32>
    %c49 = arith.constant 49 : index
    %c0_401 = arith.constant 0 : index
    %399 = vector.load %arg13[%c49, %c0_401] : memref<64x128xf32, #tpu.memory_space<vmem>>, vector<6x128xf32>
    tpu.vector_store %arg13[%c49, %c0_401], %398 {strides = array<i32>} : memref<64x128xf32, #tpu.memory_space<vmem>>, vector<6x128xf32>,
    %c0_402 = arith.constant 0 : index
    %c0_403 = arith.constant 0 : index
    %400 = vector.load %arg13[%c0_402, %c0_403] : memref<64x128xf32, #tpu.memory_space<vmem>>, vector<46x128xf32>
    %c0_404 = arith.constant 0 : index
    %c0_405 = arith.constant 0 : index
    %c0_406 = arith.constant 0 : index
    %401 = vector.load %arg8[%c0_404, %c0_405, %c0_406] : memref<9x128x128xf32, #tpu.memory_space<vmem>>, vector<1x128x128xf32>
    %402 = vector.shape_cast %401 : vector<1x128x128xf32> to vector<128x128xf32>
    %cst_407 = arith.constant dense<0.000000e+00> : vector<46x128xf32>
    %403 = tpu.matmul %400, %402, %cst_407 {dimension_numbers = #tpu.dot_dimension_numbers<[1], [0], [0], [1], [0, 0, 1, 1], [], []>} : vector<46x128xf32>, vector<128x128xf32>, vector<46x128xf32> -> vector<46x128xf32>
    %c1_408 = arith.constant 1 : index
    %c0_409 = arith.constant 0 : index
    %404 = vector.load %arg13[%c1_408, %c0_409] : memref<64x128xf32, #tpu.memory_space<vmem>>, vector<46x128xf32>
    %c1_410 = arith.constant 1 : index
    %c0_411 = arith.constant 0 : index
    %c0_412 = arith.constant 0 : index
    %405 = vector.load %arg8[%c1_410, %c0_411, %c0_412] : memref<9x128x128xf32, #tpu.memory_space<vmem>>, vector<1x128x128xf32>
    %406 = vector.shape_cast %405 : vector<1x128x128xf32> to vector<128x128xf32>
    %cst_413 = arith.constant dense<0.000000e+00> : vector<46x128xf32>
    %407 = tpu.matmul %404, %406, %cst_413 {dimension_numbers = #tpu.dot_dimension_numbers<[1], [0], [0], [1], [0, 0, 1, 1], [], []>} : vector<46x128xf32>, vector<128x128xf32>, vector<46x128xf32> -> vector<46x128xf32>
    %408 = arith.addf %403, %407 : vector<46x128xf32>
    %c2_414 = arith.constant 2 : index
    %c0_415 = arith.constant 0 : index
    %409 = vector.load %arg13[%c2_414, %c0_415] : memref<64x128xf32, #tpu.memory_space<vmem>>, vector<46x128xf32>
    %c2_416 = arith.constant 2 : index
    %c0_417 = arith.constant 0 : index
    %c0_418 = arith.constant 0 : index
    %410 = vector.load %arg8[%c2_416, %c0_417, %c0_418] : memref<9x128x128xf32, #tpu.memory_space<vmem>>, vector<1x128x128xf32>
    %411 = vector.shape_cast %410 : vector<1x128x128xf32> to vector<128x128xf32>
    %cst_419 = arith.constant dense<0.000000e+00> : vector<46x128xf32>
    %412 = tpu.matmul %409, %411, %cst_419 {dimension_numbers = #tpu.dot_dimension_numbers<[1], [0], [0], [1], [0, 0, 1, 1], [], []>} : vector<46x128xf32>, vector<128x128xf32>, vector<46x128xf32> -> vector<46x128xf32>
    %413 = arith.addf %408, %412 : vector<46x128xf32>
    %c8_420 = arith.constant 8 : index
    %c0_421 = arith.constant 0 : index
    %414 = vector.load %arg13[%c8_420, %c0_421] : memref<64x128xf32, #tpu.memory_space<vmem>>, vector<46x128xf32>
    %c3_422 = arith.constant 3 : index
    %c0_423 = arith.constant 0 : index
    %c0_424 = arith.constant 0 : index
    %415 = vector.load %arg8[%c3_422, %c0_423, %c0_424] : memref<9x128x128xf32, #tpu.memory_space<vmem>>, vector<1x128x128xf32>
    %416 = vector.shape_cast %415 : vector<1x128x128xf32> to vector<128x128xf32>
    %cst_425 = arith.constant dense<0.000000e+00> : vector<46x128xf32>
    %417 = tpu.matmul %414, %416, %cst_425 {dimension_numbers = #tpu.dot_dimension_numbers<[1], [0], [0], [1], [0, 0, 1, 1], [], []>} : vector<46x128xf32>, vector<128x128xf32>, vector<46x128xf32> -> vector<46x128xf32>
    %418 = arith.addf %413, %417 : vector<46x128xf32>
    %c9_426 = arith.constant 9 : index
    %c0_427 = arith.constant 0 : index
    %419 = vector.load %arg13[%c9_426, %c0_427] : memref<64x128xf32, #tpu.memory_space<vmem>>, vector<46x128xf32>
    %c4_428 = arith.constant 4 : index
    %c0_429 = arith.constant 0 : index
    %c0_430 = arith.constant 0 : index
    %420 = vector.load %arg8[%c4_428, %c0_429, %c0_430] : memref<9x128x128xf32, #tpu.memory_space<vmem>>, vector<1x128x128xf32>
    %421 = vector.shape_cast %420 : vector<1x128x128xf32> to vector<128x128xf32>
    %cst_431 = arith.constant dense<0.000000e+00> : vector<46x128xf32>
    %422 = tpu.matmul %419, %421, %cst_431 {dimension_numbers = #tpu.dot_dimension_numbers<[1], [0], [0], [1], [0, 0, 1, 1], [], []>} : vector<46x128xf32>, vector<128x128xf32>, vector<46x128xf32> -> vector<46x128xf32>
    %423 = arith.addf %418, %422 : vector<46x128xf32>
    %c10 = arith.constant 10 : index
    %c0_432 = arith.constant 0 : index
    %424 = vector.load %arg13[%c10, %c0_432] : memref<64x128xf32, #tpu.memory_space<vmem>>, vector<46x128xf32>
    %c5_433 = arith.constant 5 : index
    %c0_434 = arith.constant 0 : index
    %c0_435 = arith.constant 0 : index
    %425 = vector.load %arg8[%c5_433, %c0_434, %c0_435] : memref<9x128x128xf32, #tpu.memory_space<vmem>>, vector<1x128x128xf32>
    %426 = vector.shape_cast %425 : vector<1x128x128xf32> to vector<128x128xf32>
    %cst_436 = arith.constant dense<0.000000e+00> : vector<46x128xf32>
    %427 = tpu.matmul %424, %426, %cst_436 {dimension_numbers = #tpu.dot_dimension_numbers<[1], [0], [0], [1], [0, 0, 1, 1], [], []>} : vector<46x128xf32>, vector<128x128xf32>, vector<46x128xf32> -> vector<46x128xf32>
    %428 = arith.addf %423, %427 : vector<46x128xf32>
    %c16 = arith.constant 16 : index
    %c0_437 = arith.constant 0 : index
    %429 = vector.load %arg13[%c16, %c0_437] : memref<64x128xf32, #tpu.memory_space<vmem>>, vector<46x128xf32>
    %c6_438 = arith.constant 6 : index
    %c0_439 = arith.constant 0 : index
    %c0_440 = arith.constant 0 : index
    %430 = vector.load %arg8[%c6_438, %c0_439, %c0_440] : memref<9x128x128xf32, #tpu.memory_space<vmem>>, vector<1x128x128xf32>
    %431 = vector.shape_cast %430 : vector<1x128x128xf32> to vector<128x128xf32>
    %cst_441 = arith.constant dense<0.000000e+00> : vector<46x128xf32>
    %432 = tpu.matmul %429, %431, %cst_441 {dimension_numbers = #tpu.dot_dimension_numbers<[1], [0], [0], [1], [0, 0, 1, 1], [], []>} : vector<46x128xf32>, vector<128x128xf32>, vector<46x128xf32> -> vector<46x128xf32>
    %433 = arith.addf %428, %432 : vector<46x128xf32>
    %c17_442 = arith.constant 17 : index
    %c0_443 = arith.constant 0 : index
    %434 = vector.load %arg13[%c17_442, %c0_443] : memref<64x128xf32, #tpu.memory_space<vmem>>, vector<46x128xf32>
    %c7_444 = arith.constant 7 : index
    %c0_445 = arith.constant 0 : index
    %c0_446 = arith.constant 0 : index
    %435 = vector.load %arg8[%c7_444, %c0_445, %c0_446] : memref<9x128x128xf32, #tpu.memory_space<vmem>>, vector<1x128x128xf32>
    %436 = vector.shape_cast %435 : vector<1x128x128xf32> to vector<128x128xf32>
    %cst_447 = arith.constant dense<0.000000e+00> : vector<46x128xf32>
    %437 = tpu.matmul %434, %436, %cst_447 {dimension_numbers = #tpu.dot_dimension_numbers<[1], [0], [0], [1], [0, 0, 1, 1], [], []>} : vector<46x128xf32>, vector<128x128xf32>, vector<46x128xf32> -> vector<46x128xf32>
    %438 = arith.addf %433, %437 : vector<46x128xf32>
    %c18 = arith.constant 18 : index
    %c0_448 = arith.constant 0 : index
    %439 = vector.load %arg13[%c18, %c0_448] : memref<64x128xf32, #tpu.memory_space<vmem>>, vector<46x128xf32>
    %c8_449 = arith.constant 8 : index
    %c0_450 = arith.constant 0 : index
    %c0_451 = arith.constant 0 : index
    %440 = vector.load %arg8[%c8_449, %c0_450, %c0_451] : memref<9x128x128xf32, #tpu.memory_space<vmem>>, vector<1x128x128xf32>
    %441 = vector.shape_cast %440 : vector<1x128x128xf32> to vector<128x128xf32>
    %cst_452 = arith.constant dense<0.000000e+00> : vector<46x128xf32>
    %442 = tpu.matmul %439, %441, %cst_452 {dimension_numbers = #tpu.dot_dimension_numbers<[1], [0], [0], [1], [0, 0, 1, 1], [], []>} : vector<46x128xf32>, vector<128x128xf32>, vector<46x128xf32> -> vector<46x128xf32>
    %443 = arith.addf %438, %442 : vector<46x128xf32>
    %c0_453 = arith.constant 0 : index
    %c0_454 = arith.constant 0 : index
    %444 = vector.load %arg9[%c0_453, %c0_454] : memref<1x128xf32, #tpu.memory_space<vmem>>, vector<1x128xf32>
    %445 = vector.broadcast %444 : vector<1x128xf32> to vector<46x128xf32>
    %446 = arith.addf %443, %445 : vector<46x128xf32>
    %cst_455 = arith.constant 0.000000e+00 : f32
    %447 = vector.broadcast %cst_455 : f32 to vector<46x128xf32>
    %448 = arith.cmpf oge, %446, %447 : vector<46x128xf32>
    %cst_456 = arith.constant 5.000000e-02 : f32
    %449 = vector.broadcast %cst_456 : f32 to vector<46x128xf32>
    %450 = arith.mulf %449, %446 : vector<46x128xf32>
    %451 = arith.select %448, %446, %450 : vector<46x128xi1>, vector<46x128xf32>
    %c0_457 = arith.constant 0 : index
    %c0_458 = arith.constant 0 : index
    %452 = vector.load %arg11[%c0_457, %c0_458] : memref<46x1xf32, #tpu.memory_space<vmem>>, vector<46x1xf32>
    %453 = vector.broadcast %452 : vector<46x1xf32> to vector<46x128xf32>
    %454 = arith.mulf %451, %453 : vector<46x128xf32>
    %c9_459 = arith.constant 9 : index
    %c0_460 = arith.constant 0 : index
    %455 = vector.load %arg14[%c9_459, %c0_460] : memref<64x128xf32, #tpu.memory_space<vmem>>, vector<46x128xf32>
    tpu.vector_store %arg14[%c9_459, %c0_460], %454 {strides = array<i32>} : memref<64x128xf32, #tpu.memory_space<vmem>>, vector<46x128xf32>,
    return
  }
  func.func @transform_0(%arg0: i32) -> (i32, i32) {
    %c0_i32 = arith.constant 0 : i32
    %c0_i32_0 = arith.constant 0 : i32
    return %arg0, %c0_i32 : i32, i32
  }
  func.func @transform_1(%arg0: i32) -> (i32, i32) {
    %c0_i32 = arith.constant 0 : i32
    %c0_i32_0 = arith.constant 0 : i32
    %c0_i32_1 = arith.constant 0 : i32
    return %c0_i32, %c0_i32_0 : i32, i32
  }
  func.func @transform_2(%arg0: i32) -> (i32, i32) {
    %c0_i32 = arith.constant 0 : i32
    %c0_i32_0 = arith.constant 0 : i32
    %c0_i32_1 = arith.constant 0 : i32
    return %c0_i32, %c0_i32_0 : i32, i32
  }
  func.func @transform_3(%arg0: i32) -> (i32, i32, i32) {
    %c0_i32 = arith.constant 0 : i32
    %c0_i32_0 = arith.constant 0 : i32
    %c0_i32_1 = arith.constant 0 : i32
    %c0_i32_2 = arith.constant 0 : i32
    return %c0_i32, %c0_i32_0, %c0_i32_1 : i32, i32, i32
  }
  func.func @transform_4(%arg0: i32) -> (i32, i32) {
    %c0_i32 = arith.constant 0 : i32
    %c0_i32_0 = arith.constant 0 : i32
    %c0_i32_1 = arith.constant 0 : i32
    return %c0_i32, %c0_i32_0 : i32, i32
  }
  func.func @transform_5(%arg0: i32) -> (i32, i32, i32) {
    %c0_i32 = arith.constant 0 : i32
    %c0_i32_0 = arith.constant 0 : i32
    %c0_i32_1 = arith.constant 0 : i32
    %c0_i32_2 = arith.constant 0 : i32
    return %c0_i32, %c0_i32_0, %c0_i32_1 : i32, i32, i32
  }
  func.func @transform_6(%arg0: i32) -> (i32, i32) {
    %c0_i32 = arith.constant 0 : i32
    %c0_i32_0 = arith.constant 0 : i32
    %c0_i32_1 = arith.constant 0 : i32
    return %c0_i32, %c0_i32_0 : i32, i32
  }
  func.func @transform_7(%arg0: i32) -> (i32, i32, i32) {
    %c0_i32 = arith.constant 0 : i32
    %c0_i32_0 = arith.constant 0 : i32
    %c0_i32_1 = arith.constant 0 : i32
    %c0_i32_2 = arith.constant 0 : i32
    return %c0_i32, %c0_i32_0, %c0_i32_1 : i32, i32, i32
  }
  func.func @transform_8(%arg0: i32) -> (i32, i32) {
    %c0_i32 = arith.constant 0 : i32
    %c0_i32_0 = arith.constant 0 : i32
    %c0_i32_1 = arith.constant 0 : i32
    return %c0_i32, %c0_i32_0 : i32, i32
  }
  func.func @transform_9(%arg0: i32) -> (i32, i32) {
    %c0_i32 = arith.constant 0 : i32
    %c0_i32_0 = arith.constant 0 : i32
    %c0_i32_1 = arith.constant 0 : i32
    return %c0_i32, %c0_i32_0 : i32, i32
  }
  func.func @transform_10(%arg0: i32) -> (i32, i32) {
    %c0_i32 = arith.constant 0 : i32
    %c0_i32_0 = arith.constant 0 : i32
    %c0_i32_1 = arith.constant 0 : i32
    return %c0_i32, %c0_i32_0 : i32, i32
  }
  func.func @transform_11(%arg0: i32) -> (i32, i32) {
    %c0_i32 = arith.constant 0 : i32
    %c0_i32_0 = arith.constant 0 : i32
    return %arg0, %c0_i32 : i32, i32
  }
  func.func @transform_12(%arg0: i32) -> (i32, i32) {
    %c0_i32 = arith.constant 0 : i32
    %c0_i32_0 = arith.constant 0 : i32
    return %arg0, %c0_i32 : i32, i32
  }
  func.func @transform_13(%arg0: i32) -> (i32, i32) {
    %c0_i32 = arith.constant 0 : i32
    %c0_i32_0 = arith.constant 0 : i32
    return %arg0, %c0_i32 : i32, i32
  }
}

</mosaic_0001>

<bundles_post_ra>
// kernel: _lambda_.1
= control target key start
LH: loop header
LB: loop body
LE: loop exit
PB: predicated region body
PF: predicated region fallthrough
CT: control target
= control target key end

     0   :  { %s23189_s25 = smov 0   ;;  %s28911_s0 = inlined_call_operand.vmem [shape: f32[800,32], index: 0, kind: input, shape index: {}]   ;;  %s28912_s1 = inlined_call_operand.vmem [shape: f32[32,128], index: 1, kind: input, shape index: {}]   ;;  %s28913_s2 = inlined_call_operand.vmem [shape: f32[1,128], index: 2, kind: input, shape index: {}]   ;;  %s28914_s3 = inlined_call_operand.vmem [shape: f32[9,128,128], index: 3, kind: input, shape index: {}]   ;;  %s28915_s4 = inlined_call_operand.vmem [shape: f32[1,128], index: 4, kind: input, shape index: {}]   ;;  %s28916_s5 = inlined_call_operand.vmem [shape: f32[9,128,128], index: 5, kind: input, shape index: {}]   ;;  %s28917_s6 = inlined_call_operand.vmem [shape: f32[1,128], index: 6, kind: input, shape index: {}]   ;;  %s28918_s7 = inlined_call_operand.vmem [shape: f32[9,128,128], index: 7, kind: input, shape index: {}]   ;;  %s28919_s8 = inlined_call_operand.vmem [shape: f32[1,128], index: 8, kind: input, shape index: {}]   ;;  %s28920_s9 = inlined_call_operand.vmem [shape: f32[358,1], index: 9, kind: input, shape index: {}]   ;;  %s28921_s10 = inlined_call_operand.vmem [shape: f32[46,1], index: 10, kind: input, shape index: {}]   ;;  %s28922_s11 = inlined_call_operand.vmem [shape: f32[800,128], index: 11, kind: output, shape index: {0}]   ;;  %s28923_s12 = inlined_call_operand.vmem [shape: f32[128,128], index: 12, kind: output, shape index: {1}]   ;;  %s28924_s13 = inlined_call_operand.vmem [shape: f32[128,128], index: 13, kind: output, shape index: {2}]  }
   0x1 LB: > { %s13946_s26 = sadd.s32 4294967295, %s23113_s25   ;;  %p13950_p0 = scmp.ge.s32.totalorder %s23113_s25, 1  ;;  %s23113_s25 = sphi %s23189_s25, %s24_s25  }
   0x2   : > { %p393_p1 = scmp.lt.s32.totalorder %s23113_s25, 3 }
   0x4   : > { %p394_p2 = pnand %p13950_p0, %p393_p1 }
   0x6   : > { %397 = sbr.rel (%p394_p2) target bundleno = 2011 (0x7db), region = 64 }
   0xd   : > { %v23200_v0 = vld [vmem:[%s28920_s9 + $0x78] sm:$0xff]  ;;  %v23205_v1 = vld [vmem:[%s28920_s9 + $0x68] sm:$0xff]  ;;  %v507_v2 = vld [vmem:[%s28912_s1] sm:$0xff]  ;;  %s447_s16 = smul.u32 50, %s13946_s26  ;;  %v23115_v3 = vmov 0   ;;  %v23116_v8 = vmov 0.0  }
   0xe   : > { %23096 = vset.pattern.permute.xlu1 %v23115_v3  ;;  %23095 = vset.pattern.permute.xlu0 %v23115_v3  ;;  %v508_v4 = vld [vmem:[%s28912_s1 + $0x8] sm:$0xff]  ;;  %v509_v6 = vld [vmem:[%s28912_s1 + $0x10] sm:$0xff]  ;;  %v510_v7 = vld [vmem:[%s28912_s1 + $0x18] sm:$0xff]  ;;  %471 = vst [vmem:[#allocation2] sm:$0xff] %v23116_v8  ;;  %vm518_vm0 = vcmask 261120   ;;  %v28925_v28 = vmov 0.0|0.0  }
   0xf   : > { %853 = vperm.xlu1 %23096, %v23200_v0   ;;  %843 = vperm.xlu0 %23095, %v23205_v1   ;;  %v23217_v5 = vpack.c.bf16 %v508_v4, %v507_v2  ;;  %p448_p3 = scmp.lt.s32.totalorder %s447_s16, 99  ;;  %472 = vst [vmem:[#allocation2 + $0x8] sm:$0xff] %v23116_v8  ;;  %473 = vst [vmem:[#allocation2 + $0x10] sm:$0x1f] %v23116_v8  ;;  %v23234_v9 = vld [vmem:[%s28920_s9 + $0x80] sm:$0xff]  ;;  %v23239_v10 = vld [vmem:[%s28920_s9 + $0x70] sm:$0xff]  ;;  %v23241_v11 = vpack.c.bf16 %v510_v7, %v509_v6 }
  0x10   : > { %474 = vst [vmem:[#allocation2 + $0x17b] sm:$0xff] %v23116_v8  ;;  %475 = vst [vmem:[#allocation2 + $0x183] sm:$0xff] %v23116_v8  ;;  %v23254_v12 = vld [vmem:[%s28920_s9 + $0x90] sm:$0xff]  ;;  %v23259_v13 = vld [vmem:[%s28920_s9 + $0x88] sm:$0xff]  ;;  %vm23118_vm1 = vmmov 0  }
  0x11   : > { %476 = vst [vmem:[#allocation2 + $0x18b] sm:$0x1f] %v23116_v8  ;;  %20614 = vmatprep.subr.bf16.mxu0 %v23217_v5  ;;  %20622 = vmatprep.subr.bf16.mxu1 %v23217_v5  ;;  %s28983_s16 = smov (!%p448_p3, %s447_s16), 99  ;;  %v23298_v20 = vld [vmem:[%s28920_s9 + $0xa0] sm:$0xff]  ;;  %v23303_v21 = vld [vmem:[%s28920_s9 + $0x98] sm:$0xff]  ;;  %v23318_v26 = vld [vmem:[%s28920_s9 + $0xb0] sm:$0xff] }
  0x12   : > { %20616 = vmatpush3.bf16.msra.mxu0 %v23217_v5  ;;  %20624 = vmatpush3.bf16.msra.mxu1 %v23217_v5  ;;  %s13951_s29 = sshll.u32 %s28983_s16, 3  ;;  %v23323_v27 = vld [vmem:[%s28920_s9 + $0xa8] sm:$0xff]  ;;  %v23339_v33 = vld [vmem:[%s28920_s9 + $0xc0] sm:$0xff]  ;;  %v23344_v34 = vld [vmem:[%s28920_s9 + $0xb8] sm:$0xff] }
  0x13   : > { %1174 = vperm.xlu1 %23096, %v23234_v9   ;;  %848 = vperm.xlu0 %23095, %v23239_v10   ;;  %s23264_s20 = scalar_lea.vmem %s28911_s0, %s13951_s29  ;;  %s23269_s22 = scalar_lea.vmem %s28922_s11, %s13951_s29  ;;  %v23360_v39 = vld [vmem:[%s28920_s9 + $0xd0] sm:$0xff]  ;;  %v23365_v40 = vld [vmem:[%s28920_s9 + $0xc8] sm:$0xff]  ;;  %v23381_v45 = vld [vmem:[%s28920_s9 + $0xe0] sm:$0xff] }
  0x14   : > { %20618 = vmatprep.subr.bf16.mxu0 %v23241_v11  ;;  %20626 = vmatprep.subr.bf16.mxu1 %v23241_v11  ;;  %v491_v14 = vld [vmem:[%s23264_s20] sm:$0xff]  ;;  %477 = vst [vmem:[%s23269_s22] sm:$0xff] %v23116_v8  ;;  %478 = vst [vmem:[%s23269_s22 + $0x8] sm:$0xff] %v23116_v8  ;;  %v492_v16 = vld [vmem:[%s23264_s20 + $0x8] sm:$0xff] }
  0x15   : > { %v888_v15 = vld [vmem:[%s23264_s20 + $0x80] sm:$0xff]  ;;  %479 = vst [vmem:[%s23269_s22 + $0x10] sm:$0x1f] %v23116_v8  ;;  %480 = vst [vmem:[%s23269_s22 + $0x17b] sm:$0xff] %v23116_v8  ;;  %v889_v17 = vld [vmem:[%s23264_s20 + $0x88] sm:$0xff]  ;;  %16847 = vmatprep.mubr.msk.f32.mxu0 %vm518_vm0, %v491_v14 }
  0x16   : > { %481 = vst [vmem:[%s23269_s22 + $0x183] sm:$0xff] %v23116_v8  ;;  %482 = vst [vmem:[%s23269_s22 + $0x18b] sm:$0x1f] %v23116_v8  ;;  %20620 = vmatpush3.bf16.msra.mxu0 %v23241_v11  ;;  %20628 = vmatpush3.bf16.msra.mxu1 %v23241_v11  ;;  %v493_v18 = vld [vmem:[%s23264_s20 + $0x10] sm:$0xff]  ;;  %v494_v22 = vld [vmem:[%s23264_s20 + $0x18] sm:$0xff] }
  0x17   : > { %1184 = vperm.xlu1 %23096, %v23254_v12   ;;  %1179 = vperm.xlu0 %23095, %v23259_v13   ;;  %v890_v19 = vld [vmem:[%s23264_s20 + $0x90] sm:$0xff]  ;;  %v891_v23 = vld [vmem:[%s23264_s20 + $0x98] sm:$0xff]  ;;  %v495_v24 = vld [vmem:[%s23264_s20 + $0x20] sm:$0xff] }
  0x18   : > { %16879 = vmatprep.mubr.msk.f32.mxu1 %vm518_vm0, %v888_v15  ;;  %v892_v25 = vld [vmem:[%s23264_s20 + $0xa0] sm:$0xff]  ;;  %20629 = vmatprep.subr.bf16.mxu0 %v28925_v28  ;;  %v496_v29 = vld [vmem:[%s23264_s20 + $0x28] sm:$0xff]  ;;  %v497_v31 = vld [vmem:[%s23264_s20 + $0x30] sm:$0xff] }
  0x19   : > { %16848 = vmatmul.mubr.msk.f32.vlgmr.msra.gmra.mrb[0].mxu0 %vm518_vm0, %v492_v16  ;;  %16880 = vmatmul.mubr.msk.f32.vlgmr.msra.gmra.mrb[0].mxu1 %vm518_vm0, %v889_v17  ;;  %v893_v30 = vld [vmem:[%s23264_s20 + $0xa8] sm:$0xff]  ;;  %v894_v32 = vld [vmem:[%s23264_s20 + $0xb0] sm:$0xff]  ;;  %v498_v35 = vld [vmem:[%s23264_s20 + $0x38] sm:$0xff] }
  0x1a   : > { %16850 = vmatprep.mubr.msk.f32.mxu0 %vm518_vm0, %v493_v18  ;;  %16882 = vmatprep.mubr.msk.f32.mxu1 %vm518_vm0, %v890_v19  ;;  %v895_v36 = vld [vmem:[%s23264_s20 + $0xb8] sm:$0xff]  ;;  %v499_v37 = vld [vmem:[%s23264_s20 + $0x40] sm:$0xff]  ;;  %v500_v41 = vld [vmem:[%s23264_s20 + $0x48] sm:$0xff] }
  0x1b   : > { %1194 = vperm.xlu1 %23096, %v23298_v20   ;;  %1189 = vperm.xlu0 %23095, %v23303_v21   ;;  %v896_v38 = vld [vmem:[%s23264_s20 + $0xc0] sm:$0xff]  ;;  %v897_v42 = vld [vmem:[%s23264_s20 + $0xc8] sm:$0xff]  ;;  %v501_v43 = vld [vmem:[%s23264_s20 + $0x50] sm:$0xff] }
  0x1c   : > { %20631 = vmatpush3.bf16.msra.mxu0 %v23217_v5  ;;  %v898_v44 = vld [vmem:[%s23264_s20 + $0xd0] sm:$0xff]  ;;  %v23386_v46 = vld [vmem:[%s28920_s9 + $0xd8] sm:$0xff]  ;;  %v503_v49 = vld [vmem:[%s23264_s20 + $0x60] sm:$0xff] }
  0x1d   : > { %16851 = vmatmul.mubr.msk.f32.gmra.mrb[2].mxu0 %vm518_vm0, %v494_v22  ;;  %16883 = vmatmul.mubr.msk.f32.gmra.mrb[2].mxu1 %vm518_vm0, %v891_v23  ;;  %v502_v47 = vld [vmem:[%s23264_s20 + $0x58] sm:$0xff]  ;;  %v900_v50 = vld [vmem:[%s23264_s20 + $0xe0] sm:$0xff]  ;;  %v23402_v51 = vld [vmem:[%s28920_s9 + $0xe8] sm:$0xff] }
  0x1e   : > { %16853 = vmatprep.mubr.msk.f32.mxu0 %vm518_vm0, %v495_v24  ;;  %16885 = vmatprep.mubr.msk.f32.mxu1 %vm518_vm0, %v892_v25  ;;  %v899_v48 = vld [vmem:[%s23264_s20 + $0xd8] sm:$0xff]  ;;  %v23407_v52 = vld [vmem:[%s28920_s9] sm:$0xff]  ;;  %v504_v53 = vld [vmem:[%s23264_s20 + $0x68] sm:$0xff] }
  0x1f   : > { %1204 = vperm.xlu1 %23096, %v23318_v26   ;;  %1199 = vperm.xlu0 %23095, %v23323_v27   ;;  %v901_v54 = vld [vmem:[%s23264_s20 + $0xe8] sm:$0xff]  ;;  %v505_v55 = vld [vmem:[%s23264_s20 + $0x70] sm:$0xff]  ;;  %v506_v59 = vld [vmem:[%s23264_s20 + $0x78] sm:$0xff] }
  0x20   : > { %20632 = vmatprep.subr.bf16.mxu0 %v28925_v28  ;;  %v902_v56 = vld [vmem:[%s23264_s20 + $0xf0] sm:$0xff]  ;;  %v23422_v57 = vld [vmem:[%s28920_s9 + $0x8] sm:$0xff]  ;;  %v903_v60 = vld [vmem:[%s23264_s20 + $0xf8] sm:$0xff] }
  0x21   : > { %16854 = vmatmul.mubr.msk.f32.gmra.mrb[4].mxu0 %vm518_vm0, %v496_v29  ;;  %16886 = vmatmul.mubr.msk.f32.gmra.mrb[4].mxu1 %vm518_vm0, %v893_v30  ;;  %v23427_v58 = vld [vmem:[%s28920_s9 + $0xf0] sm:$0xff]  ;;  %v23440_v61 = vld [vmem:[%s28920_s9 + $0xf8] sm:$0xff]  ;;  %v1284_v63 = vld [vmem:[%s23264_s20 + $0x100] sm:$0xff] }
  0x22   : > { %16856 = vmatprep.mubr.msk.f32.mxu0 %vm518_vm0, %v497_v31  ;;  %16888 = vmatprep.mubr.msk.f32.mxu1 %vm518_vm0, %v894_v32  ;;  %v23445_v62 = vld [vmem:[%s28920_s9 + $0x10] sm:$0xff]  ;;  %v23457_v2 = vld [vmem:[%s28920_s9 + $0x18] sm:$0xff]  ;;  %v23462_v3 = vld [vmem:[%s28920_s9 + $0x20] sm:$0xff] }
  0x23   : > { %1214 = vperm.xlu1 %23096, %v23339_v33   ;;  %1209 = vperm.xlu0 %23095, %v23344_v34   ;;  %v1285_v4 = vld [vmem:[%s23264_s20 + $0x108] sm:$0xff]  ;;  %v23478_v6 = vld [vmem:[%s28920_s9 + $0x30] sm:$0xff]  ;;  %v23494_v14 = vld [vmem:[%s28920_s9 + $0x40] sm:$0xff] }
  0x24   : > { %20634 = vmatpush3.bf16.msra.mxu0 %v23241_v11  ;;  %v23473_v5 = vld [vmem:[%s28920_s9 + $0x28] sm:$0xff]  ;;  %v1286_v7 = vld [vmem:[%s23264_s20 + $0x110] sm:$0xff]  ;;  %v23489_v11 = vld [vmem:[%s28920_s9 + $0x38] sm:$0xff] }
  0x25   : > { %16857 = vmatmul.mubr.msk.f32.gmra.mrb[6].mxu0 %vm518_vm0, %v498_v35  ;;  %16889 = vmatmul.mubr.msk.f32.gmra.mrb[6].mxu1 %vm518_vm0, %v895_v36  ;;  %v1287_v15 = vld [vmem:[%s23264_s20 + $0x118] sm:$0xff]  ;;  %v23505_v16 = vld [vmem:[%s28920_s9 + $0x48] sm:$0xff]  ;;  %v23510_v17 = vld [vmem:[%s28920_s9 + $0x50] sm:$0xff] }
  0x26   : > { %16859 = vmatprep.mubr.msk.f32.mxu0 %vm518_vm0, %v499_v37  ;;  %16891 = vmatprep.mubr.msk.f32.mxu1 %vm518_vm0, %v896_v38  ;;  %v1288_v18 = vld [vmem:[%s23264_s20 + $0x120] sm:$0xff]  ;;  %v23521_v19 = vld [vmem:[%s28920_s9 + $0x58] sm:$0xff]  ;;  %v1289_v23 = vld [vmem:[%s23264_s20 + $0x128] sm:$0xff] }
  0x27   : > { %1224 = vperm.xlu1 %23096, %v23360_v39   ;;  %1219 = vperm.xlu0 %23095, %v23365_v40   ;;  %v23526_v22 = vld [vmem:[%s28920_s9 + $0x60] sm:$0xff]  ;;  %v23542_v25 = vld [vmem:[%s28920_s9 + $0x108] sm:$0xff]  ;;  %v1290_v29 = vld [vmem:[%s23264_s20 + $0x130] sm:$0xff] }
  0x28   : > { %v23537_v24 = vld [vmem:[%s28920_s9 + $0x100] sm:$0xff]  ;;  %v23553_v30 = vld [vmem:[%s28920_s9 + $0x110] sm:$0xff]  ;;  %v23558_v31 = vld [vmem:[%s28920_s9 + $0x118] sm:$0xff] }
  0x29   : > { %16860 = vmatmul.mubr.msk.f32.gmra.mrb[8].mxu0 %vm518_vm0, %v500_v41  ;;  %16892 = vmatmul.mubr.msk.f32.gmra.mrb[8].mxu1 %vm518_vm0, %v897_v42  ;;  %v1291_v32 = vld [vmem:[%s23264_s20 + $0x138] sm:$0xff]  ;;  %v23569_v35 = vld [vmem:[%s28920_s9 + $0x120] sm:$0xff]  ;;  %v23574_v36 = vld [vmem:[%s28920_s9 + $0x128] sm:$0xff] }
  0x2a   : > { %16862 = vmatprep.mubr.msk.f32.mxu0 %vm518_vm0, %v501_v43  ;;  %16894 = vmatprep.mubr.msk.f32.mxu1 %vm518_vm0, %v898_v44  ;;  %v1292_v37 = vld [vmem:[%s23264_s20 + $0x140] sm:$0xff]  ;;  %v14006_v41 = vld [vmem:[%s28914_s3 + $0x88] sm:$0xff]  ;;  %v23591_v42 = vld [vmem:[%s28920_s9 + $0x130] sm:$0xff] }
  0x2b   : > { %1234 = vperm.xlu1 %23096, %v23381_v45   ;;  %1229 = vperm.xlu0 %23095, %v23386_v46   ;;  %v14005_v38 = vld [vmem:[%s28914_s3 + $0x80] sm:$0xff]  ;;  %v23596_v43 = vld [vmem:[%s28920_s9 + $0x138] sm:$0xff] }
  0x2c   : > { %v20635_v44 = vpack.c.bf16 %v14006_v41, %v14005_v38  ;;  %v14014_v38 = vld [vmem:[%s28914_s3 + $0xc8] sm:$0xff] }
  0x2d   : > { %16863 = vmatmul.mubr.msk.f32.gmra.mrb[10].mxu0 %vm518_vm0, %v502_v47  ;;  %16895 = vmatmul.mubr.msk.f32.gmra.mrb[10].mxu1 %vm518_vm0, %v899_v48  ;;  %v1293_v47 = vld [vmem:[%s23264_s20 + $0x148] sm:$0xff]  ;;  %v14007_v48 = vld [vmem:[%s28914_s3 + $0x90] sm:$0xff] }
  0x2e   : > { %16865 = vmatprep.mubr.msk.f32.mxu0 %vm518_vm0, %v503_v49  ;;  %16897 = vmatprep.mubr.msk.f32.mxu1 %vm518_vm0, %v900_v50  ;;  %v14008_v49 = vld [vmem:[%s28914_s3 + $0x98] sm:$0xff]  ;;  %v23613_v50 = vld [vmem:[%s28920_s9 + $0x140] sm:$0xff] }
  0x2f   : > { %1239 = vperm.xlu0 %23095, %v23402_v51   ;;  %778 = vperm.xlu1 %23096, %v23407_v52  }
  0x30   : > { %20636 = vmatprep.subr.bf16.mxu1 %v20635_v44  ;;  %20924 = vmatprep.subr.bf16.mxu0 %v20635_v44 }
  0x31   : > { %16866 = vmatmul.mubr.msk.f32.gmra.mrb[12].mxu0 %vm518_vm0, %v504_v53  ;;  %16898 = vmatmul.mubr.msk.f32.gmra.mrb[12].mxu1 %vm518_vm0, %v901_v54  ;;  %v23618_v53 = vld [vmem:[%s28920_s9 + $0x148] sm:$0xff]  ;;  %v20639_v54 = vpack.c.bf16 %v14008_v49, %v14007_v48  ;;  %v14017_v48 = vld [vmem:[%s28914_s3 + $0xe0] sm:$0xff] }
  0x32   : > { %16868 = vmatprep.mubr.msk.f32.mxu0 %vm518_vm0, %v505_v55  ;;  %16900 = vmatprep.mubr.msk.f32.mxu1 %vm518_vm0, %v902_v56  ;;  %v1294_v55 = vld [vmem:[%s23264_s20 + $0x150] sm:$0xff]  ;;  %v14009_v56 = vld [vmem:[%s28914_s3 + $0xa0] sm:$0xff]  ;;  %v14018_v49 = vld [vmem:[%s28914_s3 + $0xe8] sm:$0xff] }
  0x33   : > { %783 = vperm.xlu0 %23095, %v23422_v57   ;;  %1244 = vperm.xlu1 %23096, %v23427_v58  }
  0x34   : > { %20638 = vmatpush3.bf16.msra.mxu1 %v20635_v44 }
  0x35   : > { %16869 = vmatmul.mubr.msk.f32.gmra.mrb[14].mxu0 %vm518_vm0, %v506_v59  ;;  %16901 = vmatmul.mubr.msk.f32.gmra.mrb[14].mxu1 %vm518_vm0, %v903_v60  ;;  %v14010_v59 = vld [vmem:[%s28914_s3 + $0xa8] sm:$0xff]  ;;  %v23635_v60 = vld [vmem:[%s28920_s9 + $0x150] sm:$0xff] }
  0x36   : > { %16911 = vmatprep.mubr.msk.f32.mxu0 %vm23118_vm1, %v23116_v8  ;;  %20640 = vmatprep.subr.bf16.mxu1 %v20639_v54 }
  0x37   : > { %1249 = vperm.xlu0 %23095, %v23440_v61   ;;  %788 = vperm.xlu1 %23096, %v23445_v62  }
  0x38   : > { %20642 = vmatpush3.bf16.msra.mxu1 %v20639_v54 }
  0x39   : > { %16912 = vmatmul.mubr.msk.f32.vlgmr.msra.gmra.mrb[16].mxu0 %vm518_vm0, %v1284_v63  ;;  %v23640_v63 = vld [vmem:[%s28920_s9 + $0x158] sm:$0xff] }
  0x3a   : > { %16914 = vmatprep.mubr.msk.f32.mxu0 %vm23118_vm1, %v23116_v8  ;;  %20926 = vmatpush3.bf16.msra.mxu0 %v20635_v44  ;;  %v14016_v44 = vld [vmem:[%s28914_s3 + $0xd8] sm:$0xff] }
  0x3b   : > { %793 = vperm.xlu0 %23095, %v23457_v2   ;;  %798 = vperm.xlu1 %23096, %v23462_v3  }
  0x3c   : > { %20928 = vmatprep.subr.bf16.mxu0 %v20639_v54 }
  0x3d   : > { %16915 = vmatmul.mubr.msk.f32.gmra.mrb[18].mxu0 %vm518_vm0, %v1285_v4  ;;  %v20643_v4 = vpack.c.bf16 %v14010_v59, %v14009_v56  ;;  %v14020_v56 = vld [vmem:[%s28914_s3 + $0xf8] sm:$0xff] }
  0x3e   : > { %16917 = vmatprep.mubr.msk.f32.mxu0 %vm23118_vm1, %v23116_v8  ;;  %20930 = vmatpush3.bf16.msra.mxu0 %v20639_v54  ;;  %v20659_v54 = vpack.c.bf16 %v14018_v49, %v14017_v48  ;;  %v1644_v49 = vld [vmem:[%s28914_s3 + $0x40] sm:$0xff] }
  0x3f   : > { %803 = vperm.xlu0 %23095, %v23473_v5   ;;  %808 = vperm.xlu1 %23096, %v23478_v6  }
  0x40   : > { %20644 = vmatprep.subr.bf16.mxu1 %v20643_v4  ;;  %20932 = vmatprep.subr.bf16.mxu0 %v20643_v4 }
  0x41   : > { %16918 = vmatmul.mubr.msk.f32.gmra.mrb[20].mxu0 %vm518_vm0, %v1286_v7  ;;  %v1295_v7 = vld [vmem:[%s23264_s20 + $0x158] sm:$0xff]  ;;  %20646 = vmatpush3.bf16.msra.mxu1 %v20643_v4 }
  0x42   : > { %16920 = vmatprep.mubr.msk.f32.mxu0 %vm23118_vm1, %v23116_v8  ;;  %20934 = vmatpush3.bf16.msra.mxu0 %v20643_v4  ;;  %v1636_v4 = vld [vmem:[%s28914_s3] sm:$0xff] }
  0x43   : > { %813 = vperm.xlu0 %23095, %v23489_v11   ;;  %818 = vperm.xlu1 %23096, %v23494_v14  }
  0x45   : > { %16921 = vmatmul.mubr.msk.f32.gmra.mrb[22].mxu0 %vm518_vm0, %v1287_v15  ;;  %v14011_v15 = vld [vmem:[%s28914_s3 + $0xb0] sm:$0xff] }
  0x46   : > { %16923 = vmatprep.mubr.msk.f32.mxu0 %vm23118_vm1, %v23116_v8 }
  0x47   : > { %823 = vperm.xlu0 %23095, %v23505_v16   ;;  %828 = vperm.xlu1 %23096, %v23510_v17  }
  0x49   : > { %16924 = vmatmul.mubr.msk.f32.gmra.mrb[24].mxu0 %vm518_vm0, %v1288_v18  ;;  %v14012_v18 = vld [vmem:[%s28914_s3 + $0xb8] sm:$0xff] }
  0x4a   : > { %16926 = vmatprep.mubr.msk.f32.mxu0 %vm23118_vm1, %v23116_v8 }
  0x4b   : > { %833 = vperm.xlu0 %23095, %v23521_v19   ;;  %838 = vperm.xlu1 %23096, %v23526_v22  }
  0x4d   : > { %16927 = vmatmul.mubr.msk.f32.gmra.mrb[26].mxu0 %vm518_vm0, %v1289_v23  ;;  %v1528_v23 = vld [vmem:[%s28920_s9 + $0x160] sm:$0x3f] }
  0x4e   : > { %16929 = vmatprep.mubr.msk.f32.mxu0 %vm23118_vm1, %v23116_v8 }
  0x4f   : > { %1531 = vperm.xlu0 %23095, %v23537_v24   ;;  %1536 = vperm.xlu1 %23096, %v23542_v25  }
  0x51   : > { %16930 = vmatmul.mubr.msk.f32.gmra.mrb[28].mxu0 %vm518_vm0, %v1290_v29  ;;  %v20647_v29 = vpack.c.bf16 %v14012_v18, %v14011_v15  ;;  %v1652_v15 = vld [vmem:[#allocation2 + $0x1] sm:$0xff] }
  0x52   : > { %16932 = vmatprep.mubr.msk.f32.mxu0 %vm23118_vm1, %v23116_v8  ;;  %16982 = vmatprep.mubr.f32.mxu1 %v1652_v15  ;;  %v1650_v15 = vld [vmem:[%s28914_s3 + $0x70] sm:$0xff] }
  0x53   : > { %1541 = vperm.xlu0 %23095, %v23553_v30   ;;  %1546 = vperm.xlu1 %23096, %v23558_v31  }
  0x54   : > { %20648 = vmatprep.subr.bf16.mxu1 %v20647_v29  ;;  %20936 = vmatprep.subr.bf16.mxu0 %v20647_v29 }
  0x55   : > { %16933 = vmatmul.mubr.msk.f32.gmra.mrb[30].mxu0 %vm518_vm0, %v1291_v32  ;;  %v1296_v32 = vld [vmem:[%s23264_s20 + $0x160] sm:$0x3f]  ;;  %20650 = vmatpush3.bf16.msra.mxu1 %v20647_v29  ;;  %s13953_s20 = sshll.u32 %s13946_s26, 3 }
  0x56   : > { %16935 = vmatprep.mubr.msk.f32.mxu0 %vm23118_vm1, %v23116_v8  ;;  %20938 = vmatpush3.bf16.msra.mxu0 %v20647_v29  ;;  %v1638_v29 = vld [vmem:[%s28914_s3 + $0x10] sm:$0xff]  ;;  %p460_p4 = scmp.lt.s32.totalorder %s13953_s20, 15 }
  0x57   : > { %1551 = vperm.xlu0 %23095, %v23569_v35   ;;  %1556 = vperm.xlu1 %23096, %v23574_v36  }
  0x58   : > { %s28985_s20 = smov (!%p460_p4, %s13953_s20), 15 }
  0x59   : > { %16936 = vmatmul.mubr.msk.f32.gmra.mrb[32].mxu0 %vm518_vm0, %v1292_v37  ;;  %v14013_v37 = vld [vmem:[%s28914_s3 + $0xc0] sm:$0xff]  ;;  %s13954_s26 = sshll.u32 %s28985_s20, 3 }
  0x5a   : > { %16938 = vmatprep.mubr.msk.f32.mxu0 %vm23118_vm1, %v23116_v8  ;;  %v20651_v41 = vpack.c.bf16 %v14014_v38, %v14013_v37  ;;  %v1640_v38 = vld [vmem:[%s28914_s3 + $0x20] sm:$0xff]  ;;  %s27798_s29 = scalar_lea.vmem %s28923_s12, %s13954_s26  ;;  %s28900_s24 = scalar_lea.vmem %s28924_s13, %s13954_s26 }
  0x5b   : > { %1561 = vperm.xlu0 %23095, %v23591_v42   ;;  %1566 = vperm.xlu1 %23096, %v23596_v43  }
  0x5c   : > { %20652 = vmatprep.subr.bf16.mxu1 %v20651_v41  ;;  %20940 = vmatprep.subr.bf16.mxu0 %v20651_v41 }
  0x5d   : > { %16939 = vmatmul.mubr.msk.f32.gmra.mrb[34].mxu0 %vm518_vm0, %v1293_v47  ;;  %20654 = vmatpush3.bf16.msra.mxu1 %v20651_v41 }
  0x5e   : > { %16941 = vmatprep.mubr.msk.f32.mxu0 %vm23118_vm1, %v23116_v8  ;;  %20942 = vmatpush3.bf16.msra.mxu0 %v20651_v41  ;;  %v1641_v41 = vld [vmem:[%s28914_s3 + $0x28] sm:$0xff] }
  0x5f   : > { %1571 = vperm.xlu0 %23095, %v23613_v50   ;;  %1576 = vperm.xlu1 %23096, %v23618_v53  }
  0x61   : > { %16942 = vmatmul.mubr.msk.f32.gmra.mrb[36].mxu0 %vm518_vm0, %v1294_v55  ;;  %v14019_v55 = vld [vmem:[%s28914_s3 + $0xf0] sm:$0xff] }
  0x62   : > { %16944 = vmatprep.mubr.msk.f32.mxu0 %vm23118_vm1, %v23116_v8  ;;  %v20663_v59 = vpack.c.bf16 %v14020_v56, %v14019_v55  ;;  %v1647_v56 = vld [vmem:[%s28914_s3 + $0x58] sm:$0xff] }
  0x63   : > { %1581 = vperm.xlu0 %23095, %v23635_v60   ;;  %1586 = vperm.xlu1 %23096, %v23640_v63  }
  0x65   : > { %16945 = vmatmul.mubr.msk.f32.gmra.mrb[38].mxu0 %vm518_vm0, %v1295_v7  ;;  %v1637_v7 = vld [vmem:[%s28914_s3 + $0x8] sm:$0xff] }
  0x66   : > { %16947 = vmatprep.mubr.msk.f32.mxu0 %vm23118_vm1, %v23116_v8  ;;  %v14015_v8 = vld [vmem:[%s28914_s3 + $0xd0] sm:$0xff]  ;;  %v23701_v18 = vpack.c.bf16 %v1637_v7, %v1636_v4  ;;  %v1649_v4 = vld [vmem:[%s28914_s3 + $0x68] sm:$0xff] }
  0x67   : > { %1591 = vperm.xlu0 %23095, %v1528_v23   ;;  %3422 = vperm.xlu1 %23096, %v23407_v52   ;;  %v20655_v47 = vpack.c.bf16 %v14016_v44, %v14015_v8  ;;  %v1653_v23 = vld [vmem:[#allocation2 + $0x9] sm:$0xff]  ;;  %v23728_v8 = vpack.c.bf16 %v1641_v41, %v1640_v38 }
  0x68   : > { %v1642_v44 = vld [vmem:[%s28914_s3 + $0x30] sm:$0xff] }
  0x69   : > { %16948 = vmatmul.mubr.msk.f32.gmra.mrb[40].mxu0 %vm518_vm0, %v1296_v32  ;;  %20656 = vmatprep.subr.bf16.mxu1 %v20655_v47  ;;  %v1639_v32 = vld [vmem:[%s28914_s3 + $0x18] sm:$0xff] }
  0x6a   : > { %20658 = vmatpush3.bf16.msra.mxu1 %v20655_v47  ;;  %20944 = vmatprep.subr.bf16.mxu0 %v20655_v47  ;;  %v23713_v37 = vpack.c.bf16 %v1639_v32, %v1638_v29 }
  0x6b   : > { %3427 = vperm.xlu0 %23095, %v23422_v57   ;;  %3432 = vperm.xlu1 %23096, %v23445_v62  }
  0x6c   : > { %20660 = vmatprep.subr.bf16.mxu1 %v20659_v54  ;;  %20946 = vmatpush3.bf16.msra.mxu0 %v20655_v47  ;;  %v1643_v47 = vld [vmem:[%s28914_s3 + $0x38] sm:$0xff] }
  0x6d   : > { %20948 = vmatprep.subr.bf16.mxu0 %v20659_v54  ;;  %v23742_v48 = vpack.c.bf16 %v1643_v47, %v1642_v44 }
  0x6e   : > { %20662 = vmatpush3.bf16.msra.mxu1 %v20659_v54 }
  0x6f   : > { %3437 = vperm.xlu0 %23095, %v23457_v2   ;;  %3442 = vperm.xlu1 %23096, %v23462_v3  }
  0x70   : > { %20664 = vmatprep.subr.bf16.mxu1 %v20663_v59  ;;  %20950 = vmatpush3.bf16.msra.mxu0 %v20659_v54  ;;  %v1645_v54 = vld [vmem:[%s28914_s3 + $0x48] sm:$0xff] }
  0x71   : > { %20952 = vmatprep.subr.bf16.mxu0 %v20663_v59  ;;  %v23754_v55 = vpack.c.bf16 %v1645_v54, %v1644_v49 }
  0x72   : > { %20666 = vmatpush3.bf16.msra.mxu1 %v20663_v59 }
  0x73   : > { %3447 = vperm.xlu0 %23095, %v23473_v5   ;;  %3452 = vperm.xlu1 %23096, %v23478_v6  }
  0x74   : > { %20668 = vmatprep.subr.bf16.mxu1 %v23701_v18  ;;  %20954 = vmatpush3.bf16.msra.mxu0 %v20663_v59 }
  0x75   : > { %16983 = vmatmul.mubr.f32.vlgmr.msra.gmra.mrb[16].mxu1 %v1653_v23  ;;  %20956 = vmatprep.subr.bf16.mxu0 %v23701_v18  ;;  %v1651_v23 = vld [vmem:[%s28914_s3 + $0x78] sm:$0xff] }
  0x76   : > { %20670 = vmatpush3.bf16.msra.mxu1 %v23701_v18  ;;  %v23790_v29 = vpack.c.bf16 %v1651_v23, %v1650_v15 }
  0x77   : > { %3457 = vperm.xlu0 %23095, %v23489_v11   ;;  %3462 = vperm.xlu1 %23096, %v23494_v14  }
  0x78   : > { %20672 = vmatprep.subr.bf16.mxu1 %v23713_v37 }
  0x7a   : > { %20674 = vmatpush3.bf16.msra.mxu1 %v23713_v37 }
  0x7b   : > { %3467 = vperm.xlu0 %23095, %v23505_v16   ;;  %3472 = vperm.xlu1 %23096, %v23510_v17  }
  0x7c   : > { %20676 = vmatprep.subr.bf16.mxu1 %v23728_v8 }
  0x7e   : > { %20678 = vmatpush3.bf16.msra.mxu1 %v23728_v8 }
  0x7f   : > { %3477 = vperm.xlu0 %23095, %v23521_v19   ;;  %3482 = vperm.xlu1 %23096, %v23526_v22  }
  0x80   : > { %20680 = vmatprep.subr.bf16.mxu1 %v23742_v48 }
  0x82   : > { %20682 = vmatpush3.bf16.msra.mxu1 %v23742_v48 }
  0x83   : > { %3487 = vperm.xlu0 %23095, %v23205_v1   ;;  %3492 = vperm.xlu1 %23096, %v23239_v10  }
  0x84   : > { %20684 = vmatprep.subr.bf16.mxu1 %v23754_v55 }
  0x86   : > { %20686 = vmatpush3.bf16.msra.mxu1 %v23754_v55 }
  0x87   : > { %3497 = vperm.xlu0 %23095, %v23200_v0   ;;  %5326 = vperm.xlu1 %23096, %v23234_v9  }
  0x8b   : > { %5331 = vperm.xlu0 %23095, %v23259_v13   ;;  %5336 = vperm.xlu1 %23096, %v23254_v12  }
  0x8f   : > { %5341 = vperm.xlu0 %23095, %v23303_v21   ;;  %5346 = vperm.xlu1 %23096, %v23298_v20   ;;  %v1646_v20 = vld [vmem:[%s28914_s3 + $0x50] sm:$0xff] }
  0x90   : > { %v23766_v59 = vpack.c.bf16 %v1647_v56, %v1646_v20 }
  0x92   : > { %20688 = vmatprep.subr.bf16.mxu1 %v23766_v59 }
  0x93   : > { %5351 = vperm.xlu0 %23095, %v23323_v27   ;;  %5356 = vperm.xlu1 %23096, %v23318_v26   ;;  %v1648_v27 = vld [vmem:[%s28914_s3 + $0x60] sm:$0xff] }
  0x94   : > { %20690 = vmatpush3.bf16.msra.mxu1 %v23766_v59  ;;  %v23778_v7 = vpack.c.bf16 %v1649_v4, %v1648_v27 }
  0x96   : > { %20692 = vmatprep.subr.bf16.mxu1 %v23778_v7 }
  0x97   : > { %5361 = vperm.xlu0 %23095, %v23344_v34   ;;  %5366 = vperm.xlu1 %23096, %v23339_v33  }
  0x98   : > { %20694 = vmatpush3.bf16.msra.mxu1 %v23778_v7 }
  0x99   : > { %20696 = vmatprep.subr.bf16.mxu1 %v23790_v29 }
  0x9b   : > { %5371 = vperm.xlu0 %23095, %v23365_v40   ;;  %5376 = vperm.xlu1 %23096, %v23360_v39   ;;  %v14021_v39 = vld [vmem:[%s28914_s3 + $0x100] sm:$0xff]  ;;  %v14022_v40 = vld [vmem:[%s28914_s3 + $0x108] sm:$0xff] }
  0x9c   : > { %20698 = vmatpush3.bf16.msra.mxu1 %v23790_v29  ;;  %v23802_v32 = vpack.c.bf16 %v14022_v40, %v14021_v39 }
  0x9e   : > { %20700 = vmatprep.subr.bf16.mxu1 %v23802_v32 }
  0x9f   : > { %5381 = vperm.xlu0 %23095, %v23386_v46   ;;  %5386 = vperm.xlu1 %23096, %v23381_v45   ;;  %v23809_v45 = vpop.permute.xlu0 %843  ;;  %v23813_v46 = vpop.permute.xlu1 %853 }
  0xa3   : > { %5391 = vperm.xlu0 %23095, %v23402_v51   ;;  %5396 = vperm.xlu1 %23096, %v23427_v58   ;;  %v23815_v38 = vpop.permute.xlu0 %848  ;;  %v23819_v51 = vpop.permute.xlu1 %1174 }
  0xa7   : > { %5401 = vperm.xlu0 %23095, %v23440_v61   ;;  %7032 = vperm.xlu1 %23096, %v23537_v24   ;;  %v23823_v24 = vpop.permute.xlu0 %1179 }
  0xab   : > { %7037 = vperm.xlu0 %23095, %v23542_v25   ;;  %7042 = vperm.xlu1 %23096, %v23553_v30   ;;  %v23827_v25 = vpop.permute.xlu1 %1184  ;;  %v23829_v30 = vpop.permute.xlu0 %1189 }
  0xaf   : > { %7047 = vperm.xlu0 %23095, %v23558_v31   ;;  %7052 = vperm.xlu1 %23096, %v23569_v35   ;;  %v7029_v31 = vld [vmem:[%s28920_s9 + $0x160] sm:$0x3f]  ;;  %v23836_v35 = vpop.permute.xlu1 %1194  ;;  %v23839_v41 = vpop.permute.xlu0 %1199 }
  0xb3   : > { %7057 = vperm.xlu0 %23095, %v23574_v36   ;;  %7062 = vperm.xlu1 %23096, %v23591_v42  }
  0xb7   : > { %7067 = vperm.xlu0 %23095, %v23596_v43   ;;  %7072 = vperm.xlu1 %23096, %v23613_v50   ;;  %v23843_v50 = vpop.permute.xlu1 %1204 }
  0xbb   : > { %7077 = vperm.xlu0 %23095, %v23618_v53   ;;  %7082 = vperm.xlu1 %23096, %v23635_v60   ;;  %v23845_v53 = vpop.permute.xlu0 %1209  ;;  %v23849_v60 = vpop.permute.xlu1 %1214 }
  0xbf   : > { %7087 = vperm.xlu0 %23095, %v23640_v63   ;;  %7092 = vperm.xlu1 %23096, %v7029_v31   ;;  %v23853_v63 = vpop.permute.xlu0 %1219 }
  0xc3   : > { %8923 = vperm.xlu0 %23095, %v23407_v52   ;;  %8928 = vperm.xlu1 %23096, %v23422_v57   ;;  %v23857_v52 = vpop.permute.xlu1 %1224  ;;  %v23859_v57 = vpop.permute.xlu0 %1229 }
  0xc7   : > { %8958 = vperm.xlu0 %23095, %v23489_v11   ;;  %8963 = vperm.xlu1 %23096, %v23494_v14   ;;  %v23863_v11 = vpop.permute.xlu1 %1234 }
  0xcb   : > { %8968 = vperm.xlu0 %23095, %v23505_v16   ;;  %8998 = vperm.xlu1 %23096, %v23200_v0   ;;  %v23867_v0 = vpop.permute.xlu0 %1239 }
  0xcf   : > { %10827 = vperm.xlu0 %23095, %v23234_v9   ;;  %10857 = vperm.xlu1 %23096, %v23318_v26   ;;  %v779_v9 = vpop.permute.xlu1 %778  ;;  %v784_v26 = vpop.permute.xlu0 %783 }
  0xd3   : > { %10862 = vperm.xlu0 %23095, %v23344_v34   ;;  %10867 = vperm.xlu1 %23096, %v23339_v33   ;;  %v23873_v34 = vpop.permute.xlu1 %1244  ;;  %v23877_v33 = vpop.permute.xlu0 %1249 }
  0xd7   : > { %10897 = vperm.xlu0 %23095, %v23427_v58   ;;  %10902 = vperm.xlu1 %23096, %v23440_v61   ;;  %v23881_v58 = vpop.permute.xlu1 %788  ;;  %v23886_v61 = vld [vmem:[%s28913_s2] ss:$0 sm:$0xff] }
  0xdb   : > { %12558 = vperm.xlu0 %23095, %v23574_v36   ;;  %12563 = vperm.xlu1 %23096, %v23591_v42  }
  0xdf   : > { %12568 = vperm.xlu0 %23095, %v23596_v43   ;;  %8933 = vperm.xlu1 %23096, %v23445_v62   ;;  %v794_v62 = vpop.permute.xlu0 %793  ;;  %v23894_v43 = vpop.permute.xlu1 %798 }
  0xe3   : > { %8938 = vperm.xlu0 %23095, %v23457_v2   ;;  %8943 = vperm.xlu1 %23096, %v23462_v3   ;;  %v804_v40 = vpop.permute.xlu0 %803 }
  0xe7   : > { %8948 = vperm.xlu0 %23095, %v23473_v5   ;;  %8953 = vperm.xlu1 %23096, %v23478_v6  }
  0xeb   : > { %8973 = vperm.xlu0 %23095, %v23510_v17   ;;  %8978 = vperm.xlu1 %23096, %v23521_v19  }
  0xec   : > { %v16849_v2 = vpop.f32.mrb[0].mxu0  ;;  %v16881_v3 = vpop.f32.mrb[0].mxu1 }
  0xed   : > { %v639_v14 = vadd.f32 %v16849_v2, %v23886_v61  ;;  %v633_v16 = vpop.f32.mrb[1].mxu0  ;;  %v1035_v5 = vadd.f32 %v16881_v3, %v23886_v61  ;;  %v1029_v6 = vpop.f32.mrb[1].mxu1 }
  0xee   : > { %v634_v36 = vadd.f32 %v23886_v61, %v633_v16  ;;  %v1030_v42 = vadd.f32 %v23886_v61, %v1029_v6 }
  0xef   : > { %vm713_vm2 = vcmp.ge.f32.partialorder %v639_v14, 0.0  ;;  %v729_v44 = vmul.f32 0.05, %v639_v14  ;;  %8983 = vperm.xlu0 %23095, %v23526_v22   ;;  %8988 = vperm.xlu1 %23096, %v23205_v1   ;;  %vm1109_vm3 = vcmp.ge.f32.partialorder %v1035_v5, 0.0  ;;  %v1125_v17 = vmul.f32 0.05, %v1035_v5 }
  0xf0   : > { %vm712_vm4 = vcmp.ge.f32.partialorder %v634_v36, 0.0  ;;  %v728_v19 = vmul.f32 0.05, %v634_v36  ;;  %v16852_v47 = vpop.f32.mrb[2].mxu0  ;;  %vm1108_vm5 = vcmp.ge.f32.partialorder %v1030_v42, 0.0  ;;  %v16884_v49 = vpop.f32.mrb[2].mxu1 }
  0xf1   : > { %v745_v54 = vsel %vm713_vm2, %v639_v14, %v729_v44  ;;  %v649_v20 = vadd.f32 %v16852_v47, %v23886_v61  ;;  %v643_v56 = vpop.f32.mrb[3].mxu0  ;;  %v1141_v27 = vsel %vm1109_vm3, %v1035_v5, %v1125_v17  ;;  %v1124_v4 = vmul.f32 0.05, %v1030_v42  ;;  %v1039_v15 = vpop.f32.mrb[3].mxu1  ;;  %v10813_v47 = vld [vmem:[%s28920_s9 + $0xa0] sm:$0xff] }
  0xf2   : > { %v857_v23 = vmul.f32 %v784_v26, %v745_v54  ;;  %v744_v39 = vsel %vm712_vm4, %v634_v36, %v728_v19  ;;  %v644_v22 = vadd.f32 %v23886_v61, %v643_v56  ;;  %v1253_v1 = vmul.f32 %v23823_v24, %v1141_v27  ;;  %v23911_v44 = vpop.permute.xlu1 %808 }
  0xf3   : > { %v856_v31 = vmul.f32 %v779_v9, %v744_v39  ;;  %vm715_vm6 = vcmp.ge.f32.partialorder %v649_v20, 0.0  ;;  %v731_v2 = vmul.f32 0.05, %v649_v20  ;;  %8993 = vperm.xlu0 %23095, %v23239_v10   ;;  %10832 = vperm.xlu1 %23096, %v23259_v13   ;;  %v1140_v3 = vsel %vm1108_vm5, %v1030_v42, %v1124_v4  ;;  %v814_v39 = vpop.permute.xlu0 %813 }
  0xf4   : > { %873 = vst [vmem:[#allocation2 + $0x1d] sm:$0xff] %v857_v23  ;;  %vm714_vm7 = vcmp.ge.f32.partialorder %v644_v22, 0.0  ;;  %v730_v14 = vmul.f32 0.05, %v644_v22  ;;  %v16855_v16 = vpop.f32.mrb[4].mxu0  ;;  %1269 = vst [vmem:[#allocation2 + $0x9d] sm:$0xff] %v1253_v1  ;;  %v1252_v26 = vmul.f32 %v23819_v51, %v1140_v3  ;;  %v1045_v5 = vadd.f32 %v16884_v49, %v23886_v61 }
  0xf5   : > { %v16887_v24 = vpop.f32.mrb[4].mxu1  ;;  %872 = vst [vmem:[#allocation2 + $0x15] sm:$0xff] %v856_v31  ;;  %v747_v9 = vsel %vm715_vm6, %v649_v20, %v731_v2  ;;  %v659_v6 = vadd.f32 %v16855_v16, %v23886_v61  ;;  %v653_v36 = vpop.f32.mrb[5].mxu0  ;;  %v1040_v10 = vadd.f32 %v23886_v61, %v1039_v15 }
  0xf6   : > { %v23909_v13 = vadd.f32 %v16887_v24, %v23886_v61  ;;  %v1049_v42 = vpop.f32.mrb[5].mxu1  ;;  %v859_v17 = vmul.f32 %v794_v62, %v747_v9  ;;  %v746_v19 = vsel %vm714_vm7, %v644_v22, %v730_v14  ;;  %v654_v51 = vadd.f32 %v23886_v61, %v653_v36  ;;  %1268 = vst [vmem:[#allocation2 + $0x95] sm:$0xff] %v1252_v26  ;;  %v10814_v62 = vld [vmem:[%s28920_s9 + $0xa8] sm:$0xff]  ;;  %v819_v24 = vpop.permute.xlu1 %818 }
  0xf7   : > { %vm1111_vm8 = vcmp.ge.f32.partialorder %v1045_v5, 0.0  ;;  %v858_v49 = vmul.f32 %v23881_v58, %v746_v19  ;;  %vm717_vm9 = vcmp.ge.f32.partialorder %v659_v6, 0.0  ;;  %v733_v54 = vmul.f32 0.05, %v659_v6  ;;  %10837 = vperm.xlu0 %23095, %v23254_v12   ;;  %10842 = vperm.xlu1 %23096, %v23303_v21  }
  0xf8   : > { %v1127_v20 = vmul.f32 0.05, %v1045_v5  ;;  %875 = vst [vmem:[#allocation2 + $0x2d] sm:$0xff] %v859_v17  ;;  %vm716_vm10 = vcmp.ge.f32.partialorder %v654_v51, 0.0  ;;  %v732_v56 = vmul.f32 0.05, %v654_v51  ;;  %v1050_v17 = vadd.f32 %v23886_v61, %v1049_v42 }
  0xf9   : > { %v16858_v27 = vpop.f32.mrb[6].mxu0  ;;  %vm1110_vm11 = vcmp.ge.f32.partialorder %v1040_v10, 0.0  ;;  %vm1113_vm12 = vcmp.ge.f32.partialorder %v23909_v13, 0.0  ;;  %874 = vst [vmem:[#allocation2 + $0x25] sm:$0xff] %v858_v49  ;;  %v749_v58 = vsel %vm717_vm9, %v659_v6, %v733_v54  ;;  %v1126_v21 = vmul.f32 0.05, %v1040_v10 }
  0xfa   : > { %v669_v4 = vadd.f32 %v16858_v27, %v23886_v61  ;;  %v663_v15 = vpop.f32.mrb[7].mxu0  ;;  %v1143_v12 = vsel %vm1111_vm8, %v1045_v5, %v1127_v20  ;;  %v16890_v23 = vpop.f32.mrb[6].mxu1  ;;  %v861_v22 = vmul.f32 %v804_v40, %v749_v58  ;;  %v748_v1 = vsel %vm716_vm10, %v654_v51, %v732_v56  ;;  %v10818_v5 = vld [vmem:[%s28920_s9 + $0xc8] sm:$0xff]  ;;  %v10819_v49 = vld [vmem:[%s28920_s9 + $0xd0] sm:$0xff] }
  0xfb   : > { %v664_v31 = vadd.f32 %v23886_v61, %v663_v15  ;;  %v1255_v2 = vmul.f32 %v23829_v30, %v1143_v12  ;;  %v860_v3 = vmul.f32 %v23894_v43, %v748_v1  ;;  %v1142_v16 = vsel %vm1110_vm11, %v1040_v10, %v1126_v21  ;;  %10847 = vperm.xlu0 %23095, %v10813_v47   ;;  %v1059_v26 = vpop.f32.mrb[7].mxu1  ;;  %v10820_v15 = vld [vmem:[%s28920_s9 + $0xd8] sm:$0xff]  ;;  %v824_v12 = vpop.permute.xlu0 %823 }
  0xfc   : > { %vm719_vm13 = vcmp.ge.f32.partialorder %v669_v4, 0.0  ;;  %v735_v14 = vmul.f32 0.05, %v669_v4  ;;  %10852 = vperm.xlu1 %23096, %v10814_v62   ;;  %877 = vst [vmem:[#allocation2 + $0x3d] sm:$0xff] %v861_v22  ;;  %v1254_v30 = vmul.f32 %v23827_v25, %v1142_v16  ;;  %v16861_v9 = vpop.f32.mrb[8].mxu0  ;;  %v1654_v19 = vld [vmem:[#allocation2 + $0x11] sm:$0xff]  ;;  %v1065_v51 = vadd.f32 %v16890_v23, %v23886_v61 }
  0xfd   : > { %vm718_vm14 = vcmp.ge.f32.partialorder %v664_v31, 0.0  ;;  %v734_v40 = vmul.f32 0.05, %v664_v31  ;;  %1271 = vst [vmem:[#allocation2 + $0xad] sm:$0xff] %v1255_v2  ;;  %v1129_v43 = vmul.f32 0.05, %v23909_v13  ;;  %v679_v36 = vadd.f32 %v16861_v9, %v23886_v61  ;;  %16985 = vmatprep.mubr.f32.mxu1 %v1654_v19  ;;  %v23958_v2 = vpop.permute.xlu1 %828 }
  0xfe   : > { %876 = vst [vmem:[#allocation2 + $0x35] sm:$0xff] %v860_v3  ;;  %v751_v6 = vsel %vm719_vm13, %v669_v4, %v735_v14  ;;  %v673_v10 = vpop.f32.mrb[9].mxu0  ;;  %v1655_v47 = vld [vmem:[#allocation2 + $0x19] sm:$0xff]  ;;  %v16893_v25 = vpop.f32.mrb[8].mxu1  ;;  %1270 = vst [vmem:[#allocation2 + $0xa5] sm:$0xff] %v1254_v30  ;;  %vm1112_vm2 = vcmp.ge.f32.partialorder %v1050_v17, 0.0 }
  0xff   : > { %v863_v54 = vmul.f32 %v814_v39, %v751_v6  ;;  %v750_v20 = vsel %vm718_vm14, %v664_v31, %v734_v40  ;;  %v1145_v62 = vsel %vm1113_vm12, %v23909_v13, %v1129_v43  ;;  %v674_v56 = vadd.f32 %v23886_v61, %v673_v10  ;;  %16986 = vmatmul.mubr.f32.gmra.mrb[18].mxu1 %v1655_v47  ;;  %v1069_v4 = vpop.f32.mrb[9].mxu1  ;;  %v10821_v13 = vld [vmem:[%s28920_s9 + $0xe0] sm:$0xff] }
 0x100   : > { %v862_v42 = vmul.f32 %v23911_v44, %v750_v20  ;;  %vm721_vm15 = vcmp.ge.f32.partialorder %v679_v36, 0.0  ;;  %v737_v27 = vmul.f32 0.05, %v679_v36  ;;  %v1257_v58 = vmul.f32 %v23839_v41, %v1145_v62  ;;  %10872 = vperm.xlu0 %23095, %v10818_v5   ;;  %10877 = vperm.xlu1 %23096, %v10819_v49   ;;  %v16864_v22 = vpop.f32.mrb[10].mxu0  ;;  %v1656_v1 = vld [vmem:[#allocation2 + $0x21] sm:$0xff]  ;;  %v16896_v31 = vpop.f32.mrb[10].mxu1 }
 0x101   : > { %879 = vst [vmem:[#allocation2 + $0x4d] sm:$0xff] %v863_v54  ;;  %vm720_vm0 = vcmp.ge.f32.partialorder %v674_v56, 0.0  ;;  %v736_v21 = vmul.f32 0.05, %v674_v56  ;;  %v1128_v44 = vmul.f32 0.05, %v1050_v17  ;;  %v1060_v39 = vadd.f32 %v23886_v61, %v1059_v26  ;;  %16988 = vmatprep.mubr.f32.mxu1 %v1656_v1 }
 0x102   : > { %878 = vst [vmem:[#allocation2 + $0x45] sm:$0xff] %v862_v42  ;;  %v753_v41 = vsel %vm721_vm15, %v679_v36, %v737_v27  ;;  %1273 = vst [vmem:[#allocation2 + $0xbd] sm:$0xff] %v1257_v58  ;;  %vm1115_vm3 = vcmp.ge.f32.partialorder %v1065_v51, 0.0  ;;  %v1131_v23 = vmul.f32 0.05, %v1065_v51  ;;  %v689_v5 = vadd.f32 %v16864_v22, %v23886_v61  ;;  %v683_v40 = vpop.f32.mrb[11].mxu0  ;;  %v834_v42 = vpop.permute.xlu0 %833 }
 0x103   : > { %v865_v3 = vmul.f32 %v824_v12, %v753_v41  ;;  %v752_v14 = vsel %vm720_vm0, %v674_v56, %v736_v21  ;;  %v1144_v16 = vsel %vm1112_vm2, %v1050_v17, %v1128_v44  ;;  %v1657_v30 = vld [vmem:[#allocation2 + $0x29] sm:$0xff]  ;;  %vm1114_vm4 = vcmp.ge.f32.partialorder %v1060_v39, 0.0  ;;  %v1079_v26 = vpop.f32.mrb[11].mxu1 }
 0x104   : > { %v864_v9 = vmul.f32 %v819_v24, %v752_v14  ;;  %v1256_v43 = vmul.f32 %v23836_v35, %v1144_v16  ;;  %v1147_v6 = vsel %vm1115_vm3, %v1065_v51, %v1131_v23  ;;  %16989 = vmatmul.mubr.f32.gmra.mrb[20].mxu1 %v1657_v30  ;;  %10882 = vperm.xlu0 %23095, %v10820_v15   ;;  %v10822_v36 = vld [vmem:[%s28920_s9 + $0xe8] sm:$0xff]  ;;  %v1130_v17 = vmul.f32 0.05, %v1060_v39  ;;  %v16867_v24 = vpop.f32.mrb[12].mxu0  ;;  %v16899_v54 = vpop.f32.mrb[12].mxu1  ;;  %v12520_v41 = vld [vmem:[%s28920_s9 + $0x110] sm:$0xff] }
 0x105   : > { %881 = vst [vmem:[#allocation2 + $0x5d] sm:$0xff] %v865_v3  ;;  %v1259_v10 = vmul.f32 %v23845_v53, %v1147_v6  ;;  %vm723_vm5 = vcmp.ge.f32.partialorder %v689_v5, 0.0  ;;  %v739_v19 = vmul.f32 0.05, %v689_v5  ;;  %10887 = vperm.xlu1 %23096, %v10821_v13   ;;  %v1075_v35 = vadd.f32 %v16893_v25, %v23886_v61  ;;  %v693_v20 = vpop.f32.mrb[13].mxu0  ;;  %v1658_v62 = vld [vmem:[#allocation2 + $0x31] sm:$0xff]  ;;  %v23988_v23 = vpop.permute.xlu1 %838 }
 0x106   : > { %880 = vst [vmem:[#allocation2 + $0x55] sm:$0xff] %v864_v9  ;;  %1272 = vst [vmem:[#allocation2 + $0xb5] sm:$0xff] %v1256_v43  ;;  %v684_v51 = vadd.f32 %v23886_v61, %v683_v40  ;;  %v1070_v47 = vadd.f32 %v23886_v61, %v1069_v4  ;;  %v1085_v49 = vadd.f32 %v16896_v31, %v23886_v61  ;;  %v1659_v56 = vld [vmem:[#allocation2 + $0x39] sm:$0xff]  ;;  %v1089_v15 = vpop.f32.mrb[13].mxu1  ;;  %16991 = vmatprep.mubr.f32.mxu1 %v1658_v62  ;;  %v12519_v44 = vld [vmem:[%s28920_s9 + $0x108] sm:$0xff] }
 0x107   : > { %v12518_v53 = vld [vmem:[%s28920_s9 + $0x100] sm:$0xff]  ;;  %1275 = vst [vmem:[#allocation2 + $0xcd] sm:$0xff] %v1259_v10  ;;  %v1146_v27 = vsel %vm1114_vm4, %v1060_v39, %v1130_v17  ;;  %v755_v25 = vsel %vm723_vm5, %v689_v5, %v739_v19  ;;  %v1080_v58 = vadd.f32 %v23886_v61, %v1079_v26  ;;  %v23979_v4 = vadd.f32 %v16867_v24, %v23886_v61 }
 0x108   : > { %v1258_v13 = vmul.f32 %v23843_v50, %v1146_v27  ;;  %v867_v12 = vmul.f32 %v834_v42, %v755_v25  ;;  %vm1117_vm6 = vcmp.ge.f32.partialorder %v1075_v35, 0.0  ;;  %v1133_v21 = vmul.f32 0.05, %v1075_v35  ;;  %16992 = vmatmul.mubr.f32.gmra.mrb[22].mxu1 %v1659_v56  ;;  %10892 = vperm.xlu0 %23095, %v10822_v36   ;;  %v16870_v31 = vpop.f32.mrb[14].mxu0  ;;  %v16902_v3 = vpop.f32.mrb[14].mxu1 }
 0x109   : > { %vm722_vm7 = vcmp.ge.f32.partialorder %v684_v51, 0.0  ;;  %v738_v39 = vmul.f32 0.05, %v684_v51  ;;  %vm1116_vm8 = vcmp.ge.f32.partialorder %v1070_v47, 0.0  ;;  %v1132_v22 = vmul.f32 0.05, %v1070_v47  ;;  %12533 = vperm.xlu1 %23096, %v12518_v53   ;;  %v24012_v42 = vpop.permute.xlu1 %1536 }
 0x10a   : > { %1274 = vst [vmem:[#allocation2 + $0xc5] sm:$0xff] %v1258_v13  ;;  %883 = vst [vmem:[#allocation2 + $0x6d] sm:$0xff] %v867_v12  ;;  %v1149_v50 = vsel %vm1117_vm6, %v1075_v35, %v1133_v21  ;;  %vm1119_vm9 = vcmp.ge.f32.partialorder %v1085_v49, 0.0  ;;  %v1135_v1 = vmul.f32 0.05, %v1085_v49  ;;  %vm1118_vm10 = vcmp.ge.f32.partialorder %v1080_v58, 0.0 }
 0x10b   : > { %v1261_v14 = vmul.f32 %v23853_v63, %v1149_v50  ;;  %v754_v16 = vsel %vm722_vm7, %v684_v51, %v738_v39  ;;  %v1148_v5 = vsel %vm1116_vm8, %v1070_v47, %v1132_v22  ;;  %v1134_v40 = vmul.f32 0.05, %v1080_v58  ;;  %v703_v30 = vpop.f32.mrb[15].mxu0  ;;  %v23991_v9 = vpop.f32.mrb[15].mxu1  ;;  %v1660_v43 = vld [vmem:[#allocation2 + $0x41] sm:$0xff]  ;;  %v1661_v6 = vld [vmem:[#allocation2 + $0x49] sm:$0xff] }
 0x10c   : > { %v866_v26 = vmul.f32 %v23958_v2, %v754_v16  ;;  %v1260_v36 = vmul.f32 %v23849_v60, %v1148_v5  ;;  %v1151_v10 = vsel %vm1119_vm9, %v1085_v49, %v1135_v1  ;;  %vm725_vm11 = vcmp.ge.f32.partialorder %v23979_v4, 0.0  ;;  %16994 = vmatprep.mubr.f32.mxu1 %v1660_v43  ;;  %12538 = vperm.xlu0 %23095, %v12519_v44   ;;  %v1413_v35 = vpop.f32.mrb[16].mxu0  ;;  %v12521_v60 = vld [vmem:[%s28920_s9 + $0x118] sm:$0xff]  ;;  %v24003_v51 = vpop.permute.xlu0 %1531  ;;  %v12522_v53 = vld [vmem:[%s28920_s9 + $0x120] sm:$0xff]  ;;  %v12527_v22 = vld [vmem:[%s28920_s9 + $0x148] sm:$0xff] }
 0x10d   : > { %1277 = vst [vmem:[#allocation2 + $0xdd] sm:$0xff] %v1261_v14  ;;  %v1263_v63 = vmul.f32 %v23859_v57, %v1151_v10  ;;  %v1150_v17 = vsel %vm1118_vm10, %v1080_v58, %v1134_v40  ;;  %v741_v19 = vmul.f32 0.05, %v23979_v4  ;;  %v1095_v24 = vadd.f32 %v16899_v54, %v23886_v61  ;;  %16995 = vmatmul.mubr.f32.gmra.mrb[24].mxu1 %v1661_v6  ;;  %v1662_v2 = vld [vmem:[#allocation2 + $0x51] sm:$0xff]  ;;  %v1663_v62 = vld [vmem:[#allocation2 + $0x59] sm:$0xff]  ;;  %v16913_v56 = vpop.f32.mrb[17].mxu0  ;;  %v24036_v43 = vpop.permute.xlu1 %1546 }
 0x10e   : > { %12543 = vperm.xlu1 %23096, %v12520_v41   ;;  %882 = vst [vmem:[#allocation2 + $0x65] sm:$0xff] %v866_v26  ;;  %1276 = vst [vmem:[#allocation2 + $0xd5] sm:$0xff] %v1260_v36  ;;  %v1262_v57 = vmul.f32 %v23857_v52, %v1150_v17  ;;  %v694_v47 = vadd.f32 %v23886_v61, %v693_v20  ;;  %v1090_v49 = vadd.f32 %v23886_v61, %v1089_v15  ;;  %v12526_v15 = vld [vmem:[%s28920_s9 + $0x140] sm:$0xff] }
 0x10f   : > { %v709_v54 = vadd.f32 %v16870_v31, %v23886_v61  ;;  %16997 = vmatprep.mubr.f32.mxu1 %v1662_v2  ;;  %1279 = vst [vmem:[#allocation2 + $0xed] sm:$0xff] %v1263_v63  ;;  %v757_v52 = vsel %vm725_vm11, %v23979_v4, %v741_v19  ;;  %vm1121_vm12 = vcmp.ge.f32.partialorder %v1095_v24, 0.0  ;;  %v1137_v20 = vmul.f32 0.05, %v1095_v24 }
 0x110   : > { %v1105_v27 = vadd.f32 %v16902_v3, %v23886_v61  ;;  %1278 = vst [vmem:[#allocation2 + $0xe5] sm:$0xff] %v1262_v57  ;;  %v869_v25 = vmul.f32 %v23809_v45, %v757_v52  ;;  %vm724_vm13 = vcmp.ge.f32.partialorder %v694_v47, 0.0  ;;  %v740_v58 = vmul.f32 0.05, %v694_v47  ;;  %12548 = vperm.xlu0 %23095, %v12521_v60   ;;  %v1418_v4 = vpop.f32.mrb[18].mxu0  ;;  %v1542_v14 = vpop.permute.xlu0 %1541 }
 0x111   : > { %vm1120_vm14 = vcmp.ge.f32.partialorder %v1090_v49, 0.0  ;;  %v1153_v13 = vsel %vm1121_vm12, %v1095_v24, %v1137_v20  ;;  %v1136_v12 = vmul.f32 0.05, %v1090_v49  ;;  %vm727_vm15 = vcmp.ge.f32.partialorder %v709_v54, 0.0  ;;  %16998 = vmatmul.mubr.f32.gmra.mrb[26].mxu1 %v1663_v62  ;;  %v16916_v39 = vpop.f32.mrb[19].mxu0 }
 0x112   : > { %v743_v21 = vmul.f32 0.05, %v709_v54  ;;  %12553 = vperm.xlu1 %23096, %v12522_v53   ;;  %885 = vst [vmem:[#allocation2 + $0x7d] sm:$0xff] %v869_v25  ;;  %v1265_v44 = vmul.f32 %v23867_v0, %v1153_v13  ;;  %v756_v41 = vsel %vm724_vm13, %v694_v47, %v740_v58  ;;  %vm1123_vm0 = vcmp.ge.f32.partialorder %v1105_v27, 0.0  ;;  %v12530_v62 = vld [vmem:[%s28920_s9 + $0x160] sm:$0x3f] }
 0x113   : > { %v1139_v45 = vmul.f32 0.05, %v1105_v27  ;;  %v868_v50 = vmul.f32 %v23988_v23, %v756_v41  ;;  %v1152_v1 = vsel %vm1120_vm14, %v1090_v49, %v1136_v12  ;;  %v704_v3 = vadd.f32 %v23886_v61, %v703_v30  ;;  %v12528_v23 = vld [vmem:[%s28920_s9 + $0x150] sm:$0xff] }
 0x114   : > { %v759_v31 = vsel %vm727_vm15, %v709_v54, %v743_v21  ;;  %1281 = vst [vmem:[#allocation2 + $0xfd] sm:$0xff] %v1265_v44  ;;  %v1264_v16 = vmul.f32 %v23863_v11, %v1152_v1  ;;  %v1100_v40 = vadd.f32 %v23886_v61, %v23991_v9  ;;  %12573 = vperm.xlu0 %23095, %v12526_v15   ;;  %v1423_v36 = vpop.f32.mrb[20].mxu0  ;;  %v1552_v56 = vpop.permute.xlu0 %1551  ;;  %v14024_v1 = vld [vmem:[%s28914_s3 + $0x118] sm:$0xff] }
 0x115   : > { %v871_v0 = vmul.f32 %v23813_v46, %v759_v31  ;;  %v1155_v5 = vsel %vm1123_vm0, %v1105_v27, %v1139_v45  ;;  %884 = vst [vmem:[#allocation2 + $0x75] sm:$0xff] %v868_v50  ;;  %vm726_vm2 = vcmp.ge.f32.partialorder %v704_v3, 0.0  ;;  %v742_v6 = vmul.f32 0.05, %v704_v3  ;;  %v1664_v26 = vld [vmem:[#allocation2 + $0x61] sm:$0xff]  ;;  %v1665_v46 = vld [vmem:[#allocation2 + $0x69] sm:$0xff]  ;;  %v24056_v27 = vpop.permute.xlu1 %1556 }
 0x116   : > { %v1267_v30 = vmul.f32 %v23877_v33, %v1155_v5  ;;  %v1414_v11 = vadd.f32 %v23886_v61, %v1413_v35  ;;  %12578 = vperm.xlu1 %23096, %v12527_v22   ;;  %1280 = vst [vmem:[#allocation2 + $0xf5] sm:$0xff] %v1264_v16  ;;  %vm1122_vm3 = vcmp.ge.f32.partialorder %v1100_v40, 0.0  ;;  %v1138_v9 = vmul.f32 0.05, %v1100_v40  ;;  %17000 = vmatprep.mubr.f32.mxu1 %v1664_v26  ;;  %v16919_v17 = vpop.f32.mrb[21].mxu0  ;;  %v12529_v33 = vld [vmem:[%s28920_s9 + $0x158] sm:$0xff] }
 0x117   : > { %887 = vst [vmem:[#allocation2 + $0x8d] sm:$0xff] %v871_v0  ;;  %v1419_v10 = vadd.f32 %v23886_v61, %v1418_v4  ;;  %v1424_v63 = vadd.f32 %v23886_v61, %v1423_v36  ;;  %v758_v19 = vsel %vm726_vm2, %v704_v3, %v742_v6  ;;  %17001 = vmatmul.mubr.f32.gmra.mrb[28].mxu1 %v1665_v46  ;;  %v13775_v4 = vld [vmem:[%s28921_s10 + $0x8] sm:$0xff]  ;;  %v13776_v45 = vld [vmem:[%s28921_s10 + $0x10] sm:$0xff]  ;;  %v23097_v22 = vld [vmem:[#allocation2] sm:$0xff] }
 0x118   : > { %1283 = vst [vmem:[#allocation2 + $0x10d] sm:$0xff] %v1267_v30  ;;  %vm1477_vm4 = vcmp.ge.f32.partialorder %v1414_v11, 0.0  ;;  %v1490_v24 = vmul.f32 0.05, %v1414_v11  ;;  %v870_v35 = vmul.f32 %v23815_v38, %v758_v19  ;;  %v1154_v2 = vsel %vm1122_vm3, %v1100_v40, %v1138_v9  ;;  %12583 = vperm.xlu0 %23095, %v12528_v23   ;;  %v1428_v54 = vpop.f32.mrb[22].mxu0  ;;  %v14023_v50 = vld [vmem:[%s28914_s3 + $0x110] sm:$0xff]  ;;  %v24073_v31 = vpop.permute.xlu0 %1561 }
 0x119   : > { %vm1478_vm5 = vcmp.ge.f32.partialorder %v1419_v10, 0.0  ;;  %v1491_v60 = vmul.f32 0.05, %v1419_v10  ;;  %v1266_v57 = vmul.f32 %v23873_v34, %v1154_v2  ;;  %vm1479_vm6 = vcmp.ge.f32.partialorder %v1424_v63, 0.0  ;;  %v16922_v20 = vpop.f32.mrb[23].mxu0  ;;  %v13774_v34 = vld [vmem:[%s28921_s10] sm:$0xff] }
 0x11a   : > { %v1503_v47 = vsel %vm1477_vm4, %v1414_v11, %v1490_v24  ;;  %v1492_v49 = vmul.f32 0.05, %v1424_v63  ;;  %12588 = vperm.xlu1 %23096, %v12529_v33   ;;  %886 = vst [vmem:[#allocation2 + $0x85] sm:$0xff] %v870_v35  ;;  %v1429_v52 = vadd.f32 %v23886_v61, %v1428_v54  ;;  %v1622_v40 = vld [vmem:[#allocation2 + $0x10] sm:$0xff]  ;;  %v14025_v26 = vld [vmem:[%s28914_s3 + $0x120] sm:$0xff]  ;;  %v14026_v46 = vld [vmem:[%s28914_s3 + $0x128] sm:$0xff] }
 0x11b   : > { %v1594_v53 = vmul.f32 %v24003_v51, %v1503_v47  ;;  %v1504_v38 = vsel %vm1478_vm5, %v1419_v10, %v1491_v60  ;;  %1282 = vst [vmem:[#allocation2 + $0x105] sm:$0xff] %v1266_v57  ;;  %v1623_v10 = vld [vmem:[#allocation2 + $0x18] sm:$0xff]  ;;  %v1624_v33 = vld [vmem:[#allocation2 + $0x20] sm:$0xff]  ;;  %v24090_v24 = vpack.c.bf16 %v14026_v46, %v14025_v26  ;;  %v14027_v47 = vld [vmem:[%s28914_s3 + $0x130] sm:$0xff] }
 0x11c   : > { %v1595_v25 = vmul.f32 %v24012_v42, %v1504_v38  ;;  %v1505_v58 = vsel %vm1479_vm6, %v1424_v63, %v1492_v49  ;;  %v1666_v13 = vld [vmem:[#allocation2 + $0x71] sm:$0xff]  ;;  %v1667_v12 = vld [vmem:[#allocation2 + $0x79] sm:$0xff]  ;;  %vm1480_vm7 = vcmp.ge.f32.partialorder %v1429_v52, 0.0  ;;  %v1493_v51 = vmul.f32 0.05, %v1429_v52  ;;  %12593 = vperm.xlu0 %23095, %v12530_v62   ;;  %v1433_v21 = vpop.f32.mrb[24].mxu0 }
 0x11d   : > { %1607 = vst [vmem:[#allocation2 + $0x115] sm:$0xff] %v1594_v53  ;;  %v1596_v15 = vmul.f32 %v1542_v14, %v1505_v58  ;;  %17003 = vmatprep.mubr.f32.mxu1 %v1666_v13  ;;  %v1434_v42 = vadd.f32 %v23886_v61, %v1433_v21  ;;  %v16925_v41 = vpop.f32.mrb[25].mxu0  ;;  %v24075_v14 = vpop.permute.xlu1 %1566  ;;  %v3567_v17 = vld [vmem:[#allocation2 + $0x99] sm:$0xff]  ;;  %v3568_v60 = vld [vmem:[#allocation2 + $0xa1] sm:$0xff]  ;;  %v1630_v26 = vld [vmem:[#allocation2 + $0x50] sm:$0xff] }
 0x11e   : > { %1608 = vst [vmem:[#allocation2 + $0x11d] sm:$0xff] %v1595_v25  ;;  %13782 = vperm.xlu1 %23096, %v13774_v34   ;;  %17004 = vmatmul.mubr.f32.gmra.mrb[30].mxu1 %v1667_v12  ;;  %v1506_v44 = vsel %vm1480_vm7, %v1429_v52, %v1493_v51  ;;  %v3566_v36 = vld [vmem:[#allocation2 + $0x91] sm:$0xff]  ;;  %v1625_v54 = vld [vmem:[#allocation2 + $0x28] sm:$0xff]  ;;  %v13778_v34 = vld [vmem:[%s28921_s10 + $0x20] sm:$0xff]  ;;  %v1572_v58 = vpop.permute.xlu0 %1571 }
 0x11f   : > { %1609 = vst [vmem:[#allocation2 + $0x125] sm:$0xff] %v1596_v15  ;;  %v1597_v39 = vmul.f32 %v24036_v43, %v1506_v44  ;;  %17038 = vmatprep.mubr.f32.mxu1 %v23097_v22  ;;  %vm1481_vm8 = vcmp.ge.f32.partialorder %v1434_v42, 0.0  ;;  %v1494_v3 = vmul.f32 0.05, %v1434_v42  ;;  %v24077_v43 = vpack.c.bf16 %v14024_v1, %v14023_v50  ;;  %v14028_v49 = vld [vmem:[%s28914_s3 + $0x138] sm:$0xff]  ;;  %v14029_v12 = vld [vmem:[%s28914_s3 + $0x140] sm:$0xff] }
 0x120   : > { %13787 = vperm.xlu0 %23095, %v13775_v4   ;;  %v1438_v5 = vpop.f32.mrb[26].mxu0  ;;  %v13777_v53 = vld [vmem:[%s28921_s10 + $0x18] sm:$0xff]  ;;  %v24112_v25 = vpack.c.bf16 %v14028_v49, %v14027_v47  ;;  %v14030_v51 = vld [vmem:[%s28914_s3 + $0x148] sm:$0xff] }
 0x121   : > { %1610 = vst [vmem:[#allocation2 + $0x12d] sm:$0xff] %v1597_v39  ;;  %v3564_v16 = vld [vmem:[#allocation2 + $0x81] sm:$0xff]  ;;  %v3565_v0 = vld [vmem:[#allocation2 + $0x89] sm:$0xff]  ;;  %v1507_v23 = vsel %vm1481_vm8, %v1434_v42, %v1494_v3  ;;  %v1439_v30 = vadd.f32 %v23886_v61, %v1438_v5  ;;  %v16928_v6 = vpop.f32.mrb[27].mxu0  ;;  %v3570_v15 = vld [vmem:[#allocation2 + $0xb1] sm:$0xff]  ;;  %v1577_v4 = vpop.permute.xlu1 %1576  ;;  %v24129_v1 = vpack.c.bf16 %v14030_v51, %v14029_v12 }
 0x122   : > { %13792 = vperm.xlu1 %23096, %v13776_v45   ;;  %17486 = vmatprep.mubr.f32.mxu0 %v3564_v16  ;;  %v1598_v11 = vmul.f32 %v1552_v56, %v1507_v23  ;;  %v1626_v56 = vld [vmem:[#allocation2 + $0x30] sm:$0xff]  ;;  %v3571_v45 = vld [vmem:[#allocation2 + $0xb9] sm:$0xff]  ;;  %v3572_v3 = vld [vmem:[#allocation2 + $0xc1] sm:$0xff]  ;;  %v1582_v5 = vpop.permute.xlu0 %1581 }
 0x123   : > { %17039 = vmatmul.mubr.f32.vlgmr.msra.gmra.mrb[16].mxu1 %v23097_v22  ;;  %17487 = vmatmul.mubr.f32.vlgmr.msra.gmra.mrb[42].mxu0 %v3565_v0  ;;  %vm1482_vm9 = vcmp.ge.f32.partialorder %v1439_v30, 0.0  ;;  %v1495_v9 = vmul.f32 0.05, %v1439_v30  ;;  %v1628_v39 = vld [vmem:[#allocation2 + $0x40] sm:$0xff]  ;;  %v13779_v22 = vld [vmem:[%s28921_s10 + $0x28] sm:$0x3f] }
 0x124   : > { %17041 = vmatprep.mubr.f32.mxu1 %v1622_v40  ;;  %20958 = vmatpush3.bf16.msra.mxu0 %v23701_v18  ;;  %1611 = vst [vmem:[#allocation2 + $0x135] sm:$0xff] %v1598_v11  ;;  %v1443_v63 = vpop.f32.mrb[28].mxu0  ;;  %v14031_v16 = vld [vmem:[%s28914_s3 + $0x150] sm:$0xff]  ;;  %v1629_v40 = vld [vmem:[#allocation2 + $0x48] sm:$0xff] }
 0x125   : > { %20702 = vmatpush3.bf16.msra.mxu1 %v23802_v32  ;;  %17489 = vmatprep.mubr.f32.mxu0 %v3566_v36  ;;  %v1508_v19 = vsel %vm1482_vm9, %v1439_v30, %v1495_v9  ;;  %v1444_v18 = vadd.f32 %v23886_v61, %v1443_v63  ;;  %v16931_v35 = vpop.f32.mrb[29].mxu0  ;;  %v3573_v6 = vld [vmem:[#allocation2 + $0xc9] sm:$0xff]  ;;  %v3574_v9 = vld [vmem:[#allocation2 + $0xd1] sm:$0xff]  ;;  %v3576_v49 = vld [vmem:[#allocation2 + $0xe1] sm:$0xff]  ;;  %v1587_v51 = vpop.permute.xlu1 %1586 }
 0x126   : > { %20960 = vmatprep.subr.bf16.mxu0 %v23713_v37  ;;  %20704 = vmatprep.subr.bf16.mxu1 %v24077_v43  ;;  %v1599_v2 = vmul.f32 %v24056_v27, %v1508_v19  ;;  %v14034_v63 = vld [vmem:[%s28914_s3 + $0x168] sm:$0xff]  ;;  %v3575_v35 = vld [vmem:[#allocation2 + $0xd9] sm:$0xff] }
 0x127   : > { %17042 = vmatmul.mubr.f32.gmra.mrb[18].mxu1 %v1623_v10  ;;  %17490 = vmatmul.mubr.f32.gmra.mrb[44].mxu0 %v3567_v17  ;;  %vm1483_vm10 = vcmp.ge.f32.partialorder %v1444_v18, 0.0  ;;  %v1496_v57 = vmul.f32 0.05, %v1444_v18  ;;  %v14033_v10 = vld [vmem:[%s28914_s3 + $0x160] sm:$0xff] }
 0x128   : > { %17044 = vmatprep.mubr.f32.mxu1 %v1624_v33  ;;  %20962 = vmatpush3.bf16.msra.mxu0 %v23713_v37  ;;  %1612 = vst [vmem:[#allocation2 + $0x13d] sm:$0xff] %v1599_v2  ;;  %v1448_v62 = vpop.f32.mrb[30].mxu0  ;;  %v3569_v37 = vld [vmem:[#allocation2 + $0xa9] sm:$0xff]  ;;  %v1631_v33 = vld [vmem:[#allocation2 + $0x58] sm:$0xff] }
 0x129   : > { %20706 = vmatpush3.bf16.msra.mxu1 %v24077_v43  ;;  %17492 = vmatprep.mubr.f32.mxu0 %v3568_v60  ;;  %v1509_v38 = vsel %vm1483_vm10, %v1444_v18, %v1496_v57  ;;  %v1449_v52 = vadd.f32 %v23886_v61, %v1448_v62  ;;  %v16934_v20 = vpop.f32.mrb[31].mxu0  ;;  %v1632_v60 = vld [vmem:[#allocation2 + $0x60] sm:$0xff]  ;;  %v24155_v57 = vpack.c.bf16 %v14034_v63, %v14033_v10  ;;  %v14036_v62 = vld [vmem:[%s28914_s3 + $0x178] sm:$0xff] }
 0x12a   : > { %20964 = vmatprep.subr.bf16.mxu0 %v23728_v8  ;;  %20708 = vmatprep.subr.bf16.mxu1 %v24090_v24  ;;  %v1600_v27 = vmul.f32 %v24073_v31, %v1509_v38  ;;  %v14044_v10 = vld [vmem:[%s28914_s3 + $0x1b8] sm:$0xff]  ;;  %v3536_v63 = vld [vmem:[#allocation2 + $0xa0] sm:$0xff] }
 0x12b   : > { %17045 = vmatmul.mubr.f32.gmra.mrb[20].mxu1 %v1625_v54  ;;  %17493 = vmatmul.mubr.f32.gmra.mrb[46].mxu0 %v3569_v37  ;;  %vm1484_vm11 = vcmp.ge.f32.partialorder %v1449_v52, 0.0  ;;  %v1497_v13 = vmul.f32 0.05, %v1449_v52  ;;  %v14035_v54 = vld [vmem:[%s28914_s3 + $0x170] sm:$0xff] }
 0x12c   : > { %17047 = vmatprep.mubr.f32.mxu1 %v1626_v56  ;;  %20966 = vmatpush3.bf16.msra.mxu0 %v23728_v8  ;;  %1613 = vst [vmem:[#allocation2 + $0x145] sm:$0xff] %v1600_v27  ;;  %v1453_v21 = vpop.f32.mrb[32].mxu0  ;;  %v1627_v8 = vld [vmem:[#allocation2 + $0x38] sm:$0xff]  ;;  %v1633_v56 = vld [vmem:[#allocation2 + $0x68] sm:$0xff]  ;;  %v24168_v27 = vpack.c.bf16 %v14036_v62, %v14035_v54  ;;  %v3540_v62 = vld [vmem:[#allocation2 + $0xc0] sm:$0xff] }
 0x12d   : > { %20710 = vmatpush3.bf16.msra.mxu1 %v24090_v24  ;;  %17495 = vmatprep.mubr.f32.mxu0 %v3570_v15  ;;  %v1510_v44 = vsel %vm1484_vm11, %v1449_v52, %v1497_v13  ;;  %v1454_v42 = vadd.f32 %v23886_v61, %v1453_v21  ;;  %v16937_v41 = vpop.f32.mrb[33].mxu0  ;;  %v3577_v52 = vld [vmem:[#allocation2 + $0xe9] sm:$0xff]  ;;  %v14037_v15 = vld [vmem:[%s28914_s3 + $0x180] sm:$0xff]  ;;  %v3578_v13 = vld [vmem:[#allocation2 + $0xf1] sm:$0xff] }
 0x12e   : > { %13797 = vperm.xlu0 %23095, %v13777_v53   ;;  %13802 = vperm.xlu1 %23096, %v13778_v34   ;;  %v1601_v50 = vmul.f32 %v24075_v14, %v1510_v44  ;;  %v14032_v14 = vld [vmem:[%s28914_s3 + $0x158] sm:$0xff]  ;;  %v1634_v34 = vld [vmem:[#allocation2 + $0x70] sm:$0xff] }
 0x12f   : > { %20968 = vmatprep.subr.bf16.mxu0 %v23742_v48  ;;  %17048 = vmatmul.mubr.f32.gmra.mrb[22].mxu1 %v1627_v8  ;;  %vm1485_vm12 = vcmp.ge.f32.partialorder %v1454_v42, 0.0  ;;  %v1498_v31 = vmul.f32 0.05, %v1454_v42  ;;  %v24142_v46 = vpack.c.bf16 %v14032_v14, %v14031_v16  ;;  %v1635_v21 = vld [vmem:[#allocation2 + $0x78] sm:$0xff]  ;;  %v23098_v8 = vld [vmem:[%s28913_s2] ss:$0 sm:$0xff]  ;;  %v1592_v16 = vpop.permute.xlu0 %1591 }
 0x130   : > { %20712 = vmatprep.subr.bf16.mxu1 %v24112_v25  ;;  %17496 = vmatmul.mubr.f32.gmra.mrb[48].mxu0 %v3571_v45  ;;  %1614 = vst [vmem:[#allocation2 + $0x14d] sm:$0xff] %v1601_v50  ;;  %v1458_v0 = vpop.f32.mrb[34].mxu0  ;;  %v1975_v45 = vld [vmem:[#allocation2 + $0x2] sm:$0xff]  ;;  %v1976_v14 = vld [vmem:[#allocation2 + $0xa] sm:$0xff]  ;;  %v14048_v54 = vld [vmem:[%s28914_s3 + $0x1d8] sm:$0xff] }
 0x131   : > { %17050 = vmatprep.mubr.f32.mxu1 %v1628_v39  ;;  %20970 = vmatpush3.bf16.msra.mxu0 %v23742_v48  ;;  %v1511_v23 = vsel %vm1485_vm12, %v1454_v42, %v1498_v31  ;;  %v1459_v48 = vadd.f32 %v23886_v61, %v1458_v0  ;;  %v16940_v30 = vpop.f32.mrb[35].mxu0  ;;  %v14039_v31 = vld [vmem:[%s28914_s3 + $0x190] sm:$0xff] }
 0x132   : > { %20714 = vmatpush3.bf16.msra.mxu1 %v24112_v25  ;;  %17498 = vmatprep.mubr.f32.mxu0 %v3572_v3  ;;  %v1602_v11 = vmul.f32 %v1572_v58, %v1511_v23  ;;  %v14040_v3 = vld [vmem:[%s28914_s3 + $0x198] sm:$0xff]  ;;  %v14042_v30 = vld [vmem:[%s28914_s3 + $0x1a8] sm:$0xff] }
 0x133   : > { %13807 = vperm.xlu0 %23095, %v13779_v22   ;;  %20972 = vmatprep.subr.bf16.mxu0 %v23754_v55  ;;  %vm1486_vm13 = vcmp.ge.f32.partialorder %v1459_v48, 0.0  ;;  %v1499_v36 = vmul.f32 0.05, %v1459_v48  ;;  %v3532_v22 = vld [vmem:[#allocation2 + $0x80] sm:$0xff]  ;;  %v1977_v23 = vld [vmem:[#allocation2 + $0x12] sm:$0xff] }
 0x134   : > { %17051 = vmatmul.mubr.f32.gmra.mrb[24].mxu1 %v1629_v40  ;;  %20716 = vmatprep.subr.bf16.mxu1 %v24129_v1  ;;  %1615 = vst [vmem:[#allocation2 + $0x155] sm:$0xff] %v1602_v11  ;;  %v1463_v17 = vpop.f32.mrb[36].mxu0  ;;  %v24195_v40 = vpack.c.bf16 %v14040_v3, %v14039_v31  ;;  %v3535_v11 = vld [vmem:[#allocation2 + $0x98] sm:$0xff]  ;;  %v3887_v31 = vld [vmem:[#allocation2 + $0x8a] sm:$0xff] }
 0x135   : > { %17499 = vmatmul.mubr.f32.gmra.mrb[50].mxu0 %v3573_v6  ;;  %17053 = vmatprep.mubr.f32.mxu1 %v1630_v26  ;;  %v1512_v19 = vsel %vm1486_vm13, %v1459_v48, %v1499_v36  ;;  %v1464_v18 = vadd.f32 %v23886_v61, %v1463_v17  ;;  %v14041_v48 = vld [vmem:[%s28914_s3 + $0x1a0] sm:$0xff]  ;;  %v3534_v6 = vld [vmem:[#allocation2 + $0x90] sm:$0xff]  ;;  %v3537_v17 = vld [vmem:[#allocation2 + $0xa8] sm:$0xff] }
 0x136   : > { %20974 = vmatpush3.bf16.msra.mxu0 %v23754_v55  ;;  %20718 = vmatpush3.bf16.msra.mxu1 %v24129_v1  ;;  %v16943_v55 = vpop.f32.mrb[37].mxu0  ;;  %v1603_v2 = vmul.f32 %v1577_v4, %v1512_v19  ;;  %v1978_v26 = vld [vmem:[#allocation2 + $0x1a] sm:$0xff]  ;;  %v1979_v36 = vld [vmem:[#allocation2 + $0x22] sm:$0xff]  ;;  %v1981_v19 = vld [vmem:[#allocation2 + $0x32] sm:$0xff] }
 0x137   : > { %17501 = vmatprep.mubr.f32.mxu0 %v3574_v9  ;;  %20976 = vmatprep.subr.bf16.mxu0 %v23766_v59  ;;  %vm1487_vm14 = vcmp.ge.f32.partialorder %v1464_v18, 0.0  ;;  %v1500_v47 = vmul.f32 0.05, %v1464_v18  ;;  %v14043_v9 = vld [vmem:[%s28914_s3 + $0x1b0] sm:$0xff]  ;;  %v14046_v55 = vld [vmem:[%s28914_s3 + $0x1c8] sm:$0xff]  ;;  %v2170_v3 = vld [vmem:[#allocation2 + $0x1c] sm:$0xff] }
 0x138   : > { %17054 = vmatmul.mubr.f32.gmra.mrb[26].mxu1 %v1631_v33  ;;  %20720 = vmatprep.subr.bf16.mxu1 %v24142_v46  ;;  %1616 = vst [vmem:[#allocation2 + $0x15d] sm:$0xff] %v1603_v2  ;;  %v1468_v37 = vpop.f32.mrb[38].mxu0  ;;  %v1980_v33 = vld [vmem:[#allocation2 + $0x2a] sm:$0xff]  ;;  %v3539_v2 = vld [vmem:[#allocation2 + $0xb8] sm:$0xff] }
 0x139   : > { %17502 = vmatmul.mubr.f32.gmra.mrb[52].mxu0 %v3575_v35  ;;  %17056 = vmatprep.mubr.f32.mxu1 %v1632_v60  ;;  %v1513_v53 = vsel %vm1487_vm14, %v1464_v18, %v1500_v47  ;;  %v1469_v38 = vadd.f32 %v23886_v61, %v1468_v37  ;;  %v14038_v61 = vld [vmem:[%s28914_s3 + $0x188] sm:$0xff]  ;;  %v14045_v18 = vld [vmem:[%s28914_s3 + $0x1c0] sm:$0xff]  ;;  %v3538_v35 = vld [vmem:[#allocation2 + $0xb0] sm:$0xff] }
 0x13a   : > { %20978 = vmatpush3.bf16.msra.mxu0 %v23766_v59  ;;  %20722 = vmatpush3.bf16.msra.mxu1 %v24142_v46  ;;  %v16946_v59 = vpop.f32.mrb[39].mxu0  ;;  %v1604_v20 = vmul.f32 %v1582_v5, %v1513_v53  ;;  %v24182_v39 = vpack.c.bf16 %v14038_v61, %v14037_v15  ;;  %v1982_v60 = vld [vmem:[#allocation2 + $0x3a] sm:$0xff]  ;;  %v1983_v47 = vld [vmem:[#allocation2 + $0x42] sm:$0xff]  ;;  %v1985_v53 = vld [vmem:[#allocation2 + $0x52] sm:$0xff] }
 0x13b   : > { %17504 = vmatprep.mubr.f32.mxu0 %v3576_v49  ;;  %20980 = vmatprep.subr.bf16.mxu0 %v23778_v7  ;;  %vm1488_vm15 = vcmp.ge.f32.partialorder %v1469_v38, 0.0  ;;  %v1501_v58 = vmul.f32 0.05, %v1469_v38  ;;  %v14047_v49 = vld [vmem:[%s28914_s3 + $0x1d0] sm:$0xff]  ;;  %v3541_v37 = vld [vmem:[#allocation2 + $0xc8] sm:$0xff]  ;;  %v14052_v61 = vld [vmem:[%s28914_s3 + $0x1f8] sm:$0xff] }
 0x13c   : > { %17057 = vmatmul.mubr.f32.gmra.mrb[28].mxu1 %v1633_v56  ;;  %20724 = vmatprep.subr.bf16.mxu1 %v24155_v57  ;;  %1617 = vst [vmem:[#allocation2 + $0x165] sm:$0xff] %v1604_v20  ;;  %v1473_v12 = vpop.f32.mrb[40].mxu0  ;;  %v1984_v56 = vld [vmem:[#allocation2 + $0x4a] sm:$0xff]  ;;  %v3543_v20 = vld [vmem:[#allocation2 + $0xd8] sm:$0xff] }
 0x13d   : > { %17505 = vmatmul.mubr.f32.gmra.mrb[54].mxu0 %v3577_v52  ;;  %17059 = vmatprep.mubr.f32.mxu1 %v1634_v34  ;;  %v1514_v4 = vsel %vm1488_vm15, %v1469_v38, %v1501_v58  ;;  %v1474_v44 = vadd.f32 %v23098_v8, %v1473_v12  ;;  %v16949_v42 = vpop.f32.mrb[41].mxu0  ;;  %v14049_v38 = vld [vmem:[%s28914_s3 + $0x1e0] sm:$0xff]  ;;  %v14050_v59 = vld [vmem:[%s28914_s3 + $0x1e8] sm:$0xff]  ;;  %v3542_v52 = vld [vmem:[#allocation2 + $0xd0] sm:$0xff] }
 0x13e   : > { %20982 = vmatpush3.bf16.msra.mxu0 %v23778_v7  ;;  %20726 = vmatpush3.bf16.msra.mxu1 %v24155_v57  ;;  %v3579_v7 = vld [vmem:[#allocation2 + $0xf9] sm:$0xff]  ;;  %v1605_v41 = vmul.f32 %v1587_v51, %v1514_v4  ;;  %v1987_v58 = vld [vmem:[#allocation2 + $0x62] sm:$0xff]  ;;  %v14051_v15 = vld [vmem:[%s28914_s3 + $0x1f0] sm:$0xff] }
 0x13f   : > { %17507 = vmatprep.mubr.f32.mxu0 %v3578_v13  ;;  %20984 = vmatprep.subr.bf16.mxu0 %v23790_v29  ;;  %vm1489_vm0 = vcmp.ge.f32.partialorder %v1474_v44, 0.0  ;;  %v1502_v50 = vmul.f32 0.05, %v1474_v44  ;;  %v1986_v34 = vld [vmem:[#allocation2 + $0x5a] sm:$0xff]  ;;  %v3545_v12 = vld [vmem:[#allocation2 + $0xe8] sm:$0xff] }
 0x140   : > { %17060 = vmatmul.mubr.f32.gmra.mrb[30].mxu1 %v1635_v21  ;;  %20728 = vmatprep.subr.bf16.mxu1 %v24168_v27  ;;  %1618 = vst [vmem:[#allocation2 + $0x16d] sm:$0xff] %v1605_v41  ;;  %v3544_v13 = vld [vmem:[#allocation2 + $0xe0] sm:$0xff]  ;;  %v1988_v51 = vld [vmem:[#allocation2 + $0x6a] sm:$0xff]  ;;  %v1989_v21 = vld [vmem:[#allocation2 + $0x72] sm:$0xff] }
 0x141   : > { %17508 = vmatmul.mubr.f32.gmra.mrb[56].mxu0 %v3579_v7  ;;  %17094 = vmatprep.mubr.f32.mxu1 %v1975_v45  ;;  %v1515_v0 = vsel %vm1489_vm0, %v1474_v44, %v1502_v50  ;;  %v14053_v4 = vld [vmem:[%s28914_s3 + $0x200] sm:$0xff]  ;;  %v14054_v8 = vld [vmem:[%s28914_s3 + $0x208] sm:$0xff]  ;;  %v3546_v44 = vld [vmem:[#allocation2 + $0xf0] sm:$0xff] }
 0x142   : > { %20986 = vmatpush3.bf16.msra.mxu0 %v23790_v29  ;;  %17542 = vmatprep.mubr.f32.mxu0 %v3532_v22  ;;  %v3533_v29 = vld [vmem:[#allocation2 + $0x88] sm:$0xff]  ;;  %v1606_v5 = vmul.f32 %v1592_v16, %v1515_v0  ;;  %v3547_v42 = vld [vmem:[#allocation2 + $0xf8] sm:$0xff]  ;;  %v14055_v45 = vld [vmem:[%s28914_s3 + $0x210] sm:$0xff] }
 0x143   : > { %20730 = vmatpush3.bf16.msra.mxu1 %v24168_v27  ;;  %20988 = vmatprep.subr.bf16.mxu0 %v23802_v32  ;;  %v1990_v7 = vld [vmem:[#allocation2 + $0x7a] sm:$0xff]  ;;  %v3886_v50 = vld [vmem:[#allocation2 + $0x82] sm:$0xff] }
 0x144   : > { %20732 = vmatprep.subr.bf16.mxu1 %v24182_v39  ;;  %1619 = vst [vmem:[#allocation2 + $0x175] sm:$0x3f] %v1606_v5  ;;  %v2169_v41 = vld [vmem:[#allocation2 + $0x14] sm:$0xff]  ;;  %v2171_v16 = vld [vmem:[#allocation2 + $0x24] sm:$0xff] }
 0x145   : > { %17543 = vmatmul.mubr.f32.vlgmr.msra.gmra.mrb[42].mxu0 %v3533_v29  ;;  %v14056_v22 = vld [vmem:[%s28914_s3 + $0x218] sm:$0xff]  ;;  %v14058_v0 = vld [vmem:[%s28914_s3 + $0x228] sm:$0xff] }
 0x146   : > { %17095 = vmatmul.mubr.f32.vlgmr.msra.gmra.mrb[16].mxu1 %v1976_v14  ;;  %20990 = vmatpush3.bf16.msra.mxu0 %v23802_v32  ;;  %v24207_v32 = vpack.c.bf16 %v14042_v30, %v14041_v48  ;;  %v14057_v14 = vld [vmem:[%s28914_s3 + $0x220] sm:$0xff]  ;;  %v3888_v29 = vld [vmem:[#allocation2 + $0x92] sm:$0xff] }
 0x147   : > { %17097 = vmatprep.mubr.f32.mxu1 %v1977_v23  ;;  %20734 = vmatpush3.bf16.msra.mxu1 %v24182_v39  ;;  %v3889_v5 = vld [vmem:[#allocation2 + $0x9a] sm:$0xff]  ;;  %v2172_v23 = vld [vmem:[#allocation2 + $0x2c] sm:$0xff] }
 0x148   : > { %17545 = vmatprep.mubr.f32.mxu0 %v3534_v6  ;;  %20992 = vmatprep.subr.bf16.mxu0 %v24077_v43  ;;  %v2173_v48 = vld [vmem:[#allocation2 + $0x34] sm:$0xff] }
 0x149   : > { %20736 = vmatprep.subr.bf16.mxu1 %v24195_v40  ;;  %17546 = vmatmul.mubr.f32.gmra.mrb[44].mxu0 %v3535_v11  ;;  %v14059_v30 = vld [vmem:[%s28914_s3 + $0x230] sm:$0xff]  ;;  %v14060_v6 = vld [vmem:[%s28914_s3 + $0x238] sm:$0xff]  ;;  %v3890_v11 = vld [vmem:[#allocation2 + $0xa2] sm:$0xff] }
 0x14a   : > { %17098 = vmatmul.mubr.f32.gmra.mrb[18].mxu1 %v1978_v26  ;;  %20994 = vmatpush3.bf16.msra.mxu0 %v24077_v43  ;;  %v24219_v43 = vpack.c.bf16 %v14044_v10, %v14043_v9  ;;  %v3891_v26 = vld [vmem:[#allocation2 + $0xaa] sm:$0xff]  ;;  %v14061_v10 = vld [vmem:[%s28914_s3 + $0x240] sm:$0xff] }
 0x14b   : > { %17100 = vmatprep.mubr.f32.mxu1 %v1979_v36  ;;  %20738 = vmatpush3.bf16.msra.mxu1 %v24195_v40  ;;  %v2174_v36 = vld [vmem:[#allocation2 + $0x3c] sm:$0xff]  ;;  %v2175_v9 = vld [vmem:[#allocation2 + $0x44] sm:$0xff] }
 0x14c   : > { %17548 = vmatprep.mubr.f32.mxu0 %v3536_v63  ;;  %20996 = vmatprep.subr.bf16.mxu0 %v24090_v24  ;;  %v14062_v63 = vld [vmem:[%s28914_s3 + $0x248] sm:$0xff] }
 0x14d   : > { %20740 = vmatprep.subr.bf16.mxu1 %v24207_v32  ;;  %17549 = vmatmul.mubr.f32.gmra.mrb[46].mxu0 %v3537_v17  ;;  %v3892_v17 = vld [vmem:[#allocation2 + $0xb2] sm:$0xff] }
 0x14e   : > { %17101 = vmatmul.mubr.f32.gmra.mrb[20].mxu1 %v1980_v33  ;;  %20998 = vmatpush3.bf16.msra.mxu0 %v24090_v24  ;;  %v24231_v24 = vpack.c.bf16 %v14046_v55, %v14045_v18  ;;  %v3893_v33 = vld [vmem:[#allocation2 + $0xba] sm:$0xff]  ;;  %v14063_v55 = vld [vmem:[%s28914_s3 + $0x250] sm:$0xff] }
 0x14f   : > { %17103 = vmatprep.mubr.f32.mxu1 %v1981_v19  ;;  %20742 = vmatpush3.bf16.msra.mxu1 %v24207_v32  ;;  %v2176_v19 = vld [vmem:[#allocation2 + $0x4c] sm:$0xff]  ;;  %v2177_v18 = vld [vmem:[#allocation2 + $0x54] sm:$0xff] }
 0x150   : > { %17551 = vmatprep.mubr.f32.mxu0 %v3538_v35  ;;  %21000 = vmatprep.subr.bf16.mxu0 %v24112_v25  ;;  %v14064_v35 = vld [vmem:[%s28914_s3 + $0x258] sm:$0xff] }
 0x151   : > { %20744 = vmatprep.subr.bf16.mxu1 %v24219_v43  ;;  %17552 = vmatmul.mubr.f32.gmra.mrb[48].mxu0 %v3539_v2  ;;  %v3894_v2 = vld [vmem:[#allocation2 + $0xc2] sm:$0xff] }
 0x152   : > { %17104 = vmatmul.mubr.f32.gmra.mrb[22].mxu1 %v1982_v60  ;;  %21002 = vmatpush3.bf16.msra.mxu0 %v24112_v25  ;;  %v24243_v25 = vpack.c.bf16 %v14048_v54, %v14047_v49  ;;  %v3895_v60 = vld [vmem:[#allocation2 + $0xca] sm:$0xff]  ;;  %v14065_v54 = vld [vmem:[%s28914_s3 + $0x260] sm:$0xff] }
 0x153   : > { %17106 = vmatprep.mubr.f32.mxu1 %v1983_v47  ;;  %20746 = vmatpush3.bf16.msra.mxu1 %v24219_v43  ;;  %v2178_v47 = vld [vmem:[#allocation2 + $0x5c] sm:$0xff]  ;;  %v2179_v49 = vld [vmem:[#allocation2 + $0x64] sm:$0xff] }
 0x154   : > { %17554 = vmatprep.mubr.f32.mxu0 %v3540_v62  ;;  %21004 = vmatprep.subr.bf16.mxu0 %v24129_v1  ;;  %v14066_v62 = vld [vmem:[%s28914_s3 + $0x268] sm:$0xff] }
 0x155   : > { %20748 = vmatprep.subr.bf16.mxu1 %v24231_v24  ;;  %17555 = vmatmul.mubr.f32.gmra.mrb[50].mxu0 %v3541_v37  ;;  %v3896_v37 = vld [vmem:[#allocation2 + $0xd2] sm:$0xff] }
 0x156   : > { %17107 = vmatmul.mubr.f32.gmra.mrb[24].mxu1 %v1984_v56  ;;  %21006 = vmatpush3.bf16.msra.mxu0 %v24129_v1  ;;  %v24255_v1 = vpack.c.bf16 %v14050_v59, %v14049_v38  ;;  %v3897_v56 = vld [vmem:[#allocation2 + $0xda] sm:$0xff]  ;;  %v14067_v59 = vld [vmem:[%s28914_s3 + $0x270] sm:$0xff] }
 0x157   : > { %17109 = vmatprep.mubr.f32.mxu1 %v1985_v53  ;;  %20750 = vmatpush3.bf16.msra.mxu1 %v24231_v24  ;;  %v2180_v53 = vld [vmem:[#allocation2 + $0x6c] sm:$0xff]  ;;  %v2181_v38 = vld [vmem:[#allocation2 + $0x74] sm:$0xff] }
 0x158   : > { %17557 = vmatprep.mubr.f32.mxu0 %v3542_v52  ;;  %21008 = vmatprep.subr.bf16.mxu0 %v24142_v46  ;;  %v14068_v52 = vld [vmem:[%s28914_s3 + $0x278] sm:$0xff] }
 0x159   : > { %20752 = vmatprep.subr.bf16.mxu1 %v24243_v25  ;;  %17558 = vmatmul.mubr.f32.gmra.mrb[52].mxu0 %v3543_v20  ;;  %v3898_v20 = vld [vmem:[#allocation2 + $0xe2] sm:$0xff] }
 0x15a   : > { %17110 = vmatmul.mubr.f32.gmra.mrb[26].mxu1 %v1986_v34  ;;  %21010 = vmatpush3.bf16.msra.mxu0 %v24142_v46  ;;  %v24267_v46 = vpack.c.bf16 %v14052_v61, %v14051_v15  ;;  %v3899_v34 = vld [vmem:[#allocation2 + $0xea] sm:$0xff]  ;;  %v14069_v61 = vld [vmem:[%s28914_s3 + $0x280] sm:$0xff] }
 0x15b   : > { %17112 = vmatprep.mubr.f32.mxu1 %v1987_v58  ;;  %20754 = vmatpush3.bf16.msra.mxu1 %v24243_v25  ;;  %v2182_v58 = vld [vmem:[#allocation2 + $0x7c] sm:$0xff]  ;;  %v2183_v15 = vld [vmem:[#allocation2 + $0x84] sm:$0xff] }
 0x15c   : > { %17560 = vmatprep.mubr.f32.mxu0 %v3544_v13  ;;  %21012 = vmatprep.subr.bf16.mxu0 %v24155_v57  ;;  %v14070_v13 = vld [vmem:[%s28914_s3 + $0x288] sm:$0xff] }
 0x15d   : > { %20756 = vmatprep.subr.bf16.mxu1 %v24255_v1  ;;  %17561 = vmatmul.mubr.f32.gmra.mrb[54].mxu0 %v3545_v12  ;;  %v3900_v12 = vld [vmem:[#allocation2 + $0xf2] sm:$0xff] }
 0x15e   : > { %17113 = vmatmul.mubr.f32.gmra.mrb[28].mxu1 %v1988_v51  ;;  %21014 = vmatpush3.bf16.msra.mxu0 %v24155_v57  ;;  %v24279_v57 = vpack.c.bf16 %v14054_v8, %v14053_v4  ;;  %v3901_v51 = vld [vmem:[#allocation2 + $0xfa] sm:$0xff]  ;;  %v14071_v8 = vld [vmem:[%s28914_s3 + $0x290] sm:$0xff] }
 0x15f   : > { %17115 = vmatprep.mubr.f32.mxu1 %v1989_v21  ;;  %20758 = vmatpush3.bf16.msra.mxu1 %v24255_v1  ;;  %v2184_v21 = vld [vmem:[#allocation2 + $0x8c] sm:$0xff]  ;;  %v2363_v4 = vld [vmem:[#allocation2 + $0x15] sm:$0xff] }
 0x160   : > { %17563 = vmatprep.mubr.f32.mxu0 %v3546_v44  ;;  %21016 = vmatprep.subr.bf16.mxu0 %v24168_v27  ;;  %v14072_v44 = vld [vmem:[%s28914_s3 + $0x298] sm:$0xff] }
 0x161   : > { %20760 = vmatprep.subr.bf16.mxu1 %v24267_v46  ;;  %17564 = vmatmul.mubr.f32.gmra.mrb[56].mxu0 %v3547_v42  ;;  %v4079_v42 = vld [vmem:[#allocation2 + $0x94] sm:$0xff] }
 0x162   : > { %17116 = vmatmul.mubr.f32.gmra.mrb[30].mxu1 %v1990_v7  ;;  %21018 = vmatpush3.bf16.msra.mxu0 %v24168_v27  ;;  %v24291_v27 = vpack.c.bf16 %v14056_v22, %v14055_v45  ;;  %v4080_v7 = vld [vmem:[#allocation2 + $0x9c] sm:$0xff]  ;;  %v2365_v45 = vld [vmem:[#allocation2 + $0x25] sm:$0xff] }
 0x163   : > { %20762 = vmatpush3.bf16.msra.mxu1 %v24267_v46  ;;  %17150 = vmatprep.mubr.f32.mxu1 %v2169_v41  ;;  %v2364_v41 = vld [vmem:[#allocation2 + $0x1d] sm:$0xff] }
 0x164   : > { %17598 = vmatprep.mubr.f32.mxu0 %v3886_v50  ;;  %21020 = vmatprep.subr.bf16.mxu0 %v24182_v39  ;;  %v14073_v22 = vld [vmem:[%s28914_s3 + $0x2a0] sm:$0xff]  ;;  %v14074_v50 = vld [vmem:[%s28914_s3 + $0x2a8] sm:$0xff] }
 0x165   : > { %20764 = vmatprep.subr.bf16.mxu1 %v24279_v57  ;;  %17599 = vmatmul.mubr.f32.vlgmr.msra.gmra.mrb[42].mxu0 %v3887_v31  ;;  %v4081_v31 = vld [vmem:[#allocation2 + $0xa4] sm:$0xff] }
 0x166   : > { %17151 = vmatmul.mubr.f32.vlgmr.msra.gmra.mrb[16].mxu1 %v2170_v3  ;;  %21022 = vmatpush3.bf16.msra.mxu0 %v24182_v39  ;;  %v24303_v39 = vpack.c.bf16 %v14058_v0, %v14057_v14  ;;  %v4082_v3 = vld [vmem:[#allocation2 + $0xac] sm:$0xff]  ;;  %v2367_v14 = vld [vmem:[#allocation2 + $0x35] sm:$0xff] }
 0x167   : > { %17153 = vmatprep.mubr.f32.mxu1 %v2171_v16  ;;  %20766 = vmatpush3.bf16.msra.mxu1 %v24279_v57  ;;  %v2366_v16 = vld [vmem:[#allocation2 + $0x2d] sm:$0xff] }
 0x168   : > { %17601 = vmatprep.mubr.f32.mxu0 %v3888_v29  ;;  %21024 = vmatprep.subr.bf16.mxu0 %v24195_v40  ;;  %v14075_v0 = vld [vmem:[%s28914_s3 + $0x2b0] sm:$0xff]  ;;  %v14076_v29 = vld [vmem:[%s28914_s3 + $0x2b8] sm:$0xff] }
 0x169   : > { %20768 = vmatprep.subr.bf16.mxu1 %v24291_v27  ;;  %17602 = vmatmul.mubr.f32.gmra.mrb[44].mxu0 %v3889_v5  ;;  %v4083_v5 = vld [vmem:[#allocation2 + $0xb4] sm:$0xff] }
 0x16a   : > { %17154 = vmatmul.mubr.f32.gmra.mrb[18].mxu1 %v2172_v23  ;;  %21026 = vmatpush3.bf16.msra.mxu0 %v24195_v40  ;;  %v24315_v40 = vpack.c.bf16 %v14060_v6, %v14059_v30  ;;  %v4084_v23 = vld [vmem:[#allocation2 + $0xbc] sm:$0xff]  ;;  %v2369_v30 = vld [vmem:[#allocation2 + $0x45] sm:$0xff] }
 0x16b   : > { %17156 = vmatprep.mubr.f32.mxu1 %v2173_v48  ;;  %20770 = vmatpush3.bf16.msra.mxu1 %v24291_v27  ;;  %v2368_v48 = vld [vmem:[#allocation2 + $0x3d] sm:$0xff] }
 0x16c   : > { %17604 = vmatprep.mubr.f32.mxu0 %v3890_v11  ;;  %21028 = vmatprep.subr.bf16.mxu0 %v24207_v32  ;;  %v14077_v6 = vld [vmem:[%s28914_s3 + $0x2c0] sm:$0xff]  ;;  %v14078_v11 = vld [vmem:[%s28914_s3 + $0x2c8] sm:$0xff] }
 0x16d   : > { %20772 = vmatprep.subr.bf16.mxu1 %v24303_v39  ;;  %17605 = vmatmul.mubr.f32.gmra.mrb[46].mxu0 %v3891_v26  ;;  %v4085_v26 = vld [vmem:[#allocation2 + $0xc4] sm:$0xff] }
 0x16e   : > { %17157 = vmatmul.mubr.f32.gmra.mrb[20].mxu1 %v2174_v36  ;;  %21030 = vmatpush3.bf16.msra.mxu0 %v24207_v32  ;;  %v24327_v32 = vpack.c.bf16 %v14062_v63, %v14061_v10  ;;  %v4086_v36 = vld [vmem:[#allocation2 + $0xcc] sm:$0xff]  ;;  %v2371_v10 = vld [vmem:[#allocation2 + $0x55] sm:$0xff] }
 0x16f   : > { %17159 = vmatprep.mubr.f32.mxu1 %v2175_v9  ;;  %20774 = vmatpush3.bf16.msra.mxu1 %v24303_v39  ;;  %v2370_v9 = vld [vmem:[#allocation2 + $0x4d] sm:$0xff] }
 0x170   : > { %17607 = vmatprep.mubr.f32.mxu0 %v3892_v17  ;;  %21032 = vmatprep.subr.bf16.mxu0 %v24219_v43  ;;  %v14079_v63 = vld [vmem:[%s28914_s3 + $0x2d0] sm:$0xff]  ;;  %v14080_v17 = vld [vmem:[%s28914_s3 + $0x2d8] sm:$0xff] }
 0x171   : > { %20776 = vmatprep.subr.bf16.mxu1 %v24315_v40  ;;  %17608 = vmatmul.mubr.f32.gmra.mrb[48].mxu0 %v3893_v33  ;;  %v4087_v33 = vld [vmem:[#allocation2 + $0xd4] sm:$0xff] }
 0x172   : > { %17160 = vmatmul.mubr.f32.gmra.mrb[22].mxu1 %v2176_v19  ;;  %21034 = vmatpush3.bf16.msra.mxu0 %v24219_v43  ;;  %v24339_v43 = vpack.c.bf16 %v14064_v35, %v14063_v55  ;;  %v4088_v19 = vld [vmem:[#allocation2 + $0xdc] sm:$0xff]  ;;  %v2373_v55 = vld [vmem:[#allocation2 + $0x65] sm:$0xff] }
 0x173   : > { %17162 = vmatprep.mubr.f32.mxu1 %v2177_v18  ;;  %20778 = vmatpush3.bf16.msra.mxu1 %v24315_v40  ;;  %v2372_v18 = vld [vmem:[#allocation2 + $0x5d] sm:$0xff] }
 0x174   : > { %17610 = vmatprep.mubr.f32.mxu0 %v3894_v2  ;;  %21036 = vmatprep.subr.bf16.mxu0 %v24231_v24  ;;  %v14081_v35 = vld [vmem:[%s28914_s3 + $0x2e0] sm:$0xff]  ;;  %v14082_v2 = vld [vmem:[%s28914_s3 + $0x2e8] sm:$0xff] }
 0x175   : > { %20780 = vmatprep.subr.bf16.mxu1 %v24327_v32  ;;  %17611 = vmatmul.mubr.f32.gmra.mrb[50].mxu0 %v3895_v60  ;;  %v4089_v60 = vld [vmem:[#allocation2 + $0xe4] sm:$0xff] }
 0x176   : > { %17163 = vmatmul.mubr.f32.gmra.mrb[24].mxu1 %v2178_v47  ;;  %21038 = vmatpush3.bf16.msra.mxu0 %v24231_v24  ;;  %v24351_v24 = vpack.c.bf16 %v14066_v62, %v14065_v54  ;;  %v4090_v47 = vld [vmem:[#allocation2 + $0xec] sm:$0xff]  ;;  %v2375_v54 = vld [vmem:[#allocation2 + $0x75] sm:$0xff] }
 0x177   : > { %17165 = vmatprep.mubr.f32.mxu1 %v2179_v49  ;;  %20782 = vmatpush3.bf16.msra.mxu1 %v24327_v32  ;;  %v2374_v49 = vld [vmem:[#allocation2 + $0x6d] sm:$0xff] }
 0x178   : > { %17613 = vmatprep.mubr.f32.mxu0 %v3896_v37  ;;  %21040 = vmatprep.subr.bf16.mxu0 %v24243_v25  ;;  %v14083_v62 = vld [vmem:[%s28914_s3 + $0x2f0] sm:$0xff]  ;;  %v14084_v37 = vld [vmem:[%s28914_s3 + $0x2f8] sm:$0xff] }
 0x179   : > { %20784 = vmatprep.subr.bf16.mxu1 %v24339_v43  ;;  %17614 = vmatmul.mubr.f32.gmra.mrb[52].mxu0 %v3897_v56  ;;  %v4091_v56 = vld [vmem:[#allocation2 + $0xf4] sm:$0xff] }
 0x17a   : > { %17166 = vmatmul.mubr.f32.gmra.mrb[26].mxu1 %v2180_v53  ;;  %21042 = vmatpush3.bf16.msra.mxu0 %v24243_v25  ;;  %v24363_v25 = vpack.c.bf16 %v14068_v52, %v14067_v59  ;;  %v4092_v53 = vld [vmem:[#allocation2 + $0xfc] sm:$0xff]  ;;  %v2377_v59 = vld [vmem:[#allocation2 + $0x85] sm:$0xff] }
 0x17b   : > { %17168 = vmatprep.mubr.f32.mxu1 %v2181_v38  ;;  %20786 = vmatpush3.bf16.msra.mxu1 %v24339_v43  ;;  %v2376_v38 = vld [vmem:[#allocation2 + $0x7d] sm:$0xff] }
 0x17c   : > { %17616 = vmatprep.mubr.f32.mxu0 %v3898_v20  ;;  %21044 = vmatprep.subr.bf16.mxu0 %v24255_v1  ;;  %v14085_v52 = vld [vmem:[%s28914_s3 + $0x300] sm:$0xff]  ;;  %v14086_v20 = vld [vmem:[%s28914_s3 + $0x308] sm:$0xff] }
 0x17d   : > { %20788 = vmatprep.subr.bf16.mxu1 %v24351_v24  ;;  %17617 = vmatmul.mubr.f32.gmra.mrb[54].mxu0 %v3899_v34  ;;  %v4093_v34 = vld [vmem:[#allocation2 + $0x104] sm:$0xff] }
 0x17e   : > { %17169 = vmatmul.mubr.f32.gmra.mrb[28].mxu1 %v2182_v58  ;;  %21046 = vmatpush3.bf16.msra.mxu0 %v24255_v1  ;;  %v24375_v1 = vpack.c.bf16 %v14070_v13, %v14069_v61  ;;  %v4094_v58 = vld [vmem:[#allocation2 + $0x10c] sm:$0xff]  ;;  %v2557_v61 = vld [vmem:[#allocation2 + $0x16] sm:$0xff] }
 0x17f   : > { %17171 = vmatprep.mubr.f32.mxu1 %v2183_v15  ;;  %20790 = vmatpush3.bf16.msra.mxu1 %v24351_v24  ;;  %v2378_v15 = vld [vmem:[#allocation2 + $0x8d] sm:$0xff] }
 0x180   : > { %17619 = vmatprep.mubr.f32.mxu0 %v3900_v12  ;;  %21048 = vmatprep.subr.bf16.mxu0 %v24267_v46  ;;  %v14087_v13 = vld [vmem:[%s28914_s3 + $0x310] sm:$0xff]  ;;  %v14088_v12 = vld [vmem:[%s28914_s3 + $0x318] sm:$0xff] }
 0x181   : > { %20792 = vmatprep.subr.bf16.mxu1 %v24363_v25  ;;  %17620 = vmatmul.mubr.f32.gmra.mrb[56].mxu0 %v3901_v51  ;;  %v4272_v51 = vld [vmem:[#allocation2 + $0x95] sm:$0xff] }
 0x182   : > { %17172 = vmatmul.mubr.f32.gmra.mrb[30].mxu1 %v2184_v21  ;;  %21050 = vmatpush3.bf16.msra.mxu0 %v24267_v46  ;;  %v24387_v46 = vpack.c.bf16 %v14072_v44, %v14071_v8  ;;  %v4273_v21 = vld [vmem:[#allocation2 + $0x9d] sm:$0xff]  ;;  %v2559_v8 = vld [vmem:[#allocation2 + $0x26] sm:$0xff] }
 0x183   : > { %20794 = vmatpush3.bf16.msra.mxu1 %v24363_v25  ;;  %17206 = vmatprep.mubr.f32.mxu1 %v2363_v4  ;;  %v2558_v4 = vld [vmem:[#allocation2 + $0x1e] sm:$0xff] }
 0x184   : > { %17654 = vmatprep.mubr.f32.mxu0 %v4079_v42  ;;  %21052 = vmatprep.subr.bf16.mxu0 %v24279_v57  ;;  %v14089_v44 = vld [vmem:[%s28914_s3 + $0x320] sm:$0xff]  ;;  %v14090_v42 = vld [vmem:[%s28914_s3 + $0x328] sm:$0xff] }
 0x185   : > { %20796 = vmatprep.subr.bf16.mxu1 %v24375_v1  ;;  %17655 = vmatmul.mubr.f32.vlgmr.msra.gmra.mrb[42].mxu0 %v4080_v7  ;;  %v4274_v7 = vld [vmem:[#allocation2 + $0xa5] sm:$0xff] }
 0x186   : > { %17207 = vmatmul.mubr.f32.vlgmr.msra.gmra.mrb[16].mxu1 %v2364_v41  ;;  %21054 = vmatpush3.bf16.msra.mxu0 %v24279_v57  ;;  %v24399_v57 = vpack.c.bf16 %v14074_v50, %v14073_v22  ;;  %v4275_v41 = vld [vmem:[#allocation2 + $0xad] sm:$0xff]  ;;  %v2561_v22 = vld [vmem:[#allocation2 + $0x36] sm:$0xff] }
 0x187   : > { %17209 = vmatprep.mubr.f32.mxu1 %v2365_v45  ;;  %20798 = vmatpush3.bf16.msra.mxu1 %v24375_v1  ;;  %v2560_v45 = vld [vmem:[#allocation2 + $0x2e] sm:$0xff] }
 0x188   : > { %17657 = vmatprep.mubr.f32.mxu0 %v4081_v31  ;;  %21056 = vmatprep.subr.bf16.mxu0 %v24291_v27  ;;  %v14091_v50 = vld [vmem:[%s28914_s3 + $0x330] sm:$0xff]  ;;  %v14092_v31 = vld [vmem:[%s28914_s3 + $0x338] sm:$0xff] }
 0x189   : > { %20800 = vmatprep.subr.bf16.mxu1 %v24387_v46  ;;  %17658 = vmatmul.mubr.f32.gmra.mrb[44].mxu0 %v4082_v3  ;;  %v4276_v3 = vld [vmem:[#allocation2 + $0xb5] sm:$0xff] }
 0x18a   : > { %17210 = vmatmul.mubr.f32.gmra.mrb[18].mxu1 %v2366_v16  ;;  %21058 = vmatpush3.bf16.msra.mxu0 %v24291_v27  ;;  %v24411_v27 = vpack.c.bf16 %v14076_v29, %v14075_v0  ;;  %v4277_v16 = vld [vmem:[#allocation2 + $0xbd] sm:$0xff]  ;;  %v2563_v0 = vld [vmem:[#allocation2 + $0x46] sm:$0xff] }
 0x18b   : > { %17212 = vmatprep.mubr.f32.mxu1 %v2367_v14  ;;  %20802 = vmatpush3.bf16.msra.mxu1 %v24387_v46  ;;  %v2562_v14 = vld [vmem:[#allocation2 + $0x3e] sm:$0xff] }
 0x18c   : > { %17660 = vmatprep.mubr.f32.mxu0 %v4083_v5  ;;  %21060 = vmatprep.subr.bf16.mxu0 %v24303_v39  ;;  %v14093_v29 = vld [vmem:[%s28914_s3 + $0x340] sm:$0xff]  ;;  %v14094_v5 = vld [vmem:[%s28914_s3 + $0x348] sm:$0xff] }
 0x18d   : > { %20804 = vmatprep.subr.bf16.mxu1 %v24399_v57  ;;  %17661 = vmatmul.mubr.f32.gmra.mrb[46].mxu0 %v4084_v23  ;;  %v4278_v23 = vld [vmem:[#allocation2 + $0xc5] sm:$0xff] }
 0x18e   : > { %17213 = vmatmul.mubr.f32.gmra.mrb[20].mxu1 %v2368_v48  ;;  %21062 = vmatpush3.bf16.msra.mxu0 %v24303_v39  ;;  %v24423_v39 = vpack.c.bf16 %v14078_v11, %v14077_v6  ;;  %v4279_v48 = vld [vmem:[#allocation2 + $0xcd] sm:$0xff]  ;;  %v2565_v6 = vld [vmem:[#allocation2 + $0x56] sm:$0xff] }
 0x18f   : > { %17215 = vmatprep.mubr.f32.mxu1 %v2369_v30  ;;  %20806 = vmatpush3.bf16.msra.mxu1 %v24399_v57  ;;  %v2564_v30 = vld [vmem:[#allocation2 + $0x4e] sm:$0xff] }
 0x190   : > { %17663 = vmatprep.mubr.f32.mxu0 %v4085_v26  ;;  %21064 = vmatprep.subr.bf16.mxu0 %v24315_v40  ;;  %v14095_v11 = vld [vmem:[%s28914_s3 + $0x350] sm:$0xff]  ;;  %v14096_v26 = vld [vmem:[%s28914_s3 + $0x358] sm:$0xff] }
 0x191   : > { %20808 = vmatprep.subr.bf16.mxu1 %v24411_v27  ;;  %17664 = vmatmul.mubr.f32.gmra.mrb[48].mxu0 %v4086_v36  ;;  %v4280_v36 = vld [vmem:[#allocation2 + $0xd5] sm:$0xff] }
 0x192   : > { %17216 = vmatmul.mubr.f32.gmra.mrb[22].mxu1 %v2370_v9  ;;  %21066 = vmatpush3.bf16.msra.mxu0 %v24315_v40  ;;  %v24435_v40 = vpack.c.bf16 %v14080_v17, %v14079_v63  ;;  %v4281_v9 = vld [vmem:[#allocation2 + $0xdd] sm:$0xff]  ;;  %v2567_v63 = vld [vmem:[#allocation2 + $0x66] sm:$0xff] }
 0x193   : > { %17218 = vmatprep.mubr.f32.mxu1 %v2371_v10  ;;  %20810 = vmatpush3.bf16.msra.mxu1 %v24411_v27  ;;  %v2566_v10 = vld [vmem:[#allocation2 + $0x5e] sm:$0xff] }
 0x194   : > { %17666 = vmatprep.mubr.f32.mxu0 %v4087_v33  ;;  %21068 = vmatprep.subr.bf16.mxu0 %v24327_v32  ;;  %v14097_v17 = vld [vmem:[%s28914_s3 + $0x360] sm:$0xff]  ;;  %v14098_v33 = vld [vmem:[%s28914_s3 + $0x368] sm:$0xff] }
 0x195   : > { %20812 = vmatprep.subr.bf16.mxu1 %v24423_v39  ;;  %17667 = vmatmul.mubr.f32.gmra.mrb[50].mxu0 %v4088_v19  ;;  %v4282_v19 = vld [vmem:[#allocation2 + $0xe5] sm:$0xff] }
 0x196   : > { %17219 = vmatmul.mubr.f32.gmra.mrb[24].mxu1 %v2372_v18  ;;  %21070 = vmatpush3.bf16.msra.mxu0 %v24327_v32  ;;  %v24447_v32 = vpack.c.bf16 %v14082_v2, %v14081_v35  ;;  %v4283_v18 = vld [vmem:[#allocation2 + $0xed] sm:$0xff]  ;;  %v2569_v35 = vld [vmem:[#allocation2 + $0x76] sm:$0xff] }
 0x197   : > { %17221 = vmatprep.mubr.f32.mxu1 %v2373_v55  ;;  %20814 = vmatpush3.bf16.msra.mxu1 %v24423_v39  ;;  %v2568_v55 = vld [vmem:[#allocation2 + $0x6e] sm:$0xff] }
 0x198   : > { %17669 = vmatprep.mubr.f32.mxu0 %v4089_v60  ;;  %21072 = vmatprep.subr.bf16.mxu0 %v24339_v43  ;;  %v14099_v2 = vld [vmem:[%s28914_s3 + $0x370] sm:$0xff]  ;;  %v14100_v60 = vld [vmem:[%s28914_s3 + $0x378] sm:$0xff] }
 0x199   : > { %20816 = vmatprep.subr.bf16.mxu1 %v24435_v40  ;;  %17670 = vmatmul.mubr.f32.gmra.mrb[52].mxu0 %v4090_v47  ;;  %v4284_v47 = vld [vmem:[#allocation2 + $0xf5] sm:$0xff] }
 0x19a   : > { %17222 = vmatmul.mubr.f32.gmra.mrb[26].mxu1 %v2374_v49  ;;  %21074 = vmatpush3.bf16.msra.mxu0 %v24339_v43  ;;  %v24459_v43 = vpack.c.bf16 %v14084_v37, %v14083_v62  ;;  %v4285_v49 = vld [vmem:[#allocation2 + $0xfd] sm:$0xff]  ;;  %v2571_v62 = vld [vmem:[#allocation2 + $0x86] sm:$0xff] }
 0x19b   : > { %17224 = vmatprep.mubr.f32.mxu1 %v2375_v54  ;;  %20818 = vmatpush3.bf16.msra.mxu1 %v24435_v40  ;;  %v2570_v54 = vld [vmem:[#allocation2 + $0x7e] sm:$0xff] }
 0x19c   : > { %17672 = vmatprep.mubr.f32.mxu0 %v4091_v56  ;;  %21076 = vmatprep.subr.bf16.mxu0 %v24351_v24  ;;  %v14101_v37 = vld [vmem:[%s28914_s3 + $0x380] sm:$0xff]  ;;  %v14102_v56 = vld [vmem:[%s28914_s3 + $0x388] sm:$0xff] }
 0x19d   : > { %20820 = vmatprep.subr.bf16.mxu1 %v24447_v32  ;;  %17673 = vmatmul.mubr.f32.gmra.mrb[54].mxu0 %v4092_v53  ;;  %v4286_v53 = vld [vmem:[#allocation2 + $0x105] sm:$0xff] }
 0x19e   : > { %17225 = vmatmul.mubr.f32.gmra.mrb[28].mxu1 %v2376_v38  ;;  %21078 = vmatpush3.bf16.msra.mxu0 %v24351_v24  ;;  %v24471_v24 = vpack.c.bf16 %v14086_v20, %v14085_v52  ;;  %v4287_v38 = vld [vmem:[#allocation2 + $0x10d] sm:$0xff] }
 0x19f   : > { %17227 = vmatprep.mubr.f32.mxu1 %v2377_v59  ;;  %20822 = vmatpush3.bf16.msra.mxu1 %v24447_v32  ;;  %v2572_v59 = vld [vmem:[#allocation2 + $0x8e] sm:$0xff] }
 0x1a0   : > { %17675 = vmatprep.mubr.f32.mxu0 %v4093_v34  ;;  %21080 = vmatprep.subr.bf16.mxu0 %v24363_v25  ;;  %v2751_v52 = vld [vmem:[#allocation2 + $0x28] sm:$0xff]  ;;  %v14103_v20 = vld [vmem:[%s28914_s3 + $0x390] sm:$0xff]  ;;  %v14104_v34 = vld [vmem:[%s28914_s3 + $0x398] sm:$0xff] }
 0x1a1   : > { %20824 = vmatprep.subr.bf16.mxu1 %v24459_v43  ;;  %17676 = vmatmul.mubr.f32.gmra.mrb[56].mxu0 %v4094_v58  ;;  %v4465_v58 = vld [vmem:[#allocation2 + $0x96] sm:$0xff] }
 0x1a2   : > { %17228 = vmatmul.mubr.f32.gmra.mrb[30].mxu1 %v2378_v15  ;;  %21082 = vmatpush3.bf16.msra.mxu0 %v24363_v25  ;;  %v24483_v25 = vpack.c.bf16 %v14088_v12, %v14087_v13  ;;  %v4466_v15 = vld [vmem:[#allocation2 + $0x9e] sm:$0xff] }
 0x1a3   : > { %20826 = vmatpush3.bf16.msra.mxu1 %v24459_v43  ;;  %17262 = vmatprep.mubr.f32.mxu1 %v2557_v61  ;;  %v2752_v61 = vld [vmem:[#allocation2 + $0x30] sm:$0xff]  ;;  %v2753_v13 = vld [vmem:[#allocation2 + $0x38] sm:$0xff]  ;;  %v14105_v12 = vld [vmem:[%s28914_s3 + $0x3a0] sm:$0xff] }
 0x1a4   : > { %17710 = vmatprep.mubr.f32.mxu0 %v4272_v51  ;;  %21084 = vmatprep.subr.bf16.mxu0 %v24375_v1  ;;  %v14106_v51 = vld [vmem:[%s28914_s3 + $0x3a8] sm:$0xff] }
 0x1a5   : > { %20828 = vmatprep.subr.bf16.mxu1 %v24471_v24  ;;  %17711 = vmatmul.mubr.f32.vlgmr.msra.gmra.mrb[42].mxu0 %v4273_v21  ;;  %v4467_v21 = vld [vmem:[#allocation2 + $0xa6] sm:$0xff] }
 0x1a6   : > { %17263 = vmatmul.mubr.f32.vlgmr.msra.gmra.mrb[16].mxu1 %v2558_v4  ;;  %21086 = vmatpush3.bf16.msra.mxu0 %v24375_v1  ;;  %v24495_v1 = vpack.c.bf16 %v14090_v42, %v14089_v44  ;;  %v4468_v4 = vld [vmem:[#allocation2 + $0xae] sm:$0xff] }
 0x1a7   : > { %17265 = vmatprep.mubr.f32.mxu1 %v2559_v8  ;;  %20830 = vmatpush3.bf16.msra.mxu1 %v24471_v24  ;;  %v2754_v8 = vld [vmem:[#allocation2 + $0x40] sm:$0xff]  ;;  %v2755_v44 = vld [vmem:[#allocation2 + $0x48] sm:$0xff]  ;;  %v14107_v42 = vld [vmem:[%s28914_s3 + $0x3b0] sm:$0xff] }
 0x1a8   : > { %17713 = vmatprep.mubr.f32.mxu0 %v4274_v7  ;;  %21088 = vmatprep.subr.bf16.mxu0 %v24387_v46  ;;  %v14108_v7 = vld [vmem:[%s28914_s3 + $0x3b8] sm:$0xff] }
 0x1a9   : > { %20832 = vmatprep.subr.bf16.mxu1 %v24483_v25  ;;  %17714 = vmatmul.mubr.f32.gmra.mrb[44].mxu0 %v4275_v41  ;;  %v4469_v41 = vld [vmem:[#allocation2 + $0xb6] sm:$0xff] }
 0x1aa   : > { %17266 = vmatmul.mubr.f32.gmra.mrb[18].mxu1 %v2560_v45  ;;  %21090 = vmatpush3.bf16.msra.mxu0 %v24387_v46  ;;  %v24507_v46 = vpack.c.bf16 %v14092_v31, %v14091_v50  ;;  %v4470_v45 = vld [vmem:[#allocation2 + $0xbe] sm:$0xff] }
 0x1ab   : > { %17268 = vmatprep.mubr.f32.mxu1 %v2561_v22  ;;  %20834 = vmatpush3.bf16.msra.mxu1 %v24483_v25  ;;  %v2756_v22 = vld [vmem:[#allocation2 + $0x50] sm:$0xff]  ;;  %v2757_v50 = vld [vmem:[#allocation2 + $0x58] sm:$0xff]  ;;  %v14109_v31 = vld [vmem:[%s28914_s3 + $0x3c0] sm:$0xff] }
 0x1ac   : > { %17716 = vmatprep.mubr.f32.mxu0 %v4276_v3  ;;  %21092 = vmatprep.subr.bf16.mxu0 %v24399_v57  ;;  %v14110_v3 = vld [vmem:[%s28914_s3 + $0x3c8] sm:$0xff] }
 0x1ad   : > { %20836 = vmatprep.subr.bf16.mxu1 %v24495_v1  ;;  %17717 = vmatmul.mubr.f32.gmra.mrb[46].mxu0 %v4277_v16  ;;  %v4471_v16 = vld [vmem:[#allocation2 + $0xc6] sm:$0xff] }
 0x1ae   : > { %17269 = vmatmul.mubr.f32.gmra.mrb[20].mxu1 %v2562_v14  ;;  %21094 = vmatpush3.bf16.msra.mxu0 %v24399_v57  ;;  %v24519_v57 = vpack.c.bf16 %v14094_v5, %v14093_v29  ;;  %v4472_v14 = vld [vmem:[#allocation2 + $0xce] sm:$0xff] }
 0x1af   : > { %17271 = vmatprep.mubr.f32.mxu1 %v2563_v0  ;;  %20838 = vmatpush3.bf16.msra.mxu1 %v24495_v1  ;;  %v2758_v0 = vld [vmem:[#allocation2 + $0x60] sm:$0xff]  ;;  %v2759_v29 = vld [vmem:[#allocation2 + $0x68] sm:$0xff]  ;;  %v14111_v5 = vld [vmem:[%s28914_s3 + $0x3d0] sm:$0xff] }
 0x1b0   : > { %17719 = vmatprep.mubr.f32.mxu0 %v4278_v23  ;;  %21096 = vmatprep.subr.bf16.mxu0 %v24411_v27  ;;  %v14112_v23 = vld [vmem:[%s28914_s3 + $0x3d8] sm:$0xff] }
 0x1b1   : > { %20840 = vmatprep.subr.bf16.mxu1 %v24507_v46  ;;  %17720 = vmatmul.mubr.f32.gmra.mrb[48].mxu0 %v4279_v48  ;;  %v4473_v48 = vld [vmem:[#allocation2 + $0xd6] sm:$0xff] }
 0x1b2   : > { %17272 = vmatmul.mubr.f32.gmra.mrb[22].mxu1 %v2564_v30  ;;  %21098 = vmatpush3.bf16.msra.mxu0 %v24411_v27  ;;  %v24531_v27 = vpack.c.bf16 %v14096_v26, %v14095_v11  ;;  %v4474_v30 = vld [vmem:[#allocation2 + $0xde] sm:$0xff] }
 0x1b3   : > { %17274 = vmatprep.mubr.f32.mxu1 %v2565_v6  ;;  %20842 = vmatpush3.bf16.msra.mxu1 %v24507_v46  ;;  %v2760_v6 = vld [vmem:[#allocation2 + $0x70] sm:$0xff]  ;;  %v2761_v11 = vld [vmem:[#allocation2 + $0x78] sm:$0xff]  ;;  %v14113_v26 = vld [vmem:[%s28914_s3 + $0x3e0] sm:$0xff] }
 0x1b4   : > { %17722 = vmatprep.mubr.f32.mxu0 %v4280_v36  ;;  %21100 = vmatprep.subr.bf16.mxu0 %v24423_v39  ;;  %v14114_v36 = vld [vmem:[%s28914_s3 + $0x3e8] sm:$0xff] }
 0x1b5   : > { %20844 = vmatprep.subr.bf16.mxu1 %v24519_v57  ;;  %17723 = vmatmul.mubr.f32.gmra.mrb[50].mxu0 %v4281_v9  ;;  %v4475_v9 = vld [vmem:[#allocation2 + $0xe6] sm:$0xff] }
 0x1b6   : > { %17275 = vmatmul.mubr.f32.gmra.mrb[24].mxu1 %v2566_v10  ;;  %21102 = vmatpush3.bf16.msra.mxu0 %v24423_v39  ;;  %v24543_v39 = vpack.c.bf16 %v14098_v33, %v14097_v17  ;;  %v4476_v10 = vld [vmem:[#allocation2 + $0xee] sm:$0xff] }
 0x1b7   : > { %17277 = vmatprep.mubr.f32.mxu1 %v2567_v63  ;;  %20846 = vmatpush3.bf16.msra.mxu1 %v24519_v57  ;;  %v2762_v63 = vld [vmem:[#allocation2 + $0x80] sm:$0xff]  ;;  %v2763_v17 = vld [vmem:[#allocation2 + $0x88] sm:$0xff]  ;;  %v14115_v33 = vld [vmem:[%s28914_s3 + $0x3f0] sm:$0xff] }
 0x1b8   : > { %17725 = vmatprep.mubr.f32.mxu0 %v4282_v19  ;;  %21104 = vmatprep.subr.bf16.mxu0 %v24435_v40  ;;  %v14116_v19 = vld [vmem:[%s28914_s3 + $0x3f8] sm:$0xff] }
 0x1b9   : > { %20848 = vmatprep.subr.bf16.mxu1 %v24531_v27  ;;  %17726 = vmatmul.mubr.f32.gmra.mrb[52].mxu0 %v4283_v18  ;;  %v4477_v18 = vld [vmem:[#allocation2 + $0xf6] sm:$0xff] }
 0x1ba   : > { %17278 = vmatmul.mubr.f32.gmra.mrb[26].mxu1 %v2568_v55  ;;  %21106 = vmatpush3.bf16.msra.mxu0 %v24435_v40  ;;  %v24555_v40 = vpack.c.bf16 %v14100_v60, %v14099_v2  ;;  %v4478_v55 = vld [vmem:[#allocation2 + $0xfe] sm:$0xff] }
 0x1bb   : > { %17280 = vmatprep.mubr.f32.mxu1 %v2569_v35  ;;  %20850 = vmatpush3.bf16.msra.mxu1 %v24531_v27  ;;  %v2764_v35 = vld [vmem:[#allocation2 + $0x90] sm:$0xff]  ;;  %v2765_v2 = vld [vmem:[#allocation2 + $0x98] sm:$0xff]  ;;  %v14117_v60 = vld [vmem:[%s28914_s3 + $0x400] sm:$0xff] }
 0x1bc   : > { %17728 = vmatprep.mubr.f32.mxu0 %v4284_v47  ;;  %21108 = vmatprep.subr.bf16.mxu0 %v24447_v32  ;;  %v14118_v47 = vld [vmem:[%s28914_s3 + $0x408] sm:$0xff] }
 0x1bd   : > { %20852 = vmatprep.subr.bf16.mxu1 %v24543_v39  ;;  %17729 = vmatmul.mubr.f32.gmra.mrb[54].mxu0 %v4285_v49  ;;  %v4479_v49 = vld [vmem:[#allocation2 + $0x106] sm:$0xff] }
 0x1be   : > { %17281 = vmatmul.mubr.f32.gmra.mrb[28].mxu1 %v2570_v54  ;;  %21110 = vmatpush3.bf16.msra.mxu0 %v24447_v32  ;;  %v24567_v32 = vpack.c.bf16 %v14102_v56, %v14101_v37  ;;  %v4480_v54 = vld [vmem:[#allocation2 + $0x10e] sm:$0xff] }
 0x1bf   : > { %17283 = vmatprep.mubr.f32.mxu1 %v2571_v62  ;;  %20854 = vmatpush3.bf16.msra.mxu1 %v24543_v39  ;;  %v2766_v62 = vld [vmem:[#allocation2 + $0xa0] sm:$0xff]  ;;  %v2945_v37 = vld [vmem:[#allocation2 + $0x29] sm:$0xff] }
 0x1c0   : > { %17731 = vmatprep.mubr.f32.mxu0 %v4286_v53  ;;  %21112 = vmatprep.subr.bf16.mxu0 %v24459_v43  ;;  %v14119_v56 = vld [vmem:[%s28914_s3 + $0x410] sm:$0xff]  ;;  %v14120_v53 = vld [vmem:[%s28914_s3 + $0x418] sm:$0xff] }
 0x1c1   : > { %20856 = vmatprep.subr.bf16.mxu1 %v24555_v40  ;;  %17732 = vmatmul.mubr.f32.gmra.mrb[56].mxu0 %v4287_v38  ;;  %v4658_v38 = vld [vmem:[#allocation2 + $0xa8] sm:$0xff] }
 0x1c2   : > { %17284 = vmatmul.mubr.f32.gmra.mrb[30].mxu1 %v2572_v59  ;;  %21114 = vmatpush3.bf16.msra.mxu0 %v24459_v43  ;;  %v24579_v43 = vpack.c.bf16 %v14104_v34, %v14103_v20  ;;  %v4659_v59 = vld [vmem:[#allocation2 + $0xb0] sm:$0xff]  ;;  %v2947_v20 = vld [vmem:[#allocation2 + $0x39] sm:$0xff] }
 0x1c3   : > { %20858 = vmatpush3.bf16.msra.mxu1 %v24555_v40  ;;  %17318 = vmatprep.mubr.f32.mxu1 %v2751_v52  ;;  %v2946_v52 = vld [vmem:[#allocation2 + $0x31] sm:$0xff]  ;;  %v14121_v34 = vld [vmem:[%s28914_s3 + $0x420] sm:$0xff] }
 0x1c4   : > { %17766 = vmatprep.mubr.f32.mxu0 %v4465_v58  ;;  %21116 = vmatprep.subr.bf16.mxu0 %v24471_v24  ;;  %v14122_v58 = vld [vmem:[%s28914_s3 + $0x428] sm:$0xff] }
 0x1c5   : > { %20860 = vmatprep.subr.bf16.mxu1 %v24567_v32  ;;  %17767 = vmatmul.mubr.f32.vlgmr.msra.gmra.mrb[42].mxu0 %v4466_v15  ;;  %v4660_v15 = vld [vmem:[#allocation2 + $0xb8] sm:$0xff] }
 0x1c6   : > { %17319 = vmatmul.mubr.f32.vlgmr.msra.gmra.mrb[16].mxu1 %v2752_v61  ;;  %21118 = vmatpush3.bf16.msra.mxu0 %v24471_v24  ;;  %v24591_v24 = vpack.c.bf16 %v14106_v51, %v14105_v12  ;;  %v4661_v61 = vld [vmem:[#allocation2 + $0xc0] sm:$0xff]  ;;  %v2949_v12 = vld [vmem:[#allocation2 + $0x49] sm:$0xff] }
 0x1c7   : > { %17321 = vmatprep.mubr.f32.mxu1 %v2753_v13  ;;  %20862 = vmatpush3.bf16.msra.mxu1 %v24567_v32  ;;  %v2948_v13 = vld [vmem:[#allocation2 + $0x41] sm:$0xff]  ;;  %v14123_v51 = vld [vmem:[%s28914_s3 + $0x430] sm:$0xff] }
 0x1c8   : > { %17769 = vmatprep.mubr.f32.mxu0 %v4467_v21  ;;  %21120 = vmatprep.subr.bf16.mxu0 %v24483_v25  ;;  %v14124_v21 = vld [vmem:[%s28914_s3 + $0x438] sm:$0xff] }
 0x1c9   : > { %20864 = vmatprep.subr.bf16.mxu1 %v24579_v43  ;;  %17770 = vmatmul.mubr.f32.gmra.mrb[44].mxu0 %v4468_v4  ;;  %v4662_v4 = vld [vmem:[#allocation2 + $0xc8] sm:$0xff] }
 0x1ca   : > { %17322 = vmatmul.mubr.f32.gmra.mrb[18].mxu1 %v2754_v8  ;;  %21122 = vmatpush3.bf16.msra.mxu0 %v24483_v25  ;;  %v24603_v25 = vpack.c.bf16 %v14108_v7, %v14107_v42  ;;  %v4663_v8 = vld [vmem:[#allocation2 + $0xd0] sm:$0xff]  ;;  %v2951_v42 = vld [vmem:[#allocation2 + $0x59] sm:$0xff] }
 0x1cb   : > { %17324 = vmatprep.mubr.f32.mxu1 %v2755_v44  ;;  %20866 = vmatpush3.bf16.msra.mxu1 %v24579_v43  ;;  %v2950_v44 = vld [vmem:[#allocation2 + $0x51] sm:$0xff]  ;;  %v14125_v7 = vld [vmem:[%s28914_s3 + $0x440] sm:$0xff] }
 0x1cc   : > { %17772 = vmatprep.mubr.f32.mxu0 %v4469_v41  ;;  %21124 = vmatprep.subr.bf16.mxu0 %v24495_v1  ;;  %v14126_v41 = vld [vmem:[%s28914_s3 + $0x448] sm:$0xff] }
 0x1cd   : > { %20868 = vmatprep.subr.bf16.mxu1 %v24591_v24  ;;  %17773 = vmatmul.mubr.f32.gmra.mrb[46].mxu0 %v4470_v45  ;;  %v4664_v45 = vld [vmem:[#allocation2 + $0xd8] sm:$0xff] }
 0x1ce   : > { %17325 = vmatmul.mubr.f32.gmra.mrb[20].mxu1 %v2756_v22  ;;  %21126 = vmatpush3.bf16.msra.mxu0 %v24495_v1  ;;  %v24615_v1 = vpack.c.bf16 %v14110_v3, %v14109_v31  ;;  %v4665_v22 = vld [vmem:[#allocation2 + $0xe0] sm:$0xff]  ;;  %v2953_v31 = vld [vmem:[#allocation2 + $0x69] sm:$0xff] }
 0x1cf   : > { %17327 = vmatprep.mubr.f32.mxu1 %v2757_v50  ;;  %20870 = vmatpush3.bf16.msra.mxu1 %v24591_v24  ;;  %v2952_v50 = vld [vmem:[#allocation2 + $0x61] sm:$0xff]  ;;  %v14127_v3 = vld [vmem:[%s28914_s3 + $0x450] sm:$0xff] }
 0x1d0   : > { %17775 = vmatprep.mubr.f32.mxu0 %v4471_v16  ;;  %21128 = vmatprep.subr.bf16.mxu0 %v24507_v46  ;;  %v14128_v16 = vld [vmem:[%s28914_s3 + $0x458] sm:$0xff] }
 0x1d1   : > { %20872 = vmatprep.subr.bf16.mxu1 %v24603_v25  ;;  %17776 = vmatmul.mubr.f32.gmra.mrb[48].mxu0 %v4472_v14  ;;  %v4666_v14 = vld [vmem:[#allocation2 + $0xe8] sm:$0xff] }
 0x1d2   : > { %17328 = vmatmul.mubr.f32.gmra.mrb[22].mxu1 %v2758_v0  ;;  %21130 = vmatpush3.bf16.msra.mxu0 %v24507_v46  ;;  %v24627_v46 = vpack.c.bf16 %v14112_v23, %v14111_v5  ;;  %v4667_v0 = vld [vmem:[#allocation2 + $0xf0] sm:$0xff]  ;;  %v2955_v5 = vld [vmem:[#allocation2 + $0x79] sm:$0xff] }
 0x1d3   : > { %17330 = vmatprep.mubr.f32.mxu1 %v2759_v29  ;;  %20874 = vmatpush3.bf16.msra.mxu1 %v24603_v25  ;;  %v2954_v29 = vld [vmem:[#allocation2 + $0x71] sm:$0xff]  ;;  %v14129_v23 = vld [vmem:[%s28914_s3 + $0x460] sm:$0xff] }
 0x1d4   : > { %17778 = vmatprep.mubr.f32.mxu0 %v4473_v48  ;;  %21132 = vmatprep.subr.bf16.mxu0 %v24519_v57  ;;  %v14130_v48 = vld [vmem:[%s28914_s3 + $0x468] sm:$0xff] }
 0x1d5   : > { %20876 = vmatprep.subr.bf16.mxu1 %v24615_v1  ;;  %17779 = vmatmul.mubr.f32.gmra.mrb[50].mxu0 %v4474_v30  ;;  %v4668_v30 = vld [vmem:[#allocation2 + $0xf8] sm:$0xff] }
 0x1d6   : > { %17331 = vmatmul.mubr.f32.gmra.mrb[24].mxu1 %v2760_v6  ;;  %21134 = vmatpush3.bf16.msra.mxu0 %v24519_v57  ;;  %v24639_v57 = vpack.c.bf16 %v14114_v36, %v14113_v26  ;;  %v24734_v6 = vld [vmem:[#allocation2 + $0x100] sm:$0xff]  ;;  %v2957_v26 = vld [vmem:[#allocation2 + $0x89] sm:$0xff] }
 0x1d7   : > { %17333 = vmatprep.mubr.f32.mxu1 %v2761_v11  ;;  %20878 = vmatpush3.bf16.msra.mxu1 %v24615_v1  ;;  %v2956_v11 = vld [vmem:[#allocation2 + $0x81] sm:$0xff]  ;;  %v14131_v36 = vld [vmem:[%s28914_s3 + $0x470] sm:$0xff] }
 0x1d8   : > { %17781 = vmatprep.mubr.f32.mxu0 %v4475_v9  ;;  %21136 = vmatprep.subr.bf16.mxu0 %v24531_v27  ;;  %v14132_v9 = vld [vmem:[%s28914_s3 + $0x478] sm:$0xff] }
 0x1d9   : > { %20880 = vmatprep.subr.bf16.mxu1 %v24627_v46  ;;  %17782 = vmatmul.mubr.f32.gmra.mrb[52].mxu0 %v4476_v10  ;;  %v24748_v10 = vld [vmem:[#allocation2 + $0x108] sm:$0xff] }
 0x1da   : > { %17334 = vmatmul.mubr.f32.gmra.mrb[26].mxu1 %v2762_v63  ;;  %21138 = vmatpush3.bf16.msra.mxu0 %v24531_v27  ;;  %v24651_v27 = vpack.c.bf16 %v14116_v19, %v14115_v33  ;;  %v24752_v63 = vld [vmem:[#allocation2 + $0x110] sm:$0xff]  ;;  %v2959_v33 = vld [vmem:[#allocation2 + $0x99] sm:$0xff] }
 0x1db   : > { %17336 = vmatprep.mubr.f32.mxu1 %v2763_v17  ;;  %20882 = vmatpush3.bf16.msra.mxu1 %v24627_v46  ;;  %v24756_v17 = vpack.c.bf16 %v14132_v9, %v14131_v36  ;;  %v24760_v19 = vld [vmem:[#allocation2 + $0x118] sm:$0xff] }
 0x1dc   : > { %17784 = vmatprep.mubr.f32.mxu0 %v4477_v18  ;;  %21140 = vmatprep.subr.bf16.mxu0 %v24543_v39  ;;  %v24764_v18 = vld [vmem:[#allocation2 + $0x120] sm:$0xff]  ;;  %v24837_v36 = vld [vmem:[#allocation2 + $0x111] sm:$0xff] }
 0x1dd   : > { %20884 = vmatprep.subr.bf16.mxu1 %v24639_v57  ;;  %17785 = vmatmul.mubr.f32.gmra.mrb[54].mxu0 %v4478_v55  ;;  %v2960_v55 = vld [vmem:[#allocation2 + $0xa1] sm:$0xff] }
 0x1de   : > { %17337 = vmatmul.mubr.f32.gmra.mrb[28].mxu1 %v2764_v35  ;;  %21142 = vmatpush3.bf16.msra.mxu0 %v24543_v39  ;;  %v24663_v39 = vpack.c.bf16 %v14118_v47, %v14117_v60  ;;  %v14312_v35 = vld [vmem:[%s28914_s3 + $0x208] sm:$0xff]  ;;  %v4852_v47 = vld [vmem:[#allocation2 + $0xb1] sm:$0xff] }
 0x1df   : > { %17339 = vmatprep.mubr.f32.mxu1 %v2765_v2  ;;  %20886 = vmatpush3.bf16.msra.mxu1 %v24639_v57  ;;  %v3139_v2 = vld [vmem:[#allocation2 + $0x2a] sm:$0xff] }
 0x1e0   : > { %17787 = vmatprep.mubr.f32.mxu0 %v4479_v49  ;;  %21144 = vmatprep.subr.bf16.mxu0 %v24555_v40  ;;  %v4851_v60 = vld [vmem:[#allocation2 + $0xa9] sm:$0xff] }
 0x1e1   : > { %20888 = vmatprep.subr.bf16.mxu1 %v24651_v27  ;;  %17788 = vmatmul.mubr.f32.gmra.mrb[56].mxu0 %v4480_v54  ;;  %v3140_v54 = vld [vmem:[#allocation2 + $0x32] sm:$0xff] }
 0x1e2   : > { %17340 = vmatmul.mubr.f32.gmra.mrb[30].mxu1 %v2766_v62  ;;  %21146 = vmatpush3.bf16.msra.mxu0 %v24555_v40  ;;  %v24675_v40 = vpack.c.bf16 %v14120_v53, %v14119_v56  ;;  %v14313_v62 = vld [vmem:[%s28914_s3 + $0x210] sm:$0xff]  ;;  %v4853_v56 = vld [vmem:[#allocation2 + $0xb9] sm:$0xff]  ;;  %v4854_v53 = vld [vmem:[#allocation2 + $0xc1] sm:$0xff] }
 0x1e3   : > { %20890 = vmatpush3.bf16.msra.mxu1 %v24651_v27  ;;  %17374 = vmatprep.mubr.f32.mxu1 %v2945_v37  ;;  %v3141_v37 = vld [vmem:[#allocation2 + $0x3a] sm:$0xff] }
 0x1e4   : > { %17822 = vmatprep.mubr.f32.mxu0 %v4658_v38  ;;  %21148 = vmatprep.subr.bf16.mxu0 %v24567_v32 }
 0x1e5   : > { %20892 = vmatprep.subr.bf16.mxu1 %v24663_v39  ;;  %17823 = vmatmul.mubr.f32.vlgmr.msra.gmra.mrb[42].mxu0 %v4659_v59  ;;  %v3142_v59 = vld [vmem:[#allocation2 + $0x42] sm:$0xff] }
 0x1e6   : > { %17375 = vmatmul.mubr.f32.vlgmr.msra.gmra.mrb[16].mxu1 %v2946_v52  ;;  %21150 = vmatpush3.bf16.msra.mxu0 %v24567_v32  ;;  %v24687_v32 = vpack.c.bf16 %v14122_v58, %v14121_v34  ;;  %v14315_v52 = vld [vmem:[%s28914_s3 + $0x220] sm:$0xff]  ;;  %v4855_v34 = vld [vmem:[#allocation2 + $0xc9] sm:$0xff]  ;;  %v4856_v58 = vld [vmem:[#allocation2 + $0xd1] sm:$0xff] }
 0x1e7   : > { %17377 = vmatprep.mubr.f32.mxu1 %v2947_v20  ;;  %20894 = vmatpush3.bf16.msra.mxu1 %v24663_v39  ;;  %v3143_v20 = vld [vmem:[#allocation2 + $0x4a] sm:$0xff] }
 0x1e8   : > { %17825 = vmatprep.mubr.f32.mxu0 %v4660_v15  ;;  %21152 = vmatprep.subr.bf16.mxu0 %v24579_v43 }
 0x1e9   : > { %20896 = vmatprep.subr.bf16.mxu1 %v24675_v40  ;;  %17826 = vmatmul.mubr.f32.gmra.mrb[44].mxu0 %v4661_v61  ;;  %v3144_v61 = vld [vmem:[#allocation2 + $0x52] sm:$0xff] }
 0x1ea   : > { %17378 = vmatmul.mubr.f32.gmra.mrb[18].mxu1 %v2948_v13  ;;  %21154 = vmatpush3.bf16.msra.mxu0 %v24579_v43  ;;  %v24699_v43 = vpack.c.bf16 %v14124_v21, %v14123_v51  ;;  %v14317_v13 = vld [vmem:[%s28914_s3 + $0x230] sm:$0xff]  ;;  %v3145_v51 = vld [vmem:[#allocation2 + $0x5a] sm:$0xff] }
 0x1eb   : > { %17380 = vmatprep.mubr.f32.mxu1 %v2949_v12  ;;  %20898 = vmatpush3.bf16.msra.mxu1 %v24675_v40  ;;  %v14318_v12 = vld [vmem:[%s28914_s3 + $0x238] sm:$0xff] }
 0x1ec   : > { %17828 = vmatprep.mubr.f32.mxu0 %v4662_v4  ;;  %21156 = vmatprep.subr.bf16.mxu0 %v24591_v24  ;;  %v4857_v21 = vld [vmem:[#allocation2 + $0xd9] sm:$0xff]  ;;  %v4858_v4 = vld [vmem:[#allocation2 + $0xe1] sm:$0xff] }
 0x1ed   : > { %20900 = vmatprep.subr.bf16.mxu1 %v24687_v32  ;;  %17829 = vmatmul.mubr.f32.gmra.mrb[46].mxu0 %v4663_v8  ;;  %v21317_v8 = vpack.c.bf16 %v14318_v12, %v14317_v13  ;;  %v14267_v13 = vld [vmem:[%s28914_s3 + $0xa0] sm:$0xff]  ;;  %v14268_v12 = vld [vmem:[%s28914_s3 + $0xa8] sm:$0xff] }
 0x1ee   : > { %17381 = vmatmul.mubr.f32.gmra.mrb[20].mxu1 %v2950_v44  ;;  %21158 = vmatpush3.bf16.msra.mxu0 %v24591_v24  ;;  %v24711_v24 = vpack.c.bf16 %v14126_v41, %v14125_v7  ;;  %v3146_v44 = vld [vmem:[#allocation2 + $0x62] sm:$0xff]  ;;  %v3147_v41 = vld [vmem:[#allocation2 + $0x6a] sm:$0xff] }
 0x1ef   : > { %17383 = vmatprep.mubr.f32.mxu1 %v2951_v42  ;;  %20902 = vmatpush3.bf16.msra.mxu1 %v24687_v32  ;;  %v14319_v42 = vld [vmem:[%s28914_s3 + $0x240] sm:$0xff]  ;;  %v14320_v7 = vld [vmem:[%s28914_s3 + $0x248] sm:$0xff] }
 0x1f0   : > { %17831 = vmatprep.mubr.f32.mxu0 %v4664_v45  ;;  %21160 = vmatprep.subr.bf16.mxu0 %v24603_v25  ;;  %v4859_v45 = vld [vmem:[#allocation2 + $0xe9] sm:$0xff] }
 0x1f1   : > { %20904 = vmatprep.subr.bf16.mxu1 %v24699_v43  ;;  %17832 = vmatmul.mubr.f32.gmra.mrb[48].mxu0 %v4665_v22  ;;  %v4860_v22 = vld [vmem:[#allocation2 + $0xf1] sm:$0xff] }
 0x1f2   : > { %17384 = vmatmul.mubr.f32.gmra.mrb[22].mxu1 %v2952_v50  ;;  %21162 = vmatpush3.bf16.msra.mxu0 %v24603_v25  ;;  %v24723_v25 = vpack.c.bf16 %v14128_v16, %v14127_v3  ;;  %v21320_v50 = vpack.c.bf16 %v14320_v7, %v14319_v42  ;;  %v14321_v3 = vld [vmem:[%s28914_s3 + $0x250] sm:$0xff]  ;;  %v14322_v16 = vld [vmem:[%s28914_s3 + $0x258] sm:$0xff]  ;;  %v21218_v7 = vpack.c.bf16 %v14268_v12, %v14267_v13 }
 0x1f3   : > { %17386 = vmatprep.mubr.f32.mxu1 %v2953_v31  ;;  %20906 = vmatpush3.bf16.msra.mxu1 %v24699_v43  ;;  %v3148_v31 = vld [vmem:[#allocation2 + $0x72] sm:$0xff]  ;;  %v6099_v42 = vld [vmem:[#allocation2 + $0x11d] sm:$0xff] }
 0x1f4   : > { %17834 = vmatprep.mubr.f32.mxu0 %v4666_v14  ;;  %21164 = vmatprep.subr.bf16.mxu0 %v24615_v1  ;;  %v3149_v14 = vld [vmem:[#allocation2 + $0x7a] sm:$0xff]  ;;  %v14277_v13 = vld [vmem:[%s28914_s3 + $0xf0] sm:$0xff] }
 0x1f5   : > { %20908 = vmatprep.subr.bf16.mxu1 %v24711_v24  ;;  %17835 = vmatmul.mubr.f32.gmra.mrb[50].mxu0 %v4667_v0  ;;  %v4861_v0 = vld [vmem:[#allocation2 + $0xf9] sm:$0xff] }
 0x1f6   : > { %17387 = vmatmul.mubr.f32.gmra.mrb[24].mxu1 %v2954_v29  ;;  %21166 = vmatpush3.bf16.msra.mxu0 %v24615_v1  ;;  %v24738_v1 = vpack.c.bf16 %v14130_v48, %v14129_v23  ;;  %v24822_v29 = vld [vmem:[#allocation2 + $0x101] sm:$0xff]  ;;  %v14278_v12 = vld [vmem:[%s28914_s3 + $0xf8] sm:$0xff] }
 0x1f7   : > { %17389 = vmatprep.mubr.f32.mxu1 %v2955_v5  ;;  %20910 = vmatpush3.bf16.msra.mxu1 %v24711_v24  ;;  %v21323_v5 = vpack.c.bf16 %v14322_v16, %v14321_v3  ;;  %v3150_v23 = vld [vmem:[#allocation2 + $0x82] sm:$0xff]  ;;  %v14349_v3 = vld [vmem:[%s28914_s3 + $0x330] sm:$0xff]  ;;  %v14350_v16 = vld [vmem:[%s28914_s3 + $0x338] sm:$0xff] }
 0x1f8   : > { %17837 = vmatprep.mubr.f32.mxu0 %v4668_v30  ;;  %21168 = vmatprep.subr.bf16.mxu0 %v24627_v46  ;;  %v14323_v48 = vld [vmem:[%s28914_s3 + $0x260] sm:$0xff]  ;;  %v14324_v30 = vld [vmem:[%s28914_s3 + $0x268] sm:$0xff] }
 0x1f9   : > { %20912 = vmatprep.subr.bf16.mxu1 %v24723_v25  ;;  %17838 = vmatmul.mubr.f32.gmra.mrb[52].mxu0 %v24734_v6  ;;  %v21326_v9 = vpack.c.bf16 %v14324_v30, %v14323_v48  ;;  %v5051_v48 = vld [vmem:[#allocation2 + $0xe2] sm:$0xff]  ;;  %v21365_v30 = vpack.c.bf16 %v14350_v16, %v14349_v3  ;;  %v5451_v16 = vld [vmem:[%s28914_s3 + $0x10] sm:$0xff] }
 0x1fa   : > { %17390 = vmatmul.mubr.f32.gmra.mrb[26].mxu1 %v2956_v11  ;;  %21170 = vmatpush3.bf16.msra.mxu0 %v24627_v46  ;;  %v2958_v46 = vld [vmem:[#allocation2 + $0x91] sm:$0xff] }
 0x1fb   : > { %17392 = vmatprep.mubr.f32.mxu1 %v2957_v26  ;;  %20914 = vmatpush3.bf16.msra.mxu1 %v24723_v25  ;;  %v3151_v11 = vld [vmem:[#allocation2 + $0x8a] sm:$0xff] }
 0x1fc   : > { %17840 = vmatprep.mubr.f32.mxu0 %v24748_v10  ;;  %21172 = vmatprep.subr.bf16.mxu0 %v24639_v57  ;;  %v24833_v26 = vld [vmem:[#allocation2 + $0x109] sm:$0xff] }
 0x1fd   : > { %20916 = vmatprep.subr.bf16.mxu1 %v24738_v1  ;;  %17841 = vmatmul.mubr.f32.gmra.mrb[54].mxu0 %v24752_v63 }
 0x1fe   : > { %17393 = vmatmul.mubr.f32.gmra.mrb[28].mxu1 %v2958_v46  ;;  %21174 = vmatpush3.bf16.msra.mxu0 %v24639_v57  ;;  %v14311_v57 = vld [vmem:[%s28914_s3 + $0x200] sm:$0xff]  ;;  %v3152_v46 = vld [vmem:[#allocation2 + $0x92] sm:$0xff] }
 0x1ff   : > { %17395 = vmatprep.mubr.f32.mxu1 %v2959_v33  ;;  %20918 = vmatpush3.bf16.msra.mxu1 %v24738_v1  ;;  %v21308_v49 = vpack.c.bf16 %v14312_v35, %v14311_v57  ;;  %v14325_v33 = vld [vmem:[%s28914_s3 + $0x270] sm:$0xff]  ;;  %v3153_v57 = vld [vmem:[#allocation2 + $0x9a] sm:$0xff] }
 0x200   : > { %17843 = vmatprep.mubr.f32.mxu0 %v24760_v19  ;;  %21176 = vmatprep.subr.bf16.mxu0 %v24651_v27  ;;  %v24848_v35 = vld [vmem:[#allocation2 + $0x119] sm:$0xff] }
 0x201   : > { %20920 = vmatprep.subr.bf16.mxu1 %v24756_v17  ;;  %17844 = vmatmul.mubr.f32.gmra.mrb[56].mxu0 %v24764_v18 }
 0x202   : > { %17396 = vmatmul.mubr.f32.gmra.mrb[30].mxu1 %v2960_v55  ;;  %21178 = vmatpush3.bf16.msra.mxu0 %v24651_v27  ;;  %v14314_v27 = vld [vmem:[%s28914_s3 + $0x218] sm:$0xff] }
 0x203   : > { %20922 = vmatpush3.bf16.msra.mxu1 %v24756_v17  ;;  %17430 = vmatprep.mubr.f32.mxu1 %v3139_v2  ;;  %v21311_v38 = vpack.c.bf16 %v14314_v27, %v14313_v62  ;;  %v14326_v55 = vld [vmem:[%s28914_s3 + $0x278] sm:$0xff]  ;;  %v14263_v2 = vld [vmem:[%s28914_s3 + $0x80] sm:$0xff]  ;;  %v14344_v27 = vld [vmem:[%s28914_s3 + $0x308] sm:$0xff] }
 0x204   : > { %17878 = vmatprep.mubr.f32.mxu0 %v4851_v60  ;;  %21180 = vmatprep.subr.bf16.mxu0 %v24663_v39  ;;  %v14264_v60 = vld [vmem:[%s28914_s3 + $0x88] sm:$0xff]  ;;  %v14343_v62 = vld [vmem:[%s28914_s3 + $0x300] sm:$0xff] }
 0x205   : > { %17879 = vmatmul.mubr.f32.vlgmr.msra.gmra.mrb[42].mxu0 %v4852_v47  ;;  %21307 = vmatprep.subr.bf16.mxu1 %v28925_v28  ;;  %v24858_v47 = vld [vmem:[#allocation2 + $0x121] sm:$0xff] }
 0x206   : > { %17431 = vmatmul.mubr.f32.vlgmr.msra.gmra.mrb[16].mxu1 %v3140_v54  ;;  %21182 = vmatpush3.bf16.msra.mxu0 %v24663_v39  ;;  %v14316_v39 = vld [vmem:[%s28914_s3 + $0x228] sm:$0xff] }
 0x207   : > { %17433 = vmatprep.mubr.f32.mxu1 %v3141_v37  ;;  %17881 = vmatprep.mubr.f32.mxu0 %v4853_v56  ;;  %v21314_v15 = vpack.c.bf16 %v14316_v39, %v14315_v52  ;;  %v3154_v54 = vld [vmem:[#allocation2 + $0xa2] sm:$0xff]  ;;  %v5044_v37 = vld [vmem:[#allocation2 + $0xaa] sm:$0xff]  ;;  %v21212_v56 = vpack.c.bf16 %v14264_v60, %v14263_v2  ;;  %v5045_v52 = vld [vmem:[#allocation2 + $0xb2] sm:$0xff]  ;;  %v21356_v39 = vpack.c.bf16 %v14344_v27, %v14343_v62 }
 0x208   : > { %21309 = vmatpush3.bf16.msra.mxu1 %v21308_v49  ;;  %21184 = vmatprep.subr.bf16.mxu0 %v24675_v40  ;;  %v21329_v49 = vpack.c.bf16 %v14326_v55, %v14325_v33  ;;  %v6101_v33 = vld [vmem:[#allocation2 + $0x12d] sm:$0xff]  ;;  %v14274_v2 = vld [vmem:[%s28914_s3 + $0xd8] sm:$0xff] }
 0x209   : > { %17882 = vmatmul.mubr.f32.gmra.mrb[44].mxu0 %v4854_v53  ;;  %21310 = vmatprep.subr.bf16.mxu1 %v28925_v28  ;;  %v14265_v53 = vld [vmem:[%s28914_s3 + $0x90] sm:$0xff]  ;;  %v14354_v27 = vld [vmem:[%s28914_s3 + $0x358] sm:$0xff] }
 0x20a   : > { %17434 = vmatmul.mubr.f32.gmra.mrb[18].mxu1 %v3142_v59  ;;  %21186 = vmatpush3.bf16.msra.mxu0 %v24675_v40  ;;  %v24876_v59 = vld [vmem:[#allocation2] sm:$0xff]  ;;  %v5053_v60 = vld [vmem:[#allocation2 + $0xf2] sm:$0xff] }
 0x20b   : > { %17436 = vmatprep.mubr.f32.mxu1 %v3143_v20  ;;  %17884 = vmatprep.mubr.f32.mxu0 %v4855_v34  ;;  %v5046_v20 = vld [vmem:[#allocation2 + $0xba] sm:$0xff]  ;;  %v14345_v34 = vld [vmem:[%s28914_s3 + $0x310] sm:$0xff] }
 0x20c   : > { %21312 = vmatpush3.bf16.msra.mxu1 %v21311_v38  ;;  %21188 = vmatprep.subr.bf16.mxu0 %v24687_v32  ;;  %v14266_v38 = vld [vmem:[%s28914_s3 + $0x98] sm:$0xff]  ;;  %v14353_v62 = vld [vmem:[%s28914_s3 + $0x350] sm:$0xff] }
 0x20d   : > { %17885 = vmatmul.mubr.f32.gmra.mrb[46].mxu0 %v4856_v58  ;;  %21313 = vmatprep.subr.bf16.mxu1 %v28925_v28  ;;  %v14346_v58 = vld [vmem:[%s28914_s3 + $0x318] sm:$0xff] }
 0x20e   : > { %17437 = vmatmul.mubr.f32.gmra.mrb[20].mxu1 %v3144_v61  ;;  %21190 = vmatpush3.bf16.msra.mxu0 %v24687_v32  ;;  %v21215_v61 = vpack.c.bf16 %v14266_v38, %v14265_v53  ;;  %v14275_v53 = vld [vmem:[%s28914_s3 + $0xe0] sm:$0xff]  ;;  %v14276_v38 = vld [vmem:[%s28914_s3 + $0xe8] sm:$0xff] }
 0x20f   : > { %17439 = vmatprep.mubr.f32.mxu1 %v3145_v51  ;;  %17887 = vmatprep.mubr.f32.mxu0 %v4857_v21  ;;  %v5047_v51 = vld [vmem:[#allocation2 + $0xc2] sm:$0xff]  ;;  %v21359_v21 = vpack.c.bf16 %v14346_v58, %v14345_v34 }
 0x210   : > { %21315 = vmatpush3.bf16.msra.mxu1 %v21314_v15  ;;  %21192 = vmatprep.subr.bf16.mxu0 %v24699_v43  ;;  %v6098_v15 = vld [vmem:[#allocation2 + $0x115] sm:$0xff]  ;;  %v14355_v34 = vld [vmem:[%s28914_s3 + $0x360] sm:$0xff]  ;;  %v14356_v58 = vld [vmem:[%s28914_s3 + $0x368] sm:$0xff] }
 0x211   : > { %17888 = vmatmul.mubr.f32.gmra.mrb[48].mxu0 %v4858_v4  ;;  %21316 = vmatprep.subr.bf16.mxu1 %v28925_v28  ;;  %v5048_v4 = vld [vmem:[#allocation2 + $0xca] sm:$0xff] }
 0x212   : > { %17440 = vmatmul.mubr.f32.gmra.mrb[22].mxu1 %v3146_v44  ;;  %21194 = vmatpush3.bf16.msra.mxu0 %v24699_v43  ;;  %v14348_v44 = vld [vmem:[%s28914_s3 + $0x328] sm:$0xff] }
 0x213   : > { %17442 = vmatprep.mubr.f32.mxu1 %v3147_v41  ;;  %17890 = vmatprep.mubr.f32.mxu0 %v4859_v45  ;;  %v14269_v41 = vld [vmem:[%s28914_s3 + $0xb0] sm:$0xff]  ;;  %v14270_v45 = vld [vmem:[%s28914_s3 + $0xb8] sm:$0xff] }
 0x214   : > { %21318 = vmatpush3.bf16.msra.mxu1 %v21317_v8  ;;  %21196 = vmatprep.subr.bf16.mxu0 %v24711_v24  ;;  %v14347_v8 = vld [vmem:[%s28914_s3 + $0x320] sm:$0xff] }
 0x215   : > { %17891 = vmatmul.mubr.f32.gmra.mrb[50].mxu0 %v4860_v22  ;;  %21319 = vmatprep.subr.bf16.mxu1 %v28925_v28  ;;  %v5049_v22 = vld [vmem:[#allocation2 + $0xd2] sm:$0xff] }
 0x216   : > { %17443 = vmatmul.mubr.f32.gmra.mrb[24].mxu1 %v3148_v31  ;;  %21198 = vmatpush3.bf16.msra.mxu0 %v24711_v24  ;;  %v5050_v31 = vld [vmem:[#allocation2 + $0xda] sm:$0xff] }
 0x217   : > { %17445 = vmatprep.mubr.f32.mxu1 %v3149_v14  ;;  %17893 = vmatprep.mubr.f32.mxu0 %v4861_v0  ;;  %v6100_v14 = vld [vmem:[#allocation2 + $0x125] sm:$0xff]  ;;  %v21221_v0 = vpack.c.bf16 %v14270_v45, %v14269_v41 }
 0x218   : > { %21321 = vmatpush3.bf16.msra.mxu1 %v21320_v50  ;;  %21200 = vmatprep.subr.bf16.mxu0 %v24723_v25  ;;  %v21362_v50 = vpack.c.bf16 %v14348_v44, %v14347_v8  ;;  %v14357_v8 = vld [vmem:[%s28914_s3 + $0x370] sm:$0xff]  ;;  %v14358_v44 = vld [vmem:[%s28914_s3 + $0x378] sm:$0xff]  ;;  %v5449_v41 = vld [vmem:[%s28914_s3] sm:$0xff] }
 0x219   : > { %17894 = vmatmul.mubr.f32.gmra.mrb[52].mxu0 %v24822_v29  ;;  %21322 = vmatprep.subr.bf16.mxu1 %v28925_v28  ;;  %v5450_v45 = vld [vmem:[%s28914_s3 + $0x8] sm:$0xff] }
 0x21a   : > { %17446 = vmatmul.mubr.f32.gmra.mrb[26].mxu1 %v3150_v23  ;;  %21202 = vmatpush3.bf16.msra.mxu0 %v24723_v25  ;;  %v14272_v23 = vld [vmem:[%s28914_s3 + $0xc8] sm:$0xff]  ;;  %v21236_v3 = vpack.c.bf16 %v5450_v45, %v5449_v41 }
 0x21b   : > { %17448 = vmatprep.mubr.f32.mxu1 %v3151_v11  ;;  %17896 = vmatprep.mubr.f32.mxu0 %v24833_v26  ;;  %v5052_v11 = vld [vmem:[#allocation2 + $0xea] sm:$0xff] }
 0x21c   : > { %21324 = vmatpush3.bf16.msra.mxu1 %v21323_v5  ;;  %21204 = vmatprep.subr.bf16.mxu0 %v24738_v1  ;;  %v14271_v5 = vld [vmem:[%s28914_s3 + $0xc0] sm:$0xff]  ;;  %v14522_v41 = vld [vmem:[%s28916_s5 + $0x88] sm:$0xff] }
 0x21d   : > { %17897 = vmatmul.mubr.f32.gmra.mrb[54].mxu0 %v24837_v36  ;;  %21325 = vmatprep.subr.bf16.mxu1 %v28925_v28  ;;  %v21224_v55 = vpack.c.bf16 %v14272_v23, %v14271_v5  ;;  %v5453_v23 = vld [vmem:[%s28914_s3 + $0x20] sm:$0xff]  ;;  %v14280_v45 = vld [vmem:[%s28914_s3 + $0x108] sm:$0xff] }
 0x21e   : > { %17449 = vmatmul.mubr.f32.gmra.mrb[28].mxu1 %v3152_v46  ;;  %21206 = vmatpush3.bf16.msra.mxu0 %v24738_v1  ;;  %v14352_v46 = vld [vmem:[%s28914_s3 + $0x348] sm:$0xff] }
 0x21f   : > { %17451 = vmatprep.mubr.f32.mxu1 %v3153_v57  ;;  %17899 = vmatprep.mubr.f32.mxu0 %v24848_v35  ;;  %v14273_v57 = vld [vmem:[%s28914_s3 + $0xd0] sm:$0xff] }
 0x220   : > { %21327 = vmatpush3.bf16.msra.mxu1 %v21326_v9  ;;  %21208 = vmatprep.subr.bf16.mxu0 %v24756_v17  ;;  %v14351_v9 = vld [vmem:[%s28914_s3 + $0x340] sm:$0xff] }
 0x221   : > { %17900 = vmatmul.mubr.f32.gmra.mrb[56].mxu0 %v24858_v47  ;;  %21328 = vmatprep.subr.bf16.mxu1 %v28925_v28 }
 0x222   : > { %17452 = vmatmul.mubr.f32.gmra.mrb[30].mxu1 %v3154_v54  ;;  %21210 = vmatpush3.bf16.msra.mxu0 %v24756_v17  ;;  %v5054_v54 = vld [vmem:[#allocation2 + $0xfa] sm:$0xff] }
 0x223   : > { %17934 = vmatprep.mubr.f32.mxu0 %v5044_v37  ;;  %21211 = vmatprep.subr.bf16.mxu0 %v28925_v28  ;;  %v6102_v37 = vld [vmem:[#allocation2 + $0x135] sm:$0xff] }
 0x224   : > { %21330 = vmatpush3.bf16.msra.mxu1 %v21329_v49  ;;  %18274 = vmatprep.mubr.msk.f32.mxu1 %vm23118_vm1, %v24876_v59  ;;  %v21368_v49 = vpack.c.bf16 %v14352_v46, %v14351_v9  ;;  %v5456_v9 = vld [vmem:[%s28914_s3 + $0x38] sm:$0xff] }
 0x225   : > { %17935 = vmatmul.mubr.f32.vlgmr.msra.gmra.mrb[42].mxu0 %v5045_v52  ;;  %21355 = vmatprep.subr.bf16.mxu1 %v28925_v28  ;;  %v24960_v52 = vld [vmem:[#allocation2 + $0x102] sm:$0xff] }
 0x226   : > { %21213 = vmatpush3.bf16.msra.mxu0 %v21212_v56  ;;  %17937 = vmatprep.mubr.f32.mxu0 %v5046_v20  ;;  %v21227_v56 = vpack.c.bf16 %v14274_v2, %v14273_v57  ;;  %v24963_v20 = vld [vmem:[#allocation2 + $0x10a] sm:$0xff] }
 0x227   : > { %18275 = vmatmul.mubr.f32.vlgmr.msra.gmra.mrb[32].mxu1 %v6098_v15  ;;  %21214 = vmatprep.subr.bf16.mxu0 %v28925_v28  ;;  %v6103_v15 = vld [vmem:[#allocation2 + $0x13d] sm:$0xff]  ;;  %v5459_v2 = vld [vmem:[%s28914_s3 + $0x50] sm:$0xff] }
 0x228   : > { %18277 = vmatprep.mubr.msk.f32.mxu1 %vm23118_vm1, %v24876_v59  ;;  %21357 = vmatpush3.bf16.msra.mxu1 %v21356_v39  ;;  %v21371_v39 = vpack.c.bf16 %v14354_v27, %v14353_v62  ;;  %v5462_v27 = vld [vmem:[%s28914_s3 + $0x68] sm:$0xff] }
 0x229   : > { %17938 = vmatmul.mubr.f32.gmra.mrb[44].mxu0 %v5047_v51  ;;  %21358 = vmatprep.subr.bf16.mxu1 %v28925_v28  ;;  %v24982_v51 = vld [vmem:[#allocation2 + $0x112] sm:$0xff] }
 0x22a   : > { %21216 = vmatpush3.bf16.msra.mxu0 %v21215_v61  ;;  %17940 = vmatprep.mubr.f32.mxu0 %v5048_v4  ;;  %v21230_v61 = vpack.c.bf16 %v14276_v38, %v14275_v53  ;;  %v24985_v4 = vld [vmem:[#allocation2 + $0x11a] sm:$0xff]  ;;  %v25086_v53 = vld [vmem:[#allocation2 + $0x128] sm:$0xff] }
 0x22b   : > { %18278 = vmatmul.mubr.f32.gmra.mrb[34].mxu1 %v6099_v42  ;;  %21217 = vmatprep.subr.bf16.mxu0 %v28925_v28  ;;  %v6104_v42 = vld [vmem:[#allocation2 + $0x145] sm:$0xff] }
 0x22c   : > { %18280 = vmatprep.mubr.msk.f32.mxu1 %vm23118_vm1, %v24876_v59  ;;  %21360 = vmatpush3.bf16.msra.mxu1 %v21359_v21  ;;  %v21374_v21 = vpack.c.bf16 %v14356_v58, %v14355_v34  ;;  %v5464_v34 = vld [vmem:[%s28914_s3 + $0x78] sm:$0xff] }
 0x22d   : > { %17941 = vmatmul.mubr.f32.gmra.mrb[46].mxu0 %v5049_v22  ;;  %21361 = vmatprep.subr.bf16.mxu1 %v28925_v28  ;;  %v25004_v22 = vld [vmem:[#allocation2 + $0x122] sm:$0xff]  ;;  %v5471_v58 = vld [vmem:[#allocation2 + $0x131] sm:$0xff] }
 0x22e   : > { %21219 = vmatpush3.bf16.msra.mxu0 %v21218_v7  ;;  %17943 = vmatprep.mubr.f32.mxu0 %v5050_v31  ;;  %v21233_v7 = vpack.c.bf16 %v14278_v12, %v14277_v13  ;;  %v6105_v31 = vld [vmem:[#allocation2 + $0x14d] sm:$0xff]  ;;  %v5472_v13 = vld [vmem:[#allocation2 + $0x139] sm:$0xff] }
 0x22f   : > { %18281 = vmatmul.mubr.f32.gmra.mrb[36].mxu1 %v6100_v14  ;;  %21220 = vmatprep.subr.bf16.mxu0 %v28925_v28  ;;  %v5452_v14 = vld [vmem:[%s28914_s3 + $0x18] sm:$0xff] }
 0x230   : > { %18283 = vmatprep.mubr.msk.f32.mxu1 %vm23118_vm1, %v24876_v59  ;;  %21363 = vmatpush3.bf16.msra.mxu1 %v21362_v50  ;;  %v21377_v50 = vpack.c.bf16 %v14358_v44, %v14357_v8  ;;  %v21239_v5 = vpack.c.bf16 %v5452_v14, %v5451_v16  ;;  %v25111_v12 = vld [vmem:[#allocation2 + $0x138] sm:$0xff]  ;;  %v5474_v8 = vld [vmem:[#allocation2 + $0x149] sm:$0xff] }
 0x231   : > { %17944 = vmatmul.mubr.f32.gmra.mrb[48].mxu0 %v5051_v48  ;;  %21364 = vmatprep.subr.bf16.mxu1 %v28925_v28  ;;  %v5454_v48 = vld [vmem:[%s28914_s3 + $0x28] sm:$0xff]  ;;  %v5475_v44 = vld [vmem:[#allocation2 + $0x151] sm:$0xff] }
 0x232   : > { %21222 = vmatpush3.bf16.msra.mxu0 %v21221_v0  ;;  %17946 = vmatprep.mubr.f32.mxu0 %v5052_v11  ;;  %v6106_v0 = vld [vmem:[#allocation2 + $0x155] sm:$0xff] }
 0x233   : > { %18284 = vmatmul.mubr.f32.gmra.mrb[38].mxu1 %v6101_v33  ;;  %21223 = vmatprep.subr.bf16.mxu0 %v28925_v28  ;;  %v5455_v11 = vld [vmem:[%s28914_s3 + $0x30] sm:$0xff]  ;;  %v5457_v33 = vld [vmem:[%s28914_s3 + $0x40] sm:$0xff] }
 0x234   : > { %18286 = vmatprep.mubr.msk.f32.mxu1 %vm23118_vm1, %v24876_v59  ;;  %21366 = vmatpush3.bf16.msra.mxu1 %v21365_v30  ;;  %v21242_v30 = vpack.c.bf16 %v5454_v48, %v5453_v23  ;;  %v21245_v46 = vpack.c.bf16 %v5456_v9, %v5455_v11  ;;  %v14281_v14 = vld [vmem:[%s28914_s3 + $0x110] sm:$0xff]  ;;  %v14283_v23 = vld [vmem:[%s28914_s3 + $0x120] sm:$0xff] }
 0x235   : > { %17947 = vmatmul.mubr.f32.gmra.mrb[50].mxu0 %v5053_v60  ;;  %21367 = vmatprep.subr.bf16.mxu1 %v28925_v28  ;;  %v5460_v60 = vld [vmem:[%s28914_s3 + $0x58] sm:$0xff]  ;;  %v14287_v9 = vld [vmem:[%s28914_s3 + $0x140] sm:$0xff] }
 0x236   : > { %21225 = vmatpush3.bf16.msra.mxu0 %v21224_v55  ;;  %17949 = vmatprep.mubr.f32.mxu0 %v5054_v54  ;;  %v5458_v55 = vld [vmem:[%s28914_s3 + $0x48] sm:$0xff]  ;;  %v6110_v54 = vld [vmem:[#allocation2 + $0x175] sm:$0x3f]  ;;  %v21251_v62 = vpack.c.bf16 %v5460_v60, %v5459_v2 }
 0x237   : > { %18287 = vmatmul.mubr.f32.gmra.mrb[40].mxu1 %v6102_v37  ;;  %21226 = vmatprep.subr.bf16.mxu0 %v28925_v28  ;;  %v21248_v57 = vpack.c.bf16 %v5458_v55, %v5457_v33  ;;  %v5470_v37 = vld [vmem:[#allocation2 + $0x129] sm:$0xff]  ;;  %v14290_v55 = vld [vmem:[%s28914_s3 + $0x158] sm:$0xff] }
 0x238   : > { %18289 = vmatprep.mubr.msk.f32.mxu1 %vm23118_vm1, %v24876_v59  ;;  %21369 = vmatpush3.bf16.msra.mxu1 %v21368_v49  ;;  %v14376_v49 = vld [vmem:[%s28914_s3 + $0x408] sm:$0xff]  ;;  %v14289_v33 = vld [vmem:[%s28914_s3 + $0x150] sm:$0xff]  ;;  %v14524_v2 = vld [vmem:[%s28916_s5 + $0x98] sm:$0xff] }
 0x239   : > { %17950 = vmatmul.mubr.f32.gmra.mrb[52].mxu0 %v24960_v52  ;;  %21370 = vmatprep.subr.bf16.mxu1 %v28925_v28  ;;  %v14292_v60 = vld [vmem:[%s28914_s3 + $0x168] sm:$0xff] }
 0x23a   : > { %21228 = vmatpush3.bf16.msra.mxu0 %v21227_v56  ;;  %17952 = vmatprep.mubr.f32.mxu0 %v24963_v20 }
 0x23b   : > { %18290 = vmatmul.mubr.f32.gmra.mrb[42].mxu1 %v6103_v15  ;;  %21229 = vmatprep.subr.bf16.mxu0 %v28925_v28  ;;  %v25101_v15 = vld [vmem:[#allocation2 + $0x130] sm:$0xff] }
 0x23c   : > { %18292 = vmatprep.mubr.msk.f32.mxu1 %vm23118_vm1, %v24876_v59  ;;  %21372 = vmatpush3.bf16.msra.mxu1 %v21371_v39  ;;  %v5463_v39 = vld [vmem:[%s28914_s3 + $0x70] sm:$0xff] }
 0x23d   : > { %17953 = vmatmul.mubr.f32.gmra.mrb[54].mxu0 %v24982_v51  ;;  %21373 = vmatprep.subr.bf16.mxu1 %v28925_v28 }
 0x23e   : > { %21231 = vmatpush3.bf16.msra.mxu0 %v21230_v61  ;;  %17955 = vmatprep.mubr.f32.mxu0 %v24985_v4  ;;  %v21257_v61 = vpack.c.bf16 %v5464_v34, %v5463_v39  ;;  %v14527_v39 = vld [vmem:[%s28916_s5 + $0xb0] sm:$0xff]  ;;  %v14528_v34 = vld [vmem:[%s28916_s5 + $0xb8] sm:$0xff] }
 0x23f   : > { %18293 = vmatmul.mubr.f32.gmra.mrb[44].mxu1 %v6104_v42  ;;  %21232 = vmatprep.subr.bf16.mxu0 %v28925_v28  ;;  %v5476_v42 = vld [vmem:[#allocation2 + $0x159] sm:$0xff] }
 0x240   : > { %18295 = vmatprep.mubr.msk.f32.mxu1 %vm23118_vm1, %v24876_v59  ;;  %21375 = vmatpush3.bf16.msra.mxu1 %v21374_v21  ;;  %v5473_v21 = vld [vmem:[#allocation2 + $0x141] sm:$0xff] }
 0x241   : > { %17956 = vmatmul.mubr.f32.gmra.mrb[56].mxu0 %v25004_v22  ;;  %21376 = vmatprep.subr.bf16.mxu1 %v28925_v28 }
 0x242   : > { %21234 = vmatpush3.bf16.msra.mxu0 %v21233_v7  ;;  %17990 = vmatprep.mubr.msk.f32.mxu0 %vm23118_vm1, %v24876_v59  ;;  %v14521_v7 = vld [vmem:[%s28916_s5 + $0x80] sm:$0xff] }
 0x243   : > { %18296 = vmatmul.mubr.f32.gmra.mrb[46].mxu1 %v6105_v31  ;;  %21235 = vmatprep.subr.bf16.mxu0 %v28925_v28  ;;  %v25169_v31 = vpack.c.bf16 %v14522_v41, %v14521_v7  ;;  %v14533_v7 = vld [vmem:[%s28916_s5 + $0xe0] sm:$0xff]  ;;  %v14534_v41 = vld [vmem:[%s28916_s5 + $0xe8] sm:$0xff] }
 0x244   : > { %18298 = vmatprep.mubr.msk.f32.mxu1 %vm23118_vm1, %v24876_v59  ;;  %21378 = vmatpush3.bf16.msra.mxu1 %v21377_v50  ;;  %v5477_v50 = vld [vmem:[#allocation2 + $0x161] sm:$0x3f] }
 0x245   : > { %17991 = vmatmul.mubr.f32.vlgmr.msra.gmra.mrb[58].mxu0 %v24822_v29  ;;  %21403 = vmatprep.subr.bf16.mxu1 %v28925_v28  ;;  %v6107_v29 = vld [vmem:[#allocation2 + $0x15d] sm:$0xff] }
 0x246   : > { %21237 = vmatpush3.bf16.msra.mxu0 %v21236_v3  ;;  %17993 = vmatprep.mubr.msk.f32.mxu0 %vm23118_vm1, %v24876_v59  ;;  %v6449_v3 = vld [vmem:[#allocation2 + $0x160] sm:$0xff] }
 0x247   : > { %18299 = vmatmul.mubr.f32.gmra.mrb[48].mxu1 %v6106_v0  ;;  %21238 = vmatprep.subr.bf16.mxu0 %v28925_v28  ;;  %v14282_v0 = vld [vmem:[%s28914_s3 + $0x118] sm:$0xff] }
 0x248   : > { %18301 = vmatprep.mubr.msk.f32.mxu1 %vm23118_vm1, %v24876_v59 }
 0x249   : > { %17994 = vmatmul.mubr.f32.gmra.mrb[60].mxu0 %v24833_v26  ;;  %v6108_v26 = vld [vmem:[#allocation2 + $0x165] sm:$0xff] }
 0x24a   : > { %17996 = vmatprep.mubr.msk.f32.mxu0 %vm23118_vm1, %v24876_v59  ;;  %21240 = vmatpush3.bf16.msra.mxu0 %v21239_v5  ;;  %v21263_v5 = vpack.c.bf16 %v14282_v0, %v14281_v14  ;;  %v14296_v14 = vld [vmem:[%s28914_s3 + $0x188] sm:$0xff]  ;;  %v5448_v0 = vld [vmem:[#allocation2 + $0x160] sm:$0x3f] }
 0x24b   : > { %18302 = vmatmul.mubr.f32.gmra.mrb[50].mxu1 %v6107_v29  ;;  %21241 = vmatprep.subr.bf16.mxu0 %v28925_v28  ;;  %v14285_v29 = vld [vmem:[%s28914_s3 + $0x130] sm:$0xff] }
 0x24c   : > { %18304 = vmatprep.mubr.msk.f32.mxu1 %vm23118_vm1, %v24876_v59 }
 0x24d   : > { %17997 = vmatmul.mubr.f32.gmra.mrb[62].mxu0 %v24837_v36  ;;  %v6109_v36 = vld [vmem:[#allocation2 + $0x16d] sm:$0xff] }
 0x24e   : > { %17999 = vmatprep.mubr.msk.f32.mxu0 %vm23118_vm1, %v24876_v59  ;;  %21243 = vmatpush3.bf16.msra.mxu0 %v21242_v30  ;;  %v14286_v30 = vld [vmem:[%s28914_s3 + $0x138] sm:$0xff] }
 0x24f   : > { %18305 = vmatmul.mubr.f32.gmra.mrb[52].mxu1 %v6108_v26  ;;  %21244 = vmatprep.subr.bf16.mxu0 %v28925_v28  ;;  %v21269_v11 = vpack.c.bf16 %v14286_v30, %v14285_v29  ;;  %v14288_v26 = vld [vmem:[%s28914_s3 + $0x148] sm:$0xff]  ;;  %v14299_v30 = vld [vmem:[%s28914_s3 + $0x1a0] sm:$0xff] }
 0x250   : > { %18307 = vmatprep.mubr.msk.f32.mxu1 %vm23118_vm1, %v24876_v59 }
 0x251   : > { %18000 = vmatmul.mubr.f32.gmra.mrb[64].mxu0 %v24848_v35  ;;  %v14375_v35 = vld [vmem:[%s28914_s3 + $0x400] sm:$0xff] }
 0x252   : > { %18002 = vmatprep.mubr.msk.f32.mxu0 %vm23118_vm1, %v24876_v59  ;;  %21246 = vmatpush3.bf16.msra.mxu0 %v21245_v46  ;;  %v21404_v56 = vpack.c.bf16 %v14376_v49, %v14375_v35  ;;  %v21272_v46 = vpack.c.bf16 %v14288_v26, %v14287_v9  ;;  %v25250_v49 = vld [vmem:[#allocation2 + $0x12a] sm:$0xff]  ;;  %v14302_v26 = vld [vmem:[%s28914_s3 + $0x1b8] sm:$0xff] }
 0x253   : > { %18308 = vmatmul.mubr.f32.gmra.mrb[54].mxu1 %v6109_v36  ;;  %21247 = vmatprep.subr.bf16.mxu0 %v28925_v28  ;;  %v21275_v36 = vpack.c.bf16 %v14290_v55, %v14289_v33  ;;  %v14301_v9 = vld [vmem:[%s28914_s3 + $0x1b0] sm:$0xff]  ;;  %v14304_v33 = vld [vmem:[%s28914_s3 + $0x1c8] sm:$0xff] }
 0x254   : > { %18310 = vmatprep.mubr.msk.f32.mxu1 %vm23118_vm1, %v24876_v59 }
 0x255   : > { %18003 = vmatmul.mubr.f32.gmra.mrb[66].mxu0 %v24858_v47  ;;  %v5461_v47 = vld [vmem:[%s28914_s3 + $0x60] sm:$0xff] }
 0x256   : > { %18005 = vmatprep.mubr.msk.f32.mxu0 %vm23118_vm1, %v24876_v59  ;;  %21249 = vmatpush3.bf16.msra.mxu0 %v21248_v57  ;;  %v21254_v38 = vpack.c.bf16 %v5462_v27, %v5461_v47  ;;  %v14523_v57 = vld [vmem:[%s28916_s5 + $0x90] sm:$0xff]  ;;  %v14526_v47 = vld [vmem:[%s28916_s5 + $0xa8] sm:$0xff] }
 0x257   : > { %18311 = vmatmul.mubr.f32.gmra.mrb[56].mxu1 %v6110_v54  ;;  %21250 = vmatprep.subr.bf16.mxu0 %v28925_v28  ;;  %v21719_v35 = vpack.c.bf16 %v14524_v2, %v14523_v57  ;;  %v14293_v27 = vld [vmem:[%s28914_s3 + $0x170] sm:$0xff]  ;;  %v3428_v2 = vpop.permute.xlu0 %3427 }
 0x258   : > { %18416 = vmatprep.mubr.msk.f32.mxu1 %vm23118_vm1, %v24876_v59 }
 0x259   : > { %18006 = vmatmul.mubr.f32.gmra.mrb[68].mxu0 %v5470_v37  ;;  %v14294_v37 = vld [vmem:[%s28914_s3 + $0x178] sm:$0xff] }
 0x25a   : > { %18008 = vmatprep.mubr.msk.f32.mxu0 %vm23118_vm1, %v24876_v59  ;;  %21252 = vmatpush3.bf16.msra.mxu0 %v21251_v62  ;;  %v14525_v62 = vld [vmem:[%s28916_s5 + $0xa0] sm:$0xff] }
 0x25b   : > { %18417 = vmatmul.mubr.f32.vlgmr.msra.gmra.mrb[58].mxu1 %v25086_v53  ;;  %21253 = vmatprep.subr.bf16.mxu0 %v28925_v28 }
 0x25c   : > { %18419 = vmatprep.mubr.msk.f32.mxu1 %vm23118_vm1, %v24876_v59  ;;  %21405 = vmatpush3.bf16.msra.mxu1 %v21404_v56  ;;  %v21723_v56 = vpack.c.bf16 %v14526_v47, %v14525_v62  ;;  %v14310_v62 = vld [vmem:[%s28914_s3 + $0x1f8] sm:$0xff]  ;;  %v25444_v47 = vpop.permute.xlu0 %3437 }
 0x25d   : > { %18009 = vmatmul.mubr.f32.gmra.mrb[70].mxu0 %v5471_v58  ;;  %21406 = vmatprep.subr.bf16.mxu1 %v28925_v28  ;;  %v21727_v58 = vpack.c.bf16 %v14528_v34, %v14527_v39  ;;  %v25478_v34 = vld [vmem:[%s28915_s4] ss:$0 sm:$0xff] }
 0x25e   : > { %18011 = vmatprep.mubr.msk.f32.mxu0 %vm23118_vm1, %v24876_v59  ;;  %21255 = vmatpush3.bf16.msra.mxu0 %v21254_v38  ;;  %v21281_v38 = vpack.c.bf16 %v14294_v37, %v14293_v27 }
 0x25f   : > { %18420 = vmatmul.mubr.f32.gmra.mrb[60].mxu1 %v25101_v15  ;;  %21256 = vmatprep.subr.bf16.mxu0 %v28925_v28 }
 0x260   : > { %18422 = vmatprep.mubr.msk.f32.mxu1 %vm23118_vm1, %v24876_v59  ;;  %21408 = vmatpush3.bf16.msra.mxu1 %v24675_v40  ;;  %v25121_v40 = vld [vmem:[#allocation2 + $0x140] sm:$0xff]  ;;  %v25455_v37 = vpop.permute.xlu0 %3447 }
 0x261   : > { %18012 = vmatmul.mubr.f32.gmra.mrb[72].mxu0 %v5472_v13  ;;  %21409 = vmatprep.subr.bf16.mxu1 %v28925_v28  ;;  %v14530_v13 = vld [vmem:[%s28916_s5 + $0xc8] sm:$0xff] }
 0x262   : > { %18014 = vmatprep.mubr.msk.f32.mxu0 %vm23118_vm1, %v24876_v59  ;;  %21258 = vmatpush3.bf16.msra.mxu0 %v21257_v61  ;;  %v14529_v61 = vld [vmem:[%s28916_s5 + $0xc0] sm:$0xff] }
 0x263   : > { %18423 = vmatmul.mubr.f32.gmra.mrb[62].mxu1 %v25111_v12  ;;  %21259 = vmatprep.subr.bf16.mxu0 %v28925_v28 }
 0x264   : > { %18425 = vmatprep.mubr.msk.f32.mxu1 %vm23118_vm1, %v24876_v59  ;;  %21411 = vmatpush3.bf16.msra.mxu1 %v24687_v32  ;;  %v25130_v32 = vld [vmem:[#allocation2 + $0x148] sm:$0xff] }
 0x265   : > { %18015 = vmatmul.mubr.f32.gmra.mrb[74].mxu0 %v5473_v21  ;;  %21412 = vmatprep.subr.bf16.mxu1 %v28925_v28  ;;  %v25302_v21 = vld [vmem:[#allocation2 + $0x142] sm:$0xff] }
 0x266   : > { %18017 = vmatprep.mubr.msk.f32.mxu0 %vm23118_vm1, %v24876_v59 }
 0x267   : > { %18426 = vmatmul.mubr.f32.gmra.mrb[64].mxu1 %v25121_v40 }
 0x268   : > { %18428 = vmatprep.mubr.msk.f32.mxu1 %vm23118_vm1, %v24876_v59  ;;  %21414 = vmatpush3.bf16.msra.mxu1 %v24699_v43  ;;  %v25139_v43 = vld [vmem:[#allocation2 + $0x150] sm:$0xff] }
 0x269   : > { %18018 = vmatmul.mubr.f32.gmra.mrb[76].mxu0 %v5474_v8  ;;  %21415 = vmatprep.subr.bf16.mxu1 %v28925_v28  ;;  %v14531_v8 = vld [vmem:[%s28916_s5 + $0xd0] sm:$0xff] }
 0x26a   : > { %18020 = vmatprep.mubr.msk.f32.mxu0 %vm23118_vm1, %v24876_v59 }
 0x26b   : > { %18429 = vmatmul.mubr.f32.gmra.mrb[66].mxu1 %v25130_v32 }
 0x26c   : > { %18431 = vmatprep.mubr.msk.f32.mxu1 %vm23118_vm1, %v24876_v59  ;;  %21417 = vmatpush3.bf16.msra.mxu1 %v24711_v24  ;;  %v25148_v24 = vld [vmem:[#allocation2 + $0x158] sm:$0xff] }
 0x26d   : > { %18021 = vmatmul.mubr.f32.gmra.mrb[78].mxu0 %v5475_v44  ;;  %21418 = vmatprep.subr.bf16.mxu1 %v28925_v28  ;;  %v14532_v44 = vld [vmem:[%s28916_s5 + $0xd8] sm:$0xff] }
 0x26e   : > { %18023 = vmatprep.mubr.msk.f32.mxu0 %vm23118_vm1, %v24876_v59 }
 0x26f   : > { %18432 = vmatmul.mubr.f32.gmra.mrb[68].mxu1 %v25139_v43 }
 0x270   : > { %18434 = vmatprep.mubr.msk.f32.mxu1 %vm23118_vm1, %v24876_v59  ;;  %21420 = vmatpush3.bf16.msra.mxu1 %v24723_v25  ;;  %v14279_v25 = vld [vmem:[%s28914_s3 + $0x100] sm:$0xff] }
 0x271   : > { %18024 = vmatmul.mubr.f32.gmra.mrb[80].mxu0 %v5476_v42  ;;  %21421 = vmatprep.subr.bf16.mxu1 %v28925_v28  ;;  %v21260_v16 = vpack.c.bf16 %v14280_v45, %v14279_v25  ;;  %v25316_v42 = vld [vmem:[#allocation2 + $0x14a] sm:$0xff]  ;;  %v25330_v25 = vld [vmem:[#allocation2 + $0x152] sm:$0xff] }
 0x272   : > { %18026 = vmatprep.mubr.msk.f32.mxu0 %vm23118_vm1, %v24876_v59  ;;  %v14535_v45 = vld [vmem:[%s28916_s5 + $0xf0] sm:$0xff] }
 0x273   : > { %18435 = vmatmul.mubr.f32.gmra.mrb[70].mxu1 %v25148_v24 }
 0x274   : > { %18437 = vmatprep.mubr.msk.f32.mxu1 %vm23118_vm1, %v24876_v59  ;;  %21423 = vmatpush3.bf16.msra.mxu1 %v24738_v1  ;;  %v6450_v1 = vld [vmem:[#allocation2 + $0x168] sm:$0xff] }
 0x275   : > { %18027 = vmatmul.mubr.f32.gmra.mrb[82].mxu0 %v5477_v50  ;;  %21424 = vmatprep.subr.bf16.mxu1 %v28925_v28  ;;  %v14536_v50 = vld [vmem:[%s28916_s5 + $0xf8] sm:$0xff] }
 0x276   : > { %18061 = vmatprep.mubr.msk.f32.mxu0 %vm23118_vm1, %v24876_v59 }
 0x277   : > { %18438 = vmatmul.mubr.f32.gmra.mrb[72].mxu1 %v6449_v3  ;;  %v9049_v3 = vld [vmem:[%s28916_s5] sm:$0xff] }
 0x278   : > { %18440 = vmatprep.mubr.msk.f32.mxu1 %vm23118_vm1, %v24876_v59  ;;  %21426 = vmatpush3.bf16.msra.mxu1 %v24756_v17  ;;  %v14284_v17 = vld [vmem:[%s28914_s3 + $0x128] sm:$0xff] }
 0x279   : > { %18062 = vmatmul.mubr.f32.vlgmr.msra.gmra.mrb[84].mxu0 %v24734_v6  ;;  %21716 = vmatprep.subr.bf16.mxu1 %v25169_v31  ;;  %v6451_v6 = vld [vmem:[#allocation2 + $0x170] sm:$0xff]  ;;  %v21266_v48 = vpack.c.bf16 %v14284_v17, %v14283_v23 }
 0x27a   : > { %21261 = vmatpush3.bf16.msra.mxu0 %v21260_v16  ;;  %18064 = vmatprep.mubr.msk.f32.mxu0 %vm23118_vm1, %v24876_v59  ;;  %v9050_v16 = vld [vmem:[%s28916_s5 + $0x8] sm:$0xff]  ;;  %v14297_v17 = vld [vmem:[%s28914_s3 + $0x190] sm:$0xff] }
 0x27b   : > { %18441 = vmatmul.mubr.f32.gmra.mrb[74].mxu1 %v6450_v1  ;;  %21262 = vmatprep.subr.bf16.mxu0 %v28925_v28  ;;  %v25363_v1 = vpack.c.bf16 %v9050_v16, %v9049_v3 }
 0x27c   : > { %18443 = vmatprep.mubr.msk.f32.mxu1 %vm23118_vm1, %v24876_v59 }
 0x27d   : > { %18065 = vmatmul.mubr.f32.gmra.mrb[86].mxu0 %v24748_v10  ;;  %v6452_v10 = vld [vmem:[#allocation2 + $0x178] sm:$0xff] }
 0x27e   : > { %18067 = vmatprep.mubr.msk.f32.mxu0 %vm23118_vm1, %v24876_v59  ;;  %21264 = vmatpush3.bf16.msra.mxu0 %v21263_v5  ;;  %v6793_v5 = vld [vmem:[#allocation2 + $0x162] sm:$0xff] }
 0x27f   : > { %18444 = vmatmul.mubr.f32.gmra.mrb[76].mxu1 %v6451_v6  ;;  %21265 = vmatprep.subr.bf16.mxu0 %v28925_v28  ;;  %v14298_v6 = vld [vmem:[%s28914_s3 + $0x198] sm:$0xff] }
 0x280   : > { %18446 = vmatprep.mubr.msk.f32.mxu1 %vm23118_vm1, %v24876_v59  ;;  %v21287_v29 = vpack.c.bf16 %v14298_v6, %v14297_v17 }
 0x281   : > { %18068 = vmatmul.mubr.f32.gmra.mrb[88].mxu0 %v24752_v63  ;;  %v6453_v63 = vld [vmem:[#allocation2 + $0x180] sm:$0xff] }
 0x282   : > { %18070 = vmatprep.mubr.msk.f32.mxu0 %vm23118_vm1, %v24876_v59  ;;  %21267 = vmatpush3.bf16.msra.mxu0 %v21266_v48  ;;  %v6794_v48 = vld [vmem:[#allocation2 + $0x16a] sm:$0xff] }
 0x283   : > { %18447 = vmatmul.mubr.f32.gmra.mrb[78].mxu1 %v6452_v10  ;;  %21268 = vmatprep.subr.bf16.mxu0 %v28925_v28  ;;  %v14300_v10 = vld [vmem:[%s28914_s3 + $0x1a8] sm:$0xff] }
 0x284   : > { %18449 = vmatprep.mubr.msk.f32.mxu1 %vm23118_vm1, %v24876_v59 }
 0x285   : > { %18071 = vmatmul.mubr.f32.gmra.mrb[90].mxu0 %v24760_v19  ;;  %v6454_v19 = vld [vmem:[#allocation2 + $0x188] sm:$0x3f] }
 0x286   : > { %18073 = vmatprep.mubr.msk.f32.mxu0 %vm23118_vm1, %v24876_v59  ;;  %21270 = vmatpush3.bf16.msra.mxu0 %v21269_v11  ;;  %v21290_v11 = vpack.c.bf16 %v14300_v10, %v14299_v30 }
 0x287   : > { %18450 = vmatmul.mubr.f32.gmra.mrb[80].mxu1 %v6453_v63  ;;  %21271 = vmatprep.subr.bf16.mxu0 %v28925_v28  ;;  %v21293_v63 = vpack.c.bf16 %v14302_v26, %v14301_v9 }
 0x288   : > { %18452 = vmatprep.mubr.msk.f32.mxu1 %vm23118_vm1, %v24876_v59 }
 0x289   : > { %18074 = vmatmul.mubr.f32.gmra.mrb[92].mxu0 %v24764_v18  ;;  %v14291_v18 = vld [vmem:[%s28914_s3 + $0x160] sm:$0xff] }
 0x28a   : > { %18076 = vmatprep.mubr.msk.f32.mxu0 %vm23118_vm1, %v24876_v59  ;;  %21273 = vmatpush3.bf16.msra.mxu0 %v21272_v46  ;;  %v21278_v54 = vpack.c.bf16 %v14292_v60, %v14291_v18  ;;  %v14303_v46 = vld [vmem:[%s28914_s3 + $0x1c0] sm:$0xff]  ;;  %v14308_v60 = vld [vmem:[%s28914_s3 + $0x1e8] sm:$0xff] }
 0x28b   : > { %18453 = vmatmul.mubr.f32.gmra.mrb[82].mxu1 %v6454_v19  ;;  %21274 = vmatprep.subr.bf16.mxu0 %v28925_v28  ;;  %v21296_v55 = vpack.c.bf16 %v14304_v33, %v14303_v46  ;;  %v14305_v19 = vld [vmem:[%s28914_s3 + $0x1d0] sm:$0xff]  ;;  %v14307_v18 = vld [vmem:[%s28914_s3 + $0x1e0] sm:$0xff] }
 0x28c   : > { %18558 = vmatprep.mubr.msk.f32.mxu1 %vm23118_vm1, %v24876_v59 }
 0x28d   : > { %18077 = vmatmul.mubr.f32.gmra.mrb[94].mxu0 %v25086_v53  ;;  %v25272_v53 = vld [vmem:[#allocation2 + $0x132] sm:$0xff] }
 0x28e   : > { %18079 = vmatprep.mubr.msk.f32.mxu0 %vm23118_vm1, %v24876_v59  ;;  %21276 = vmatpush3.bf16.msra.mxu0 %v21275_v36  ;;  %v14306_v36 = vld [vmem:[%s28914_s3 + $0x1d8] sm:$0xff] }
 0x28f   : > { %18559 = vmatmul.mubr.f32.vlgmr.msra.gmra.mrb[84].mxu1 %v25250_v49  ;;  %21277 = vmatprep.subr.bf16.mxu0 %v28925_v28  ;;  %v21299_v57 = vpack.c.bf16 %v14306_v36, %v14305_v19 }
 0x290   : > { %18561 = vmatprep.mubr.msk.f32.mxu1 %vm23118_vm1, %v24876_v59  ;;  %21718 = vmatpush3.bf16.msra.mxu1 %v25169_v31  ;;  %v25344_v31 = vld [vmem:[#allocation2 + $0x15a] sm:$0xff] }
 0x291   : > { %18080 = vmatmul.mubr.f32.gmra.mrb[96].mxu0 %v25101_v15  ;;  %21720 = vmatprep.subr.bf16.mxu1 %v21719_v35  ;;  %v25287_v15 = vld [vmem:[#allocation2 + $0x13a] sm:$0xff] }
 0x292   : > { %18082 = vmatprep.mubr.msk.f32.mxu0 %vm23118_vm1, %v24876_v59  ;;  %21279 = vmatpush3.bf16.msra.mxu0 %v21278_v54  ;;  %v14309_v54 = vld [vmem:[%s28914_s3 + $0x1f0] sm:$0xff] }
 0x293   : > { %18562 = vmatmul.mubr.f32.gmra.mrb[86].mxu1 %v25272_v53  ;;  %21280 = vmatprep.subr.bf16.mxu0 %v28925_v28  ;;  %v21305_v27 = vpack.c.bf16 %v14310_v62, %v14309_v54  ;;  %v14333_v54 = vld [vmem:[%s28914_s3 + $0x2b0] sm:$0xff]  ;;  %v14334_v62 = vld [vmem:[%s28914_s3 + $0x2b8] sm:$0xff] }
 0x294   : > { %18564 = vmatprep.mubr.msk.f32.mxu1 %vm23118_vm1, %v24876_v59  ;;  %21722 = vmatpush3.bf16.msra.mxu1 %v21719_v35  ;;  %v3423_v35 = vpop.permute.xlu1 %3422 }
 0x295   : > { %18083 = vmatmul.mubr.f32.gmra.mrb[98].mxu0 %v25111_v12  ;;  %21724 = vmatprep.subr.bf16.mxu1 %v21723_v56  ;;  %v21731_v12 = vpack.c.bf16 %v14530_v13, %v14529_v61 }
 0x296   : > { %18085 = vmatprep.mubr.msk.f32.mxu0 %vm23118_vm1, %v24876_v59  ;;  %21282 = vmatpush3.bf16.msra.mxu0 %v21281_v38 }
 0x297   : > { %18565 = vmatmul.mubr.f32.gmra.mrb[88].mxu1 %v25287_v15  ;;  %21283 = vmatprep.subr.bf16.mxu0 %v28925_v28 }
 0x298   : > { %18567 = vmatprep.mubr.msk.f32.mxu1 %vm23118_vm1, %v24876_v59  ;;  %21726 = vmatpush3.bf16.msra.mxu1 %v21723_v56 }
 0x299   : > { %18086 = vmatmul.mubr.f32.gmra.mrb[100].mxu0 %v25121_v40  ;;  %21728 = vmatprep.subr.bf16.mxu1 %v21727_v58  ;;  %v21735_v40 = vpack.c.bf16 %v14532_v44, %v14531_v8  ;;  %v14328_v8 = vld [vmem:[%s28914_s3 + $0x288] sm:$0xff] }
 0x29a   : > { %18088 = vmatprep.mubr.msk.f32.mxu0 %vm23118_vm1, %v24876_v59 }
 0x29b   : > { %18568 = vmatmul.mubr.f32.gmra.mrb[90].mxu1 %v25302_v21 }
 0x29c   : > { %18570 = vmatprep.mubr.msk.f32.mxu1 %vm23118_vm1, %v24876_v59  ;;  %21730 = vmatpush3.bf16.msra.mxu1 %v21727_v58 }
 0x29d   : > { %18089 = vmatmul.mubr.f32.gmra.mrb[102].mxu0 %v25130_v32  ;;  %21732 = vmatprep.subr.bf16.mxu1 %v21731_v12  ;;  %v21739_v32 = vpack.c.bf16 %v14534_v41, %v14533_v7 }
 0x29e   : > { %18091 = vmatprep.mubr.msk.f32.mxu0 %vm23118_vm1, %v24876_v59 }
 0x29f   : > { %18571 = vmatmul.mubr.f32.gmra.mrb[92].mxu1 %v25316_v42 }
 0x2a0   : > { %18573 = vmatprep.mubr.msk.f32.mxu1 %vm23118_vm1, %v24876_v59  ;;  %21734 = vmatpush3.bf16.msra.mxu1 %v21731_v12 }
 0x2a1   : > { %18092 = vmatmul.mubr.f32.gmra.mrb[104].mxu0 %v25139_v43  ;;  %21736 = vmatprep.subr.bf16.mxu1 %v21735_v40  ;;  %v21743_v43 = vpack.c.bf16 %v14536_v50, %v14535_v45  ;;  %v25498_v50 = vld [vmem:[#allocation2] sm:$0xff] }
 0x2a2   : > { %18094 = vmatprep.mubr.msk.f32.mxu0 %vm23118_vm1, %v24876_v59 }
 0x2a3   : > { %18574 = vmatmul.mubr.f32.gmra.mrb[94].mxu1 %v25330_v25 }
 0x2a4   : > { %18576 = vmatprep.mubr.msk.f32.mxu1 %vm23118_vm1, %v24876_v59  ;;  %21738 = vmatpush3.bf16.msra.mxu1 %v21735_v40  ;;  %v5766_v40 = vld [vmem:[#allocation2 + $0x162] sm:$0x3f] }
 0x2a5   : > { %18095 = vmatmul.mubr.f32.gmra.mrb[106].mxu0 %v25148_v24  ;;  %21740 = vmatprep.subr.bf16.mxu1 %v21739_v32  ;;  %v14295_v24 = vld [vmem:[%s28914_s3 + $0x180] sm:$0xff] }
 0x2a6   : > { %18097 = vmatprep.mubr.msk.f32.mxu0 %vm23118_vm1, %v24876_v59  ;;  %v21284_v23 = vpack.c.bf16 %v14296_v14, %v14295_v24  ;;  %v14329_v24 = vld [vmem:[%s28914_s3 + $0x290] sm:$0xff]  ;;  %v14330_v14 = vld [vmem:[%s28914_s3 + $0x298] sm:$0xff] }
 0x2a7   : > { %18577 = vmatmul.mubr.f32.gmra.mrb[96].mxu1 %v25344_v31  ;;  %v21335_v10 = vpack.c.bf16 %v14330_v14, %v14329_v24 }
 0x2a8   : > { %18579 = vmatprep.mubr.msk.f32.mxu1 %vm23118_vm1, %v24876_v59  ;;  %21742 = vmatpush3.bf16.msra.mxu1 %v21739_v32 }
 0x2a9   : > { %18098 = vmatmul.mubr.f32.gmra.mrb[108].mxu0 %v5448_v0  ;;  %21744 = vmatprep.subr.bf16.mxu1 %v21743_v43 }
 0x2aa   : > { %18132 = vmatprep.mubr.msk.f32.mxu0 %vm23118_vm1, %v24876_v59 }
 0x2ab   : > { %18580 = vmatmul.mubr.f32.gmra.mrb[98].mxu1 %v6793_v5 }
 0x2ac   : > { %18582 = vmatprep.mubr.msk.f32.mxu1 %vm23118_vm1, %v24876_v59  ;;  %21746 = vmatpush3.bf16.msra.mxu1 %v21743_v43 }
 0x2ad   : > { %18133 = vmatmul.mubr.f32.vlgmr.msra.gmra.mrb[110].mxu0 %v24960_v52  ;;  %21748 = vmatprep.subr.bf16.mxu1 %v25363_v1  ;;  %v6795_v52 = vld [vmem:[#allocation2 + $0x172] sm:$0xff] }
 0x2ae   : > { %21285 = vmatpush3.bf16.msra.mxu0 %v21284_v23  ;;  %18135 = vmatprep.mubr.msk.f32.mxu0 %vm23118_vm1, %v24876_v59  ;;  %v5926_v23 = vld [vmem:[#allocation2 + $0x114] sm:$0xff] }
 0x2af   : > { %18583 = vmatmul.mubr.f32.gmra.mrb[100].mxu1 %v6794_v48  ;;  %21286 = vmatprep.subr.bf16.mxu0 %v28925_v28 }
 0x2b0   : > { %18585 = vmatprep.mubr.msk.f32.mxu1 %vm23118_vm1, %v24876_v59 }
 0x2b1   : > { %18136 = vmatmul.mubr.f32.gmra.mrb[112].mxu0 %v24963_v20  ;;  %v6796_v20 = vld [vmem:[#allocation2 + $0x17a] sm:$0xff] }
 0x2b2   : > { %18138 = vmatprep.mubr.msk.f32.mxu0 %vm23118_vm1, %v24876_v59  ;;  %21288 = vmatpush3.bf16.msra.mxu0 %v21287_v29 }
 0x2b3   : > { %18586 = vmatmul.mubr.f32.gmra.mrb[102].mxu1 %v6795_v52  ;;  %21289 = vmatprep.subr.bf16.mxu0 %v28925_v28 }
 0x2b4   : > { %18588 = vmatprep.mubr.msk.f32.mxu1 %vm23118_vm1, %v24876_v59 }
 0x2b5   : > { %18139 = vmatmul.mubr.f32.gmra.mrb[114].mxu0 %v24982_v51  ;;  %v6797_v51 = vld [vmem:[#allocation2 + $0x182] sm:$0xff] }
 0x2b6   : > { %18141 = vmatprep.mubr.msk.f32.mxu0 %vm23118_vm1, %v24876_v59  ;;  %21291 = vmatpush3.bf16.msra.mxu0 %v21290_v11 }
 0x2b7   : > { %18589 = vmatmul.mubr.f32.gmra.mrb[104].mxu1 %v6796_v20  ;;  %21292 = vmatprep.subr.bf16.mxu0 %v28925_v28  ;;  %v14331_v20 = vld [vmem:[%s28914_s3 + $0x2a0] sm:$0xff] }
 0x2b8   : > { %18591 = vmatprep.mubr.msk.f32.mxu1 %vm23118_vm1, %v24876_v59 }
 0x2b9   : > { %18142 = vmatmul.mubr.f32.gmra.mrb[116].mxu0 %v24985_v4  ;;  %v6798_v4 = vld [vmem:[#allocation2 + $0x18a] sm:$0x3f] }
 0x2ba   : > { %18144 = vmatprep.mubr.msk.f32.mxu0 %vm23118_vm1, %v24876_v59  ;;  %21294 = vmatpush3.bf16.msra.mxu0 %v21293_v63  ;;  %v14332_v63 = vld [vmem:[%s28914_s3 + $0x2a8] sm:$0xff] }
 0x2bb   : > { %21295 = vmatprep.subr.bf16.mxu0 %v28925_v28  ;;  %18592 = vmatmul.mubr.f32.gmra.mrb[106].mxu1 %v6797_v51 }
 0x2bc   : > { %18594 = vmatprep.mubr.msk.f32.mxu1 %vm23118_vm1, %v24876_v59 }
 0x2bd   : > { %18145 = vmatmul.mubr.f32.gmra.mrb[118].mxu0 %v25004_v22  ;;  %v21302_v22 = vpack.c.bf16 %v14308_v60, %v14307_v18  ;;  %v21338_v18 = vpack.c.bf16 %v14332_v63, %v14331_v20 }
 0x2be   : > { %18147 = vmatprep.mubr.msk.f32.mxu0 %vm23118_vm1, %v24876_v59  ;;  %21297 = vmatpush3.bf16.msra.mxu0 %v21296_v55  ;;  %v5927_v55 = vld [vmem:[#allocation2 + $0x11c] sm:$0xff] }
 0x2bf   : > { %21298 = vmatprep.subr.bf16.mxu0 %v28925_v28  ;;  %18595 = vmatmul.mubr.f32.gmra.mrb[108].mxu1 %v6798_v4 }
 0x2c1   : > { %18148 = vmatmul.mubr.f32.gmra.mrb[120].mxu0 %v25250_v49  ;;  %v25447_v49 = vpop.permute.xlu1 %3432 }
 0x2c2   : > { %18150 = vmatprep.mubr.msk.f32.mxu0 %vm23118_vm1, %v24876_v59  ;;  %21300 = vmatpush3.bf16.msra.mxu0 %v21299_v57 }
 0x2c3   : > { %21301 = vmatprep.subr.bf16.mxu0 %v28925_v28 }
 0x2c5   : > { %18151 = vmatmul.mubr.f32.gmra.mrb[122].mxu0 %v25272_v53  ;;  %v25458_v56 = vpop.permute.xlu1 %3442  ;;  %v25463_v53 = vpop.permute.xlu0 %3457 }
 0x2c6   : > { %18153 = vmatprep.mubr.msk.f32.mxu0 %vm23118_vm1, %v24876_v59  ;;  %21303 = vmatpush3.bf16.msra.mxu0 %v21302_v22 }
 0x2c7   : > { %21304 = vmatprep.subr.bf16.mxu0 %v28925_v28 }
 0x2c9   : > { %18154 = vmatmul.mubr.f32.gmra.mrb[124].mxu0 %v25287_v15  ;;  %v25466_v38 = vpop.permute.xlu1 %3452  ;;  %v25473_v39 = vpop.permute.xlu0 %3467 }
 0x2ca   : > { %18156 = vmatprep.mubr.msk.f32.mxu0 %vm23118_vm1, %v24876_v59  ;;  %21306 = vmatpush3.bf16.msra.mxu0 %v21305_v27  ;;  %v5928_v27 = vld [vmem:[#allocation2 + $0x124] sm:$0xff] }
 0x2cb   : > { %21331 = vmatprep.subr.bf16.mxu0 %v28925_v28 }
 0x2cd   : > { %18157 = vmatmul.mubr.f32.gmra.mrb[126].mxu0 %v25302_v21  ;;  %v25480_v58 = vpop.permute.xlu1 %3462  ;;  %v14327_v21 = vld [vmem:[%s28914_s3 + $0x280] sm:$0xff] }
 0x2ce   : > { %18159 = vmatprep.mubr.msk.f32.mxu0 %vm23118_vm1, %v24876_v59  ;;  %v21332_v43 = vpack.c.bf16 %v14328_v8, %v14327_v21 }
 0x2d1   : > { %18160 = vmatmul.mubr.f32.gmra.mrb[128].mxu0 %v25316_v42  ;;  %v25493_v42 = vpop.permute.xlu0 %3477 }
 0x2d2   : > { %18162 = vmatprep.mubr.msk.f32.mxu0 %vm23118_vm1, %v24876_v59 }
 0x2d5   : > { %18163 = vmatmul.mubr.f32.gmra.mrb[130].mxu0 %v25330_v25  ;;  %v25514_v52 = vpop.permute.xlu0 %3487 }
 0x2d6   : > { %18165 = vmatprep.mubr.msk.f32.mxu0 %vm23118_vm1, %v24876_v59 }
 0x2d9   : > { %v17432_v15 = vpop.f32.mrb[16].mxu1  ;;  %18166 = vmatmul.mubr.f32.gmra.mrb[132].mxu0 %v25344_v31 }
 0x2da   : > { %v3341_v61 = vadd.f32 %v17432_v15, %v25478_v34  ;;  %v3238_v13 = vpop.f32.mrb[17].mxu1  ;;  %18168 = vmatprep.mubr.msk.f32.mxu0 %vm23118_vm1, %v24876_v59  ;;  %v25495_v59 = vpop.permute.xlu1 %3472 }
 0x2db   : > { %v3340_v12 = vadd.f32 %v25478_v34, %v3238_v13 }
 0x2dc   : > { %vm3357_vm2 = vcmp.ge.f32.partialorder %v3341_v61, 0.0  ;;  %v3373_v44 = vmul.f32 0.05, %v3341_v61 }
 0x2dd   : > { %vm3356_vm3 = vcmp.ge.f32.partialorder %v3340_v12, 0.0  ;;  %v3372_v7 = vmul.f32 0.05, %v3340_v12  ;;  %v17435_v41 = vpop.f32.mrb[18].mxu1  ;;  %18169 = vmatmul.mubr.f32.gmra.mrb[134].mxu0 %v5766_v40 }
 0x2de   : > { %v3389_v32 = vsel %vm3357_vm2, %v3341_v61, %v3373_v44  ;;  %v3343_v25 = vadd.f32 %v17435_v41, %v25478_v34  ;;  %v3248_v45 = vpop.f32.mrb[19].mxu1  ;;  %18203 = vmatprep.mubr.msk.f32.mxu0 %vm23118_vm1, %v25498_v50  ;;  %v25525_v46 = vpop.permute.xlu1 %3482  ;;  %v14335_v41 = vld [vmem:[%s28914_s3 + $0x2c0] sm:$0xff] }
 0x2df   : > { %v3501_v31 = vmul.f32 %v3428_v2, %v3389_v32  ;;  %v3388_v3 = vsel %vm3356_vm3, %v3340_v12, %v3372_v7  ;;  %v3342_v16 = vadd.f32 %v25478_v34, %v3248_v45  ;;  %v14336_v32 = vld [vmem:[%s28914_s3 + $0x2c8] sm:$0xff] }
 0x2e0   : > { %v3500_v0 = vmul.f32 %v3423_v35, %v3388_v3  ;;  %vm3359_vm4 = vcmp.ge.f32.partialorder %v3343_v25, 0.0  ;;  %v3375_v5 = vmul.f32 0.05, %v3343_v25  ;;  %v21344_v14 = vpack.c.bf16 %v14336_v32, %v14335_v41 }
 0x2e1   : > { %3517 = vst [vmem:[%s23269_s22 + $0x1d] sm:$0xff] %v3501_v31  ;;  %vm3358_vm5 = vcmp.ge.f32.partialorder %v3342_v16, 0.0  ;;  %v3374_v17 = vmul.f32 0.05, %v3342_v16  ;;  %v17438_v6 = vpop.f32.mrb[20].mxu1  ;;  %18204 = vmatmul.mubr.f32.vlgmr.msra.gmra.mrb[136].mxu0 %v5926_v23 }
 0x2e2   : > { %3516 = vst [vmem:[%s23269_s22 + $0x15] sm:$0xff] %v3500_v0  ;;  %v3391_v48 = vsel %vm3359_vm4, %v3343_v25, %v3375_v5  ;;  %v3345_v29 = vadd.f32 %v17438_v6, %v25478_v34  ;;  %v3258_v30 = vpop.f32.mrb[21].mxu1  ;;  %21333 = vmatpush3.bf16.msra.mxu0 %v21332_v43  ;;  %18206 = vmatprep.mubr.msk.f32.mxu0 %vm23118_vm1, %v25498_v50  ;;  %v25546_v13 = vpop.permute.xlu1 %3492  ;;  %v5929_v43 = vld [vmem:[#allocation2 + $0x12c] sm:$0xff]  ;;  %v14338_v6 = vld [vmem:[%s28914_s3 + $0x2d8] sm:$0xff] }
 0x2e3   : > { %v3503_v11 = vmul.f32 %v25444_v47, %v3391_v48  ;;  %v3390_v9 = vsel %vm3358_vm5, %v3342_v16, %v3374_v17  ;;  %v3344_v26 = vadd.f32 %v25478_v34, %v3258_v30  ;;  %21334 = vmatprep.subr.bf16.mxu0 %v28925_v28  ;;  %v14337_v17 = vld [vmem:[%s28914_s3 + $0x2d0] sm:$0xff] }
 0x2e4   : > { %v3502_v33 = vmul.f32 %v25447_v49, %v3390_v9  ;;  %vm3361_vm6 = vcmp.ge.f32.partialorder %v3345_v29, 0.0  ;;  %v3377_v51 = vmul.f32 0.05, %v3345_v29  ;;  %v5930_v30 = vld [vmem:[#allocation2 + $0x134] sm:$0xff]  ;;  %v21347_v63 = vpack.c.bf16 %v14338_v6, %v14337_v17 }
 0x2e5   : > { %3519 = vst [vmem:[%s23269_s22 + $0x2d] sm:$0xff] %v3503_v11  ;;  %vm3360_vm7 = vcmp.ge.f32.partialorder %v3344_v26, 0.0  ;;  %v3376_v19 = vmul.f32 0.05, %v3344_v26  ;;  %v17441_v36 = vpop.f32.mrb[22].mxu1  ;;  %18207 = vmatmul.mubr.f32.gmra.mrb[138].mxu0 %v5927_v55  ;;  %v14339_v55 = vld [vmem:[%s28914_s3 + $0x2e0] sm:$0xff] }
 0x2e6   : > { %3518 = vst [vmem:[%s23269_s22 + $0x25] sm:$0xff] %v3502_v33  ;;  %v3393_v4 = vsel %vm3361_vm6, %v3345_v29, %v3377_v51  ;;  %v3347_v57 = vadd.f32 %v17441_v36, %v25478_v34  ;;  %v3268_v2 = vpop.f32.mrb[23].mxu1  ;;  %18209 = vmatprep.mubr.msk.f32.mxu0 %vm23118_vm1, %v25498_v50  ;;  %21336 = vmatpush3.bf16.msra.mxu0 %v21335_v10  ;;  %v25578_v48 = vpop.permute.xlu1 %5326 }
 0x2e7   : > { %v3505_v60 = vmul.f32 %v25455_v37, %v3393_v4  ;;  %v3392_v35 = vsel %vm3360_vm7, %v3344_v26, %v3376_v19  ;;  %v3346_v22 = vadd.f32 %v25478_v34, %v3268_v2  ;;  %21337 = vmatprep.subr.bf16.mxu0 %v28925_v28  ;;  %v25543_v37 = vpop.permute.xlu0 %3497  ;;  %v14340_v19 = vld [vmem:[%s28914_s3 + $0x2e8] sm:$0xff] }
 0x2e8   : > { %v3504_v47 = vmul.f32 %v25458_v56, %v3392_v35  ;;  %vm3363_vm8 = vcmp.ge.f32.partialorder %v3347_v57, 0.0  ;;  %v3379_v49 = vmul.f32 0.05, %v3347_v57  ;;  %v21341_v56 = vpack.c.bf16 %v14334_v62, %v14333_v54 }
 0x2e9   : > { %3521 = vst [vmem:[%s23269_s22 + $0x3d] sm:$0xff] %v3505_v60  ;;  %vm3362_vm9 = vcmp.ge.f32.partialorder %v3346_v22, 0.0  ;;  %v3378_v15 = vmul.f32 0.05, %v3346_v22  ;;  %v17444_v61 = vpop.f32.mrb[24].mxu1  ;;  %18210 = vmatmul.mubr.f32.gmra.mrb[140].mxu0 %v5928_v27  ;;  %v14341_v27 = vld [vmem:[%s28914_s3 + $0x2f0] sm:$0xff] }
 0x2ea   : > { %3520 = vst [vmem:[%s23269_s22 + $0x35] sm:$0xff] %v3504_v47  ;;  %v3395_v12 = vsel %vm3363_vm8, %v3347_v57, %v3379_v49  ;;  %v3349_v21 = vadd.f32 %v17444_v61, %v25478_v34  ;;  %v3278_v8 = vpop.f32.mrb[25].mxu1  ;;  %18212 = vmatprep.mubr.msk.f32.mxu0 %vm23118_vm1, %v25498_v50  ;;  %21339 = vmatpush3.bf16.msra.mxu0 %v21338_v18  ;;  %v5931_v57 = vld [vmem:[#allocation2 + $0x13c] sm:$0xff]  ;;  %v25599_v60 = vpop.permute.xlu1 %5336 }
 0x2eb   : > { %v3507_v44 = vmul.f32 %v25463_v53, %v3395_v12  ;;  %v3394_v40 = vsel %vm3362_vm9, %v3346_v22, %v3378_v15  ;;  %v3348_v7 = vadd.f32 %v25478_v34, %v3278_v8  ;;  %21340 = vmatprep.subr.bf16.mxu0 %v28925_v28  ;;  %v14342_v15 = vld [vmem:[%s28914_s3 + $0x2f8] sm:$0xff] }
 0x2ec   : > { %v3506_v25 = vmul.f32 %v25466_v38, %v3394_v40  ;;  %vm3365_vm10 = vcmp.ge.f32.partialorder %v3349_v21, 0.0  ;;  %v3381_v45 = vmul.f32 0.05, %v3349_v21  ;;  %v25567_v38 = vpop.permute.xlu0 %5331 }
 0x2ed   : > { %3523 = vst [vmem:[%s23269_s22 + $0x4d] sm:$0xff] %v3507_v44  ;;  %vm3364_vm11 = vcmp.ge.f32.partialorder %v3348_v7, 0.0  ;;  %v3380_v53 = vmul.f32 0.05, %v3348_v7  ;;  %v17447_v31 = vpop.f32.mrb[26].mxu1  ;;  %18213 = vmatmul.mubr.f32.gmra.mrb[142].mxu0 %v5929_v43 }
 0x2ee   : > { %3522 = vst [vmem:[%s23269_s22 + $0x45] sm:$0xff] %v3506_v25  ;;  %v3397_v3 = vsel %vm3365_vm10, %v3349_v21, %v3381_v45  ;;  %v3351_v16 = vadd.f32 %v17447_v31, %v25478_v34  ;;  %v3288_v24 = vpop.f32.mrb[27].mxu1  ;;  %18215 = vmatprep.mubr.msk.f32.mxu0 %vm23118_vm1, %v25498_v50  ;;  %21342 = vmatpush3.bf16.msra.mxu0 %v21341_v56  ;;  %v25627_v31 = vpop.permute.xlu1 %5346 }
 0x2ef   : > { %v3509_v0 = vmul.f32 %v25473_v39, %v3397_v3  ;;  %v3396_v5 = vsel %vm3364_vm11, %v3348_v7, %v3380_v53  ;;  %v3350_v23 = vadd.f32 %v25478_v34, %v3288_v24  ;;  %21343 = vmatprep.subr.bf16.mxu0 %v28925_v28 }
 0x2f0   : > { %v3508_v29 = vmul.f32 %v25480_v58, %v3396_v5  ;;  %vm3367_vm12 = vcmp.ge.f32.partialorder %v3351_v16, 0.0  ;;  %v3383_v39 = vmul.f32 0.05, %v3351_v16 }
 0x2f1   : > { %3525 = vst [vmem:[%s23269_s22 + $0x5d] sm:$0xff] %v3509_v0  ;;  %vm3366_vm13 = vcmp.ge.f32.partialorder %v3350_v23, 0.0  ;;  %v3382_v10 = vmul.f32 0.05, %v3350_v23  ;;  %v17450_v11 = vpop.f32.mrb[28].mxu1  ;;  %18216 = vmatmul.mubr.f32.gmra.mrb[144].mxu0 %v5930_v30 }
 0x2f2   : > { %3524 = vst [vmem:[%s23269_s22 + $0x55] sm:$0xff] %v3508_v29  ;;  %v3399_v9 = vsel %vm3367_vm12, %v3351_v16, %v3383_v39  ;;  %v3353_v26 = vadd.f32 %v17450_v11, %v25478_v34  ;;  %v3298_v20 = vpop.f32.mrb[29].mxu1  ;;  %18218 = vmatprep.mubr.msk.f32.mxu0 %vm23118_vm1, %v25498_v50  ;;  %21345 = vmatpush3.bf16.msra.mxu0 %v21344_v14  ;;  %v5933_v14 = vld [vmem:[#allocation2 + $0x14c] sm:$0xff]  ;;  %v5934_v11 = vld [vmem:[#allocation2 + $0x154] sm:$0xff] }
 0x2f3   : > { %v3511_v58 = vmul.f32 %v25493_v42, %v3399_v9  ;;  %v3398_v33 = vsel %vm3366_vm13, %v3350_v23, %v3382_v10  ;;  %v3352_v51 = vadd.f32 %v25478_v34, %v3298_v20  ;;  %21346 = vmatprep.subr.bf16.mxu0 %v28925_v28  ;;  %v25596_v42 = vpop.permute.xlu0 %5341 }
 0x2f4   : > { %v3510_v36 = vmul.f32 %v25495_v59, %v3398_v33  ;;  %vm3369_vm14 = vcmp.ge.f32.partialorder %v3353_v26, 0.0  ;;  %v3385_v4 = vmul.f32 0.05, %v3353_v26  ;;  %v21350_v59 = vpack.c.bf16 %v14340_v19, %v14339_v55  ;;  %v9051_v19 = vld [vmem:[%s28916_s5 + $0x10] sm:$0xff] }
 0x2f5   : > { %3527 = vst [vmem:[%s23269_s22 + $0x6d] sm:$0xff] %v3511_v58  ;;  %vm3368_vm15 = vcmp.ge.f32.partialorder %v3352_v51, 0.0  ;;  %v3384_v2 = vmul.f32 0.05, %v3352_v51  ;;  %v17453_v18 = vpop.f32.mrb[30].mxu1  ;;  %18219 = vmatmul.mubr.f32.gmra.mrb[146].mxu0 %v5931_v57  ;;  %v25644_v58 = vpop.permute.xlu1 %5356 }
 0x2f6   : > { %3526 = vst [vmem:[%s23269_s22 + $0x65] sm:$0xff] %v3510_v36  ;;  %v3401_v35 = vsel %vm3369_vm14, %v3353_v26, %v3385_v4  ;;  %v3355_v22 = vadd.f32 %v17453_v18, %v25478_v34  ;;  %v3308_v54 = vpop.f32.mrb[31].mxu1  ;;  %18221 = vmatprep.mubr.msk.f32.mxu0 %vm23118_vm1, %v25498_v50  ;;  %21348 = vmatpush3.bf16.msra.mxu0 %v21347_v63  ;;  %v9052_v36 = vld [vmem:[%s28916_s5 + $0x18] sm:$0xff] }
 0x2f7   : > { %v3513_v62 = vmul.f32 %v25514_v52, %v3401_v35  ;;  %v3400_v47 = vsel %vm3368_vm15, %v3352_v51, %v3384_v2  ;;  %v3354_v49 = vadd.f32 %v25478_v34, %v3308_v54  ;;  %21349 = vmatprep.subr.bf16.mxu0 %v28925_v28  ;;  %v5932_v52 = vld [vmem:[#allocation2 + $0x144] sm:$0xff]  ;;  %v25623_v32 = vpop.permute.xlu0 %5351  ;;  %v5935_v35 = vld [vmem:[#allocation2 + $0x15c] sm:$0xff] }
 0x2f8   : > { %v3512_v61 = vmul.f32 %v25525_v46, %v3400_v47  ;;  %vm3371_vm0 = vcmp.ge.f32.partialorder %v3355_v22, 0.0  ;;  %v3387_v12 = vmul.f32 0.05, %v3355_v22  ;;  %v17936_v21 = vpop.f32.mrb[42].mxu0  ;;  %v21353_v46 = vpack.c.bf16 %v14342_v15, %v14341_v27 }
 0x2f9   : > { %3529 = vst [vmem:[%s23269_s22 + $0x7d] sm:$0xff] %v3513_v62  ;;  %vm3370_vm2 = vcmp.ge.f32.partialorder %v3354_v49, 0.0  ;;  %v3386_v8 = vmul.f32 0.05, %v3354_v49  ;;  %v5245_v56 = vadd.f32 %v17936_v21, %v25478_v34  ;;  %v5142_v44 = vpop.f32.mrb[43].mxu0  ;;  %18222 = vmatmul.mubr.f32.gmra.mrb[148].mxu0 %v5932_v52  ;;  %v9054_v21 = vld [vmem:[%s28916_s5 + $0x28] sm:$0xff] }
 0x2fa   : > { %3528 = vst [vmem:[%s23269_s22 + $0x75] sm:$0xff] %v3512_v61  ;;  %v3403_v40 = vsel %vm3371_vm0, %v3355_v22, %v3387_v12  ;;  %v25618_v7 = vpop.f32.mrb[32].mxu1  ;;  %v5244_v41 = vadd.f32 %v25478_v34, %v5142_v44  ;;  %18224 = vmatprep.mubr.msk.f32.mxu0 %vm23118_vm1, %v25498_v50  ;;  %21351 = vmatpush3.bf16.msra.mxu0 %v21350_v59  ;;  %v9053_v12 = vld [vmem:[%s28916_s5 + $0x20] sm:$0xff] }
 0x2fb   : > { %v3515_v25 = vmul.f32 %v25543_v37, %v3403_v40  ;;  %v3402_v45 = vsel %vm3370_vm2, %v3354_v49, %v3386_v8  ;;  %vm5261_vm3 = vcmp.ge.f32.partialorder %v5245_v56, 0.0  ;;  %v5277_v43 = vmul.f32 0.05, %v5245_v56  ;;  %v18276_v53 = vpop.f32.mrb[33].mxu1  ;;  %21352 = vmatprep.subr.bf16.mxu0 %v28925_v28  ;;  %v5362_v9 = vpop.permute.xlu0 %5361  ;;  %v5936_v40 = vld [vmem:[#allocation2 + $0x164] sm:$0xff] }
 0x2fc   : > { %v3514_v3 = vmul.f32 %v25546_v13, %v3402_v45  ;;  %vm5260_vm4 = vcmp.ge.f32.partialorder %v5244_v41, 0.0  ;;  %v5276_v16 = vmul.f32 0.05, %v5244_v41  ;;  %v17939_v24 = vpop.f32.mrb[44].mxu0  ;;  %v21751_v49 = vpack.c.bf16 %v9052_v36, %v9051_v19 }
 0x2fd   : > { %3531 = vst [vmem:[%s23269_s22 + $0x8d] sm:$0xff] %v3515_v25  ;;  %v5293_v0 = vsel %vm5261_vm3, %v5245_v56, %v5277_v43  ;;  %v5247_v37 = vadd.f32 %v17939_v24, %v25478_v34  ;;  %v5152_v5 = vpop.f32.mrb[45].mxu0  ;;  %18225 = vmatmul.mubr.f32.gmra.mrb[150].mxu0 %v5933_v14 }
 0x2fe   : > { %3530 = vst [vmem:[%s23269_s22 + $0x85] sm:$0xff] %v3514_v3  ;;  %v5405_v23 = vmul.f32 %v25567_v38, %v5293_v0  ;;  %v5292_v17 = vsel %vm5260_vm4, %v5244_v41, %v5276_v16  ;;  %v25634_v6 = vpop.f32.mrb[34].mxu1  ;;  %v5246_v13 = vadd.f32 %v25478_v34, %v5152_v5  ;;  %18227 = vmatprep.mubr.msk.f32.mxu0 %vm23118_vm1, %v25498_v50  ;;  %v5367_v41 = vpop.permute.xlu1 %5366 }
 0x2ff   : > { %21354 = vmatpush3.bf16.msra.mxu0 %v21353_v46  ;;  %v5404_v29 = vmul.f32 %v25578_v48, %v5292_v17  ;;  %vm5263_vm5 = vcmp.ge.f32.partialorder %v5247_v37, 0.0  ;;  %v5279_v39 = vmul.f32 0.05, %v5247_v37  ;;  %v18279_v30 = vpop.f32.mrb[35].mxu1  ;;  %v5372_v52 = vpop.permute.xlu0 %5371 }
 0x300   : > { %21379 = vmatprep.subr.bf16.mxu0 %v28925_v28  ;;  %5421 = vst [vmem:[%s23269_s22 + $0x9d] sm:$0xff] %v5405_v23  ;;  %vm5262_vm6 = vcmp.ge.f32.partialorder %v5246_v13, 0.0  ;;  %v5278_v38 = vmul.f32 0.05, %v5246_v13  ;;  %v17942_v10 = vpop.f32.mrb[46].mxu0 }
 0x301   : > { %5420 = vst [vmem:[%s23269_s22 + $0x95] sm:$0xff] %v5404_v29  ;;  %v5295_v26 = vsel %vm5263_vm5, %v5247_v37, %v5279_v39  ;;  %v5249_v20 = vadd.f32 %v17942_v10, %v25478_v34  ;;  %v5162_v63 = vpop.f32.mrb[47].mxu0  ;;  %18228 = vmatmul.mubr.f32.gmra.mrb[152].mxu0 %v5934_v11  ;;  %v9056_v37 = vld [vmem:[%s28916_s5 + $0x38] sm:$0xff] }
 0x302   : > { %v5407_v48 = vmul.f32 %v25596_v42, %v5295_v26  ;;  %v5294_v33 = vsel %vm5262_vm6, %v5246_v13, %v5278_v38  ;;  %v25647_v51 = vpop.f32.mrb[36].mxu1  ;;  %v5248_v55 = vadd.f32 %v25478_v34, %v5162_v63  ;;  %18230 = vmatprep.mubr.msk.f32.mxu0 %vm23118_vm1, %v25498_v50  ;;  %v5937_v13 = vld [vmem:[#allocation2 + $0x16c] sm:$0xff]  ;;  %v25703_v63 = vld [vmem:[%s28914_s3 + $0x380] sm:$0xff] }
 0x303   : > { %v5406_v4 = vmul.f32 %v25599_v60, %v5294_v33  ;;  %vm5265_vm7 = vcmp.ge.f32.partialorder %v5249_v20, 0.0  ;;  %v5281_v57 = vmul.f32 0.05, %v5249_v20  ;;  %v18282_v42 = vpop.f32.mrb[37].mxu1  ;;  %v5382_v10 = vpop.permute.xlu0 %5381 }
 0x304   : > { %5423 = vst [vmem:[%s23269_s22 + $0xad] sm:$0xff] %v5407_v48  ;;  %vm5264_vm8 = vcmp.ge.f32.partialorder %v5248_v55, 0.0  ;;  %v5280_v2 = vmul.f32 0.05, %v5248_v55  ;;  %v17945_v18 = vpop.f32.mrb[48].mxu0  ;;  %v5377_v48 = vpop.permute.xlu1 %5376 }
 0x305   : > { %5422 = vst [vmem:[%s23269_s22 + $0xa5] sm:$0xff] %v5406_v4  ;;  %v5297_v22 = vsel %vm5265_vm7, %v5249_v20, %v5281_v57  ;;  %v5251_v54 = vadd.f32 %v17945_v18, %v25478_v34  ;;  %v5172_v59 = vpop.f32.mrb[49].mxu0  ;;  %18231 = vmatmul.mubr.f32.gmra.mrb[154].mxu0 %v5935_v35  ;;  %v9065_v62 = vld [vmem:[%s23269_s22 + $0x81] sm:$0xff]  ;;  %v9066_v47 = vld [vmem:[%s23269_s22 + $0x89] sm:$0xff]  ;;  %v5938_v35 = vld [vmem:[#allocation2 + $0x174] sm:$0x3f] }
 0x306   : > { %v5409_v27 = vmul.f32 %v25623_v32, %v5297_v22  ;;  %v5296_v60 = vsel %vm5264_vm8, %v5248_v55, %v5280_v2  ;;  %v25665_v15 = vpop.f32.mrb[38].mxu1  ;;  %v5250_v61 = vadd.f32 %v25478_v34, %v5172_v59  ;;  %19133 = vmatprep.mubr.f32.mxu1 %v9065_v62  ;;  %18233 = vmatprep.mubr.msk.f32.mxu0 %vm23118_vm1, %v25498_v50  ;;  %v9057_v4 = vld [vmem:[%s28916_s5 + $0x40] sm:$0xff]  ;;  %v9058_v57 = vld [vmem:[%s28916_s5 + $0x48] sm:$0xff] }
 0x307   : > { %v5408_v8 = vmul.f32 %v25627_v31, %v5296_v60  ;;  %vm5267_vm9 = vcmp.ge.f32.partialorder %v5251_v54, 0.0  ;;  %v5283_v56 = vmul.f32 0.05, %v5251_v54  ;;  %v18285_v44 = vpop.f32.mrb[39].mxu1  ;;  %19134 = vmatmul.mubr.f32.vlgmr.msra.gmra.mrb[110].mxu1 %v9066_v47  ;;  %v21755_v31 = vpack.c.bf16 %v9054_v21, %v9053_v12 }
 0x308   : > { %5425 = vst [vmem:[%s23269_s22 + $0xbd] sm:$0xff] %v5409_v27  ;;  %vm5266_vm10 = vcmp.ge.f32.partialorder %v5250_v61, 0.0  ;;  %v5282_v46 = vmul.f32 0.05, %v5250_v61  ;;  %21750 = vmatpush3.bf16.msra.mxu1 %v25363_v1  ;;  %v17948_v32 = vpop.f32.mrb[50].mxu0  ;;  %v9067_v25 = vld [vmem:[%s23269_s22 + $0x91] sm:$0xff] }
 0x309   : > { %v9068_v45 = vld [vmem:[%s23269_s22 + $0x99] sm:$0xff]  ;;  %5424 = vst [vmem:[%s23269_s22 + $0xb5] sm:$0xff] %v5408_v8  ;;  %v5299_v43 = vsel %vm5267_vm9, %v5251_v54, %v5283_v56  ;;  %v5253_v53 = vadd.f32 %v17948_v32, %v25478_v34  ;;  %v5182_v3 = vpop.f32.mrb[51].mxu0  ;;  %18234 = vmatmul.mubr.f32.gmra.mrb[156].mxu0 %v5936_v40  ;;  %19136 = vmatprep.mubr.f32.mxu1 %v9067_v25  ;;  %v9055_v1 = vld [vmem:[%s28916_s5 + $0x30] sm:$0xff] }
 0x30a   : > { %v5411_v16 = vmul.f32 %v5362_v9, %v5299_v43  ;;  %v5298_v24 = vsel %vm5266_vm10, %v5250_v61, %v5282_v46  ;;  %v25683_v14 = vpop.f32.mrb[40].mxu1  ;;  %v5252_v0 = vadd.f32 %v25478_v34, %v5182_v3  ;;  %21752 = vmatprep.subr.bf16.mxu1 %v21751_v49  ;;  %18236 = vmatprep.mubr.msk.f32.mxu0 %vm23118_vm1, %v25498_v50  ;;  %v6270_v56 = vld [vmem:[#allocation2 + $0x116] sm:$0xff] }
 0x30b   : > { %v5410_v5 = vmul.f32 %v25644_v58, %v5298_v24  ;;  %vm5269_vm11 = vcmp.ge.f32.partialorder %v5253_v53, 0.0  ;;  %v5285_v23 = vmul.f32 0.05, %v5253_v53  ;;  %v18288_v17 = vpop.f32.mrb[41].mxu1  ;;  %19137 = vmatmul.mubr.f32.gmra.mrb[112].mxu1 %v9068_v45  ;;  %v21759_v20 = vpack.c.bf16 %v9056_v37, %v9055_v1  ;;  %v25708_v58 = vld [vmem:[%s28914_s3 + $0x388] sm:$0xff]  ;;  %v9059_v44 = vld [vmem:[%s28916_s5 + $0x50] sm:$0xff] }
 0x30c   : > { %5427 = vst [vmem:[%s23269_s22 + $0xcd] sm:$0xff] %v5411_v16  ;;  %vm5268_vm12 = vcmp.ge.f32.partialorder %v5252_v0, 0.0  ;;  %v5284_v29 = vmul.f32 0.05, %v5252_v0  ;;  %21754 = vmatpush3.bf16.msra.mxu1 %v21751_v49  ;;  %v17951_v39 = vpop.f32.mrb[52].mxu0  ;;  %v9069_v30 = vld [vmem:[%s23269_s22 + $0xa1] sm:$0xff]  ;;  %v21380_v47 = vpack.c.bf16 %v25708_v58, %v25703_v63  ;;  %v21763_v61 = vpack.c.bf16 %v9058_v57, %v9057_v4 }
 0x30d   : > { %v9070_v38 = vld [vmem:[%s23269_s22 + $0xa9] sm:$0xff]  ;;  %5426 = vst [vmem:[%s23269_s22 + $0xc5] sm:$0xff] %v5410_v5  ;;  %v5301_v11 = vsel %vm5269_vm11, %v5253_v53, %v5285_v23  ;;  %v5255_v9 = vadd.f32 %v17951_v39, %v25478_v34  ;;  %v5192_v26 = vpop.f32.mrb[53].mxu0  ;;  %18237 = vmatmul.mubr.f32.gmra.mrb[158].mxu0 %v5937_v13  ;;  %19139 = vmatprep.mubr.f32.mxu1 %v9069_v30  ;;  %v9060_v40 = vld [vmem:[%s28916_s5 + $0x58] sm:$0xff]  ;;  %v5387_v53 = vpop.permute.xlu1 %5386  ;;  %v9061_v30 = vld [vmem:[%s28916_s5 + $0x60] sm:$0xff] }
 0x30e   : > { %v5413_v33 = vmul.f32 %v5372_v52, %v5301_v11  ;;  %v5300_v55 = vsel %vm5268_vm12, %v5252_v0, %v5284_v29  ;;  %v25711_v19 = vpop.f32.mrb[42].mxu1  ;;  %v5254_v36 = vadd.f32 %v25478_v34, %v5192_v26  ;;  %21756 = vmatprep.subr.bf16.mxu1 %v21755_v31  ;;  %18239 = vmatprep.mubr.msk.f32.mxu0 %vm23118_vm1, %v25498_v50  ;;  %v14361_v45 = vld [vmem:[%s28914_s3 + $0x390] sm:$0xff]  ;;  %v14362_v43 = vld [vmem:[%s28914_s3 + $0x398] sm:$0xff]  ;;  %v14363_v26 = vld [vmem:[%s28914_s3 + $0x3a0] sm:$0xff] }
 0x30f   : > { %v5412_v42 = vmul.f32 %v5367_v41, %v5300_v55  ;;  %vm5271_vm13 = vcmp.ge.f32.partialorder %v5255_v9, 0.0  ;;  %v5287_v2 = vmul.f32 0.05, %v5255_v9  ;;  %v18291_v18 = vpop.f32.mrb[43].mxu1  ;;  %19140 = vmatmul.mubr.f32.gmra.mrb[114].mxu1 %v9070_v38  ;;  %v5392_v41 = vpop.permute.xlu0 %5391  ;;  %v21767_v5 = vpack.c.bf16 %v9060_v40, %v9059_v44  ;;  %v6271_v39 = vld [vmem:[#allocation2 + $0x11e] sm:$0xff]  ;;  %v9062_v38 = vld [vmem:[%s28916_s5 + $0x68] sm:$0xff] }
 0x310   : > { %5429 = vst [vmem:[%s23269_s22 + $0xdd] sm:$0xff] %v5413_v33  ;;  %vm5270_vm14 = vcmp.ge.f32.partialorder %v5254_v36, 0.0  ;;  %v5286_v22 = vmul.f32 0.05, %v5254_v36  ;;  %21758 = vmatpush3.bf16.msra.mxu1 %v21755_v31  ;;  %v17954_v54 = vpop.f32.mrb[54].mxu0  ;;  %v9071_v59 = vld [vmem:[%s23269_s22 + $0xb1] sm:$0xff] }
 0x311   : > { %v9072_v62 = vld [vmem:[%s23269_s22 + $0xb9] sm:$0xff]  ;;  %5428 = vst [vmem:[%s23269_s22 + $0xd5] sm:$0xff] %v5412_v42  ;;  %v5303_v49 = vsel %vm5271_vm13, %v5255_v9, %v5287_v2  ;;  %v5257_v27 = vadd.f32 %v17954_v54, %v25478_v34  ;;  %v5202_v60 = vpop.f32.mrb[55].mxu0  ;;  %18240 = vmatmul.mubr.f32.gmra.mrb[160].mxu0 %v5938_v35  ;;  %19142 = vmatprep.mubr.f32.mxu1 %v9071_v59  ;;  %v5397_v57 = vpop.permute.xlu1 %5396  ;;  %v6272_v35 = vld [vmem:[#allocation2 + $0x126] sm:$0xff] }
 0x312   : > { %v5415_v12 = vmul.f32 %v5382_v10, %v5303_v49  ;;  %v5302_v21 = vsel %vm5270_vm14, %v5254_v36, %v5286_v22  ;;  %v25729_v52 = vpop.f32.mrb[44].mxu1  ;;  %v5256_v8 = vadd.f32 %v25478_v34, %v5202_v60  ;;  %21760 = vmatprep.subr.bf16.mxu1 %v21759_v20  ;;  %18345 = vmatprep.mubr.msk.f32.mxu0 %vm23118_vm1, %v25498_v50  ;;  %v9064_v49 = vld [vmem:[%s28916_s5 + $0x78] sm:$0xff]  ;;  %v14537_v40 = vld [vmem:[%s28916_s5 + $0x100] sm:$0xff] }
 0x313   : > { %v5414_v46 = vmul.f32 %v5377_v48, %v5302_v21  ;;  %vm5273_vm15 = vcmp.ge.f32.partialorder %v5257_v27, 0.0  ;;  %v5289_v32 = vmul.f32 0.05, %v5257_v27  ;;  %v18294_v25 = vpop.f32.mrb[45].mxu1  ;;  %19143 = vmatmul.mubr.f32.gmra.mrb[116].mxu1 %v9072_v62  ;;  %v5402_v55 = vpop.permute.xlu0 %5401  ;;  %v21771_v22 = vpack.c.bf16 %v9062_v38, %v9061_v30  ;;  %v14366_v21 = vld [vmem:[%s28914_s3 + $0x3b8] sm:$0xff]  ;;  %v14369_v30 = vld [vmem:[%s28914_s3 + $0x3d0] sm:$0xff] }
 0x314   : > { %5431 = vst [vmem:[%s23269_s22 + $0xed] sm:$0xff] %v5415_v12  ;;  %vm5272_vm0 = vcmp.ge.f32.partialorder %v5256_v8, 0.0  ;;  %v5288_v3 = vmul.f32 0.05, %v5256_v8  ;;  %21762 = vmatpush3.bf16.msra.mxu1 %v21759_v20  ;;  %v17957_v31 = vpop.f32.mrb[56].mxu0  ;;  %v9073_v16 = vld [vmem:[%s23269_s22 + $0xc1] sm:$0xff] }
 0x315   : > { %v9074_v24 = vld [vmem:[%s23269_s22 + $0xc9] sm:$0xff]  ;;  %5430 = vst [vmem:[%s23269_s22 + $0xe5] sm:$0xff] %v5414_v46  ;;  %v5305_v0 = vsel %vm5273_vm15, %v5257_v27, %v5289_v32  ;;  %v5259_v1 = vadd.f32 %v17957_v31, %v25478_v34  ;;  %v5212_v37 = vpop.f32.mrb[57].mxu0  ;;  %18346 = vmatmul.mubr.f32.vlgmr.msra.gmra.mrb[162].mxu0 %v6270_v56  ;;  %19145 = vmatprep.mubr.f32.mxu1 %v9073_v16  ;;  %v14370_v38 = vld [vmem:[%s28914_s3 + $0x3d8] sm:$0xff] }
 0x316   : > { %v5417_v23 = vmul.f32 %v5392_v41, %v5305_v0  ;;  %v5304_v17 = vsel %vm5272_vm0, %v5256_v8, %v5288_v3  ;;  %v25751_v13 = vpop.f32.mrb[46].mxu1  ;;  %v5258_v29 = vadd.f32 %v25478_v34, %v5212_v37  ;;  %21381 = vmatpush3.bf16.msra.mxu0 %v21380_v47  ;;  %21764 = vmatprep.subr.bf16.mxu1 %v21763_v61  ;;  %v14364_v20 = vld [vmem:[%s28914_s3 + $0x3a8] sm:$0xff]  ;;  %v9063_v47 = vld [vmem:[%s28916_s5 + $0x70] sm:$0xff]  ;;  %v14540_v37 = vld [vmem:[%s28916_s5 + $0x118] sm:$0xff] }
 0x317   : > { %v5416_v10 = vmul.f32 %v5387_v53, %v5304_v17  ;;  %vm5275_vm2 = vcmp.ge.f32.partialorder %v5259_v1, 0.0  ;;  %v5291_v11 = vmul.f32 0.05, %v5259_v1  ;;  %v18297_v9 = vpop.f32.mrb[47].mxu1  ;;  %19146 = vmatmul.mubr.f32.gmra.mrb[118].mxu1 %v9074_v24  ;;  %18348 = vmatprep.mubr.msk.f32.mxu0 %vm23118_vm1, %v25498_v50  ;;  %v21383_v34 = vpack.c.bf16 %v14362_v43, %v14361_v45  ;;  %v14365_v27 = vld [vmem:[%s28914_s3 + $0x3b0] sm:$0xff]  ;;  %v14538_v41 = vld [vmem:[%s28916_s5 + $0x108] sm:$0xff] }
 0x318   : > { %5433 = vst [vmem:[%s23269_s22 + $0xfd] sm:$0xff] %v5417_v23  ;;  %vm5274_vm3 = vcmp.ge.f32.partialorder %v5258_v29, 0.0  ;;  %v5290_v63 = vmul.f32 0.05, %v5258_v29  ;;  %21766 = vmatpush3.bf16.msra.mxu1 %v21763_v61  ;;  %v25769_v58 = vpop.f32.mrb[58].mxu0  ;;  %v9075_v48 = vld [vmem:[%s23269_s22 + $0xd1] sm:$0xff]  ;;  %21382 = vmatprep.subr.bf16.mxu0 %v28925_v28  ;;  %v21386_v62 = vpack.c.bf16 %v14364_v20, %v14363_v26  ;;  %v21775_v44 = vpack.c.bf16 %v9064_v49, %v9063_v47 }
 0x319   : > { %v9076_v33 = vld [vmem:[%s23269_s22 + $0xd9] sm:$0xff]  ;;  %5432 = vst [vmem:[%s23269_s22 + $0xf5] sm:$0xff] %v5416_v10  ;;  %v5307_v36 = vsel %vm5275_vm2, %v5259_v1, %v5291_v11  ;;  %v17992_v4 = vpop.f32.mrb[59].mxu0  ;;  %18349 = vmatmul.mubr.f32.gmra.mrb[164].mxu0 %v6271_v39  ;;  %19148 = vmatprep.mubr.f32.mxu1 %v9075_v48  ;;  %v6273_v32 = vld [vmem:[#allocation2 + $0x12e] sm:$0xff]  ;;  %v21389_v25 = vpack.c.bf16 %v14366_v21, %v14365_v27 }
 0x31a   : > { %v5419_v42 = vmul.f32 %v5402_v55, %v5307_v36  ;;  %v5306_v2 = vsel %vm5274_vm3, %v5258_v29, %v5290_v63  ;;  %v25776_v18 = vpop.f32.mrb[48].mxu1  ;;  %21768 = vmatprep.subr.bf16.mxu1 %v21767_v5  ;;  %18351 = vmatprep.mubr.msk.f32.mxu0 %vm23118_vm1, %v25498_v50  ;;  %v14367_v45 = vld [vmem:[%s28914_s3 + $0x3c0] sm:$0xff]  ;;  %v14368_v31 = vld [vmem:[%s28914_s3 + $0x3c8] sm:$0xff]  ;;  %v21779_v24 = vpack.c.bf16 %v14538_v41, %v14537_v40  ;;  %v14539_v1 = vld [vmem:[%s28916_s5 + $0x110] sm:$0xff] }
 0x31b   : > { %v5418_v54 = vmul.f32 %v5397_v57, %v5306_v2  ;;  %v18300_v59 = vpop.f32.mrb[49].mxu1  ;;  %19149 = vmatmul.mubr.f32.gmra.mrb[120].mxu1 %v9076_v33  ;;  %21384 = vmatpush3.bf16.msra.mxu0 %v21383_v34  ;;  %v9033_v23 = vld [vmem:[%s23269_s22 + $0x80] sm:$0xff]  ;;  %v21392_v17 = vpack.c.bf16 %v14368_v31, %v14367_v45  ;;  %v6274_v39 = vld [vmem:[#allocation2 + $0x136] sm:$0xff]  ;;  %v21783_v11 = vpack.c.bf16 %v14540_v37, %v14539_v1  ;;  %v9034_v34 = vld [vmem:[%s23269_s22 + $0x88] sm:$0xff] }
 0x31c   : > { %5435 = vst [vmem:[%s23269_s22 + $0x10d] sm:$0xff] %v5419_v42  ;;  %21770 = vmatpush3.bf16.msra.mxu1 %v21767_v5  ;;  %v25790_v60 = vpop.f32.mrb[60].mxu0  ;;  %v9077_v61 = vld [vmem:[%s23269_s22 + $0xe1] sm:$0xff]  ;;  %v9078_v12 = vld [vmem:[%s23269_s22 + $0xe9] sm:$0xff]  ;;  %21385 = vmatprep.subr.bf16.mxu0 %v28925_v28  ;;  %v21395_v33 = vpack.c.bf16 %v14370_v38, %v14369_v30  ;;  %v14544_v59 = vld [vmem:[%s28916_s5 + $0x138] sm:$0xff] }
 0x31d   : > { %5434 = vst [vmem:[%s23269_s22 + $0x105] sm:$0xff] %v5418_v54  ;;  %v17995_v8 = vpop.f32.mrb[61].mxu0  ;;  %18352 = vmatmul.mubr.f32.gmra.mrb[166].mxu0 %v6272_v35  ;;  %19151 = vmatprep.mubr.f32.mxu1 %v9077_v61  ;;  %v14541_v26 = vld [vmem:[%s28916_s5 + $0x120] sm:$0xff]  ;;  %v14542_v20 = vld [vmem:[%s28916_s5 + $0x128] sm:$0xff]  ;;  %v9035_v48 = vld [vmem:[%s23269_s22 + $0x90] sm:$0xff] }
 0x31e   : > { %v25799_v56 = vpop.f32.mrb[50].mxu1  ;;  %21772 = vmatprep.subr.bf16.mxu1 %v21771_v22  ;;  %18354 = vmatprep.mubr.msk.f32.mxu0 %vm23118_vm1, %v25498_v50  ;;  %v6275_v36 = vld [vmem:[#allocation2 + $0x13e] sm:$0xff]  ;;  %v14372_v57 = vld [vmem:[%s28914_s3 + $0x3e8] sm:$0xff]  ;;  %v21787_v2 = vpack.c.bf16 %v14542_v20, %v14541_v26  ;;  %v14543_v54 = vld [vmem:[%s28916_s5 + $0x130] sm:$0xff] }
 0x31f   : > { %v18303_v46 = vpop.f32.mrb[51].mxu1  ;;  %19152 = vmatmul.mubr.f32.gmra.mrb[122].mxu1 %v9078_v12  ;;  %21387 = vmatpush3.bf16.msra.mxu0 %v21386_v62  ;;  %v14371_v4 = vld [vmem:[%s28914_s3 + $0x3e0] sm:$0xff]  ;;  %v14373_v12 = vld [vmem:[%s28914_s3 + $0x3f0] sm:$0xff]  ;;  %v14374_v21 = vld [vmem:[%s28914_s3 + $0x3f8] sm:$0xff] }
 0x320   : > { %21774 = vmatpush3.bf16.msra.mxu1 %v21771_v22  ;;  %v25812_v43 = vpop.f32.mrb[62].mxu0  ;;  %v9079_v53 = vld [vmem:[%s23269_s22 + $0xf1] sm:$0xff]  ;;  %v9080_v3 = vld [vmem:[%s23269_s22 + $0xf9] sm:$0xff]  ;;  %21388 = vmatprep.subr.bf16.mxu0 %v28925_v28  ;;  %v21398_v49 = vpack.c.bf16 %v14372_v57, %v14371_v4  ;;  %v6276_v61 = vld [vmem:[#allocation2 + $0x146] sm:$0xff] }
 0x321   : > { %v17998_v16 = vpop.f32.mrb[63].mxu0  ;;  %18355 = vmatmul.mubr.f32.gmra.mrb[168].mxu0 %v6273_v32  ;;  %19154 = vmatprep.mubr.f32.mxu1 %v9079_v53  ;;  %v9036_v22 = vld [vmem:[%s23269_s22 + $0x98] sm:$0xff]  ;;  %v9037_v47 = vld [vmem:[%s23269_s22 + $0xa0] sm:$0xff]  ;;  %v9038_v41 = vld [vmem:[%s23269_s22 + $0xa8] sm:$0xff]  ;;  %v21401_v53 = vpack.c.bf16 %v14374_v21, %v14373_v12 }
 0x322   : > { %v25820_v0 = vpop.f32.mrb[52].mxu1  ;;  %21776 = vmatprep.subr.bf16.mxu1 %v21775_v44  ;;  %18357 = vmatprep.mubr.msk.f32.mxu0 %vm23118_vm1, %v25498_v50  ;;  %v14545_v46 = vld [vmem:[%s28916_s5 + $0x140] sm:$0xff]  ;;  %v14546_v32 = vld [vmem:[%s28916_s5 + $0x148] sm:$0xff]  ;;  %v9039_v45 = vld [vmem:[%s23269_s22 + $0xb0] sm:$0xff] }
 0x323   : > { %v18306_v5 = vpop.f32.mrb[53].mxu1  ;;  %19155 = vmatmul.mubr.f32.gmra.mrb[124].mxu1 %v9080_v3  ;;  %21390 = vmatpush3.bf16.msra.mxu0 %v21389_v25  ;;  %v14393_v3 = vld [vmem:[%s28916_s5 + $0x88] sm:$0xff]  ;;  %v21795_v1 = vpack.c.bf16 %v14546_v32, %v14545_v46  ;;  %v9043_v57 = vld [vmem:[%s23269_s22 + $0xd0] sm:$0xff]  ;;  %v9045_v12 = vld [vmem:[%s23269_s22 + $0xe0] sm:$0xff] }
 0x324   : > { %21778 = vmatpush3.bf16.msra.mxu1 %v21775_v44  ;;  %19189 = vmatprep.mubr.f32.mxu1 %v9033_v23  ;;  %v25831_v29 = vpop.f32.mrb[64].mxu0  ;;  %v21791_v44 = vpack.c.bf16 %v14544_v59, %v14543_v54  ;;  %v6277_v16 = vld [vmem:[#allocation2 + $0x14e] sm:$0xff]  ;;  %v9040_v5 = vld [vmem:[%s23269_s22 + $0xb8] sm:$0xff]  ;;  %v25905_v23 = vld [vmem:[#allocation2] sm:$0xff] }
 0x325   : > { %v18001_v10 = vpop.f32.mrb[65].mxu0  ;;  %18358 = vmatmul.mubr.f32.gmra.mrb[170].mxu0 %v6274_v39  ;;  %21780 = vmatprep.subr.bf16.mxu1 %v21779_v24  ;;  %v14548_v39 = vld [vmem:[%s28916_s5 + $0x158] sm:$0xff]  ;;  %v9046_v32 = vld [vmem:[%s23269_s22 + $0xe8] sm:$0xff] }
 0x326   : > { %v25839_v9 = vpop.f32.mrb[54].mxu1  ;;  %18360 = vmatprep.mubr.msk.f32.mxu0 %vm23118_vm1, %v25498_v50  ;;  %21391 = vmatprep.subr.bf16.mxu0 %v28925_v28  ;;  %v9041_v10 = vld [vmem:[%s23269_s22 + $0xc0] sm:$0xff] }
 0x327   : > { %v18309_v63 = vpop.f32.mrb[55].mxu1  ;;  %19190 = vmatmul.mubr.f32.vlgmr.msra.gmra.mrb[110].mxu1 %v9034_v34  ;;  %21393 = vmatpush3.bf16.msra.mxu0 %v21392_v17  ;;  %v14547_v17 = vld [vmem:[%s28916_s5 + $0x150] sm:$0xff] }
 0x328   : > { %19192 = vmatprep.mubr.f32.mxu1 %v9035_v48  ;;  %21782 = vmatpush3.bf16.msra.mxu1 %v21779_v24  ;;  %v25852_v55 = vpop.f32.mrb[66].mxu0  ;;  %v6278_v34 = vld [vmem:[#allocation2 + $0x156] sm:$0xff]  ;;  %v21799_v20 = vpack.c.bf16 %v14548_v39, %v14547_v17  ;;  %v9042_v48 = vld [vmem:[%s23269_s22 + $0xc8] sm:$0xff] }
 0x329   : > { %v18004_v42 = vpop.f32.mrb[67].mxu0  ;;  %18361 = vmatmul.mubr.f32.gmra.mrb[172].mxu0 %v6275_v36  ;;  %21784 = vmatprep.subr.bf16.mxu1 %v21783_v11  ;;  %v14550_v36 = vld [vmem:[%s28916_s5 + $0x168] sm:$0xff]  ;;  %v9048_v17 = vld [vmem:[%s23269_s22 + $0xf8] sm:$0xff]  ;;  %v14555_v39 = vld [vmem:[%s28916_s5 + $0x190] sm:$0xff] }
 0x32a   : > { %v25860_v35 = vpop.f32.mrb[56].mxu1  ;;  %18363 = vmatprep.mubr.msk.f32.mxu0 %vm23118_vm1, %v25498_v50  ;;  %21394 = vmatprep.subr.bf16.mxu0 %v28925_v28 }
 0x32b   : > { %v18312_v62 = vpop.f32.mrb[57].mxu1  ;;  %19193 = vmatmul.mubr.f32.gmra.mrb[112].mxu1 %v9036_v22  ;;  %21396 = vmatpush3.bf16.msra.mxu0 %v21395_v33  ;;  %v14549_v33 = vld [vmem:[%s28916_s5 + $0x160] sm:$0xff] }
 0x32c   : > { %19195 = vmatprep.mubr.f32.mxu1 %v9037_v47  ;;  %21786 = vmatpush3.bf16.msra.mxu1 %v21783_v11  ;;  %v25873_v27 = vpop.f32.mrb[68].mxu0  ;;  %v21803_v54 = vpack.c.bf16 %v14550_v36, %v14549_v33  ;;  %v9044_v62 = vld [vmem:[%s23269_s22 + $0xd8] sm:$0xff]  ;;  %v14551_v47 = vld [vmem:[%s28916_s5 + $0x170] sm:$0xff] }
 0x32d   : > { %v18007_v8 = vpop.f32.mrb[69].mxu0  ;;  %18364 = vmatmul.mubr.f32.gmra.mrb[174].mxu0 %v6276_v61  ;;  %21788 = vmatprep.subr.bf16.mxu1 %v21787_v2  ;;  %v14395_v33 = vld [vmem:[%s28916_s5 + $0x98] sm:$0xff] }
 0x32e   : > { %v25881_v40 = vpop.f32.mrb[58].mxu1  ;;  %18366 = vmatprep.mubr.msk.f32.mxu0 %vm23118_vm1, %v25498_v50  ;;  %21397 = vmatprep.subr.bf16.mxu0 %v28925_v28  ;;  %v14392_v50 = vld [vmem:[%s28916_s5 + $0x80] sm:$0xff] }
 0x32f   : > { %v18418_v25 = vpop.f32.mrb[59].mxu1  ;;  %19196 = vmatmul.mubr.f32.gmra.mrb[114].mxu1 %v9038_v41  ;;  %21399 = vmatpush3.bf16.msra.mxu0 %v21398_v49  ;;  %v25916_v30 = vpack.c.bf16 %v14393_v3, %v14392_v50  ;;  %v14552_v49 = vld [vmem:[%s28916_s5 + $0x178] sm:$0xff]  ;;  %v6280_v8 = vld [vmem:[#allocation2 + $0x166] sm:$0xff]  ;;  %v9047_v50 = vld [vmem:[%s23269_s22 + $0xf0] sm:$0xff] }
 0x330   : > { %19198 = vmatprep.mubr.f32.mxu1 %v9039_v45  ;;  %21790 = vmatpush3.bf16.msra.mxu1 %v21787_v2  ;;  %v25900_v31 = vpop.f32.mrb[70].mxu0  ;;  %v6279_v2 = vld [vmem:[#allocation2 + $0x15e] sm:$0xff]  ;;  %v21807_v41 = vpack.c.bf16 %v14552_v49, %v14551_v47  ;;  %v14554_v45 = vld [vmem:[%s28916_s5 + $0x188] sm:$0xff]  ;;  %v9389_v47 = vld [vmem:[%s23269_s22 + $0x92] sm:$0xff] }
 0x331   : > { %v18010_v24 = vpop.f32.mrb[71].mxu0  ;;  %18367 = vmatmul.mubr.f32.gmra.mrb[176].mxu0 %v6277_v16  ;;  %21792 = vmatprep.subr.bf16.mxu1 %v21791_v44  ;;  %v14553_v25 = vld [vmem:[%s28916_s5 + $0x180] sm:$0xff]  ;;  %v6281_v16 = vld [vmem:[#allocation2 + $0x16e] sm:$0xff] }
 0x332   : > { %v25902_v37 = vpop.f32.mrb[60].mxu1  ;;  %18369 = vmatprep.mubr.msk.f32.mxu0 %vm23118_vm1, %v25905_v23  ;;  %21400 = vmatprep.subr.bf16.mxu0 %v28925_v28 }
 0x333   : > { %v18421_v38 = vpop.f32.mrb[61].mxu1  ;;  %19199 = vmatmul.mubr.f32.gmra.mrb[116].mxu1 %v9040_v5  ;;  %21402 = vmatpush3.bf16.msra.mxu0 %v21401_v53 }
 0x334   : > { %19201 = vmatprep.mubr.f32.mxu1 %v9041_v10  ;;  %21794 = vmatpush3.bf16.msra.mxu1 %v21791_v44  ;;  %v25919_v11 = vpop.f32.mrb[72].mxu0  ;;  %v14556_v38 = vld [vmem:[%s28916_s5 + $0x198] sm:$0xff] }
 0x335   : > { %v18013_v26 = vpop.f32.mrb[73].mxu0  ;;  %18370 = vmatmul.mubr.f32.gmra.mrb[178].mxu0 %v6278_v34  ;;  %21796 = vmatprep.subr.bf16.mxu1 %v21795_v1  ;;  %v9387_v34 = vld [vmem:[%s23269_s22 + $0x82] sm:$0xff] }
 0x336   : > { %v25921_v63 = vpop.f32.mrb[62].mxu1  ;;  %18372 = vmatprep.mubr.msk.f32.mxu0 %vm23118_vm1, %v25905_v23  ;;  %21428 = vmatprep.subr.bf16.mxu0 %v25916_v30 }
 0x337   : > { %v18424_v4 = vpop.f32.mrb[63].mxu1  ;;  %19202 = vmatmul.mubr.f32.gmra.mrb[118].mxu1 %v9042_v48  ;;  %v14394_v48 = vld [vmem:[%s28916_s5 + $0x90] sm:$0xff] }
 0x338   : > { %19204 = vmatprep.mubr.f32.mxu1 %v9043_v57  ;;  %21798 = vmatpush3.bf16.msra.mxu1 %v21795_v1  ;;  %v25934_v42 = vpop.f32.mrb[74].mxu0  ;;  %v21811_v1 = vpack.c.bf16 %v14554_v45, %v14553_v25  ;;  %v21815_v4 = vpack.c.bf16 %v14556_v38, %v14555_v39  ;;  %v21431_v49 = vpack.c.bf16 %v14395_v33, %v14394_v48  ;;  %v9390_v45 = vld [vmem:[%s23269_s22 + $0x9a] sm:$0xff]  ;;  %v14398_v39 = vld [vmem:[%s28916_s5 + $0xb0] sm:$0xff] }
 0x339   : > { %v18016_v22 = vpop.f32.mrb[75].mxu0  ;;  %18373 = vmatmul.mubr.f32.gmra.mrb[180].mxu0 %v6279_v2  ;;  %21800 = vmatprep.subr.bf16.mxu1 %v21799_v20  ;;  %v9388_v2 = vld [vmem:[%s23269_s22 + $0x8a] sm:$0xff]  ;;  %v14399_v38 = vld [vmem:[%s28916_s5 + $0xb8] sm:$0xff] }
 0x33a   : > { %v25936_v59 = vpop.f32.mrb[64].mxu1  ;;  %18375 = vmatprep.mubr.msk.f32.mxu0 %vm23118_vm1, %v25905_v23  ;;  %v14557_v22 = vld [vmem:[%s28916_s5 + $0x1a0] sm:$0xff]  ;;  %v9392_v33 = vld [vmem:[%s23269_s22 + $0xaa] sm:$0xff] }
 0x33b   : > { %v18427_v61 = vpop.f32.mrb[65].mxu1  ;;  %19205 = vmatmul.mubr.f32.gmra.mrb[120].mxu1 %v9044_v62 }
 0x33c   : > { %19207 = vmatprep.mubr.f32.mxu1 %v9045_v12  ;;  %21802 = vmatpush3.bf16.msra.mxu1 %v21799_v20  ;;  %v25948_v21 = vpop.f32.mrb[76].mxu0  ;;  %v6282_v20 = vld [vmem:[#allocation2 + $0x176] sm:$0x3f]  ;;  %v6614_v12 = vld [vmem:[#allocation2 + $0x129] sm:$0xff] }
 0x33d   : > { %v18019_v44 = vpop.f32.mrb[77].mxu0  ;;  %18376 = vmatmul.mubr.f32.gmra.mrb[182].mxu0 %v6280_v8  ;;  %21804 = vmatprep.subr.bf16.mxu1 %v21803_v54  ;;  %v14396_v8 = vld [vmem:[%s28916_s5 + $0xa0] sm:$0xff] }
 0x33e   : > { %v25950_v46 = vpop.f32.mrb[66].mxu1  ;;  %18378 = vmatprep.mubr.msk.f32.mxu0 %vm23118_vm1, %v25905_v23  ;;  %v14397_v44 = vld [vmem:[%s28916_s5 + $0xa8] sm:$0xff] }
 0x33f   : > { %v18430_v53 = vpop.f32.mrb[67].mxu1  ;;  %19208 = vmatmul.mubr.f32.gmra.mrb[122].mxu1 %v9046_v32 }
 0x340   : > { %19210 = vmatprep.mubr.f32.mxu1 %v9047_v50  ;;  %21806 = vmatpush3.bf16.msra.mxu1 %v21803_v54  ;;  %v25962_v3 = vpop.f32.mrb[78].mxu0  ;;  %v14558_v54 = vld [vmem:[%s28916_s5 + $0x1a8] sm:$0xff]  ;;  %v14559_v53 = vld [vmem:[%s28916_s5 + $0x1b0] sm:$0xff]  ;;  %v14560_v50 = vld [vmem:[%s28916_s5 + $0x1b8] sm:$0xff] }
 0x341   : > { %v18022_v24 = vpop.f32.mrb[79].mxu0  ;;  %18379 = vmatmul.mubr.f32.gmra.mrb[184].mxu0 %v6281_v16  ;;  %21808 = vmatprep.subr.bf16.mxu1 %v21807_v41  ;;  %v21819_v32 = vpack.c.bf16 %v14558_v54, %v14557_v22  ;;  %v21439_v22 = vpack.c.bf16 %v14399_v38, %v14398_v39 }
 0x342   : > { %v25964_v5 = vpop.f32.mrb[68].mxu1  ;;  %18381 = vmatprep.mubr.msk.f32.mxu0 %vm23118_vm1, %v25905_v23  ;;  %v9391_v24 = vld [vmem:[%s23269_s22 + $0xa2] sm:$0xff] }
 0x343   : > { %v18433_v10 = vpop.f32.mrb[69].mxu1  ;;  %19211 = vmatmul.mubr.f32.gmra.mrb[124].mxu1 %v9048_v17  ;;  %v6615_v17 = vld [vmem:[#allocation2 + $0x131] sm:$0xff] }
 0x344   : > { %21810 = vmatpush3.bf16.msra.mxu1 %v21807_v41  ;;  %19245 = vmatprep.mubr.f32.mxu1 %v9387_v34  ;;  %v25976_v26 = vpop.f32.mrb[80].mxu0  ;;  %v21823_v34 = vpack.c.bf16 %v14560_v50, %v14559_v53  ;;  %v14564_v53 = vld [vmem:[%s28916_s5 + $0x1d8] sm:$0xff] }
 0x345   : > { %v18025_v36 = vpop.f32.mrb[81].mxu0  ;;  %18382 = vmatmul.mubr.f32.gmra.mrb[186].mxu0 %v6282_v20  ;;  %21812 = vmatprep.subr.bf16.mxu1 %v21811_v1 }
 0x346   : > { %v25984_v57 = vpop.f32.mrb[70].mxu1  ;;  %18487 = vmatprep.mubr.msk.f32.mxu0 %vm23118_vm1, %v25905_v23  ;;  %v14561_v36 = vld [vmem:[%s28916_s5 + $0x1c0] sm:$0xff] }
 0x347   : > { %v18436_v62 = vpop.f32.mrb[71].mxu1  ;;  %19246 = vmatmul.mubr.f32.vlgmr.msra.gmra.mrb[110].mxu1 %v9388_v2 }
 0x348   : > { %19248 = vmatprep.mubr.f32.mxu1 %v9389_v47  ;;  %21814 = vmatpush3.bf16.msra.mxu1 %v21811_v1  ;;  %v25996_v61 = vpop.f32.mrb[82].mxu0  ;;  %v21435_v1 = vpack.c.bf16 %v14397_v44, %v14396_v8  ;;  %v6616_v62 = vld [vmem:[#allocation2 + $0x139] sm:$0xff] }
 0x349   : > { %v18028_v41 = vpop.f32.mrb[83].mxu0  ;;  %18488 = vmatmul.mubr.f32.vlgmr.msra.gmra.mrb[188].mxu0 %v6614_v12  ;;  %21816 = vmatprep.subr.bf16.mxu1 %v21815_v4  ;;  %v14400_v47 = vld [vmem:[%s28916_s5 + $0xc0] sm:$0xff] }
 0x34a   : > { %v26004_v25 = vpop.f32.mrb[72].mxu1  ;;  %21430 = vmatpush3.bf16.msra.mxu0 %v25916_v30  ;;  %18490 = vmatprep.mubr.msk.f32.mxu0 %vm23118_vm1, %v25905_v23 }
 0x34b   : > { %v18439_v16 = vpop.f32.mrb[73].mxu1  ;;  %19249 = vmatmul.mubr.f32.gmra.mrb[112].mxu1 %v9390_v45  ;;  %21432 = vmatprep.subr.bf16.mxu0 %v21431_v49  ;;  %v14563_v45 = vld [vmem:[%s28916_s5 + $0x1d0] sm:$0xff] }
 0x34c   : > { %19251 = vmatprep.mubr.f32.mxu1 %v9391_v24  ;;  %21818 = vmatpush3.bf16.msra.mxu1 %v21815_v4  ;;  %v5690_v30 = vpop.f32.mrb[84].mxu0  ;;  %v14562_v4 = vld [vmem:[%s28916_s5 + $0x1c8] sm:$0xff]  ;;  %v21831_v38 = vpack.c.bf16 %v14564_v53, %v14563_v45  ;;  %v9398_v45 = vld [vmem:[%s23269_s22 + $0xda] sm:$0xff]  ;;  %v14567_v53 = vld [vmem:[%s28916_s5 + $0x1f0] sm:$0xff] }
 0x34d   : > { %v18063_v10 = vpop.f32.mrb[85].mxu0  ;;  %18491 = vmatmul.mubr.f32.gmra.mrb[190].mxu0 %v6615_v17  ;;  %21820 = vmatprep.subr.bf16.mxu1 %v21819_v32  ;;  %v26024_v20 = vadd.f32 %v5690_v30, %v25769_v58  ;;  %v9393_v58 = vld [vmem:[%s23269_s22 + $0xb2] sm:$0xff]  ;;  %v21827_v8 = vpack.c.bf16 %v14562_v4, %v14561_v36  ;;  %v6617_v30 = vld [vmem:[#allocation2 + $0x141] sm:$0xff] }
 0x34e   : > { %v26026_v48 = vpop.f32.mrb[74].mxu1  ;;  %18493 = vmatprep.mubr.msk.f32.mxu0 %vm23118_vm1, %v25905_v23  ;;  %21434 = vmatpush3.bf16.msra.mxu0 %v21431_v49  ;;  %v14401_v49 = vld [vmem:[%s28916_s5 + $0xc8] sm:$0xff]  ;;  %v14403_v17 = vld [vmem:[%s28916_s5 + $0xd8] sm:$0xff]  ;;  %v14565_v36 = vld [vmem:[%s28916_s5 + $0x1e0] sm:$0xff] }
 0x34f   : > { %v18442_v2 = vpop.f32.mrb[75].mxu1  ;;  %19252 = vmatmul.mubr.f32.gmra.mrb[114].mxu1 %v9392_v33  ;;  %21436 = vmatprep.subr.bf16.mxu0 %v21435_v1  ;;  %v21443_v16 = vpack.c.bf16 %v14401_v49, %v14400_v47  ;;  %v14566_v4 = vld [vmem:[%s28916_s5 + $0x1e8] sm:$0xff] }
 0x350   : > { %19254 = vmatprep.mubr.f32.mxu1 %v9393_v58  ;;  %21822 = vmatpush3.bf16.msra.mxu1 %v21819_v32  ;;  %v5695_v54 = vpop.f32.mrb[86].mxu0  ;;  %v9394_v32 = vld [vmem:[%s23269_s22 + $0xba] sm:$0xff]  ;;  %v14405_v47 = vld [vmem:[%s28916_s5 + $0xe8] sm:$0xff] }
 0x351   : > { %v18066_v12 = vpop.f32.mrb[87].mxu0  ;;  %18494 = vmatmul.mubr.f32.gmra.mrb[192].mxu0 %v6616_v62  ;;  %21824 = vmatprep.subr.bf16.mxu1 %v21823_v34  ;;  %v26045_v44 = vadd.f32 %v5695_v54, %v25790_v60  ;;  %v9395_v60 = vld [vmem:[%s23269_s22 + $0xc2] sm:$0xff] }
 0x352   : > { %v26047_v41 = vpop.f32.mrb[76].mxu1  ;;  %18496 = vmatprep.mubr.msk.f32.mxu0 %vm23118_vm1, %v25905_v23  ;;  %21438 = vmatpush3.bf16.msra.mxu0 %v21435_v1  ;;  %v14402_v1 = vld [vmem:[%s28916_s5 + $0xd0] sm:$0xff]  ;;  %v21835_v12 = vpack.c.bf16 %v14566_v4, %v14565_v36 }
 0x353   : > { %28939 = vst [vmem:[#allocation4_spill] sm:$0xff] %v26047_v41  ;;  %v18445_v50 = vpop.f32.mrb[77].mxu1  ;;  %19255 = vmatmul.mubr.f32.gmra.mrb[116].mxu1 %v9394_v32  ;;  %21440 = vmatprep.subr.bf16.mxu0 %v21439_v22  ;;  %v21447_v58 = vpack.c.bf16 %v14403_v17, %v14402_v1  ;;  %v6618_v62 = vld [vmem:[#allocation2 + $0x149] sm:$0xff]  ;;  %v6619_v1 = vld [vmem:[#allocation2 + $0x151] sm:$0xff] }
 0x354   : > { %19257 = vmatprep.mubr.f32.mxu1 %v9395_v60  ;;  %21826 = vmatpush3.bf16.msra.mxu1 %v21823_v34  ;;  %v5700_v24 = vpop.f32.mrb[88].mxu0  ;;  %v9396_v34 = vld [vmem:[%s23269_s22 + $0xca] sm:$0xff]  ;;  %v14568_v50 = vld [vmem:[%s28916_s5 + $0x1f8] sm:$0xff]  ;;  %v9399_v60 = vld [vmem:[%s23269_s22 + $0xe2] sm:$0xff] }
 0x355   : > { %v18069_v39 = vpop.f32.mrb[89].mxu0  ;;  %18497 = vmatmul.mubr.f32.gmra.mrb[194].mxu0 %v6617_v30  ;;  %21828 = vmatprep.subr.bf16.mxu1 %v21827_v8  ;;  %v26066_v10 = vadd.f32 %v5700_v24, %v25812_v43  ;;  %v9397_v43 = vld [vmem:[%s23269_s22 + $0xd2] sm:$0xff] }
 0x356   : > { %v26068_v33 = vpop.f32.mrb[78].mxu1  ;;  %18499 = vmatprep.mubr.msk.f32.mxu0 %vm23118_vm1, %v25905_v23  ;;  %21442 = vmatpush3.bf16.msra.mxu0 %v21439_v22  ;;  %v14404_v22 = vld [vmem:[%s28916_s5 + $0xe0] sm:$0xff]  ;;  %v14406_v17 = vld [vmem:[%s28916_s5 + $0xf0] sm:$0xff]  ;;  %v14407_v39 = vld [vmem:[%s28916_s5 + $0xf8] sm:$0xff] }
 0x357   : > { %28940 = vst [vmem:[#allocation5_spill] sm:$0xff] %v26068_v33  ;;  %v18448_v2 = vpop.f32.mrb[79].mxu1  ;;  %19258 = vmatmul.mubr.f32.gmra.mrb[118].mxu1 %v9396_v34  ;;  %21444 = vmatprep.subr.bf16.mxu0 %v21443_v16  ;;  %v21451_v24 = vpack.c.bf16 %v14405_v47, %v14404_v22  ;;  %v21839_v34 = vpack.c.bf16 %v14568_v50, %v14567_v53  ;;  %v6620_v47 = vld [vmem:[#allocation2 + $0x159] sm:$0xff] }
 0x358   : > { %19260 = vmatprep.mubr.f32.mxu1 %v9397_v43  ;;  %21830 = vmatpush3.bf16.msra.mxu1 %v21827_v8  ;;  %v5705_v54 = vpop.f32.mrb[90].mxu0  ;;  %v14569_v2 = vld [vmem:[%s28916_s5 + $0x200] sm:$0xff]  ;;  %v14570_v43 = vld [vmem:[%s28916_s5 + $0x208] sm:$0xff]  ;;  %v7128_v33 = vld [vmem:[%s23269_s22 + $0x38] sm:$0xff] }
 0x359   : > { %v18072_v49 = vpop.f32.mrb[91].mxu0  ;;  %18500 = vmatmul.mubr.f32.gmra.mrb[196].mxu0 %v6618_v62  ;;  %21832 = vmatprep.subr.bf16.mxu1 %v21831_v38  ;;  %v26087_v32 = vadd.f32 %v5705_v54, %v25831_v29  ;;  %v21455_v62 = vpack.c.bf16 %v14407_v39, %v14406_v17  ;;  %v21843_v53 = vpack.c.bf16 %v14570_v43, %v14569_v2 }
 0x35a   : > { %v26090_v8 = vpop.f32.mrb[80].mxu1  ;;  %18502 = vmatprep.mubr.msk.f32.mxu0 %vm23118_vm1, %v25905_v23  ;;  %21446 = vmatpush3.bf16.msra.mxu0 %v21443_v16  ;;  %v7137_v49 = vld [vmem:[%s28916_s5] sm:$0xff] }
 0x35b   : > { %28941 = vst [vmem:[#allocation6_spill] sm:$0xff] %v26090_v8  ;;  %19261 = vmatmul.mubr.f32.gmra.mrb[120].mxu1 %v9398_v45  ;;  %v18451_v29 = vpop.f32.mrb[81].mxu1  ;;  %21448 = vmatprep.subr.bf16.mxu0 %v21447_v58  ;;  %v7138_v45 = vld [vmem:[%s28916_s5 + $0x8] sm:$0xff]  ;;  %v14603_v8 = vld [vmem:[%s28916_s5 + $0x310] sm:$0xff] }
 0x35c   : > { %19263 = vmatprep.mubr.f32.mxu1 %v9399_v60  ;;  %21834 = vmatpush3.bf16.msra.mxu1 %v21831_v38  ;;  %v5710_v30 = vpop.f32.mrb[92].mxu0  ;;  %v9400_v38 = vld [vmem:[%s23269_s22 + $0xea] sm:$0xff]  ;;  %v26143_v17 = vpack.c.bf16 %v7138_v45, %v7137_v49 }
 0x35d   : > { %v18075_v16 = vpop.f32.mrb[93].mxu0  ;;  %18503 = vmatmul.mubr.f32.gmra.mrb[198].mxu0 %v6619_v1  ;;  %21836 = vmatprep.subr.bf16.mxu1 %v21835_v12  ;;  %v26108_v36 = vadd.f32 %v5710_v30, %v25852_v55  ;;  %v9401_v55 = vld [vmem:[%s23269_s22 + $0xf2] sm:$0xff]  ;;  %v6622_v49 = vld [vmem:[#allocation2 + $0x169] sm:$0xff] }
 0x35e   : > { %v26110_v4 = vpop.f32.mrb[82].mxu1  ;;  %18505 = vmatprep.mubr.msk.f32.mxu0 %vm23118_vm1, %v25905_v23  ;;  %21450 = vmatpush3.bf16.msra.mxu0 %v21447_v58  ;;  %v14571_v29 = vld [vmem:[%s28916_s5 + $0x210] sm:$0xff]  ;;  %v14572_v30 = vld [vmem:[%s28916_s5 + $0x218] sm:$0xff]  ;;  %v6621_v16 = vld [vmem:[#allocation2 + $0x161] sm:$0xff] }
 0x35f   : > { %28942 = vst [vmem:[#allocation7_spill] sm:$0xff] %v26110_v4  ;;  %19264 = vmatmul.mubr.f32.gmra.mrb[122].mxu1 %v9400_v38  ;;  %v18454_v54 = vpop.f32.mrb[83].mxu1  ;;  %21452 = vmatprep.subr.bf16.mxu0 %v21451_v24  ;;  %v21847_v2 = vpack.c.bf16 %v14572_v30, %v14571_v29  ;;  %v14576_v30 = vld [vmem:[%s28916_s5 + $0x238] sm:$0xff]  ;;  %v14601_v4 = vld [vmem:[%s28916_s5 + $0x300] sm:$0xff] }
 0x360   : > { %19266 = vmatprep.mubr.f32.mxu1 %v9401_v55  ;;  %21838 = vmatpush3.bf16.msra.mxu1 %v21835_v12  ;;  %v5715_v22 = vpop.f32.mrb[94].mxu0  ;;  %v9402_v12 = vld [vmem:[%s23269_s22 + $0xfa] sm:$0xff]  ;;  %v14574_v55 = vld [vmem:[%s28916_s5 + $0x228] sm:$0xff] }
 0x361   : > { %v18078_v58 = vpop.f32.mrb[95].mxu0  ;;  %18506 = vmatmul.mubr.f32.gmra.mrb[200].mxu0 %v6620_v47  ;;  %21840 = vmatprep.subr.bf16.mxu1 %v21839_v34  ;;  %v26129_v50 = vadd.f32 %v5715_v22, %v25873_v27  ;;  %v9580_v27 = vld [vmem:[%s23269_s22 + $0x94] sm:$0xff]  ;;  %v9581_v54 = vld [vmem:[%s23269_s22 + $0x9c] sm:$0xff] }
 0x362   : > { %v26131_v60 = vpop.f32.mrb[84].mxu1  ;;  %18508 = vmatprep.mubr.msk.f32.mxu0 %vm23118_vm1, %v25905_v23  ;;  %21454 = vmatpush3.bf16.msra.mxu0 %v21451_v24 }
 0x363   : > { %28943 = vst [vmem:[#allocation8_spill] sm:$0xff] %v26131_v60  ;;  %v18560_v1 = vpop.f32.mrb[85].mxu1  ;;  %19267 = vmatmul.mubr.f32.gmra.mrb[124].mxu1 %v9402_v12  ;;  %21456 = vmatprep.subr.bf16.mxu0 %v21455_v62  ;;  %v14599_v60 = vld [vmem:[%s28916_s5 + $0x2f0] sm:$0xff] }
 0x364   : > { %21842 = vmatpush3.bf16.msra.mxu1 %v21839_v34  ;;  %19301 = vmatprep.mubr.f32.mxu1 %v9580_v27  ;;  %v5720_v39 = vpop.f32.mrb[96].mxu0  ;;  %v14573_v34 = vld [vmem:[%s28916_s5 + $0x220] sm:$0xff]  ;;  %v9584_v27 = vld [vmem:[%s23269_s22 + $0xb4] sm:$0xff] }
 0x365   : > { %v18081_v38 = vpop.f32.mrb[97].mxu0  ;;  %18509 = vmatmul.mubr.f32.gmra.mrb[202].mxu0 %v6621_v16  ;;  %21844 = vmatprep.subr.bf16.mxu1 %v21843_v53  ;;  %v26146_v43 = vadd.f32 %v5720_v39, %v25900_v31  ;;  %v9582_v31 = vld [vmem:[%s23269_s22 + $0xa4] sm:$0xff]  ;;  %v21851_v58 = vpack.c.bf16 %v14574_v55, %v14573_v34  ;;  %v6623_v39 = vld [vmem:[#allocation2 + $0x171] sm:$0xff]  ;;  %v9585_v55 = vld [vmem:[%s23269_s22 + $0xbc] sm:$0xff] }
 0x366   : > { %v26148_v24 = vpop.f32.mrb[86].mxu1  ;;  %18511 = vmatprep.mubr.msk.f32.mxu0 %vm23118_vm1, %v25905_v23  ;;  %21458 = vmatpush3.bf16.msra.mxu0 %v21455_v62  ;;  %v9583_v62 = vld [vmem:[%s23269_s22 + $0xac] sm:$0xff] }
 0x367   : > { %28944 = vst [vmem:[#allocation9_spill] sm:$0xff] %v26148_v24  ;;  %v18563_v22 = vpop.f32.mrb[87].mxu1  ;;  %19302 = vmatmul.mubr.f32.vlgmr.msra.gmra.mrb[110].mxu1 %v9581_v54  ;;  %21460 = vmatprep.subr.bf16.mxu0 %v26143_v17  ;;  %v14597_v24 = vld [vmem:[%s28916_s5 + $0x2e0] sm:$0xff] }
 0x368   : > { %19304 = vmatprep.mubr.f32.mxu1 %v9582_v31  ;;  %21846 = vmatpush3.bf16.msra.mxu1 %v21843_v53  ;;  %v5725_v47 = vpop.f32.mrb[98].mxu0  ;;  %v14575_v53 = vld [vmem:[%s28916_s5 + $0x230] sm:$0xff]  ;;  %v14578_v22 = vld [vmem:[%s28916_s5 + $0x248] sm:$0xff] }
 0x369   : > { %v18084_v45 = vpop.f32.mrb[99].mxu0  ;;  %18512 = vmatmul.mubr.f32.gmra.mrb[204].mxu0 %v6622_v49  ;;  %21848 = vmatprep.subr.bf16.mxu1 %v21847_v2  ;;  %v26162_v12 = vadd.f32 %v5725_v47, %v25919_v11  ;;  %v26176_v38 = vpack.c.bf16 %v14576_v30, %v14575_v53  ;;  %v9586_v47 = vld [vmem:[%s23269_s22 + $0xc4] sm:$0xff]  ;;  %v6624_v49 = vld [vmem:[#allocation2 + $0x179] sm:$0xff] }
 0x36a   : > { %v26164_v29 = vpop.f32.mrb[88].mxu1  ;;  %18514 = vmatprep.mubr.msk.f32.mxu0 %vm23118_vm1, %v25905_v23 }
 0x36b   : > { %28945 = vst [vmem:[#allocation10_spill] sm:$0xff] %v26164_v29  ;;  %v18566_v1 = vpop.f32.mrb[89].mxu1  ;;  %19305 = vmatmul.mubr.f32.gmra.mrb[112].mxu1 %v9583_v62  ;;  %v6625_v62 = vld [vmem:[#allocation2 + $0x181] sm:$0xff]  ;;  %v14595_v29 = vld [vmem:[%s28916_s5 + $0x2d0] sm:$0xff] }
 0x36c   : > { %19307 = vmatprep.mubr.f32.mxu1 %v9584_v27  ;;  %21850 = vmatpush3.bf16.msra.mxu1 %v21847_v2  ;;  %v5730_v11 = vpop.f32.mrb[100].mxu0  ;;  %v14577_v2 = vld [vmem:[%s28916_s5 + $0x240] sm:$0xff]  ;;  %v9587_v27 = vld [vmem:[%s23269_s22 + $0xcc] sm:$0xff] }
 0x36d   : > { %v18087_v16 = vpop.f32.mrb[101].mxu0  ;;  %18515 = vmatmul.mubr.f32.gmra.mrb[206].mxu0 %v6623_v39  ;;  %21852 = vmatprep.subr.bf16.mxu1 %v21851_v58  ;;  %v26179_v54 = vadd.f32 %v5730_v11, %v25934_v42  ;;  %v26194_v53 = vpack.c.bf16 %v14578_v22, %v14577_v2  ;;  %v14580_v11 = vld [vmem:[%s28916_s5 + $0x258] sm:$0xff]  ;;  %v6626_v2 = vld [vmem:[#allocation2 + $0x189] sm:$0x3f] }
 0x36e   : > { %v26181_v34 = vpop.f32.mrb[90].mxu1  ;;  %18517 = vmatprep.mubr.msk.f32.mxu0 %vm23118_vm1, %v25905_v23  ;;  %v9588_v16 = vld [vmem:[%s23269_s22 + $0xd4] sm:$0xff] }
 0x36f   : > { %28946 = vst [vmem:[#allocation11_spill] sm:$0xff] %v26181_v34  ;;  %v18569_v31 = vpop.f32.mrb[91].mxu1  ;;  %19308 = vmatmul.mubr.f32.gmra.mrb[114].mxu1 %v9585_v55  ;;  %v14591_v34 = vld [vmem:[%s28916_s5 + $0x2b0] sm:$0xff] }
 0x370   : > { %19310 = vmatprep.mubr.f32.mxu1 %v9586_v47  ;;  %21854 = vmatpush3.bf16.msra.mxu1 %v21851_v58  ;;  %v5735_v42 = vpop.f32.mrb[102].mxu0  ;;  %v14579_v58 = vld [vmem:[%s28916_s5 + $0x250] sm:$0xff] }
 0x371   : > { %v18090_v45 = vpop.f32.mrb[103].mxu0  ;;  %18518 = vmatmul.mubr.f32.gmra.mrb[208].mxu0 %v6624_v49  ;;  %21856 = vmatprep.subr.bf16.mxu1 %v26176_v38  ;;  %v26197_v30 = vadd.f32 %v5735_v42, %v25948_v21  ;;  %v26213_v22 = vpack.c.bf16 %v14580_v11, %v14579_v58  ;;  %v9589_v42 = vld [vmem:[%s23269_s22 + $0xdc] sm:$0xff] }
 0x372   : > { %v26199_v1 = vpop.f32.mrb[92].mxu1  ;;  %18520 = vmatprep.mubr.msk.f32.mxu0 %vm23118_vm1, %v25905_v23  ;;  %v14581_v49 = vld [vmem:[%s28916_s5 + $0x260] sm:$0xff]  ;;  %v14582_v45 = vld [vmem:[%s28916_s5 + $0x268] sm:$0xff]  ;;  %v7140_v11 = vld [vmem:[%s28916_s5 + $0x18] sm:$0xff] }
 0x373   : > { %28947 = vst [vmem:[#allocation12_spill] sm:$0xff] %v26199_v1  ;;  %v18572_v39 = vpop.f32.mrb[93].mxu1  ;;  %19311 = vmatmul.mubr.f32.gmra.mrb[116].mxu1 %v9587_v27  ;;  %v7153_v27 = vld [vmem:[%s23269_s22 + $0x1] sm:$0xff] }
 0x374   : > { %19313 = vmatprep.mubr.f32.mxu1 %v9588_v16  ;;  %21858 = vmatpush3.bf16.msra.mxu1 %v26176_v38  ;;  %v5740_v21 = vpop.f32.mrb[104].mxu0  ;;  %v14589_v1 = vld [vmem:[%s28916_s5 + $0x2a0] sm:$0xff] }
 0x375   : > { %v18093_v55 = vpop.f32.mrb[105].mxu0  ;;  %18521 = vmatmul.mubr.f32.gmra.mrb[210].mxu0 %v6625_v62  ;;  %21860 = vmatprep.subr.bf16.mxu1 %v26194_v53  ;;  %v26216_v31 = vadd.f32 %v5740_v21, %v25962_v3  ;;  %v9590_v3 = vld [vmem:[%s23269_s22 + $0xe4] sm:$0xff] }
 0x376   : > { %v26218_v47 = vpop.f32.mrb[94].mxu1  ;;  %18523 = vmatprep.mubr.msk.f32.mxu0 %vm23118_vm1, %v25905_v23  ;;  %v7139_v23 = vld [vmem:[%s28916_s5 + $0x10] sm:$0xff]  ;;  %v26243_v55 = vpack.c.bf16 %v14582_v45, %v14581_v49  ;;  %v7141_v45 = vld [vmem:[%s28916_s5 + $0x20] sm:$0xff] }
 0x377   : > { %28948 = vst [vmem:[#allocation13_spill] sm:$0xff] %v26218_v47  ;;  %v18575_v62 = vpop.f32.mrb[95].mxu1  ;;  %19314 = vmatmul.mubr.f32.gmra.mrb[118].mxu1 %v9589_v42  ;;  %v7154_v21 = vld [vmem:[%s23269_s22 + $0x9] sm:$0xff] }
 0x378   : > { %19316 = vmatprep.mubr.f32.mxu1 %v9590_v3  ;;  %21862 = vmatpush3.bf16.msra.mxu1 %v26194_v53  ;;  %v5745_v58 = vpop.f32.mrb[106].mxu0  ;;  %v9591_v62 = vld [vmem:[%s23269_s22 + $0xec] sm:$0xff] }
 0x379   : > { %v26239_v39 = vadd.f32 %v5745_v58, %v25976_v26  ;;  %v18096_v16 = vpop.f32.mrb[107].mxu0  ;;  %18524 = vmatmul.mubr.f32.gmra.mrb[212].mxu0 %v6626_v2  ;;  %21864 = vmatprep.subr.bf16.mxu1 %v26213_v22  ;;  %v14583_v3 = vld [vmem:[%s28916_s5 + $0x270] sm:$0xff]  ;;  %v14584_v26 = vld [vmem:[%s28916_s5 + $0x278] sm:$0xff] }
 0x37a   : > { %v26245_v42 = vpop.f32.mrb[96].mxu1  ;;  %18629 = vmatprep.mubr.f32.mxu0 %v7153_v27  ;;  %v9592_v2 = vld [vmem:[%s23269_s22 + $0xf4] sm:$0xff]  ;;  %v21463_v16 = vpack.c.bf16 %v7140_v11, %v7139_v23  ;;  %v7142_v27 = vld [vmem:[%s28916_s5 + $0x28] sm:$0xff]  ;;  %v26267_v23 = vpack.c.bf16 %v14584_v26, %v14583_v3 }
 0x37b   : > { %28949 = vst [vmem:[#allocation14_spill] sm:$0xff] %v26245_v42  ;;  %v18578_v58 = vpop.f32.mrb[97].mxu1  ;;  %19317 = vmatmul.mubr.f32.gmra.mrb[120].mxu1 %v9591_v62  ;;  %v14585_v42 = vld [vmem:[%s28916_s5 + $0x280] sm:$0xff]  ;;  %v21467_v3 = vpack.c.bf16 %v7142_v27, %v7141_v45  ;;  %v14587_v47 = vld [vmem:[%s28916_s5 + $0x290] sm:$0xff] }
 0x37c   : > { %19319 = vmatprep.mubr.f32.mxu1 %v9592_v2  ;;  %21866 = vmatpush3.bf16.msra.mxu1 %v26213_v22  ;;  %v5750_v49 = vpop.f32.mrb[108].mxu0  ;;  %v7155_v58 = vld [vmem:[%s23269_s22 + $0x11] sm:$0xff]  ;;  %v9593_v2 = vld [vmem:[%s23269_s22 + $0xfc] sm:$0xff] }
 0x37d   : > { %v26263_v28 = vadd.f32 %v5750_v49, %v25996_v61  ;;  %v18099_v62 = vpop.f32.mrb[109].mxu0  ;;  %18630 = vmatmul.mubr.f32.vlgmr.msra.gmra.mrb[214].mxu0 %v7154_v21  ;;  %21868 = vmatprep.subr.bf16.mxu1 %v26243_v55  ;;  %v14586_v61 = vld [vmem:[%s28916_s5 + $0x288] sm:$0xff]  ;;  %v7156_v26 = vld [vmem:[%s23269_s22 + $0x19] sm:$0xff] }
 0x37e   : > { %v26269_v11 = vpop.f32.mrb[98].mxu1  ;;  %21462 = vmatpush3.bf16.msra.mxu0 %v26143_v17  ;;  %18632 = vmatprep.mubr.f32.mxu0 %v7155_v58  ;;  %v9594_v49 = vld [vmem:[%s23269_s22 + $0x104] sm:$0xff]  ;;  %v7143_v62 = vld [vmem:[%s28916_s5 + $0x30] sm:$0xff]  ;;  %v7144_v58 = vld [vmem:[%s28916_s5 + $0x38] sm:$0xff]  ;;  %v26293_v27 = vpack.c.bf16 %v14586_v61, %v14585_v42 }
 0x37f   : > { %28950 = vst [vmem:[#allocation15_spill] sm:$0xff] %v26269_v11  ;;  %v18581_v21 = vpop.f32.mrb[99].mxu1  ;;  %19320 = vmatmul.mubr.f32.gmra.mrb[122].mxu1 %v9593_v2  ;;  %21464 = vmatprep.subr.bf16.mxu0 %v21463_v16  ;;  %v7157_v45 = vld [vmem:[%s23269_s22 + $0x21] sm:$0xff]  ;;  %v9595_v11 = vld [vmem:[%s23269_s22 + $0x10c] sm:$0xff]  ;;  %v21471_v42 = vpack.c.bf16 %v7144_v58, %v7143_v62 }
 0x380   : > { %19322 = vmatprep.mubr.f32.mxu1 %v9594_v49  ;;  %21870 = vmatpush3.bf16.msra.mxu1 %v26243_v55  ;;  %v5849_v17 = vpop.f32.mrb[110].mxu0  ;;  %v7158_v61 = vld [vmem:[%s23269_s22 + $0x29] sm:$0xff]  ;;  %v7159_v62 = vld [vmem:[%s23269_s22 + $0x31] sm:$0xff] }
 0x381   : > { %v26289_v2 = vadd.f32 %v5849_v17, %v26024_v20  ;;  %v18134_v21 = vpop.f32.mrb[111].mxu0  ;;  %18633 = vmatmul.mubr.f32.gmra.mrb[216].mxu0 %v7156_v26  ;;  %21872 = vmatprep.subr.bf16.mxu1 %v26267_v23  ;;  %v14588_v20 = vld [vmem:[%s28916_s5 + $0x298] sm:$0xff] }
 0x382   : > { %v26295_v49 = vpop.f32.mrb[100].mxu1  ;;  %21466 = vmatpush3.bf16.msra.mxu0 %v21463_v16  ;;  %18635 = vmatprep.mubr.f32.mxu0 %v7157_v45  ;;  %v9773_v26 = vld [vmem:[%s23269_s22 + $0x95] sm:$0xff]  ;;  %v7145_v21 = vld [vmem:[%s28916_s5 + $0x40] sm:$0xff]  ;;  %v7146_v45 = vld [vmem:[%s28916_s5 + $0x48] sm:$0xff]  ;;  %v26318_v58 = vpack.c.bf16 %v14588_v20, %v14587_v47 }
 0x383   : > { %28951 = vst [vmem:[#allocation16_spill] sm:$0xff] %v26295_v49  ;;  %v18584_v17 = vpop.f32.mrb[101].mxu1  ;;  %19323 = vmatmul.mubr.f32.gmra.mrb[124].mxu1 %v9595_v11  ;;  %21468 = vmatprep.subr.bf16.mxu0 %v21467_v3  ;;  %v9774_v49 = vld [vmem:[%s23269_s22 + $0x9d] sm:$0xff]  ;;  %v21475_v47 = vpack.c.bf16 %v7146_v45, %v7145_v21 }
 0x384   : > { %21874 = vmatpush3.bf16.msra.mxu1 %v26267_v23  ;;  %19357 = vmatprep.mubr.f32.mxu1 %v9773_v26  ;;  %v5854_v16 = vpop.f32.mrb[112].mxu0  ;;  %v7160_v20 = vld [vmem:[%s23269_s22 + $0x39] sm:$0xff]  ;;  %v7161_v21 = vld [vmem:[%s23269_s22 + $0x41] sm:$0xff] }
 0x385   : > { %v26314_v11 = vadd.f32 %v5854_v16, %v26045_v44  ;;  %v18137_v17 = vpop.f32.mrb[113].mxu0  ;;  %18636 = vmatmul.mubr.f32.gmra.mrb[218].mxu0 %v7158_v61  ;;  %21876 = vmatprep.subr.bf16.mxu1 %v26293_v27  ;;  %v14590_v44 = vld [vmem:[%s28916_s5 + $0x2a8] sm:$0xff] }
 0x386   : > { %v26320_v26 = vpop.f32.mrb[102].mxu1  ;;  %21470 = vmatpush3.bf16.msra.mxu0 %v21467_v3  ;;  %18638 = vmatprep.mubr.f32.mxu0 %v7159_v62  ;;  %v9775_v61 = vld [vmem:[%s23269_s22 + $0xa5] sm:$0xff]  ;;  %v7147_v17 = vld [vmem:[%s28916_s5 + $0x50] sm:$0xff]  ;;  %v7148_v62 = vld [vmem:[%s28916_s5 + $0x58] sm:$0xff]  ;;  %v26343_v45 = vpack.c.bf16 %v14590_v44, %v14589_v1 }
 0x387   : > { %28952 = vst [vmem:[#allocation17_spill] sm:$0xff] %v26320_v26  ;;  %v18587_v16 = vpop.f32.mrb[103].mxu1  ;;  %19358 = vmatmul.mubr.f32.vlgmr.msra.gmra.mrb[110].mxu1 %v9774_v49  ;;  %21472 = vmatprep.subr.bf16.mxu0 %v21471_v42  ;;  %v9776_v26 = vld [vmem:[%s23269_s22 + $0xad] sm:$0xff]  ;;  %v21479_v1 = vpack.c.bf16 %v7148_v62, %v7147_v17 }
 0x388   : > { %19360 = vmatprep.mubr.f32.mxu1 %v9775_v61  ;;  %21878 = vmatpush3.bf16.msra.mxu1 %v26293_v27  ;;  %v5859_v3 = vpop.f32.mrb[114].mxu0  ;;  %v7162_v44 = vld [vmem:[%s23269_s22 + $0x49] sm:$0xff]  ;;  %v7163_v17 = vld [vmem:[%s23269_s22 + $0x51] sm:$0xff] }
 0x389   : > { %v26339_v49 = vadd.f32 %v5859_v3, %v26066_v10  ;;  %v18140_v16 = vpop.f32.mrb[115].mxu0  ;;  %18639 = vmatmul.mubr.f32.gmra.mrb[220].mxu0 %v7160_v20  ;;  %21880 = vmatprep.subr.bf16.mxu1 %v26318_v58  ;;  %v14592_v10 = vld [vmem:[%s28916_s5 + $0x2b8] sm:$0xff] }
 0x38a   : > { %v26345_v61 = vpop.f32.mrb[104].mxu1  ;;  %21474 = vmatpush3.bf16.msra.mxu0 %v21471_v42  ;;  %18641 = vmatprep.mubr.f32.mxu0 %v7161_v21  ;;  %v9777_v20 = vld [vmem:[%s23269_s22 + $0xb5] sm:$0xff]  ;;  %v7149_v16 = vld [vmem:[%s28916_s5 + $0x60] sm:$0xff]  ;;  %v7150_v21 = vld [vmem:[%s28916_s5 + $0x68] sm:$0xff]  ;;  %v26368_v62 = vpack.c.bf16 %v14592_v10, %v14591_v34 }
 0x38b   : > { %28953 = vst [vmem:[#allocation18_spill] sm:$0xff] %v26345_v61  ;;  %v18590_v3 = vpop.f32.mrb[105].mxu1  ;;  %19361 = vmatmul.mubr.f32.gmra.mrb[112].mxu1 %v9776_v26  ;;  %21476 = vmatprep.subr.bf16.mxu0 %v21475_v47  ;;  %v14593_v61 = vld [vmem:[%s28916_s5 + $0x2c0] sm:$0xff]  ;;  %v7151_v10 = vld [vmem:[%s28916_s5 + $0x70] sm:$0xff] }
 0x38c   : > { %19363 = vmatprep.mubr.f32.mxu1 %v9777_v20  ;;  %21882 = vmatpush3.bf16.msra.mxu1 %v26318_v58  ;;  %v5864_v42 = vpop.f32.mrb[116].mxu0  ;;  %v9778_v20 = vld [vmem:[%s23269_s22 + $0xbd] sm:$0xff] }
 0x38d   : > { %v26364_v26 = vadd.f32 %v5864_v42, %v26087_v32  ;;  %v18143_v3 = vpop.f32.mrb[117].mxu0  ;;  %18642 = vmatmul.mubr.f32.gmra.mrb[222].mxu0 %v7162_v44  ;;  %21884 = vmatprep.subr.bf16.mxu1 %v26343_v45  ;;  %v14594_v32 = vld [vmem:[%s28916_s5 + $0x2c8] sm:$0xff]  ;;  %v21483_v44 = vpack.c.bf16 %v7150_v21, %v7149_v16 }
 0x38e   : > { %21478 = vmatpush3.bf16.msra.mxu0 %v21475_v47  ;;  %18644 = vmatprep.mubr.f32.mxu0 %v7163_v17  ;;  %v9779_v42 = vld [vmem:[%s23269_s22 + $0xc5] sm:$0xff]  ;;  %v7164_v47 = vld [vmem:[%s23269_s22 + $0x59] sm:$0xff]  ;;  %v26391_v21 = vpack.c.bf16 %v14594_v32, %v14593_v61 }
 0x38f   : > { %19364 = vmatmul.mubr.f32.gmra.mrb[114].mxu1 %v9778_v20  ;;  %21480 = vmatprep.subr.bf16.mxu0 %v21479_v1  ;;  %v7152_v3 = vld [vmem:[%s28916_s5 + $0x78] sm:$0xff]  ;;  %v7165_v16 = vld [vmem:[%s23269_s22 + $0x61] sm:$0xff] }
 0x390   : > { %19366 = vmatprep.mubr.f32.mxu1 %v9779_v42  ;;  %21886 = vmatpush3.bf16.msra.mxu1 %v26343_v45  ;;  %v5869_v34 = vpop.f32.mrb[118].mxu0  ;;  %v9780_v42 = vld [vmem:[%s23269_s22 + $0xcd] sm:$0xff]  ;;  %v14408_v32 = vld [vmem:[%s28916_s5 + $0x100] sm:$0xff] }
 0x391   : > { %v26387_v17 = vadd.f32 %v5869_v34, %v26108_v36  ;;  %v18146_v20 = vpop.f32.mrb[119].mxu0  ;;  %18645 = vmatmul.mubr.f32.gmra.mrb[224].mxu0 %v7164_v47  ;;  %21888 = vmatprep.subr.bf16.mxu1 %v26368_v62  ;;  %v14596_v36 = vld [vmem:[%s28916_s5 + $0x2d8] sm:$0xff]  ;;  %v21487_v47 = vpack.c.bf16 %v7152_v3, %v7151_v10 }
 0x392   : > { %21482 = vmatpush3.bf16.msra.mxu0 %v21479_v1  ;;  %18647 = vmatprep.mubr.f32.mxu0 %v7165_v16  ;;  %v9781_v34 = vld [vmem:[%s23269_s22 + $0xd5] sm:$0xff]  ;;  %v7166_v1 = vld [vmem:[%s23269_s22 + $0x69] sm:$0xff]  ;;  %v26414_v3 = vpack.c.bf16 %v14596_v36, %v14595_v29 }
 0x393   : > { %19367 = vmatmul.mubr.f32.gmra.mrb[116].mxu1 %v9780_v42  ;;  %21484 = vmatprep.subr.bf16.mxu0 %v21483_v44  ;;  %v14409_v20 = vld [vmem:[%s28916_s5 + $0x108] sm:$0xff]  ;;  %v7167_v10 = vld [vmem:[%s23269_s22 + $0x71] sm:$0xff] }
 0x394   : > { %19369 = vmatprep.mubr.f32.mxu1 %v9781_v34  ;;  %21890 = vmatpush3.bf16.msra.mxu1 %v26368_v62  ;;  %v5874_v61 = vpop.f32.mrb[120].mxu0  ;;  %v9782_v34 = vld [vmem:[%s23269_s22 + $0xdd] sm:$0xff]  ;;  %v14410_v36 = vld [vmem:[%s28916_s5 + $0x110] sm:$0xff] }
 0x395   : > { %v26410_v16 = vadd.f32 %v5874_v61, %v26129_v50  ;;  %v18149_v42 = vpop.f32.mrb[121].mxu0  ;;  %18648 = vmatmul.mubr.f32.gmra.mrb[226].mxu0 %v7166_v1  ;;  %21892 = vmatprep.subr.bf16.mxu1 %v26391_v21  ;;  %v14598_v50 = vld [vmem:[%s28916_s5 + $0x2e8] sm:$0xff]  ;;  %v21491_v1 = vpack.c.bf16 %v14409_v20, %v14408_v32 }
 0x396   : > { %21486 = vmatpush3.bf16.msra.mxu0 %v21483_v44  ;;  %18650 = vmatprep.mubr.f32.mxu0 %v7167_v10  ;;  %v9783_v61 = vld [vmem:[%s23269_s22 + $0xe5] sm:$0xff]  ;;  %v7168_v44 = vld [vmem:[%s23269_s22 + $0x79] sm:$0xff]  ;;  %v26436_v32 = vpack.c.bf16 %v14598_v50, %v14597_v24  ;;  %v9784_v20 = vld [vmem:[%s23269_s22 + $0xed] sm:$0xff] }
 0x397   : > { %19370 = vmatmul.mubr.f32.gmra.mrb[118].mxu1 %v9782_v34  ;;  %21488 = vmatprep.subr.bf16.mxu0 %v21487_v47  ;;  %v14411_v42 = vld [vmem:[%s28916_s5 + $0x118] sm:$0xff]  ;;  %v14413_v50 = vld [vmem:[%s28916_s5 + $0x128] sm:$0xff] }
 0x398   : > { %19372 = vmatprep.mubr.f32.mxu1 %v9783_v61  ;;  %21894 = vmatpush3.bf16.msra.mxu1 %v26391_v21  ;;  %v5879_v29 = vpop.f32.mrb[122].mxu0  ;;  %28954 = vst [vmem:[#allocation19_spill] sm:$0xff] %v26436_v32  ;;  %v23102_v61 = vld [vmem:[#allocation2] sm:$0xff] }
 0x399   : > { %v26433_v10 = vadd.f32 %v5879_v29, %v26146_v43  ;;  %v18152_v34 = vpop.f32.mrb[123].mxu0  ;;  %18651 = vmatmul.mubr.f32.gmra.mrb[228].mxu0 %v7168_v44  ;;  %21896 = vmatprep.subr.bf16.mxu1 %v26414_v3  ;;  %v14600_v43 = vld [vmem:[%s28916_s5 + $0x2f8] sm:$0xff]  ;;  %v21495_v44 = vpack.c.bf16 %v14411_v42, %v14410_v36  ;;  %v7123_v36 = vld [vmem:[%s23269_s22 + $0x10] sm:$0xff] }
 0x39a   : > { %21490 = vmatpush3.bf16.msra.mxu0 %v21487_v47  ;;  %18685 = vmatprep.mubr.f32.mxu0 %v23102_v61  ;;  %v9785_v29 = vld [vmem:[%s23269_s22 + $0xf5] sm:$0xff]  ;;  %v14412_v47 = vld [vmem:[%s28916_s5 + $0x120] sm:$0xff]  ;;  %v26458_v42 = vpack.c.bf16 %v14600_v43, %v14599_v60 }
 0x39b   : > { %19373 = vmatmul.mubr.f32.gmra.mrb[120].mxu1 %v9784_v20  ;;  %21492 = vmatprep.subr.bf16.mxu0 %v21491_v1  ;;  %v14414_v43 = vld [vmem:[%s28916_s5 + $0x130] sm:$0xff] }
 0x39c   : > { %19375 = vmatprep.mubr.f32.mxu1 %v9785_v29  ;;  %21898 = vmatpush3.bf16.msra.mxu1 %v26414_v3  ;;  %v5884_v24 = vpop.f32.mrb[124].mxu0  ;;  %28955 = vst [vmem:[#allocation20_spill] sm:$0xff] %v26458_v42  ;;  %v9786_v29 = vld [vmem:[%s23269_s22 + $0xfd] sm:$0xff] }
 0x39d   : > { %v26454_v34 = vadd.f32 %v5884_v24, %v26162_v12  ;;  %v18155_v20 = vpop.f32.mrb[125].mxu0  ;;  %18686 = vmatmul.mubr.f32.vlgmr.msra.gmra.mrb[214].mxu0 %v23102_v61  ;;  %21900 = vmatprep.subr.bf16.mxu1 %v26436_v32  ;;  %v14602_v12 = vld [vmem:[%s28916_s5 + $0x308] sm:$0xff]  ;;  %v21499_v24 = vpack.c.bf16 %v14413_v50, %v14412_v47  ;;  %v7125_v47 = vld [vmem:[%s23269_s22 + $0x20] sm:$0xff] }
 0x39e   : > { %21494 = vmatpush3.bf16.msra.mxu0 %v21491_v1  ;;  %18688 = vmatprep.mubr.f32.mxu0 %v7123_v36  ;;  %v9787_v61 = vld [vmem:[%s23269_s22 + $0x105] sm:$0xff]  ;;  %v7124_v1 = vld [vmem:[%s23269_s22 + $0x18] sm:$0xff]  ;;  %v26481_v50 = vpack.c.bf16 %v14602_v12, %v14601_v4 }
 0x39f   : > { %19376 = vmatmul.mubr.f32.gmra.mrb[122].mxu1 %v9786_v29  ;;  %21496 = vmatprep.subr.bf16.mxu0 %v21495_v44  ;;  %v14415_v20 = vld [vmem:[%s28916_s5 + $0x138] sm:$0xff]  ;;  %v14416_v12 = vld [vmem:[%s28916_s5 + $0x140] sm:$0xff] }
 0x3a0   : > { %19378 = vmatprep.mubr.f32.mxu1 %v9787_v61  ;;  %21902 = vmatpush3.bf16.msra.mxu1 %v26436_v32  ;;  %v5889_v60 = vpop.f32.mrb[126].mxu0  ;;  %28956 = vst [vmem:[#allocation21_spill] sm:$0xff] %v26481_v50  ;;  %v9788_v61 = vld [vmem:[%s23269_s22 + $0x10d] sm:$0xff] }
 0x3a1   : > { %v26477_v36 = vadd.f32 %v5889_v60, %v26179_v54  ;;  %v18158_v29 = vpop.f32.mrb[127].mxu0  ;;  %18689 = vmatmul.mubr.f32.gmra.mrb[216].mxu0 %v7124_v1  ;;  %21904 = vmatprep.subr.bf16.mxu1 %v26458_v42  ;;  %v14604_v54 = vld [vmem:[%s28916_s5 + $0x318] sm:$0xff]  ;;  %v21503_v1 = vpack.c.bf16 %v14415_v20, %v14414_v43  ;;  %v7127_v43 = vld [vmem:[%s23269_s22 + $0x30] sm:$0xff] }
 0x3a2   : > { %21498 = vmatpush3.bf16.msra.mxu0 %v21495_v44  ;;  %18691 = vmatprep.mubr.f32.mxu0 %v7125_v47  ;;  %v9966_v60 = vld [vmem:[%s23269_s22 + $0x96] sm:$0xff]  ;;  %v7126_v44 = vld [vmem:[%s23269_s22 + $0x28] sm:$0xff]  ;;  %v26504_v20 = vpack.c.bf16 %v14604_v54, %v14603_v8 }
 0x3a3   : > { %19379 = vmatmul.mubr.f32.gmra.mrb[124].mxu1 %v9788_v61  ;;  %21500 = vmatprep.subr.bf16.mxu0 %v21499_v24  ;;  %v14417_v29 = vld [vmem:[%s28916_s5 + $0x148] sm:$0xff]  ;;  %v14419_v8 = vld [vmem:[%s28916_s5 + $0x158] sm:$0xff] }
 0x3a4   : > { %21906 = vmatpush3.bf16.msra.mxu1 %v26458_v42  ;;  %19413 = vmatprep.mubr.f32.mxu1 %v9966_v60  ;;  %v5894_v4 = vpop.f32.mrb[128].mxu0  ;;  %28957 = vst [vmem:[#allocation22_spill] sm:$0xff] %v26504_v20  ;;  %v9967_v60 = vld [vmem:[%s23269_s22 + $0x9e] sm:$0xff]  ;;  %v9968_v42 = vld [vmem:[%s23269_s22 + $0xa6] sm:$0xff]  ;;  %v21507_v32 = vpack.c.bf16 %v14417_v29, %v14416_v12 }
 0x3a5   : > { %v26500_v47 = vadd.f32 %v5894_v4, %v26197_v30  ;;  %v18161_v61 = vpop.f32.mrb[129].mxu0  ;;  %18692 = vmatmul.mubr.f32.gmra.mrb[218].mxu0 %v7126_v44  ;;  %21908 = vmatprep.subr.bf16.mxu1 %v26481_v50  ;;  %v14418_v30 = vld [vmem:[%s28916_s5 + $0x150] sm:$0xff]  ;;  %v14606_v54 = vld [vmem:[%s28916_s5 + $0x328] sm:$0xff]  ;;  %v7129_v12 = vld [vmem:[%s23269_s22 + $0x40] sm:$0xff] }
 0x3a6   : > { %21502 = vmatpush3.bf16.msra.mxu0 %v21499_v24  ;;  %18694 = vmatprep.mubr.f32.mxu0 %v7127_v43  ;;  %v14605_v24 = vld [vmem:[%s28916_s5 + $0x320] sm:$0xff]  ;;  %v9969_v61 = vld [vmem:[%s23269_s22 + $0xae] sm:$0xff]  ;;  %v9970_v43 = vld [vmem:[%s23269_s22 + $0xb6] sm:$0xff] }
 0x3a7   : > { %19414 = vmatmul.mubr.f32.vlgmr.msra.gmra.mrb[110].mxu1 %v9967_v60  ;;  %21504 = vmatprep.subr.bf16.mxu0 %v21503_v1  ;;  %v26527_v29 = vpack.c.bf16 %v14606_v54, %v14605_v24  ;;  %v7130_v60 = vld [vmem:[%s23269_s22 + $0x48] sm:$0xff]  ;;  %v7131_v54 = vld [vmem:[%s23269_s22 + $0x50] sm:$0xff] }
 0x3a8   : > { %19416 = vmatprep.mubr.f32.mxu1 %v9968_v42  ;;  %v5899_v4 = vpop.f32.mrb[130].mxu0  ;;  %21910 = vmatpush3.bf16.msra.mxu1 %v26481_v50  ;;  %v21511_v50 = vpack.c.bf16 %v14419_v8, %v14418_v30  ;;  %v14608_v30 = vld [vmem:[%s28916_s5 + $0x338] sm:$0xff] }
 0x3a9   : > { %v26523_v44 = vadd.f32 %v5899_v4, %v26216_v31  ;;  %v18164_v42 = vpop.f32.mrb[131].mxu0  ;;  %18695 = vmatmul.mubr.f32.gmra.mrb[220].mxu0 %v7128_v33  ;;  %21912 = vmatprep.subr.bf16.mxu1 %v26504_v20  ;;  %28958 = vst [vmem:[#allocation23_spill] sm:$0xff] %v26527_v29  ;;  %v14420_v31 = vld [vmem:[%s28916_s5 + $0x160] sm:$0xff]  ;;  %v14607_v4 = vld [vmem:[%s28916_s5 + $0x330] sm:$0xff] }
 0x3aa   : > { %21506 = vmatpush3.bf16.msra.mxu0 %v21503_v1  ;;  %18697 = vmatprep.mubr.f32.mxu0 %v7129_v12  ;;  %v14421_v1 = vld [vmem:[%s28916_s5 + $0x168] sm:$0xff]  ;;  %v26550_v42 = vpack.c.bf16 %v14608_v30, %v14607_v4  ;;  %v9971_v12 = vld [vmem:[%s23269_s22 + $0xbe] sm:$0xff] }
 0x3ab   : > { %19417 = vmatmul.mubr.f32.gmra.mrb[112].mxu1 %v9969_v61  ;;  %21508 = vmatprep.subr.bf16.mxu0 %v21507_v32  ;;  %v9972_v61 = vld [vmem:[%s23269_s22 + $0xc6] sm:$0xff] }
 0x3ac   : > { %19419 = vmatprep.mubr.f32.mxu1 %v9970_v43  ;;  %v5904_v33 = vpop.f32.mrb[132].mxu0  ;;  %21914 = vmatpush3.bf16.msra.mxu1 %v26504_v20  ;;  %28959 = vst [vmem:[#allocation24_spill] sm:$0xff] %v26550_v42  ;;  %v7132_v43 = vld [vmem:[%s23269_s22 + $0x58] sm:$0xff]  ;;  %v21515_v20 = vpack.c.bf16 %v14421_v1, %v14420_v31  ;;  %v14610_v31 = vld [vmem:[%s28916_s5 + $0x348] sm:$0xff]  ;;  %v7133_v30 = vld [vmem:[%s23269_s22 + $0x60] sm:$0xff] }
 0x3ad   : > { %v26546_v8 = vadd.f32 %v5904_v33, %v26239_v39  ;;  %v18167_v24 = vpop.f32.mrb[133].mxu0  ;;  %18698 = vmatmul.mubr.f32.gmra.mrb[222].mxu0 %v7130_v60  ;;  %21916 = vmatprep.subr.bf16.mxu1 %v26527_v29  ;;  %v14422_v39 = vld [vmem:[%s28916_s5 + $0x170] sm:$0xff]  ;;  %v14609_v33 = vld [vmem:[%s28916_s5 + $0x340] sm:$0xff] }
 0x3ae   : > { %21510 = vmatpush3.bf16.msra.mxu0 %v21507_v32  ;;  %18700 = vmatprep.mubr.f32.mxu0 %v7131_v54  ;;  %v14423_v32 = vld [vmem:[%s28916_s5 + $0x178] sm:$0xff]  ;;  %v26573_v24 = vpack.c.bf16 %v14610_v31, %v14609_v33  ;;  %v9973_v54 = vld [vmem:[%s23269_s22 + $0xce] sm:$0xff] }
 0x3af   : > { %19420 = vmatmul.mubr.f32.gmra.mrb[114].mxu1 %v9971_v12  ;;  %21512 = vmatprep.subr.bf16.mxu0 %v21511_v50  ;;  %v9974_v12 = vld [vmem:[%s23269_s22 + $0xd6] sm:$0xff] }
 0x3b0   : > { %19422 = vmatprep.mubr.f32.mxu1 %v9972_v61  ;;  %v5909_v60 = vpop.f32.mrb[134].mxu0  ;;  %21918 = vmatpush3.bf16.msra.mxu1 %v26527_v29  ;;  %v7134_v61 = vld [vmem:[%s23269_s22 + $0x68] sm:$0xff]  ;;  %v21519_v29 = vpack.c.bf16 %v14423_v32, %v14422_v39  ;;  %v14611_v39 = vld [vmem:[%s28916_s5 + $0x350] sm:$0xff] }
 0x3b1   : > { %v26569_v1 = vadd.f32 %v5909_v60, %v26263_v28  ;;  %v18170_v4 = vpop.f32.mrb[135].mxu0  ;;  %18701 = vmatmul.mubr.f32.gmra.mrb[224].mxu0 %v7132_v43  ;;  %21920 = vmatprep.subr.bf16.mxu1 %v26550_v42  ;;  %v14424_v28 = vld [vmem:[%s28916_s5 + $0x180] sm:$0xff]  ;;  %v14612_v60 = vld [vmem:[%s28916_s5 + $0x358] sm:$0xff]  ;;  %v7135_v31 = vld [vmem:[%s23269_s22 + $0x70] sm:$0xff] }
 0x3b2   : > { %21514 = vmatpush3.bf16.msra.mxu0 %v21511_v50  ;;  %18703 = vmatprep.mubr.f32.mxu0 %v7133_v30  ;;  %v14425_v50 = vld [vmem:[%s28916_s5 + $0x188] sm:$0xff]  ;;  %v26594_v4 = vpack.c.bf16 %v14612_v60, %v14611_v39  ;;  %v9975_v30 = vld [vmem:[%s23269_s22 + $0xde] sm:$0xff] }
 0x3b3   : > { %19423 = vmatmul.mubr.f32.gmra.mrb[116].mxu1 %v9973_v54  ;;  %21516 = vmatprep.subr.bf16.mxu0 %v21515_v20  ;;  %v7136_v54 = vld [vmem:[%s23269_s22 + $0x78] sm:$0xff]  ;;  %v21523_v41 = vpack.c.bf16 %v14425_v50, %v14424_v28  ;;  %v14613_v28 = vld [vmem:[%s28916_s5 + $0x360] sm:$0xff]  ;;  %v14614_v50 = vld [vmem:[%s28916_s5 + $0x368] sm:$0xff] }
 0x3b4   : > { %19425 = vmatprep.mubr.f32.mxu1 %v9974_v12  ;;  %v6021_v43 = vpop.f32.mrb[136].mxu0  ;;  %21922 = vmatpush3.bf16.msra.mxu1 %v26550_v42  ;;  %v9976_v12 = vld [vmem:[%s23269_s22 + $0xe6] sm:$0xff]  ;;  %v26618_v60 = vpack.c.bf16 %v14614_v50, %v14613_v28  ;;  %v9979_v50 = vld [vmem:[%s23269_s22 + $0xfe] sm:$0xff] }
 0x3b5   : > { %v6085_v32 = vadd.f32 %v6021_v43, %v26289_v2  ;;  %v18205_v33 = vpop.f32.mrb[137].mxu0  ;;  %18704 = vmatmul.mubr.f32.gmra.mrb[226].mxu0 %v7134_v61  ;;  %21924 = vmatprep.subr.bf16.mxu1 %v26573_v24  ;;  %v7476_v42 = vld [vmem:[%s23269_s22 + $0x2] sm:$0xff]  ;;  %v14426_v2 = vld [vmem:[%s28916_s5 + $0x190] sm:$0xff]  ;;  %v14427_v43 = vld [vmem:[%s28916_s5 + $0x198] sm:$0xff] }
 0x3b6   : > { %21518 = vmatpush3.bf16.msra.mxu0 %v21515_v20  ;;  %18706 = vmatprep.mubr.f32.mxu0 %v7135_v31  ;;  %v7477_v33 = vld [vmem:[%s23269_s22 + $0xa] sm:$0xff]  ;;  %v9978_v31 = vld [vmem:[%s23269_s22 + $0xf6] sm:$0xff] }
 0x3b7   : > { %19426 = vmatmul.mubr.f32.gmra.mrb[118].mxu1 %v9975_v30  ;;  %21520 = vmatprep.subr.bf16.mxu0 %v21519_v29  ;;  %v26604_v61 = vadd.f32 %v25618_v7, %v6085_v32  ;;  %v9977_v32 = vld [vmem:[%s23269_s22 + $0xee] sm:$0xff]  ;;  %v21527_v30 = vpack.c.bf16 %v14427_v43, %v14426_v2  ;;  %v14616_v2 = vld [vmem:[%s28916_s5 + $0x378] sm:$0xff] }
 0x3b8   : > { %19428 = vmatprep.mubr.f32.mxu1 %v9976_v12  ;;  %v6026_v20 = vpop.f32.mrb[138].mxu0  ;;  %21926 = vmatpush3.bf16.msra.mxu1 %v26573_v24  ;;  %v14428_v12 = vld [vmem:[%s28916_s5 + $0x1a0] sm:$0xff]  ;;  %v7478_v43 = vld [vmem:[%s23269_s22 + $0x12] sm:$0xff] }
 0x3b9   : > { %v6086_v7 = vadd.f32 %v6026_v20, %v26314_v11  ;;  %v18208_v39 = vpop.f32.mrb[139].mxu0  ;;  %18707 = vmatmul.mubr.f32.gmra.mrb[228].mxu0 %v7136_v54  ;;  %21928 = vmatprep.subr.bf16.mxu1 %v26594_v4 }
 0x3ba   : > { %21522 = vmatpush3.bf16.msra.mxu0 %v21519_v29  ;;  %18741 = vmatprep.mubr.f32.mxu0 %v7476_v42  ;;  %v14429_v29 = vld [vmem:[%s28916_s5 + $0x1a8] sm:$0xff]  ;;  %v14615_v42 = vld [vmem:[%s28916_s5 + $0x370] sm:$0xff]  ;;  %v7479_v39 = vld [vmem:[%s23269_s22 + $0x1a] sm:$0xff] }
 0x3bb   : > { %19429 = vmatmul.mubr.f32.gmra.mrb[120].mxu1 %v9977_v32  ;;  %21524 = vmatprep.subr.bf16.mxu0 %v21523_v41  ;;  %v26627_v11 = vadd.f32 %v25634_v6, %v6086_v7  ;;  %v26642_v28 = vpack.c.bf16 %v14616_v2, %v14615_v42  ;;  %v9980_v7 = vld [vmem:[%s23269_s22 + $0x106] sm:$0xff]  ;;  %v21531_v32 = vpack.c.bf16 %v14429_v29, %v14428_v12 }
 0x3bc   : > { %19431 = vmatprep.mubr.f32.mxu1 %v9978_v31  ;;  %v6031_v54 = vpop.f32.mrb[140].mxu0  ;;  %21930 = vmatpush3.bf16.msra.mxu1 %v26594_v4  ;;  %v14617_v12 = vld [vmem:[%s28916_s5 + $0x380] sm:$0xff] }
 0x3bd   : > { %v6087_v6 = vadd.f32 %v6031_v54, %v26339_v49  ;;  %v18211_v20 = vpop.f32.mrb[141].mxu0  ;;  %18742 = vmatmul.mubr.f32.vlgmr.msra.gmra.mrb[214].mxu0 %v7477_v33  ;;  %21932 = vmatprep.subr.bf16.mxu1 %v26618_v60  ;;  %v14430_v49 = vld [vmem:[%s28916_s5 + $0x1b0] sm:$0xff]  ;;  %v14618_v54 = vld [vmem:[%s28916_s5 + $0x388] sm:$0xff] }
 0x3be   : > { %21526 = vmatpush3.bf16.msra.mxu0 %v21523_v41  ;;  %18744 = vmatprep.mubr.f32.mxu0 %v7478_v43  ;;  %v14431_v41 = vld [vmem:[%s28916_s5 + $0x1b8] sm:$0xff]  ;;  %v7480_v42 = vld [vmem:[%s23269_s22 + $0x22] sm:$0xff]  ;;  %v26666_v2 = vpack.c.bf16 %v14618_v54, %v14617_v12 }
 0x3bf   : > { %19432 = vmatmul.mubr.f32.gmra.mrb[122].mxu1 %v9979_v50  ;;  %21528 = vmatprep.subr.bf16.mxu0 %v21527_v30  ;;  %v26651_v33 = vadd.f32 %v25647_v51, %v6087_v6  ;;  %v21535_v6 = vpack.c.bf16 %v14431_v41, %v14430_v49  ;;  %v7481_v50 = vld [vmem:[%s23269_s22 + $0x2a] sm:$0xff]  ;;  %v7483_v12 = vld [vmem:[%s23269_s22 + $0x3a] sm:$0xff] }
 0x3c0   : > { %19434 = vmatprep.mubr.f32.mxu1 %v9980_v7  ;;  %v6036_v31 = vpop.f32.mrb[142].mxu0  ;;  %21934 = vmatpush3.bf16.msra.mxu1 %v26618_v60  ;;  %v14433_v7 = vld [vmem:[%s28916_s5 + $0x1c8] sm:$0xff]  ;;  %v14435_v54 = vld [vmem:[%s28916_s5 + $0x1d8] sm:$0xff] }
 0x3c1   : > { %v6088_v51 = vadd.f32 %v6036_v31, %v26364_v26  ;;  %v18214_v29 = vpop.f32.mrb[143].mxu0  ;;  %18745 = vmatmul.mubr.f32.gmra.mrb[216].mxu0 %v7479_v39  ;;  %21936 = vmatprep.subr.bf16.mxu1 %v26642_v28  ;;  %v14432_v26 = vld [vmem:[%s28916_s5 + $0x1c0] sm:$0xff] }
 0x3c2   : > { %21530 = vmatpush3.bf16.msra.mxu0 %v21527_v30  ;;  %18747 = vmatprep.mubr.f32.mxu0 %v7480_v42  ;;  %v21539_v49 = vpack.c.bf16 %v14433_v7, %v14432_v26  ;;  %v7484_v29 = vld [vmem:[%s23269_s22 + $0x42] sm:$0xff] }
 0x3c3   : > { %21532 = vmatprep.subr.bf16.mxu0 %v21531_v32  ;;  %v26669_v20 = vadd.f32 %v25665_v15, %v6088_v51  ;;  %v7482_v15 = vld [vmem:[%s23269_s22 + $0x32] sm:$0xff]  ;;  %v14436_v26 = vld [vmem:[%s28916_s5 + $0x1e0] sm:$0xff] }
 0x3c4   : > { %v6041_v43 = vpop.f32.mrb[144].mxu0  ;;  %21938 = vmatpush3.bf16.msra.mxu1 %v26642_v28 }
 0x3c5   : > { %v6089_v30 = vadd.f32 %v6041_v43, %v26387_v17  ;;  %v18217_v39 = vpop.f32.mrb[145].mxu0  ;;  %18748 = vmatmul.mubr.f32.gmra.mrb[218].mxu0 %v7481_v50  ;;  %21940 = vmatprep.subr.bf16.mxu1 %v26666_v2  ;;  %v14434_v17 = vld [vmem:[%s28916_s5 + $0x1d0] sm:$0xff] }
 0x3c6   : > { %21534 = vmatpush3.bf16.msra.mxu0 %v21531_v32  ;;  %18750 = vmatprep.mubr.f32.mxu0 %v7482_v15  ;;  %v7485_v50 = vld [vmem:[%s23269_s22 + $0x4a] sm:$0xff] }
 0x3c7   : > { %21536 = vmatprep.subr.bf16.mxu0 %v21535_v6  ;;  %v26683_v31 = vadd.f32 %v25683_v14, %v6089_v30  ;;  %v21543_v14 = vpack.c.bf16 %v14435_v54, %v14434_v17  ;;  %v7486_v30 = vld [vmem:[%s23269_s22 + $0x52] sm:$0xff]  ;;  %v26716_v17 = vpop.f32.mrb[106].mxu1 }
 0x3c8   : > { %v6046_v41 = vpop.f32.mrb[146].mxu0 }
 0x3c9   : > { %v6090_v51 = vadd.f32 %v6046_v41, %v26410_v16  ;;  %v18220_v32 = vpop.f32.mrb[147].mxu0  ;;  %18751 = vmatmul.mubr.f32.gmra.mrb[220].mxu0 %v7483_v12  ;;  %v14437_v16 = vld [vmem:[%s28916_s5 + $0x1e8] sm:$0xff]  ;;  %v7487_v41 = vld [vmem:[%s23269_s22 + $0x5a] sm:$0xff]  ;;  %v14438_v12 = vld [vmem:[%s28916_s5 + $0x1f0] sm:$0xff] }
 0x3ca   : > { %21538 = vmatpush3.bf16.msra.mxu0 %v21535_v6  ;;  %18753 = vmatprep.mubr.f32.mxu0 %v7484_v29 }
 0x3cb   : > { %21540 = vmatprep.subr.bf16.mxu0 %v21539_v49  ;;  %v26695_v42 = vadd.f32 %v25711_v19, %v6090_v51  ;;  %v21547_v19 = vpack.c.bf16 %v14437_v16, %v14436_v26  ;;  %v18593_v51 = vpop.f32.mrb[107].mxu1  ;;  %v14440_v26 = vld [vmem:[%s28916_s5 + $0x200] sm:$0xff] }
 0x3cc   : > { %v6051_v43 = vpop.f32.mrb[148].mxu0  ;;  %v26730_v16 = vpop.f32.mrb[108].mxu1 }
 0x3cd   : > { %v6091_v7 = vadd.f32 %v6051_v43, %v26433_v10  ;;  %v18223_v6 = vpop.f32.mrb[149].mxu0  ;;  %18754 = vmatmul.mubr.f32.gmra.mrb[222].mxu0 %v7485_v50  ;;  %v14439_v10 = vld [vmem:[%s28916_s5 + $0x1f8] sm:$0xff]  ;;  %v7489_v50 = vld [vmem:[%s23269_s22 + $0x6a] sm:$0xff] }
 0x3ce   : > { %21542 = vmatpush3.bf16.msra.mxu0 %v21539_v49  ;;  %18756 = vmatprep.mubr.f32.mxu0 %v7486_v30  ;;  %v21551_v32 = vpack.c.bf16 %v14439_v10, %v14438_v12  ;;  %v18596_v6 = vpop.f32.mrb[109].mxu1  ;;  %v7491_v12 = vld [vmem:[%s23269_s22 + $0x7a] sm:$0xff]  ;;  %v14442_v10 = vld [vmem:[%s28916_s5 + $0x210] sm:$0xff] }
 0x3cf   : > { %21544 = vmatprep.subr.bf16.mxu0 %v21543_v14  ;;  %v26707_v39 = vadd.f32 %v25729_v52, %v6091_v7  ;;  %v7488_v52 = vld [vmem:[%s23269_s22 + $0x62] sm:$0xff] }
 0x3d0   : > { %v6056_v15 = vpop.f32.mrb[150].mxu0 }
 0x3d1   : > { %v6092_v49 = vadd.f32 %v6056_v15, %v26454_v34  ;;  %v18226_v54 = vpop.f32.mrb[151].mxu0  ;;  %18757 = vmatmul.mubr.f32.gmra.mrb[224].mxu0 %v7487_v41  ;;  %v14441_v34 = vld [vmem:[%s28916_s5 + $0x208] sm:$0xff] }
 0x3d2   : > { %21546 = vmatpush3.bf16.msra.mxu0 %v21543_v14  ;;  %18759 = vmatprep.mubr.f32.mxu0 %v7488_v52  ;;  %v21555_v30 = vpack.c.bf16 %v14441_v34, %v14440_v26  ;;  %v7670_v54 = vld [vmem:[%s23269_s22 + $0x14] sm:$0xff]  ;;  %v7672_v34 = vld [vmem:[%s23269_s22 + $0x24] sm:$0xff] }
 0x3d3   : > { %21548 = vmatprep.subr.bf16.mxu0 %v21547_v19  ;;  %v26721_v29 = vadd.f32 %v25751_v13, %v6092_v49  ;;  %v7490_v13 = vld [vmem:[%s23269_s22 + $0x72] sm:$0xff] }
 0x3d4   : > { %v6061_v43 = vpop.f32.mrb[152].mxu0 }
 0x3d5   : > { %v6093_v14 = vadd.f32 %v6061_v43, %v26477_v36  ;;  %v18229_v7 = vpop.f32.mrb[153].mxu0  ;;  %18760 = vmatmul.mubr.f32.gmra.mrb[226].mxu0 %v7489_v50  ;;  %v14443_v36 = vld [vmem:[%s28916_s5 + $0x218] sm:$0xff]  ;;  %v14444_v50 = vld [vmem:[%s28916_s5 + $0x220] sm:$0xff] }
 0x3d6   : > { %21550 = vmatpush3.bf16.msra.mxu0 %v21547_v19  ;;  %18762 = vmatprep.mubr.f32.mxu0 %v7490_v13  ;;  %v7671_v43 = vld [vmem:[%s23269_s22 + $0x1c] sm:$0xff]  ;;  %v7673_v13 = vld [vmem:[%s23269_s22 + $0x2c] sm:$0xff] }
 0x3d7   : > { %21552 = vmatprep.subr.bf16.mxu0 %v21551_v32  ;;  %v26735_v15 = vadd.f32 %v25776_v18, %v6093_v14  ;;  %v21559_v18 = vpack.c.bf16 %v14443_v36, %v14442_v10  ;;  %v7675_v10 = vld [vmem:[%s23269_s22 + $0x3c] sm:$0xff] }
 0x3d8   : > { %v6066_v41 = vpop.f32.mrb[154].mxu0 }
 0x3d9   : > { %v6094_v49 = vadd.f32 %v6066_v41, %v26500_v47  ;;  %v18232_v19 = vpop.f32.mrb[155].mxu0  ;;  %18763 = vmatmul.mubr.f32.gmra.mrb[228].mxu0 %v7491_v12  ;;  %v14445_v47 = vld [vmem:[%s28916_s5 + $0x228] sm:$0xff]  ;;  %v7674_v12 = vld [vmem:[%s23269_s22 + $0x34] sm:$0xff] }
 0x3da   : > { %21554 = vmatpush3.bf16.msra.mxu0 %v21551_v32  ;;  %18797 = vmatprep.mubr.f32.mxu0 %v7670_v54 }
 0x3db   : > { %21556 = vmatprep.subr.bf16.mxu0 %v21555_v30  ;;  %v26747_v52 = vadd.f32 %v25799_v56, %v6094_v49  ;;  %v21563_v56 = vpack.c.bf16 %v14445_v47, %v14444_v50  ;;  %v7676_v49 = vld [vmem:[%s23269_s22 + $0x44] sm:$0xff] }
 0x3dc   : > { %v6071_v51 = vpop.f32.mrb[156].mxu0 }
 0x3dd   : > { %v6095_v32 = vadd.f32 %v6071_v51, %v26523_v44  ;;  %v18235_v26 = vpop.f32.mrb[157].mxu0  ;;  %18798 = vmatmul.mubr.f32.vlgmr.msra.gmra.mrb[214].mxu0 %v7671_v43  ;;  %v7678_v51 = vld [vmem:[%s23269_s22 + $0x54] sm:$0xff]  ;;  %v7679_v43 = vld [vmem:[%s23269_s22 + $0x5c] sm:$0xff] }
 0x3de   : > { %21558 = vmatpush3.bf16.msra.mxu0 %v21555_v30  ;;  %18800 = vmatprep.mubr.f32.mxu0 %v7672_v34 }
 0x3df   : > { %21560 = vmatprep.subr.bf16.mxu0 %v21559_v18  ;;  %v26759_v14 = vadd.f32 %v25820_v0, %v6095_v32  ;;  %v7681_v32 = vld [vmem:[%s23269_s22 + $0x6c] sm:$0xff] }
 0x3e0   : > { %v6076_v7 = vpop.f32.mrb[158].mxu0 }
 0x3e1   : > { %v6096_v6 = vadd.f32 %v6076_v7, %v26546_v8  ;;  %v18238_v41 = vpop.f32.mrb[159].mxu0  ;;  %18801 = vmatmul.mubr.f32.gmra.mrb[216].mxu0 %v7673_v13 }
 0x3e2   : > { %21562 = vmatpush3.bf16.msra.mxu0 %v21559_v18  ;;  %18803 = vmatprep.mubr.f32.mxu0 %v7674_v12 }
 0x3e3   : > { %21564 = vmatprep.subr.bf16.mxu0 %v21563_v56  ;;  %v26765_v44 = vadd.f32 %v25839_v9, %v6096_v6  ;;  %v7677_v9 = vld [vmem:[%s23269_s22 + $0x4c] sm:$0xff] }
 0x3e4   : > { %v6081_v30 = vpop.f32.mrb[160].mxu0  ;;  %v7685_v6 = vld [vmem:[%s23269_s22 + $0x8c] sm:$0xff] }
 0x3e5   : > { %v6097_v0 = vadd.f32 %v6081_v30, %v26569_v1  ;;  %v18241_v36 = vpop.f32.mrb[161].mxu0  ;;  %18804 = vmatmul.mubr.f32.gmra.mrb[218].mxu0 %v7675_v10  ;;  %v7865_v30 = vld [vmem:[%s23269_s22 + $0x1d] sm:$0xff] }
 0x3e6   : > { %21566 = vmatpush3.bf16.msra.mxu0 %v21563_v56  ;;  %18806 = vmatprep.mubr.f32.mxu0 %v7676_v49  ;;  %v7683_v56 = vld [vmem:[%s23269_s22 + $0x7c] sm:$0xff]  ;;  %v7867_v36 = vld [vmem:[%s23269_s22 + $0x2d] sm:$0xff] }
 0x3e7   : > { %21568 = vmatprep.subr.bf16.mxu0 %v26176_v38  ;;  %v26772_v8 = vadd.f32 %v25860_v35, %v6097_v0 }
 0x3e8   : > { %v6365_v19 = vpop.f32.mrb[162].mxu0 }
 0x3e9   : > { %v6429_v54 = vadd.f32 %v6365_v19, %v26604_v61  ;;  %v18347_v18 = vpop.f32.mrb[163].mxu0  ;;  %18807 = vmatmul.mubr.f32.gmra.mrb[220].mxu0 %v7677_v9  ;;  %v7680_v61 = vld [vmem:[%s23269_s22 + $0x64] sm:$0xff] }
 0x3ea   : > { %21570 = vmatpush3.bf16.msra.mxu0 %v26176_v38  ;;  %18809 = vmatprep.mubr.f32.mxu0 %v7678_v51  ;;  %v7869_v9 = vld [vmem:[%s23269_s22 + $0x3d] sm:$0xff]  ;;  %v7871_v51 = vld [vmem:[%s23269_s22 + $0x4d] sm:$0xff] }
 0x3eb   : > { %21572 = vmatprep.subr.bf16.mxu0 %v26194_v53  ;;  %v26780_v1 = vadd.f32 %v25881_v40, %v6429_v54 }
 0x3ec   : > { %v6370_v35 = vpop.f32.mrb[164].mxu0 }
 0x3ed   : > { %v6430_v50 = vadd.f32 %v6370_v35, %v26627_v11  ;;  %v18350_v47 = vpop.f32.mrb[165].mxu0  ;;  %18810 = vmatmul.mubr.f32.gmra.mrb[222].mxu0 %v7679_v43  ;;  %v7682_v11 = vld [vmem:[%s23269_s22 + $0x74] sm:$0xff] }
 0x3ee   : > { %21574 = vmatpush3.bf16.msra.mxu0 %v26194_v53  ;;  %18812 = vmatprep.mubr.f32.mxu0 %v7680_v61 }
 0x3ef   : > { %21576 = vmatprep.subr.bf16.mxu0 %v26213_v22  ;;  %v26788_v38 = vadd.f32 %v25902_v37, %v6430_v50  ;;  %v7873_v50 = vld [vmem:[%s23269_s22 + $0x5d] sm:$0xff] }
 0x3f0   : > { %v6375_v40 = vpop.f32.mrb[166].mxu0 }
 0x3f1   : > { %v6431_v26 = vadd.f32 %v6375_v40, %v26651_v33  ;;  %v18353_v34 = vpop.f32.mrb[167].mxu0  ;;  %18813 = vmatmul.mubr.f32.gmra.mrb[224].mxu0 %v7681_v32  ;;  %v7684_v33 = vld [vmem:[%s23269_s22 + $0x84] sm:$0xff]  ;;  %v7875_v32 = vld [vmem:[%s23269_s22 + $0x6d] sm:$0xff] }
 0x3f2   : > { %21578 = vmatpush3.bf16.msra.mxu0 %v26213_v22  ;;  %18815 = vmatprep.mubr.f32.mxu0 %v7682_v11  ;;  %v28961_v11 = vld [vmem:[#allocation19_spill] sm:$0xff] }
 0x3f3   : > { %21580 = vmatprep.subr.bf16.mxu0 %v26243_v55  ;;  %v26796_v53 = vadd.f32 %v25921_v63, %v6431_v26 }
 0x3f4   : > { %v6380_v37 = vpop.f32.mrb[168].mxu0 }
 0x3f5   : > { %v6432_v7 = vadd.f32 %v6380_v37, %v26669_v20  ;;  %v18356_v13 = vpop.f32.mrb[169].mxu0  ;;  %18816 = vmatmul.mubr.f32.gmra.mrb[226].mxu0 %v7683_v56  ;;  %v7864_v20 = vld [vmem:[%s23269_s22 + $0x15] sm:$0xff] }
 0x3f6   : > { %21582 = vmatpush3.bf16.msra.mxu0 %v26243_v55  ;;  %18818 = vmatprep.mubr.f32.mxu0 %v7684_v33 }
 0x3f7   : > { %21584 = vmatprep.subr.bf16.mxu0 %v26267_v23  ;;  %v26804_v22 = vadd.f32 %v25936_v59, %v6432_v7  ;;  %v7877_v7 = vld [vmem:[%s23269_s22 + $0x7d] sm:$0xff] }
 0x3f8   : > { %v6385_v63 = vpop.f32.mrb[170].mxu0 }
 0x3f9   : > { %v6433_v41 = vadd.f32 %v6385_v63, %v26683_v31  ;;  %v18359_v12 = vpop.f32.mrb[171].mxu0  ;;  %18819 = vmatmul.mubr.f32.gmra.mrb[228].mxu0 %v7685_v6  ;;  %v7866_v31 = vld [vmem:[%s23269_s22 + $0x25] sm:$0xff] }
 0x3fa   : > { %21586 = vmatpush3.bf16.msra.mxu0 %v26267_v23  ;;  %18853 = vmatprep.mubr.f32.mxu0 %v7864_v20  ;;  %v28963_v63 = vld [vmem:[#allocation20_spill] sm:$0xff]  ;;  %v7879_v12 = vld [vmem:[%s23269_s22 + $0x8d] sm:$0xff] }
 0x3fb   : > { %21588 = vmatprep.subr.bf16.mxu0 %v26293_v27  ;;  %v26812_v55 = vadd.f32 %v25950_v46, %v6433_v41 }
 0x3fc   : > { %v6390_v59 = vpop.f32.mrb[172].mxu0 }
 0x3fd   : > { %v6434_v10 = vadd.f32 %v6390_v59, %v26695_v42  ;;  %v18362_v0 = vpop.f32.mrb[173].mxu0  ;;  %18854 = vmatmul.mubr.f32.vlgmr.msra.gmra.mrb[214].mxu0 %v7865_v30  ;;  %v7868_v42 = vld [vmem:[%s23269_s22 + $0x35] sm:$0xff]  ;;  %v28965_v30 = vld [vmem:[#allocation21_spill] sm:$0xff] }
 0x3fe   : > { %21590 = vmatpush3.bf16.msra.mxu0 %v26293_v27  ;;  %18856 = vmatprep.mubr.f32.mxu0 %v7866_v31 }
 0x3ff   : > { %21592 = vmatprep.subr.bf16.mxu0 %v26318_v58  ;;  %v26820_v23 = vadd.f32 %v25964_v5, %v6434_v10  ;;  %v28966_v10 = vld [vmem:[#allocation7_spill] sm:$0xff] }
 0x400   : > { %v6395_v46 = vpop.f32.mrb[174].mxu0 }
 0x401   : > { %v6435_v49 = vadd.f32 %v6395_v46, %v26707_v39  ;;  %v18365_v19 = vpop.f32.mrb[175].mxu0  ;;  %18857 = vmatmul.mubr.f32.gmra.mrb[216].mxu0 %v7867_v36  ;;  %v7870_v39 = vld [vmem:[%s23269_s22 + $0x45] sm:$0xff] }
 0x402   : > { %21594 = vmatpush3.bf16.msra.mxu0 %v26318_v58  ;;  %18859 = vmatprep.mubr.f32.mxu0 %v7868_v42  ;;  %v8059_v46 = vld [vmem:[%s23269_s22 + $0x1e] sm:$0xff] }
 0x403   : > { %21596 = vmatprep.subr.bf16.mxu0 %v26343_v45  ;;  %v26828_v27 = vadd.f32 %v25984_v57, %v6435_v49  ;;  %v26884_v19 = vld [vmem:[%s28915_s4] ss:$0 sm:$0xff] }
 0x404   : > { %v6400_v5 = vpop.f32.mrb[176].mxu0  ;;  %v28967_v42 = vld [vmem:[#allocation8_spill] sm:$0xff] }
 0x405   : > { %v6436_v54 = vadd.f32 %v6400_v5, %v26721_v29  ;;  %v18368_v18 = vpop.f32.mrb[177].mxu0  ;;  %18860 = vmatmul.mubr.f32.gmra.mrb[218].mxu0 %v7869_v9  ;;  %v7872_v29 = vld [vmem:[%s23269_s22 + $0x55] sm:$0xff] }
 0x406   : > { %21598 = vmatpush3.bf16.msra.mxu0 %v26343_v45  ;;  %18862 = vmatprep.mubr.f32.mxu0 %v7870_v39  ;;  %v28968_v9 = vld [vmem:[#allocation22_spill] sm:$0xff] }
 0x407   : > { %21600 = vmatprep.subr.bf16.mxu0 %v26368_v62  ;;  %v26836_v58 = vadd.f32 %v26004_v25, %v6436_v54  ;;  %v8061_v18 = vld [vmem:[%s23269_s22 + $0x2e] sm:$0xff] }
 0x408   : > { %v6405_v57 = vpop.f32.mrb[178].mxu0 }
 0x409   : > { %v6437_v35 = vadd.f32 %v6405_v57, %v26735_v15  ;;  %v18371_v43 = vpop.f32.mrb[179].mxu0  ;;  %18863 = vmatmul.mubr.f32.gmra.mrb[220].mxu0 %v7871_v51  ;;  %v7874_v15 = vld [vmem:[%s23269_s22 + $0x65] sm:$0xff]  ;;  %v8062_v51 = vld [vmem:[%s23269_s22 + $0x36] sm:$0xff] }
 0x40a   : > { %21602 = vmatpush3.bf16.msra.mxu0 %v26368_v62  ;;  %18865 = vmatprep.mubr.f32.mxu0 %v7872_v29  ;;  %v28960_v62 = vld [vmem:[#allocation4_spill] sm:$0xff]  ;;  %v28969_v43 = vld [vmem:[#allocation9_spill] sm:$0xff] }
 0x40b   : > { %21604 = vmatprep.subr.bf16.mxu0 %v26391_v21  ;;  %v26844_v45 = vadd.f32 %v26026_v48, %v6437_v35 }
 0x40c   : > { %v6410_v25 = vpop.f32.mrb[180].mxu0 }
 0x40d   : > { %v6438_v47 = vadd.f32 %v6410_v25, %v26747_v52  ;;  %v18374_v61 = vpop.f32.mrb[181].mxu0  ;;  %18866 = vmatmul.mubr.f32.gmra.mrb[222].mxu0 %v7873_v50  ;;  %v7876_v52 = vld [vmem:[%s23269_s22 + $0x75] sm:$0xff] }
 0x40e   : > { %21606 = vmatpush3.bf16.msra.mxu0 %v26391_v21  ;;  %18868 = vmatprep.mubr.f32.mxu0 %v7874_v15  ;;  %v28962_v21 = vld [vmem:[#allocation5_spill] sm:$0xff]  ;;  %v28970_v25 = vld [vmem:[#allocation23_spill] sm:$0xff]  ;;  %v7033_v61 = vpop.permute.xlu1 %7032 }
 0x40f   : > { %21608 = vmatprep.subr.bf16.mxu0 %v26414_v3  ;;  %v26852_v40 = vadd.f32 %v28960_v62, %v6438_v47  ;;  %v8063_v47 = vld [vmem:[%s23269_s22 + $0x3e] sm:$0xff] }
 0x410   : > { %v6415_v48 = vpop.f32.mrb[182].mxu0 }
 0x411   : > { %v6439_v26 = vadd.f32 %v6415_v48, %v26759_v14  ;;  %v18377_v34 = vpop.f32.mrb[183].mxu0  ;;  %18869 = vmatmul.mubr.f32.gmra.mrb[224].mxu0 %v7875_v32  ;;  %v7878_v14 = vld [vmem:[%s23269_s22 + $0x85] sm:$0xff] }
 0x412   : > { %21610 = vmatpush3.bf16.msra.mxu0 %v26414_v3  ;;  %18871 = vmatprep.mubr.f32.mxu0 %v7876_v52  ;;  %v28964_v3 = vld [vmem:[#allocation6_spill] sm:$0xff]  ;;  %v8064_v32 = vld [vmem:[%s23269_s22 + $0x46] sm:$0xff] }
 0x413   : > { %21612 = vmatprep.subr.bf16.mxu0 %v28961_v11  ;;  %v26860_v37 = vadd.f32 %v28962_v21, %v6439_v26  ;;  %v28971_v52 = vld [vmem:[#allocation10_spill] sm:$0xff]  ;;  %v28972_v21 = vld [vmem:[#allocation24_spill] sm:$0xff] }
 0x414   : > { %v6420_v56 = vpop.f32.mrb[184].mxu0 }
 0x415   : > { %v6440_v13 = vadd.f32 %v6420_v56, %v26765_v44  ;;  %v18380_v33 = vpop.f32.mrb[185].mxu0  ;;  %18872 = vmatmul.mubr.f32.gmra.mrb[226].mxu0 %v7877_v7  ;;  %v8058_v44 = vld [vmem:[%s23269_s22 + $0x16] sm:$0xff]  ;;  %v8065_v7 = vld [vmem:[%s23269_s22 + $0x4e] sm:$0xff] }
 0x416   : > { %21614 = vmatpush3.bf16.msra.mxu0 %v28961_v11  ;;  %18874 = vmatprep.mubr.f32.mxu0 %v7878_v14 }
 0x417   : > { %21616 = vmatprep.subr.bf16.mxu0 %v28963_v63  ;;  %v26868_v6 = vadd.f32 %v28964_v3, %v6440_v13  ;;  %v7038_v13 = vpop.permute.xlu0 %7037  ;;  %v8066_v3 = vld [vmem:[%s23269_s22 + $0x56] sm:$0xff] }
 0x418   : > { %v6425_v41 = vpop.f32.mrb[186].mxu0 }
 0x419   : > { %v6441_v20 = vadd.f32 %v6425_v41, %v26772_v8  ;;  %v18383_v59 = vpop.f32.mrb[187].mxu0  ;;  %18875 = vmatmul.mubr.f32.gmra.mrb[228].mxu0 %v7879_v12  ;;  %v8060_v8 = vld [vmem:[%s23269_s22 + $0x26] sm:$0xff] }
 0x41a   : > { %21618 = vmatpush3.bf16.msra.mxu0 %v28963_v63  ;;  %18909 = vmatprep.mubr.f32.mxu0 %v8058_v44 }
 0x41b   : > { %21620 = vmatprep.subr.bf16.mxu0 %v28965_v30  ;;  %v26876_v0 = vadd.f32 %v28966_v10, %v6441_v20  ;;  %v28973_v20 = vld [vmem:[#allocation11_spill] sm:$0xff] }
 0x41c   : > { %v6709_v31 = vpop.f32.mrb[188].mxu0 }
 0x41d   : > { %v6773_v36 = vadd.f32 %v6709_v31, %v26780_v1  ;;  %v18489_v49 = vpop.f32.mrb[189].mxu0  ;;  %18910 = vmatmul.mubr.f32.vlgmr.msra.gmra.mrb[214].mxu0 %v8059_v46 }
 0x41e   : > { %21622 = vmatpush3.bf16.msra.mxu0 %v28965_v30  ;;  %18912 = vmatprep.mubr.f32.mxu0 %v8060_v8  ;;  %v8067_v30 = vld [vmem:[%s23269_s22 + $0x5e] sm:$0xff]  ;;  %v8068_v49 = vld [vmem:[%s23269_s22 + $0x66] sm:$0xff] }
 0x41f   : > { %v6945_v5 = vadd.f32 %v28967_v42, %v6773_v36  ;;  %21624 = vmatprep.subr.bf16.mxu0 %v28968_v9 }
 0x420   : > { %v6714_v54 = vpop.f32.mrb[190].mxu0 }
 0x421   : > { %v6965_v1 = vadd.f32 %v26884_v19, %v6945_v5  ;;  %v6774_v39 = vadd.f32 %v6714_v54, %v26788_v38  ;;  %v18492_v57 = vpop.f32.mrb[191].mxu0  ;;  %18913 = vmatmul.mubr.f32.gmra.mrb[216].mxu0 %v8061_v18  ;;  %v28974_v5 = vld [vmem:[#allocation12_spill] sm:$0xff] }
 0x422   : > { %21626 = vmatpush3.bf16.msra.mxu0 %v28968_v9  ;;  %18915 = vmatprep.mubr.f32.mxu0 %v8062_v51 }
 0x423   : > { %vm6978_vm4 = vcmp.ge.f32.partialorder %v6965_v1, 0.0  ;;  %v6991_v35 = vmul.f32 0.05, %v6965_v1  ;;  %v6946_v29 = vadd.f32 %v28969_v43, %v6774_v39  ;;  %21628 = vmatprep.subr.bf16.mxu0 %v28970_v25  ;;  %v7048_v39 = vpop.permute.xlu0 %7047  ;;  %v8070_v43 = vld [vmem:[%s23269_s22 + $0x76] sm:$0xff] }
 0x424   : > { %v6719_v50 = vpop.f32.mrb[192].mxu0 }
 0x425   : > { %v7004_v15 = vsel %vm6978_vm4, %v6965_v1, %v6991_v35  ;;  %v6966_v38 = vadd.f32 %v26884_v19, %v6946_v29  ;;  %v6775_v62 = vadd.f32 %v6719_v50, %v26796_v53  ;;  %v18495_v48 = vpop.f32.mrb[193].mxu0  ;;  %18916 = vmatmul.mubr.f32.gmra.mrb[218].mxu0 %v8063_v47  ;;  %v10159_v1 = vld [vmem:[%s23269_s22 + $0xa8] sm:$0xff]  ;;  %v14619_v29 = vld [vmem:[%s28916_s5 + $0x390] sm:$0xff] }
 0x426   : > { %v7095_v26 = vmul.f32 %v7033_v61, %v7004_v15  ;;  %21630 = vmatpush3.bf16.msra.mxu0 %v28970_v25  ;;  %18918 = vmatprep.mubr.f32.mxu0 %v8064_v32  ;;  %v14620_v25 = vld [vmem:[%s28916_s5 + $0x398] sm:$0xff]  ;;  %v28975_v47 = vld [vmem:[#allocation13_spill] sm:$0xff]  ;;  %v10160_v15 = vld [vmem:[%s23269_s22 + $0xb0] sm:$0xff] }
 0x427   : > { %vm6979_vm5 = vcmp.ge.f32.partialorder %v6966_v38, 0.0  ;;  %v6992_v34 = vmul.f32 0.05, %v6966_v38  ;;  %v6947_v11 = vadd.f32 %v28971_v52, %v6775_v62  ;;  %21632 = vmatprep.subr.bf16.mxu0 %v28972_v21  ;;  %v8071_v62 = vld [vmem:[%s23269_s22 + $0x7e] sm:$0xff]  ;;  %v26939_v32 = vpack.c.bf16 %v14620_v25, %v14619_v29 }
 0x428   : > { %7108 = vst [vmem:[%s23269_s22 + $0x115] sm:$0xff] %v7095_v26  ;;  %v6724_v56 = vpop.f32.mrb[194].mxu0  ;;  %v10161_v48 = vld [vmem:[%s23269_s22 + $0xb8] sm:$0xff]  ;;  %v10166_v25 = vld [vmem:[%s23269_s22 + $0xe0] sm:$0xff] }
 0x429   : > { %v7005_v53 = vsel %vm6979_vm5, %v6966_v38, %v6992_v34  ;;  %v6967_v33 = vadd.f32 %v26884_v19, %v6947_v11  ;;  %v6776_v14 = vadd.f32 %v6724_v56, %v26804_v22  ;;  %v18498_v63 = vpop.f32.mrb[195].mxu0  ;;  %18919 = vmatmul.mubr.f32.gmra.mrb[220].mxu0 %v8065_v7  ;;  %v7043_v22 = vpop.permute.xlu1 %7042  ;;  %v14622_v56 = vld [vmem:[%s28916_s5 + $0x3a8] sm:$0xff] }
 0x42a   : > { %v7096_v41 = vmul.f32 %v7038_v13, %v7005_v53  ;;  %21634 = vmatpush3.bf16.msra.mxu0 %v28972_v21  ;;  %18921 = vmatprep.mubr.f32.mxu0 %v8066_v3  ;;  %v14621_v21 = vld [vmem:[%s28916_s5 + $0x3a0] sm:$0xff]  ;;  %v28976_v53 = vld [vmem:[#allocation14_spill] sm:$0xff] }
 0x42b   : > { %vm6980_vm6 = vcmp.ge.f32.partialorder %v6967_v33, 0.0  ;;  %v6993_v12 = vmul.f32 0.05, %v6967_v33  ;;  %v6948_v59 = vadd.f32 %v28973_v20, %v6776_v14  ;;  %21636 = vmatprep.subr.bf16.mxu0 %v26573_v24  ;;  %v10162_v14 = vld [vmem:[%s23269_s22 + $0xc0] sm:$0xff]  ;;  %v8073_v3 = vld [vmem:[%s23269_s22 + $0x8e] sm:$0xff] }
 0x42c   : > { %7109 = vst [vmem:[%s23269_s22 + $0x11d] sm:$0xff] %v7096_v41  ;;  %v6729_v44 = vpop.f32.mrb[196].mxu0  ;;  %v10163_v41 = vld [vmem:[%s23269_s22 + $0xc8] sm:$0xff] }
 0x42d   : > { %v7006_v10 = vsel %vm6980_vm6, %v6967_v33, %v6993_v12  ;;  %v6968_v31 = vadd.f32 %v26884_v19, %v6948_v59  ;;  %v6777_v46 = vadd.f32 %v6729_v44, %v26812_v55  ;;  %v18501_v36 = vpop.f32.mrb[197].mxu0  ;;  %18922 = vmatmul.mubr.f32.gmra.mrb[222].mxu0 %v8067_v30  ;;  %v8069_v55 = vld [vmem:[%s23269_s22 + $0x6e] sm:$0xff]  ;;  %v7053_v26 = vpop.permute.xlu1 %7052 }
 0x42e   : > { %v7097_v8 = vmul.f32 %v7043_v22, %v7006_v10  ;;  %21638 = vmatpush3.bf16.msra.mxu0 %v26573_v24  ;;  %18924 = vmatprep.mubr.f32.mxu0 %v8068_v49  ;;  %v7058_v12 = vpop.permute.xlu0 %7057  ;;  %v14623_v22 = vld [vmem:[%s28916_s5 + $0x3b0] sm:$0xff]  ;;  %v14624_v10 = vld [vmem:[%s28916_s5 + $0x3b8] sm:$0xff] }
 0x42f   : > { %vm6981_vm7 = vcmp.ge.f32.partialorder %v6968_v31, 0.0  ;;  %v6994_v42 = vmul.f32 0.05, %v6968_v31  ;;  %v6949_v9 = vadd.f32 %v28974_v5, %v6777_v46  ;;  %21640 = vmatprep.subr.bf16.mxu0 %v26594_v4  ;;  %v9981_v54 = vld [vmem:[%s23269_s22 + $0x10e] sm:$0xff]  ;;  %v28977_v36 = vld [vmem:[#allocation15_spill] sm:$0xff] }
 0x430   : > { %7110 = vst [vmem:[%s23269_s22 + $0x125] sm:$0xff] %v7097_v8  ;;  %v6734_v18 = vpop.f32.mrb[198].mxu0  ;;  %19435 = vmatmul.mubr.f32.gmra.mrb[124].mxu1 %v9981_v54  ;;  %v10164_v8 = vld [vmem:[%s23269_s22 + $0xd0] sm:$0xff] }
 0x431   : > { %v7007_v57 = vsel %vm6981_vm7, %v6968_v31, %v6994_v42  ;;  %v6969_v51 = vadd.f32 %v26884_v19, %v6949_v9  ;;  %v6778_v24 = vadd.f32 %v6734_v18, %v26820_v23  ;;  %v18504_v35 = vpop.f32.mrb[199].mxu0  ;;  %18925 = vmatmul.mubr.f32.gmra.mrb[224].mxu0 %v8069_v55  ;;  %19469 = vmatprep.mubr.f32.mxu1 %v10159_v1  ;;  %v8253_v5 = vld [vmem:[%s23269_s22 + $0x30] sm:$0xff]  ;;  %v10165_v9 = vld [vmem:[%s23269_s22 + $0xd8] sm:$0xff]  ;;  %v7063_v54 = vpop.permute.xlu1 %7062 }
 0x432   : > { %v7098_v50 = vmul.f32 %v7048_v39, %v7007_v57  ;;  %21642 = vmatpush3.bf16.msra.mxu0 %v26594_v4  ;;  %18927 = vmatprep.mubr.f32.mxu0 %v8070_v43  ;;  %v14625_v57 = vld [vmem:[%s28916_s5 + $0x3c0] sm:$0xff] }
 0x433   : > { %vm6982_vm8 = vcmp.ge.f32.partialorder %v6969_v51, 0.0  ;;  %v6995_v23 = vmul.f32 0.05, %v6969_v51  ;;  %v6950_v61 = vadd.f32 %v28975_v47, %v6778_v24  ;;  %21644 = vmatprep.subr.bf16.mxu0 %v26618_v60  ;;  %v28978_v43 = vld [vmem:[#allocation16_spill] sm:$0xff]  ;;  %v10167_v47 = vld [vmem:[%s23269_s22 + $0xe8] sm:$0xff] }
 0x434   : > { %7111 = vst [vmem:[%s23269_s22 + $0x12d] sm:$0xff] %v7098_v50  ;;  %v6739_v38 = vpop.f32.mrb[200].mxu0  ;;  %19470 = vmatmul.mubr.f32.vlgmr.msra.gmra.mrb[110].mxu1 %v10160_v15 }
 0x435   : > { %v7008_v34 = vsel %vm6982_vm8, %v6969_v51, %v6995_v23  ;;  %v6970_v4 = vadd.f32 %v26884_v19, %v6950_v61  ;;  %v6779_v52 = vadd.f32 %v6739_v38, %v26828_v27  ;;  %v18507_v11 = vpop.f32.mrb[201].mxu0  ;;  %18928 = vmatmul.mubr.f32.gmra.mrb[226].mxu0 %v8071_v62  ;;  %19472 = vmatprep.mubr.f32.mxu1 %v10161_v48  ;;  %v8072_v27 = vld [vmem:[%s23269_s22 + $0x86] sm:$0xff]  ;;  %v7068_v61 = vpop.permute.xlu0 %7067 }
 0x436   : > { %v7099_v7 = vmul.f32 %v7053_v26, %v7008_v34  ;;  %21646 = vmatpush3.bf16.msra.mxu0 %v26618_v60  ;;  %21942 = vmatpush3.bf16.msra.mxu1 %v26666_v2  ;;  %v26959_v60 = vpack.c.bf16 %v14622_v56, %v14621_v21  ;;  %v14626_v51 = vld [vmem:[%s28916_s5 + $0x3c8] sm:$0xff]  ;;  %v8255_v23 = vld [vmem:[%s23269_s22 + $0x40] sm:$0xff]  ;;  %v14627_v26 = vld [vmem:[%s28916_s5 + $0x3d0] sm:$0xff] }
 0x437   : > { %vm6983_vm9 = vcmp.ge.f32.partialorder %v6970_v4, 0.0  ;;  %v6996_v13 = vmul.f32 0.05, %v6970_v4  ;;  %v6951_v33 = vadd.f32 %v28976_v53, %v6779_v52  ;;  %18930 = vmatprep.mubr.f32.mxu0 %v8072_v27  ;;  %21648 = vmatprep.subr.bf16.mxu0 %v26642_v28  ;;  %v14628_v34 = vld [vmem:[%s28916_s5 + $0x3d8] sm:$0xff]  ;;  %v28979_v11 = vld [vmem:[#allocation17_spill] sm:$0xff]  ;;  %v10168_v56 = vld [vmem:[%s23269_s22 + $0xf0] sm:$0xff]  ;;  %v7073_v53 = vpop.permute.xlu1 %7072 }
 0x438   : > { %7112 = vst [vmem:[%s23269_s22 + $0x135] sm:$0xff] %v7099_v7  ;;  %v6744_v63 = vpop.f32.mrb[202].mxu0  ;;  %19473 = vmatmul.mubr.f32.gmra.mrb[112].mxu1 %v10162_v14  ;;  %21944 = vmatprep.subr.bf16.mxu1 %v26939_v32  ;;  %v8257_v27 = vld [vmem:[%s23269_s22 + $0x50] sm:$0xff] }
 0x439   : > { %v7009_v20 = vsel %vm6983_vm9, %v6970_v4, %v6996_v13  ;;  %v6971_v59 = vadd.f32 %v26884_v19, %v6951_v33  ;;  %v6780_v44 = vadd.f32 %v6744_v63, %v26836_v58  ;;  %v18510_v30 = vpop.f32.mrb[203].mxu0  ;;  %18931 = vmatmul.mubr.f32.gmra.mrb[228].mxu0 %v8073_v3  ;;  %19475 = vmatprep.mubr.f32.mxu1 %v10163_v41  ;;  %v8252_v58 = vld [vmem:[%s23269_s22 + $0x28] sm:$0xff]  ;;  %v10169_v13 = vld [vmem:[%s23269_s22 + $0xf8] sm:$0xff]  ;;  %v14629_v41 = vld [vmem:[%s28916_s5 + $0x3e0] sm:$0xff] }
 0x43a   : > { %v7100_v31 = vmul.f32 %v7058_v12, %v7009_v20  ;;  %21650 = vmatpush3.bf16.msra.mxu0 %v26642_v28  ;;  %21946 = vmatpush3.bf16.msra.mxu1 %v26939_v32  ;;  %v26979_v28 = vpack.c.bf16 %v14624_v10, %v14623_v22  ;;  %v14630_v12 = vld [vmem:[%s28916_s5 + $0x3e8] sm:$0xff]  ;;  %v27035_v22 = vld [vmem:[%s23269_s22 + $0x100] sm:$0xff] }
 0x43b   : > { %vm6984_vm10 = vcmp.ge.f32.partialorder %v6971_v59, 0.0  ;;  %v6997_v46 = vmul.f32 0.05, %v6971_v59  ;;  %v6952_v49 = vadd.f32 %v28977_v36, %v6780_v44  ;;  %18965 = vmatprep.mubr.f32.mxu0 %v8252_v58  ;;  %21652 = vmatprep.subr.bf16.mxu0 %v26666_v2  ;;  %v28980_v44 = vld [vmem:[#allocation18_spill] sm:$0xff]  ;;  %v27044_v58 = vpack.c.bf16 %v14630_v12, %v14629_v41 }
 0x43c   : > { %7113 = vst [vmem:[%s23269_s22 + $0x13d] sm:$0xff] %v7100_v31  ;;  %v6749_v42 = vpop.f32.mrb[204].mxu0  ;;  %19476 = vmatmul.mubr.f32.gmra.mrb[114].mxu1 %v10164_v8  ;;  %21948 = vmatprep.subr.bf16.mxu1 %v26959_v60  ;;  %v27042_v31 = vld [vmem:[%s23269_s22 + $0x108] sm:$0xff]  ;;  %v14639_v12 = vld [vmem:[%s28916_s5 + $0x430] sm:$0xff] }
 0x43d   : > { %v7010_v18 = vsel %vm6984_vm10, %v6971_v59, %v6997_v46  ;;  %v6972_v55 = vadd.f32 %v26884_v19, %v6952_v49  ;;  %v6781_v1 = vadd.f32 %v6749_v42, %v26844_v45  ;;  %v18513_v39 = vpop.f32.mrb[205].mxu0  ;;  %18966 = vmatmul.mubr.f32.vlgmr.msra.gmra.mrb[214].mxu0 %v8253_v5  ;;  %19478 = vmatprep.mubr.f32.mxu1 %v10165_v9  ;;  %v8254_v45 = vld [vmem:[%s23269_s22 + $0x38] sm:$0xff]  ;;  %v7078_v46 = vpop.permute.xlu0 %7077  ;;  %v14631_v5 = vld [vmem:[%s28916_s5 + $0x3f0] sm:$0xff] }
 0x43e   : > { %v7101_v24 = vmul.f32 %v7063_v54, %v7010_v18  ;;  %21654 = vmatpush3.bf16.msra.mxu0 %v26666_v2  ;;  %21950 = vmatpush3.bf16.msra.mxu1 %v26959_v60  ;;  %v26999_v2 = vpack.c.bf16 %v14626_v51, %v14625_v57  ;;  %v14632_v9 = vld [vmem:[%s28916_s5 + $0x3f8] sm:$0xff]  ;;  %v10356_v41 = vld [vmem:[%s23269_s22 + $0xc9] sm:$0xff] }
 0x43f   : > { %vm6985_vm11 = vcmp.ge.f32.partialorder %v6972_v55, 0.0  ;;  %v6998_v35 = vmul.f32 0.05, %v6972_v55  ;;  %v6953_v29 = vadd.f32 %v28978_v43, %v6781_v1  ;;  %18968 = vmatprep.mubr.f32.mxu0 %v8254_v45  ;;  %21656 = vmatprep.subr.bf16.mxu0 %v26939_v32  ;;  %v27061_v1 = vld [vmem:[%s23269_s22 + $0x110] sm:$0xff]  ;;  %v27068_v57 = vld [vmem:[%s23269_s22 + $0x118] sm:$0xff]  ;;  %v27070_v51 = vpack.c.bf16 %v14632_v9, %v14631_v5 }
 0x440   : > { %7114 = vst [vmem:[%s23269_s22 + $0x145] sm:$0xff] %v7101_v24  ;;  %v6754_v50 = vpop.f32.mrb[206].mxu0  ;;  %19479 = vmatmul.mubr.f32.gmra.mrb[116].mxu1 %v10166_v25  ;;  %21952 = vmatprep.subr.bf16.mxu1 %v26979_v28  ;;  %v7083_v24 = vpop.permute.xlu1 %7082  ;;  %v14634_v25 = vld [vmem:[%s28916_s5 + $0x408] sm:$0xff]  ;;  %v14643_v5 = vld [vmem:[%s28916_s5 + $0x450] sm:$0xff]  ;;  %v14644_v9 = vld [vmem:[%s28916_s5 + $0x458] sm:$0xff] }
 0x441   : > { %v7011_v15 = vsel %vm6985_vm11, %v6972_v55, %v6998_v35  ;;  %v6973_v38 = vadd.f32 %v26884_v19, %v6953_v29  ;;  %v6782_v62 = vadd.f32 %v6754_v50, %v26852_v40  ;;  %v18516_v48 = vpop.f32.mrb[207].mxu0  ;;  %18969 = vmatmul.mubr.f32.gmra.mrb[216].mxu0 %v8255_v23  ;;  %19481 = vmatprep.mubr.f32.mxu1 %v10167_v47  ;;  %v8256_v40 = vld [vmem:[%s23269_s22 + $0x48] sm:$0xff]  ;;  %v14633_v29 = vld [vmem:[%s28916_s5 + $0x400] sm:$0xff] }
 0x442   : > { %v7102_v4 = vmul.f32 %v7068_v61, %v7011_v15  ;;  %21658 = vmatpush3.bf16.msra.mxu0 %v26939_v32  ;;  %21954 = vmatpush3.bf16.msra.mxu1 %v26979_v28  ;;  %v27019_v32 = vpack.c.bf16 %v14628_v34, %v14627_v26  ;;  %v27087_v61 = vld [vmem:[%s23269_s22 + $0x120] sm:$0xff]  ;;  %v14635_v26 = vld [vmem:[%s28916_s5 + $0x410] sm:$0xff]  ;;  %v14636_v34 = vld [vmem:[%s28916_s5 + $0x418] sm:$0xff] }
 0x443   : > { %vm6986_vm12 = vcmp.ge.f32.partialorder %v6973_v38, 0.0  ;;  %v6999_v52 = vmul.f32 0.05, %v6973_v38  ;;  %v6954_v21 = vadd.f32 %v28979_v11, %v6782_v62  ;;  %18971 = vmatprep.mubr.f32.mxu0 %v8256_v40  ;;  %21660 = vmatprep.subr.bf16.mxu0 %v26959_v60  ;;  %v8263_v15 = vld [vmem:[%s23269_s22 + $0x80] sm:$0xff]  ;;  %v7088_v62 = vpop.permute.xlu0 %7087  ;;  %v8264_v40 = vld [vmem:[%s23269_s22 + $0x88] sm:$0xff]  ;;  %v8265_v11 = vld [vmem:[%s23269_s22 + $0x90] sm:$0xff] }
 0x444   : > { %7115 = vst [vmem:[%s23269_s22 + $0x14d] sm:$0xff] %v7102_v4  ;;  %v6759_v7 = vpop.f32.mrb[208].mxu0  ;;  %19482 = vmatmul.mubr.f32.gmra.mrb[118].mxu1 %v10168_v56  ;;  %21956 = vmatprep.subr.bf16.mxu1 %v26999_v2  ;;  %v7093_v56 = vpop.permute.xlu1 %7092 }
 0x445   : > { %v7012_v33 = vsel %vm6986_vm12, %v6973_v38, %v6999_v52  ;;  %v6974_v14 = vadd.f32 %v26884_v19, %v6954_v21  ;;  %v6783_v63 = vadd.f32 %v6759_v7, %v26860_v37  ;;  %v18519_v3 = vpop.f32.mrb[209].mxu0  ;;  %18972 = vmatmul.mubr.f32.gmra.mrb[218].mxu0 %v8257_v27  ;;  %19484 = vmatprep.mubr.f32.mxu1 %v10169_v13  ;;  %v8258_v37 = vld [vmem:[%s23269_s22 + $0x58] sm:$0xff]  ;;  %v14637_v13 = vld [vmem:[%s28916_s5 + $0x420] sm:$0xff] }
 0x446   : > { %v7103_v20 = vmul.f32 %v7073_v53, %v7012_v33  ;;  %21662 = vmatpush3.bf16.msra.mxu0 %v26959_v60  ;;  %21958 = vmatpush3.bf16.msra.mxu1 %v26999_v2  ;;  %v8259_v60 = vld [vmem:[%s23269_s22 + $0x60] sm:$0xff]  ;;  %v21971_v38 = vpack.c.bf16 %v14634_v25, %v14633_v29  ;;  %v10353_v52 = vld [vmem:[%s23269_s22 + $0xb1] sm:$0xff]  ;;  %v21975_v21 = vpack.c.bf16 %v14636_v34, %v14635_v26  ;;  %v8458_v34 = vld [vmem:[%s23269_s22 + $0x89] sm:$0xff] }
 0x447   : > { %vm6987_vm13 = vcmp.ge.f32.partialorder %v6974_v14, 0.0  ;;  %v7000_v59 = vmul.f32 0.05, %v6974_v14  ;;  %v6955_v30 = vadd.f32 %v28980_v44, %v6783_v63  ;;  %18974 = vmatprep.mubr.f32.mxu0 %v8258_v37  ;;  %21664 = vmatprep.subr.bf16.mxu0 %v26979_v28  ;;  %v10354_v27 = vld [vmem:[%s23269_s22 + $0xb9] sm:$0xff]  ;;  %v8446_v37 = vld [vmem:[%s23269_s22 + $0x29] sm:$0xff]  ;;  %v8447_v44 = vld [vmem:[%s23269_s22 + $0x31] sm:$0xff] }
 0x448   : > { %7116 = vst [vmem:[%s23269_s22 + $0x155] sm:$0xff] %v7103_v20  ;;  %v6764_v10 = vpop.f32.mrb[210].mxu0  ;;  %19485 = vmatmul.mubr.f32.gmra.mrb[120].mxu1 %v27035_v22  ;;  %21960 = vmatprep.subr.bf16.mxu1 %v27019_v32  ;;  %v8266_v33 = vld [vmem:[%s23269_s22 + $0x98] sm:$0xff]  ;;  %v8267_v63 = vld [vmem:[%s23269_s22 + $0xa0] sm:$0xff]  ;;  %v14647_v29 = vld [vmem:[%s28916_s5 + $0x470] sm:$0xff] }
 0x449   : > { %v7013_v36 = vsel %vm6987_vm13, %v6974_v14, %v7000_v59  ;;  %v6975_v49 = vadd.f32 %v26884_v19, %v6955_v30  ;;  %v6784_v8 = vadd.f32 %v6764_v10, %v26868_v6  ;;  %v18522_v42 = vpop.f32.mrb[211].mxu0  ;;  %18975 = vmatmul.mubr.f32.gmra.mrb[220].mxu0 %v8259_v60  ;;  %19487 = vmatprep.mubr.f32.mxu1 %v27042_v31  ;;  %v8260_v6 = vld [vmem:[%s23269_s22 + $0x68] sm:$0xff]  ;;  %v14640_v20 = vld [vmem:[%s28916_s5 + $0x438] sm:$0xff]  ;;  %v14641_v60 = vld [vmem:[%s28916_s5 + $0x440] sm:$0xff] }
 0x44a   : > { %v7104_v54 = vmul.f32 %v7078_v46, %v7013_v36  ;;  %21666 = vmatpush3.bf16.msra.mxu0 %v26979_v28  ;;  %21962 = vmatpush3.bf16.msra.mxu1 %v27019_v32  ;;  %v8261_v28 = vld [vmem:[%s23269_s22 + $0x70] sm:$0xff]  ;;  %v10355_v14 = vld [vmem:[%s23269_s22 + $0xc1] sm:$0xff]  ;;  %v21983_v30 = vpack.c.bf16 %v14640_v20, %v14639_v12  ;;  %v10358_v10 = vld [vmem:[%s23269_s22 + $0xd9] sm:$0xff] }
 0x44b   : > { %vm6988_vm14 = vcmp.ge.f32.partialorder %v6975_v49, 0.0  ;;  %v7001_v18 = vmul.f32 0.05, %v6975_v49  ;;  %v6956_v55 = vadd.f32 %v26716_v17, %v6784_v8  ;;  %18977 = vmatprep.mubr.f32.mxu0 %v8260_v6  ;;  %21668 = vmatprep.subr.bf16.mxu0 %v26999_v2  ;;  %v10357_v59 = vld [vmem:[%s23269_s22 + $0xd1] sm:$0xff]  ;;  %v8448_v46 = vld [vmem:[%s23269_s22 + $0x39] sm:$0xff]  ;;  %v10359_v36 = vld [vmem:[%s23269_s22 + $0xe1] sm:$0xff] }
 0x44c   : > { %7117 = vst [vmem:[%s23269_s22 + $0x15d] sm:$0xff] %v7104_v54  ;;  %v6769_v39 = vpop.f32.mrb[212].mxu0  ;;  %19488 = vmatmul.mubr.f32.gmra.mrb[122].mxu1 %v27061_v1  ;;  %21964 = vmatprep.subr.bf16.mxu1 %v27044_v58  ;;  %v10360_v42 = vld [vmem:[%s23269_s22 + $0xe9] sm:$0xff]  ;;  %v10361_v6 = vld [vmem:[%s23269_s22 + $0xf1] sm:$0xff] }
 0x44d   : > { %v7014_v45 = vsel %vm6988_vm14, %v6975_v49, %v7001_v18  ;;  %v6976_v17 = vadd.f32 %v26884_v19, %v6956_v55  ;;  %v6785_v35 = vadd.f32 %v6769_v39, %v26876_v0  ;;  %v18525_v43 = vpop.f32.mrb[213].mxu0  ;;  %18978 = vmatmul.mubr.f32.gmra.mrb[222].mxu0 %v8261_v28  ;;  %19490 = vmatprep.mubr.f32.mxu1 %v27068_v57  ;;  %v8262_v0 = vld [vmem:[%s23269_s22 + $0x78] sm:$0xff]  ;;  %v8449_v49 = vld [vmem:[%s23269_s22 + $0x41] sm:$0xff]  ;;  %v8450_v54 = vld [vmem:[%s23269_s22 + $0x49] sm:$0xff] }
 0x44e   : > { %v7105_v50 = vmul.f32 %v7083_v24, %v7014_v45  ;;  %21670 = vmatpush3.bf16.msra.mxu0 %v26999_v2  ;;  %21966 = vmatpush3.bf16.msra.mxu1 %v27044_v58  ;;  %v10352_v2 = vld [vmem:[%s23269_s22 + $0xa9] sm:$0xff]  ;;  %v8451_v18 = vld [vmem:[%s23269_s22 + $0x51] sm:$0xff]  ;;  %v21991_v55 = vpack.c.bf16 %v14644_v9, %v14643_v5  ;;  %v10362_v39 = vld [vmem:[%s23269_s22 + $0xf9] sm:$0xff] }
 0x44f   : > { %vm6989_vm15 = vcmp.ge.f32.partialorder %v6976_v17, 0.0  ;;  %v7002_v23 = vmul.f32 0.05, %v6976_v17  ;;  %v6957_v47 = vadd.f32 %v26730_v16, %v6785_v35  ;;  %18980 = vmatprep.mubr.f32.mxu0 %v8262_v0  ;;  %21672 = vmatprep.subr.bf16.mxu0 %v27019_v32  ;;  %v14645_v28 = vld [vmem:[%s28916_s5 + $0x460] sm:$0xff]  ;;  %v27166_v43 = vld [vmem:[%s23269_s22 + $0x109] sm:$0xff]  ;;  %v14648_v25 = vld [vmem:[%s28916_s5 + $0x478] sm:$0xff] }
 0x450   : > { %7118 = vst [vmem:[%s23269_s22 + $0x165] sm:$0xff] %v7105_v50  ;;  %19491 = vmatmul.mubr.f32.gmra.mrb[124].mxu1 %v27087_v61  ;;  %21968 = vmatprep.subr.bf16.mxu1 %v27070_v51  ;;  %v8452_v24 = vld [vmem:[%s23269_s22 + $0x59] sm:$0xff]  ;;  %v27161_v45 = vld [vmem:[%s23269_s22 + $0x101] sm:$0xff]  ;;  %v8454_v50 = vld [vmem:[%s23269_s22 + $0x69] sm:$0xff] }
 0x451   : > { %v7015_v48 = vsel %vm6989_vm15, %v6976_v17, %v7002_v23  ;;  %v6977_v16 = vadd.f32 %v26884_v19, %v6957_v47  ;;  %18981 = vmatmul.mubr.f32.gmra.mrb[224].mxu0 %v8263_v15  ;;  %19525 = vmatprep.mubr.f32.mxu1 %v10352_v2  ;;  %v8453_v17 = vld [vmem:[%s23269_s22 + $0x61] sm:$0xff]  ;;  %v27177_v0 = vld [vmem:[%s23269_s22 + $0x111] sm:$0xff]  ;;  %v21999_v47 = vpack.c.bf16 %v14648_v25, %v14647_v29  ;;  %v27182_v15 = vld [vmem:[%s23269_s22 + $0x119] sm:$0xff] }
 0x452   : > { %v7106_v4 = vmul.f32 %v7088_v62, %v7015_v48  ;;  %21674 = vmatpush3.bf16.msra.mxu0 %v27019_v32  ;;  %21970 = vmatpush3.bf16.msra.mxu1 %v27070_v51  ;;  %v14638_v32 = vld [vmem:[%s28916_s5 + $0x428] sm:$0xff]  ;;  %v8455_v23 = vld [vmem:[%s23269_s22 + $0x71] sm:$0xff]  ;;  %v8456_v2 = vld [vmem:[%s23269_s22 + $0x79] sm:$0xff] }
 0x453   : > { %vm6990_vm0 = vcmp.ge.f32.partialorder %v6977_v16, 0.0  ;;  %v7003_v19 = vmul.f32 0.05, %v6977_v16  ;;  %18983 = vmatprep.mubr.f32.mxu0 %v8264_v40  ;;  %21676 = vmatprep.subr.bf16.mxu0 %v27044_v58  ;;  %v21979_v3 = vpack.c.bf16 %v14638_v32, %v14637_v13  ;;  %v27188_v62 = vld [vmem:[%s23269_s22 + $0x121] sm:$0xff]  ;;  %v10545_v26 = vld [vmem:[%s23269_s22 + $0xaa] sm:$0xff]  ;;  %v28981_v40 = vmov 0.0|0.0  }
 0x454   : > { %7119 = vst [vmem:[%s23269_s22 + $0x16d] sm:$0xff] %v7106_v4  ;;  %21972 = vmatprep.subr.bf16.mxu1 %v21971_v38  ;;  %v10950_v48 = vld [vmem:[%s28916_s5] sm:$0xff]  ;;  %v14651_v32 = vld [vmem:[%s28916_s5 + $0x88] sm:$0xff]  ;;  %v10961_v29 = vld [vmem:[%s28916_s5 + $0x58] sm:$0xff] }
 0x455   : > { %v7016_v7 = vsel %vm6990_vm0, %v6977_v16, %v7003_v19  ;;  %19526 = vmatmul.mubr.f32.vlgmr.msra.gmra.mrb[110].mxu1 %v10353_v52  ;;  %18984 = vmatmul.mubr.f32.gmra.mrb[226].mxu0 %v8265_v11  ;;  %v10951_v16 = vld [vmem:[%s28916_s5 + $0x8] sm:$0xff]  ;;  %v8459_v19 = vld [vmem:[%s23269_s22 + $0x91] sm:$0xff]  ;;  %v14650_v13 = vld [vmem:[%s28916_s5 + $0x80] sm:$0xff] }
 0x456   : > { %v7107_v53 = vmul.f32 %v7093_v56, %v7016_v7  ;;  %21678 = vmatpush3.bf16.msra.mxu0 %v27044_v58  ;;  %19528 = vmatprep.mubr.f32.mxu1 %v10354_v27  ;;  %v14642_v58 = vld [vmem:[%s28916_s5 + $0x448] sm:$0xff]  ;;  %v22028_v4 = vpack.c.bf16 %v10951_v16, %v10950_v48  ;;  %v10952_v52 = vld [vmem:[%s28916_s5 + $0x10] sm:$0xff]  ;;  %v10953_v11 = vld [vmem:[%s28916_s5 + $0x18] sm:$0xff] }
 0x457   : > { %21974 = vmatpush3.bf16.msra.mxu1 %v21971_v38  ;;  %18986 = vmatprep.mubr.f32.mxu0 %v8266_v33  ;;  %v21987_v8 = vpack.c.bf16 %v14642_v58, %v14641_v60  ;;  %v10547_v56 = vld [vmem:[%s23269_s22 + $0xba] sm:$0xff]  ;;  %v22031_v27 = vpack.c.bf16 %v10953_v11, %v10952_v52  ;;  %v8640_v12 = vld [vmem:[%s23269_s22 + $0x2a] sm:$0xff]  ;;  %v10550_v60 = vld [vmem:[%s23269_s22 + $0xd2] sm:$0xff] }
 0x458   : > { %7120 = vst [vmem:[%s23269_s22 + $0x175] sm:$0x3f] %v7107_v53  ;;  %21680 = vmatprep.subr.bf16.mxu0 %v27070_v51  ;;  %21976 = vmatprep.subr.bf16.mxu1 %v21975_v21  ;;  %v8460_v7 = vld [vmem:[%s23269_s22 + $0x99] sm:$0xff]  ;;  %v8461_v53 = vld [vmem:[%s23269_s22 + $0xa1] sm:$0xff]  ;;  %v8648_v11 = vld [vmem:[%s23269_s22 + $0x6a] sm:$0xff] }
 0x459   : > { %19529 = vmatmul.mubr.f32.gmra.mrb[112].mxu1 %v10355_v14  ;;  %18987 = vmatmul.mubr.f32.gmra.mrb[228].mxu0 %v8267_v63  ;;  %v10954_v33 = vld [vmem:[%s28916_s5 + $0x20] sm:$0xff]  ;;  %v10955_v14 = vld [vmem:[%s28916_s5 + $0x28] sm:$0xff]  ;;  %v10554_v25 = vld [vmem:[%s23269_s22 + $0xf2] sm:$0xff] }
 0x45a   : > { %21682 = vmatpush3.bf16.msra.mxu0 %v27070_v51  ;;  %19531 = vmatprep.mubr.f32.mxu1 %v10356_v41  ;;  %v14646_v51 = vld [vmem:[%s28916_s5 + $0x468] sm:$0xff]  ;;  %v22004_v41 = vpack.c.bf16 %v14651_v32, %v14650_v13  ;;  %v22034_v20 = vpack.c.bf16 %v10955_v14, %v10954_v33  ;;  %v10551_v58 = vld [vmem:[%s23269_s22 + $0xda] sm:$0xff]  ;;  %v10964_v13 = vld [vmem:[%s28916_s5 + $0x70] sm:$0xff] }
 0x45b   : > { %21978 = vmatpush3.bf16.msra.mxu1 %v21975_v21  ;;  %19021 = vmatprep.mubr.f32.mxu0 %v8446_v37  ;;  %v21995_v35 = vpack.c.bf16 %v14646_v51, %v14645_v28  ;;  %v10548_v63 = vld [vmem:[%s23269_s22 + $0xc2] sm:$0xff]  ;;  %v14652_v37 = vld [vmem:[%s28916_s5 + $0x90] sm:$0xff]  ;;  %v10965_v32 = vld [vmem:[%s28916_s5 + $0x78] sm:$0xff] }
 0x45c   : > { %21684 = vmatprep.subr.bf16.mxu0 %v21971_v38  ;;  %21980 = vmatprep.subr.bf16.mxu1 %v21979_v3  ;;  %v8643_v5 = vld [vmem:[%s23269_s22 + $0x42] sm:$0xff]  ;;  %v14656_v51 = vld [vmem:[%s28916_s5 + $0xb0] sm:$0xff]  ;;  %v27325_v33 = vld [vmem:[%s23269_s22 + $0x11a] sm:$0xff] }
 0x45d   : > { %19532 = vmatmul.mubr.f32.gmra.mrb[114].mxu1 %v10357_v59  ;;  %19022 = vmatmul.mubr.f32.vlgmr.msra.gmra.mrb[214].mxu0 %v8447_v44  ;;  %v14653_v59 = vld [vmem:[%s28916_s5 + $0x98] sm:$0xff]  ;;  %v10958_v9 = vld [vmem:[%s28916_s5 + $0x40] sm:$0xff]  ;;  %v14659_v48 = vld [vmem:[%s28916_s5 + $0xc8] sm:$0xff] }
 0x45e   : > { %21686 = vmatpush3.bf16.msra.mxu0 %v21971_v38  ;;  %19534 = vmatprep.mubr.f32.mxu1 %v10358_v10  ;;  %v8457_v38 = vld [vmem:[%s23269_s22 + $0x81] sm:$0xff]  ;;  %v8641_v44 = vld [vmem:[%s23269_s22 + $0x32] sm:$0xff] }
 0x45f   : > { %21982 = vmatpush3.bf16.msra.mxu1 %v21979_v3  ;;  %19024 = vmatprep.mubr.f32.mxu0 %v8448_v46  ;;  %v10957_v10 = vld [vmem:[%s28916_s5 + $0x38] sm:$0xff]  ;;  %v22007_v46 = vpack.c.bf16 %v14653_v59, %v14652_v37  ;;  %v8647_v16 = vld [vmem:[%s23269_s22 + $0x62] sm:$0xff] }
 0x460   : > { %21688 = vmatprep.subr.bf16.mxu0 %v21975_v21  ;;  %21984 = vmatprep.subr.bf16.mxu1 %v21983_v30  ;;  %v27338_v37 = vld [vmem:[%s23269_s22 + $0x122] sm:$0xff] }
 0x461   : > { %19535 = vmatmul.mubr.f32.gmra.mrb[116].mxu1 %v10359_v36  ;;  %19025 = vmatmul.mubr.f32.gmra.mrb[216].mxu0 %v8449_v49  ;;  %v8642_v36 = vld [vmem:[%s23269_s22 + $0x3a] sm:$0xff] }
 0x462   : > { %21690 = vmatpush3.bf16.msra.mxu0 %v21975_v21  ;;  %19537 = vmatprep.mubr.f32.mxu1 %v10360_v42  ;;  %v10546_v21 = vld [vmem:[%s23269_s22 + $0xb2] sm:$0xff]  ;;  %v14655_v42 = vld [vmem:[%s28916_s5 + $0xa8] sm:$0xff]  ;;  %v14682_v59 = vld [vmem:[%s28916_s5 + $0x180] sm:$0xff] }
 0x463   : > { %21986 = vmatpush3.bf16.msra.mxu1 %v21983_v30  ;;  %19027 = vmatprep.mubr.f32.mxu0 %v8450_v54  ;;  %v10959_v54 = vld [vmem:[%s28916_s5 + $0x48] sm:$0xff] }
 0x464   : > { %21692 = vmatprep.subr.bf16.mxu0 %v21979_v3  ;;  %21988 = vmatprep.subr.bf16.mxu1 %v21987_v8  ;;  %v22040_v28 = vpack.c.bf16 %v10959_v54, %v10958_v9  ;;  %v14666_v54 = vld [vmem:[%s28916_s5 + $0x100] sm:$0xff] }
 0x465   : > { %19538 = vmatmul.mubr.f32.gmra.mrb[118].mxu1 %v10361_v6  ;;  %19028 = vmatmul.mubr.f32.gmra.mrb[218].mxu0 %v8451_v18  ;;  %v10552_v6 = vld [vmem:[%s23269_s22 + $0xe2] sm:$0xff]  ;;  %v10553_v18 = vld [vmem:[%s23269_s22 + $0xea] sm:$0xff] }
 0x466   : > { %21694 = vmatpush3.bf16.msra.mxu0 %v21979_v3  ;;  %19540 = vmatprep.mubr.f32.mxu1 %v10362_v39  ;;  %v10549_v3 = vld [vmem:[%s23269_s22 + $0xca] sm:$0xff] }
 0x467   : > { %21990 = vmatpush3.bf16.msra.mxu1 %v21987_v8  ;;  %19030 = vmatprep.mubr.f32.mxu0 %v8452_v24  ;;  %v8644_v39 = vld [vmem:[%s23269_s22 + $0x4a] sm:$0xff]  ;;  %v14657_v24 = vld [vmem:[%s28916_s5 + $0xb8] sm:$0xff] }
 0x468   : > { %21696 = vmatprep.subr.bf16.mxu0 %v21983_v30  ;;  %21992 = vmatprep.subr.bf16.mxu1 %v21991_v55 }
 0x469   : > { %19541 = vmatmul.mubr.f32.gmra.mrb[120].mxu1 %v27161_v45  ;;  %19031 = vmatmul.mubr.f32.gmra.mrb[220].mxu0 %v8453_v17  ;;  %v8645_v17 = vld [vmem:[%s23269_s22 + $0x52] sm:$0xff] }
 0x46a   : > { %21698 = vmatpush3.bf16.msra.mxu0 %v21983_v30  ;;  %19543 = vmatprep.mubr.f32.mxu1 %v27166_v43  ;;  %v10956_v30 = vld [vmem:[%s28916_s5 + $0x30] sm:$0xff] }
 0x46b   : > { %21994 = vmatpush3.bf16.msra.mxu1 %v21991_v55  ;;  %19033 = vmatprep.mubr.f32.mxu0 %v8454_v50  ;;  %v22037_v49 = vpack.c.bf16 %v10957_v10, %v10956_v30  ;;  %v10555_v50 = vld [vmem:[%s23269_s22 + $0xfa] sm:$0xff]  ;;  %v8652_v30 = vld [vmem:[%s23269_s22 + $0x8a] sm:$0xff] }
 0x46c   : > { %21700 = vmatprep.subr.bf16.mxu0 %v21987_v8  ;;  %21996 = vmatprep.subr.bf16.mxu1 %v21995_v35 }
 0x46d   : > { %19544 = vmatmul.mubr.f32.gmra.mrb[122].mxu1 %v27177_v0  ;;  %19034 = vmatmul.mubr.f32.gmra.mrb[222].mxu0 %v8455_v23  ;;  %v22013_v23 = vpack.c.bf16 %v14657_v24, %v14656_v51  ;;  %v14668_v51 = vld [vmem:[%s28916_s5 + $0x110] sm:$0xff]  ;;  %v14669_v24 = vld [vmem:[%s28916_s5 + $0x118] sm:$0xff] }
 0x46e   : > { %21702 = vmatpush3.bf16.msra.mxu0 %v21987_v8  ;;  %19546 = vmatprep.mubr.f32.mxu1 %v27182_v15  ;;  %v14654_v8 = vld [vmem:[%s28916_s5 + $0xa0] sm:$0xff] }
 0x46f   : > { %21998 = vmatpush3.bf16.msra.mxu1 %v21995_v35  ;;  %19036 = vmatprep.mubr.f32.mxu0 %v8456_v2 }
 0x470   : > { %21704 = vmatprep.subr.bf16.mxu0 %v21991_v55  ;;  %22000 = vmatprep.subr.bf16.mxu1 %v21999_v47 }
 0x471   : > { %19547 = vmatmul.mubr.f32.gmra.mrb[124].mxu1 %v27188_v62  ;;  %19037 = vmatmul.mubr.f32.gmra.mrb[224].mxu0 %v8457_v38  ;;  %v14658_v38 = vld [vmem:[%s28916_s5 + $0xc0] sm:$0xff] }
 0x472   : > { %21706 = vmatpush3.bf16.msra.mxu0 %v21991_v55  ;;  %19581 = vmatprep.mubr.f32.mxu1 %v10545_v26  ;;  %v22010_v55 = vpack.c.bf16 %v14655_v42, %v14654_v8  ;;  %v10962_v26 = vld [vmem:[%s28916_s5 + $0x60] sm:$0xff]  ;;  %v22016_v52 = vpack.c.bf16 %v14659_v48, %v14658_v38  ;;  %v14684_v8 = vld [vmem:[%s28916_s5 + $0x190] sm:$0xff]  ;;  %v14685_v42 = vld [vmem:[%s28916_s5 + $0x198] sm:$0xff] }
 0x473   : > { %22002 = vmatpush3.bf16.msra.mxu1 %v21999_v47  ;;  %19039 = vmatprep.mubr.f32.mxu0 %v8458_v34  ;;  %v10963_v34 = vld [vmem:[%s28916_s5 + $0x68] sm:$0xff]  ;;  %v14692_v38 = vld [vmem:[%s28916_s5 + $0x1d0] sm:$0xff]  ;;  %v14693_v48 = vld [vmem:[%s28916_s5 + $0x1d8] sm:$0xff] }
 0x474   : > { %21708 = vmatprep.subr.bf16.mxu0 %v21995_v35  ;;  %22027 = vmatprep.subr.bf16.mxu1 %v28981_v40 }
 0x475   : > { %19040 = vmatmul.mubr.f32.gmra.mrb[226].mxu0 %v8459_v19  ;;  %v27301_v19 = vld [vmem:[%s23269_s22 + $0x10a] sm:$0xff] }
 0x476   : > { %19582 = vmatmul.mubr.f32.vlgmr.msra.gmra.mrb[110].mxu1 %v10546_v21  ;;  %21710 = vmatpush3.bf16.msra.mxu0 %v21995_v35  ;;  %v10960_v35 = vld [vmem:[%s28916_s5 + $0x50] sm:$0xff]  ;;  %v22046_v21 = vpack.c.bf16 %v10963_v34, %v10962_v26  ;;  %v14675_v26 = vld [vmem:[%s28916_s5 + $0x148] sm:$0xff] }
 0x477   : > { %19584 = vmatprep.mubr.f32.mxu1 %v10547_v56  ;;  %22029 = vmatpush3.bf16.msra.mxu1 %v22028_v4  ;;  %v22043_v2 = vpack.c.bf16 %v10961_v29, %v10960_v35  ;;  %v27296_v4 = vld [vmem:[%s23269_s22 + $0x102] sm:$0xff]  ;;  %v14660_v56 = vld [vmem:[%s28916_s5 + $0xd0] sm:$0xff]  ;;  %v14689_v35 = vld [vmem:[%s28916_s5 + $0x1b8] sm:$0xff] }
 0x478   : > { %19042 = vmatprep.mubr.f32.mxu0 %v8460_v7  ;;  %21712 = vmatprep.subr.bf16.mxu0 %v21999_v47  ;;  %v14661_v7 = vld [vmem:[%s28916_s5 + $0xd8] sm:$0xff]  ;;  %v14670_v29 = vld [vmem:[%s28916_s5 + $0x120] sm:$0xff]  ;;  %v27460_v34 = vld [vmem:[%s23269_s22 + $0x128] sm:$0xff] }
 0x479   : > { %22030 = vmatprep.subr.bf16.mxu1 %v28981_v40  ;;  %19043 = vmatmul.mubr.f32.gmra.mrb[228].mxu0 %v8461_v53  ;;  %v27320_v53 = vld [vmem:[%s23269_s22 + $0x112] sm:$0xff]  ;;  %v22019_v14 = vpack.c.bf16 %v14661_v7, %v14660_v56 }
 0x47a   : > { %19585 = vmatmul.mubr.f32.gmra.mrb[112].mxu1 %v10548_v63  ;;  %21714 = vmatpush3.bf16.msra.mxu0 %v21999_v47  ;;  %v8646_v47 = vld [vmem:[%s23269_s22 + $0x5a] sm:$0xff] }
 0x47b   : > { %19587 = vmatprep.mubr.f32.mxu1 %v10549_v3  ;;  %22032 = vmatpush3.bf16.msra.mxu1 %v22031_v27  ;;  %v8649_v27 = vld [vmem:[%s23269_s22 + $0x72] sm:$0xff]  ;;  %v8650_v63 = vld [vmem:[%s23269_s22 + $0x7a] sm:$0xff]  ;;  %v22049_v3 = vpack.c.bf16 %v10965_v32, %v10964_v13 }
 0x47c   : > { %19077 = vmatprep.mubr.f32.mxu0 %v8640_v12  ;;  %22003 = vmatprep.subr.bf16.mxu0 %v28981_v40  ;;  %v14663_v12 = vld [vmem:[%s28916_s5 + $0xe8] sm:$0xff]  ;;  %v14677_v56 = vld [vmem:[%s28916_s5 + $0x158] sm:$0xff]  ;;  %v14696_v13 = vld [vmem:[%s28916_s5 + $0x1f0] sm:$0xff] }
 0x47d   : > { %22033 = vmatprep.subr.bf16.mxu1 %v28981_v40  ;;  %19078 = vmatmul.mubr.f32.vlgmr.msra.gmra.mrb[214].mxu0 %v8641_v44  ;;  %v14683_v44 = vld [vmem:[%s28916_s5 + $0x188] sm:$0xff]  ;;  %v14697_v32 = vld [vmem:[%s28916_s5 + $0x1f8] sm:$0xff] }
 0x47e   : > { %19588 = vmatmul.mubr.f32.gmra.mrb[114].mxu1 %v10550_v60  ;;  %22005 = vmatpush3.bf16.msra.mxu0 %v22004_v41  ;;  %v14662_v41 = vld [vmem:[%s28916_s5 + $0xe0] sm:$0xff]  ;;  %v14664_v60 = vld [vmem:[%s28916_s5 + $0xf0] sm:$0xff] }
 0x47f   : > { %19590 = vmatprep.mubr.f32.mxu1 %v10551_v58  ;;  %22035 = vmatpush3.bf16.msra.mxu1 %v22034_v20  ;;  %v8651_v20 = vld [vmem:[%s23269_s22 + $0x82] sm:$0xff]  ;;  %v22022_v10 = vpack.c.bf16 %v14663_v12, %v14662_v41  ;;  %v14665_v58 = vld [vmem:[%s28916_s5 + $0xf8] sm:$0xff]  ;;  %v22097_v41 = vpack.c.bf16 %v14697_v32, %v14696_v13 }
 0x480   : > { %19080 = vmatprep.mubr.f32.mxu0 %v8642_v36  ;;  %22006 = vmatprep.subr.bf16.mxu0 %v28981_v40  ;;  %v8653_v36 = vld [vmem:[%s23269_s22 + $0x92] sm:$0xff]  ;;  %v22025_v9 = vpack.c.bf16 %v14665_v58, %v14664_v60  ;;  %v14707_v32 = vld [vmem:[%s28916_s5 + $0x248] sm:$0xff] }
 0x481   : > { %22036 = vmatprep.subr.bf16.mxu1 %v28981_v40  ;;  %19081 = vmatmul.mubr.f32.gmra.mrb[216].mxu0 %v8643_v5  ;;  %v8654_v5 = vld [vmem:[%s23269_s22 + $0x9a] sm:$0xff] }
 0x482   : > { %19591 = vmatmul.mubr.f32.gmra.mrb[116].mxu1 %v10552_v6  ;;  %22008 = vmatpush3.bf16.msra.mxu0 %v22007_v46  ;;  %v27355_v46 = vld [vmem:[#allocation2] sm:$0xff]  ;;  %v14667_v6 = vld [vmem:[%s28916_s5 + $0x108] sm:$0xff]  ;;  %v27509_v12 = vld [vmem:[%s23269_s22 + $0x138] sm:$0xff] }
 0x483   : > { %19593 = vmatprep.mubr.f32.mxu1 %v10553_v18  ;;  %22038 = vmatpush3.bf16.msra.mxu1 %v22037_v49  ;;  %v22076_v49 = vpack.c.bf16 %v14683_v44, %v14682_v59  ;;  %v8655_v18 = vld [vmem:[%s23269_s22 + $0xa2] sm:$0xff]  ;;  %v27519_v59 = vld [vmem:[%s23269_s22 + $0x131] sm:$0xff]  ;;  %v27539_v58 = vld [vmem:[%s23269_s22 + $0x139] sm:$0xff]  ;;  %483 = vst [vmem:[%s27798_s29] sm:$0xff] %v27355_v46 }
 0x484   : > { %19083 = vmatprep.mubr.f32.mxu0 %v8644_v39  ;;  %22009 = vmatprep.subr.bf16.mxu0 %v28981_v40  ;;  %v14687_v39 = vld [vmem:[%s28916_s5 + $0x1a8] sm:$0xff]  ;;  %v14680_v44 = vld [vmem:[%s28916_s5 + $0x170] sm:$0xff]  ;;  %484 = vst [vmem:[%s27798_s29 + $0x8] sm:$0xff] %v27355_v46  ;;  %485 = vst [vmem:[%s27798_s29 + $0x10] sm:$0xff] %v27355_v46 }
 0x485   : > { %22039 = vmatprep.subr.bf16.mxu1 %v28981_v40  ;;  %19084 = vmatmul.mubr.f32.gmra.mrb[218].mxu0 %v8645_v17  ;;  %v14688_v17 = vld [vmem:[%s28916_s5 + $0x1b0] sm:$0xff]  ;;  %486 = vst [vmem:[%s27798_s29 + $0x18] sm:$0xff] %v27355_v46  ;;  %487 = vst [vmem:[%s27798_s29 + $0x20] sm:$0xff] %v27355_v46 }
 0x486   : > { %19594 = vmatmul.mubr.f32.gmra.mrb[118].mxu1 %v10554_v25  ;;  %22011 = vmatpush3.bf16.msra.mxu0 %v22010_v55  ;;  %v14686_v55 = vld [vmem:[%s28916_s5 + $0x1a0] sm:$0xff]  ;;  %v14671_v25 = vld [vmem:[%s28916_s5 + $0x128] sm:$0xff]  ;;  %488 = vst [vmem:[%s27798_s29 + $0x28] sm:$0xff] %v27355_v46  ;;  %489 = vst [vmem:[%s27798_s29 + $0x30] sm:$0xff] %v27355_v46 }
 0x487   : > { %19596 = vmatprep.mubr.f32.mxu1 %v10555_v50  ;;  %22041 = vmatpush3.bf16.msra.mxu1 %v22040_v28  ;;  %v22052_v28 = vpack.c.bf16 %v14667_v6, %v14666_v54  ;;  %v14690_v50 = vld [vmem:[%s28916_s5 + $0x1c0] sm:$0xff]  ;;  %v14715_v6 = vld [vmem:[%s28916_s5 + $0x288] sm:$0xff]  ;;  %490 = vst [vmem:[%s27798_s29 + $0x38] sm:$0xff] %v27355_v46 }
 0x488   : > { %19086 = vmatprep.mubr.f32.mxu0 %v8646_v47  ;;  %22012 = vmatprep.subr.bf16.mxu0 %v28981_v40  ;;  %v14672_v47 = vld [vmem:[%s28916_s5 + $0x130] sm:$0xff]  ;;  %v14714_v54 = vld [vmem:[%s28916_s5 + $0x280] sm:$0xff] }
 0x489   : > { %22042 = vmatprep.subr.bf16.mxu1 %v28981_v40  ;;  %19087 = vmatmul.mubr.f32.gmra.mrb[220].mxu0 %v8647_v16  ;;  %v14674_v16 = vld [vmem:[%s28916_s5 + $0x140] sm:$0xff] }
 0x48a   : > { %19597 = vmatmul.mubr.f32.gmra.mrb[120].mxu1 %v27296_v4  ;;  %22014 = vmatpush3.bf16.msra.mxu0 %v22013_v23  ;;  %v14691_v23 = vld [vmem:[%s28916_s5 + $0x1c8] sm:$0xff] }
 0x48b   : > { %19599 = vmatprep.mubr.f32.mxu1 %v27301_v19  ;;  %22044 = vmatpush3.bf16.msra.mxu1 %v22043_v2  ;;  %v14673_v2 = vld [vmem:[%s28916_s5 + $0x138] sm:$0xff] }
 0x48c   : > { %19089 = vmatprep.mubr.f32.mxu0 %v8648_v11  ;;  %22015 = vmatprep.subr.bf16.mxu0 %v28981_v40  ;;  %v14695_v11 = vld [vmem:[%s28916_s5 + $0x1e8] sm:$0xff] }
 0x48d   : > { %22045 = vmatprep.subr.bf16.mxu1 %v28981_v40  ;;  %19090 = vmatmul.mubr.f32.gmra.mrb[222].mxu0 %v8649_v27  ;;  %v27483_v27 = vld [vmem:[%s23269_s22 + $0x130] sm:$0xff] }
 0x48e   : > { %19600 = vmatmul.mubr.f32.gmra.mrb[122].mxu1 %v27320_v53  ;;  %22017 = vmatpush3.bf16.msra.mxu0 %v22016_v52  ;;  %v14694_v52 = vld [vmem:[%s28916_s5 + $0x1e0] sm:$0xff] }
 0x48f   : > { %19602 = vmatprep.mubr.f32.mxu1 %v27325_v33  ;;  %22047 = vmatpush3.bf16.msra.mxu1 %v22046_v21  ;;  %v14676_v21 = vld [vmem:[%s28916_s5 + $0x150] sm:$0xff]  ;;  %v22094_v7 = vpack.c.bf16 %v14695_v11, %v14694_v52  ;;  %v14705_v11 = vld [vmem:[%s28916_s5 + $0x238] sm:$0xff] }
 0x490   : > { %19092 = vmatprep.mubr.f32.mxu0 %v8650_v63  ;;  %22018 = vmatprep.subr.bf16.mxu0 %v28981_v40  ;;  %v14678_v63 = vld [vmem:[%s28916_s5 + $0x160] sm:$0xff] }
 0x491   : > { %22048 = vmatprep.subr.bf16.mxu1 %v28981_v40  ;;  %19093 = vmatmul.mubr.f32.gmra.mrb[224].mxu0 %v8651_v20 }
 0x492   : > { %19603 = vmatmul.mubr.f32.gmra.mrb[124].mxu1 %v27338_v37  ;;  %22020 = vmatpush3.bf16.msra.mxu0 %v22019_v14  ;;  %v27499_v14 = vld [vmem:[%s23269_s22 + $0x129] sm:$0xff] }
 0x493   : > { %22050 = vmatpush3.bf16.msra.mxu1 %v22049_v3  ;;  %19095 = vmatprep.mubr.f32.mxu0 %v8652_v30  ;;  %v14679_v3 = vld [vmem:[%s28916_s5 + $0x168] sm:$0xff]  ;;  %v14681_v30 = vld [vmem:[%s28916_s5 + $0x178] sm:$0xff] }
 0x494   : > { %19708 = vmatprep.mubr.msk.f32.mxu1 %vm23118_vm1, %v27355_v46  ;;  %22021 = vmatprep.subr.bf16.mxu0 %v28981_v40  ;;  %v22070_v20 = vpack.c.bf16 %v14679_v3, %v14678_v63  ;;  %v22073_v60 = vpack.c.bf16 %v14681_v30, %v14680_v44  ;;  %v11432_v63 = vld [vmem:[%s23269_s22 + $0x13c] sm:$0xff] }
 0x495   : > { %19096 = vmatmul.mubr.f32.gmra.mrb[226].mxu0 %v8653_v36  ;;  %22075 = vmatprep.subr.bf16.mxu1 %v28981_v40  ;;  %v27543_v36 = vld [vmem:[%s23269_s22 + $0x148] sm:$0xff]  ;;  %v14726_v3 = vld [vmem:[%s28916_s5 + $0x2e0] sm:$0xff]  ;;  %v14709_v44 = vld [vmem:[%s28916_s5 + $0x258] sm:$0xff] }
 0x496   : > { %19709 = vmatmul.mubr.f32.vlgmr.msra.gmra.mrb[126].mxu1 %v27035_v22  ;;  %22023 = vmatpush3.bf16.msra.mxu0 %v22022_v10  ;;  %v22079_v22 = vpack.c.bf16 %v14685_v42, %v14684_v8  ;;  %v27529_v10 = vld [vmem:[%s23269_s22 + $0x140] sm:$0xff]  ;;  %v27556_v8 = vld [vmem:[%s23269_s22 + $0x150] sm:$0xff] }
 0x497   : > { %19098 = vmatprep.mubr.f32.mxu0 %v8654_v5  ;;  %19711 = vmatprep.mubr.msk.f32.mxu1 %vm23118_vm1, %v27355_v46  ;;  %v27565_v42 = vld [vmem:[%s23269_s22 + $0x149] sm:$0xff]  ;;  %v10948_v5 = vld [vmem:[%s23269_s22 + $0x158] sm:$0xff] }
 0x498   : > { %22024 = vmatprep.subr.bf16.mxu0 %v28981_v40  ;;  %22077 = vmatpush3.bf16.msra.mxu1 %v22076_v49  ;;  %v27552_v49 = vld [vmem:[%s23269_s22 + $0x141] sm:$0xff] }
 0x499   : > { %19099 = vmatmul.mubr.f32.gmra.mrb[228].mxu0 %v8655_v18  ;;  %22078 = vmatprep.subr.bf16.mxu1 %v28981_v40  ;;  %v10949_v18 = vld [vmem:[%s23269_s22 + $0x160] sm:$0x3f] }
 0x49a   : > { %19712 = vmatmul.mubr.f32.gmra.mrb[128].mxu1 %v27042_v31  ;;  %22026 = vmatpush3.bf16.msra.mxu0 %v22025_v9  ;;  %v22082_v31 = vpack.c.bf16 %v14687_v39, %v14686_v55  ;;  %v27574_v9 = vld [vmem:[%s23269_s22 + $0x151] sm:$0xff]  ;;  %v27589_v55 = vld [vmem:[%s23269_s22 + $0x159] sm:$0xff] }
 0x49b   : > { %19714 = vmatprep.mubr.msk.f32.mxu1 %vm23118_vm1, %v27355_v46  ;;  %19637 = vmatprep.mubr.msk.f32.mxu0 %vm23118_vm1, %v27355_v46  ;;  %v14716_v39 = vld [vmem:[%s28916_s5 + $0x290] sm:$0xff] }
 0x49c   : > { %22051 = vmatprep.subr.bf16.mxu0 %v28981_v40  ;;  %22080 = vmatpush3.bf16.msra.mxu1 %v22079_v22  ;;  %v22124_v22 = vpack.c.bf16 %v14715_v6, %v14714_v54  ;;  %v14729_v54 = vld [vmem:[%s28916_s5 + $0x2f8] sm:$0xff]  ;;  %v11260_v6 = vld [vmem:[%s23269_s22 + $0x12a] sm:$0xff] }
 0x49d   : > { %19638 = vmatmul.mubr.f32.vlgmr.msra.gmra.mrb[230].mxu0 %v27161_v45  ;;  %22081 = vmatprep.subr.bf16.mxu1 %v28981_v40  ;;  %v22055_v45 = vpack.c.bf16 %v14669_v24, %v14668_v51  ;;  %v11427_v51 = vld [vmem:[%s23269_s22 + $0x114] sm:$0xff]  ;;  %v14698_v24 = vld [vmem:[%s28916_s5 + $0x200] sm:$0xff] }
 0x49e   : > { %19715 = vmatmul.mubr.f32.gmra.mrb[130].mxu1 %v27061_v1  ;;  %22053 = vmatpush3.bf16.msra.mxu0 %v22052_v28  ;;  %v22085_v1 = vpack.c.bf16 %v14689_v35, %v14688_v17  ;;  %v14717_v28 = vld [vmem:[%s28916_s5 + $0x298] sm:$0xff]  ;;  %v10978_v35 = vld [vmem:[%s23269_s22 + $0x161] sm:$0x3f] }
 0x49f   : > { %19717 = vmatprep.mubr.msk.f32.mxu1 %vm23118_vm1, %v27355_v46  ;;  %19640 = vmatprep.mubr.msk.f32.mxu0 %vm23118_vm1, %v27355_v46  ;;  %v22127_v17 = vpack.c.bf16 %v14717_v28, %v14716_v39  ;;  %v11434_v28 = vld [vmem:[%s23269_s22 + $0x14c] sm:$0xff] }
 0x4a0   : > { %22054 = vmatprep.subr.bf16.mxu0 %v28981_v40  ;;  %22083 = vmatpush3.bf16.msra.mxu1 %v22082_v31  ;;  %v14699_v31 = vld [vmem:[%s28916_s5 + $0x208] sm:$0xff] }
 0x4a1   : > { %19641 = vmatmul.mubr.f32.gmra.mrb[232].mxu0 %v27166_v43  ;;  %22084 = vmatprep.subr.bf16.mxu1 %v28981_v40  ;;  %v22058_v43 = vpack.c.bf16 %v14671_v25, %v14670_v29  ;;  %v14718_v29 = vld [vmem:[%s28916_s5 + $0x2a0] sm:$0xff]  ;;  %v14719_v25 = vld [vmem:[%s28916_s5 + $0x2a8] sm:$0xff] }
 0x4a2   : > { %19718 = vmatmul.mubr.f32.gmra.mrb[132].mxu1 %v27068_v57  ;;  %19643 = vmatprep.mubr.msk.f32.mxu0 %vm23118_vm1, %v27355_v46  ;;  %v22088_v57 = vpack.c.bf16 %v14691_v23, %v14690_v50  ;;  %v14700_v50 = vld [vmem:[%s28916_s5 + $0x210] sm:$0xff]  ;;  %v14701_v23 = vld [vmem:[%s28916_s5 + $0x218] sm:$0xff] }
 0x4a3   : > { %19720 = vmatprep.mubr.msk.f32.mxu1 %vm23118_vm1, %v27355_v46  ;;  %22056 = vmatpush3.bf16.msra.mxu0 %v22055_v45  ;;  %v11428_v45 = vld [vmem:[%s23269_s22 + $0x11c] sm:$0xff] }
 0x4a4   : > { %22057 = vmatprep.subr.bf16.mxu0 %v28981_v40  ;;  %22086 = vmatpush3.bf16.msra.mxu1 %v22085_v1  ;;  %v22100_v1 = vpack.c.bf16 %v14699_v31, %v14698_v24  ;;  %v11261_v24 = vld [vmem:[%s23269_s22 + $0x132] sm:$0xff] }
 0x4a5   : > { %19644 = vmatmul.mubr.f32.gmra.mrb[234].mxu0 %v27177_v0  ;;  %22087 = vmatprep.subr.bf16.mxu1 %v28981_v40  ;;  %v22061_v0 = vpack.c.bf16 %v14673_v2, %v14672_v47  ;;  %v11429_v47 = vld [vmem:[%s23269_s22 + $0x124] sm:$0xff]  ;;  %v14720_v2 = vld [vmem:[%s28916_s5 + $0x2b0] sm:$0xff] }
 0x4a6   : > { %19721 = vmatmul.mubr.f32.gmra.mrb[134].mxu1 %v27087_v61  ;;  %19646 = vmatprep.mubr.msk.f32.mxu0 %vm23118_vm1, %v27355_v46  ;;  %v22091_v61 = vpack.c.bf16 %v14693_v48, %v14692_v38  ;;  %v22103_v38 = vpack.c.bf16 %v14701_v23, %v14700_v50  ;;  %v14703_v48 = vld [vmem:[%s28916_s5 + $0x228] sm:$0xff]  ;;  %v14712_v31 = vld [vmem:[%s28916_s5 + $0x270] sm:$0xff] }
 0x4a7   : > { %19723 = vmatprep.mubr.msk.f32.mxu1 %vm23118_vm1, %v27355_v46  ;;  %22059 = vmatpush3.bf16.msra.mxu0 %v22058_v43  ;;  %v22130_v43 = vpack.c.bf16 %v14719_v25, %v14718_v29  ;;  %v11262_v29 = vld [vmem:[%s23269_s22 + $0x13a] sm:$0xff]  ;;  %v11437_v50 = vld [vmem:[%s23269_s22 + $0x164] sm:$0xff] }
 0x4a8   : > { %22060 = vmatprep.subr.bf16.mxu0 %v28981_v40  ;;  %22089 = vmatpush3.bf16.msra.mxu1 %v22088_v57  ;;  %v14721_v57 = vld [vmem:[%s28916_s5 + $0x2b8] sm:$0xff]  ;;  %v11264_v23 = vld [vmem:[%s23269_s22 + $0x14a] sm:$0xff] }
 0x4a9   : > { %19647 = vmatmul.mubr.f32.gmra.mrb[236].mxu0 %v27182_v15  ;;  %22090 = vmatprep.subr.bf16.mxu1 %v28981_v40  ;;  %v22064_v15 = vpack.c.bf16 %v14675_v26, %v14674_v16  ;;  %v11430_v16 = vld [vmem:[%s23269_s22 + $0x12c] sm:$0xff]  ;;  %v14722_v26 = vld [vmem:[%s28916_s5 + $0x2c0] sm:$0xff] }
 0x4aa   : > { %19724 = vmatmul.mubr.f32.gmra.mrb[136].mxu1 %v27460_v34  ;;  %19649 = vmatprep.mubr.msk.f32.mxu0 %vm23118_vm1, %v27355_v46  ;;  %v11436_v25 = vld [vmem:[%s23269_s22 + $0x15c] sm:$0xff] }
 0x4ab   : > { %19726 = vmatprep.mubr.msk.f32.mxu1 %vm23118_vm1, %v27355_v46  ;;  %22062 = vmatpush3.bf16.msra.mxu0 %v22061_v0  ;;  %v22133_v0 = vpack.c.bf16 %v14721_v57, %v14720_v2  ;;  %v14746_v2 = vld [vmem:[%s28916_s5 + $0x380] sm:$0xff]  ;;  %v14747_v57 = vld [vmem:[%s28916_s5 + $0x388] sm:$0xff] }
 0x4ac   : > { %22063 = vmatprep.subr.bf16.mxu0 %v28981_v40  ;;  %22092 = vmatpush3.bf16.msra.mxu1 %v22091_v61  ;;  %v14723_v61 = vld [vmem:[%s28916_s5 + $0x2c8] sm:$0xff] }
 0x4ad   : > { %19650 = vmatmul.mubr.f32.gmra.mrb[238].mxu0 %v27188_v62  ;;  %22093 = vmatprep.subr.bf16.mxu1 %v28981_v40  ;;  %v22067_v62 = vpack.c.bf16 %v14677_v56, %v14676_v21  ;;  %v11431_v21 = vld [vmem:[%s23269_s22 + $0x134] sm:$0xff] }
 0x4ae   : > { %19727 = vmatmul.mubr.f32.gmra.mrb[138].mxu1 %v27483_v27  ;;  %19652 = vmatprep.mubr.msk.f32.mxu0 %vm23118_vm1, %v27355_v46  ;;  %v14724_v56 = vld [vmem:[%s28916_s5 + $0x2d0] sm:$0xff] }
 0x4af   : > { %19729 = vmatprep.mubr.msk.f32.mxu1 %vm23118_vm1, %v27355_v46  ;;  %22065 = vmatpush3.bf16.msra.mxu0 %v22064_v15  ;;  %v22136_v15 = vpack.c.bf16 %v14723_v61, %v14722_v26  ;;  %v11771_v26 = vld [vmem:[%s23269_s22 + $0x116] sm:$0xff]  ;;  %v14730_v61 = vld [vmem:[%s28916_s5 + $0x300] sm:$0xff] }
 0x4b0   : > { %22066 = vmatprep.subr.bf16.mxu0 %v28981_v40  ;;  %22095 = vmatpush3.bf16.msra.mxu1 %v22094_v7  ;;  %v14725_v7 = vld [vmem:[%s28916_s5 + $0x2d8] sm:$0xff] }
 0x4b1   : > { %19653 = vmatmul.mubr.f32.gmra.mrb[240].mxu0 %v27499_v14  ;;  %22096 = vmatprep.subr.bf16.mxu1 %v28981_v40 }
 0x4b2   : > { %19730 = vmatmul.mubr.f32.gmra.mrb[140].mxu1 %v27509_v12  ;;  %19655 = vmatprep.mubr.msk.f32.mxu0 %vm23118_vm1, %v27355_v46 }
 0x4b3   : > { %19732 = vmatprep.mubr.msk.f32.mxu1 %vm23118_vm1, %v27355_v46  ;;  %22068 = vmatpush3.bf16.msra.mxu0 %v22067_v62  ;;  %v22139_v62 = vpack.c.bf16 %v14725_v7, %v14724_v56  ;;  %v14750_v56 = vld [vmem:[%s28916_s5 + $0x3a0] sm:$0xff]  ;;  %v14751_v7 = vld [vmem:[%s28916_s5 + $0x3a8] sm:$0xff] }
 0x4b4   : > { %22069 = vmatprep.subr.bf16.mxu0 %v28981_v40  ;;  %22098 = vmatpush3.bf16.msra.mxu1 %v22097_v41  ;;  %v14727_v41 = vld [vmem:[%s28916_s5 + $0x2e8] sm:$0xff] }
 0x4b5   : > { %19656 = vmatmul.mubr.f32.gmra.mrb[242].mxu0 %v27519_v59  ;;  %22123 = vmatprep.subr.bf16.mxu1 %v28981_v40  ;;  %v22142_v30 = vpack.c.bf16 %v14727_v41, %v14726_v3  ;;  %v22178_v3 = vpack.c.bf16 %v14751_v7, %v14750_v56  ;;  %v11773_v41 = vld [vmem:[%s23269_s22 + $0x126] sm:$0xff]  ;;  %v14761_v56 = vld [vmem:[%s28916_s5 + $0x3f8] sm:$0xff] }
 0x4b6   : > { %19733 = vmatmul.mubr.f32.gmra.mrb[142].mxu1 %v27529_v10  ;;  %19658 = vmatprep.mubr.msk.f32.mxu0 %vm23118_vm1, %v27355_v46  ;;  %v14779_v7 = vld [vmem:[%s28918_s7 + $0x80] sm:$0xff] }
 0x4b7   : > { %19735 = vmatprep.mubr.msk.f32.mxu1 %vm23118_vm1, %v27355_v46  ;;  %22071 = vmatpush3.bf16.msra.mxu0 %v22070_v20 }
 0x4b8   : > { %22072 = vmatprep.subr.bf16.mxu0 %v28981_v40 }
 0x4b9   : > { %19659 = vmatmul.mubr.f32.gmra.mrb[244].mxu0 %v27539_v58 }
 0x4ba   : > { %19736 = vmatmul.mubr.f32.gmra.mrb[144].mxu1 %v27543_v36  ;;  %19661 = vmatprep.mubr.msk.f32.mxu0 %vm23118_vm1, %v27355_v46 }
 0x4bb   : > { %19738 = vmatprep.mubr.msk.f32.mxu1 %vm23118_vm1, %v27355_v46  ;;  %22074 = vmatpush3.bf16.msra.mxu0 %v22073_v60  ;;  %v11433_v60 = vld [vmem:[%s23269_s22 + $0x144] sm:$0xff] }
 0x4bc   : > { %22099 = vmatprep.subr.bf16.mxu0 %v28981_v40 }
 0x4bd   : > { %19662 = vmatmul.mubr.f32.gmra.mrb[246].mxu0 %v27552_v49 }
 0x4be   : > { %19739 = vmatmul.mubr.f32.gmra.mrb[146].mxu1 %v27556_v8  ;;  %19664 = vmatprep.mubr.msk.f32.mxu0 %vm23118_vm1, %v27355_v46 }
 0x4bf   : > { %19741 = vmatprep.mubr.msk.f32.mxu1 %vm23118_vm1, %v27355_v46 }
 0x4c1   : > { %19665 = vmatmul.mubr.f32.gmra.mrb[248].mxu0 %v27565_v42 }
 0x4c2   : > { %19742 = vmatmul.mubr.f32.gmra.mrb[148].mxu1 %v10948_v5  ;;  %19667 = vmatprep.mubr.msk.f32.mxu0 %vm23118_vm1, %v27355_v46  ;;  %v14728_v5 = vld [vmem:[%s28916_s5 + $0x2f0] sm:$0xff] }
 0x4c3   : > { %19744 = vmatprep.mubr.msk.f32.mxu1 %vm23118_vm1, %v27355_v46  ;;  %v22145_v39 = vpack.c.bf16 %v14729_v54, %v14728_v5  ;;  %v11600_v5 = vld [vmem:[%s23269_s22 + $0x11d] sm:$0xff] }
 0x4c4   : > { %v14734_v54 = vld [vmem:[%s28916_s5 + $0x320] sm:$0xff] }
 0x4c5   : > { %19668 = vmatmul.mubr.f32.gmra.mrb[250].mxu0 %v27574_v9 }
 0x4c6   : > { %19745 = vmatmul.mubr.f32.gmra.mrb[150].mxu1 %v10949_v18  ;;  %19670 = vmatprep.mubr.msk.f32.mxu0 %vm23118_vm1, %v27355_v46  ;;  %v14710_v18 = vld [vmem:[%s28916_s5 + $0x260] sm:$0xff] }
 0x4c7   : > { %19850 = vmatprep.mubr.msk.f32.mxu1 %vm23118_vm1, %v27355_v46 }
 0x4c9   : > { %19671 = vmatmul.mubr.f32.gmra.mrb[252].mxu0 %v27589_v55 }
 0x4ca   : > { %19851 = vmatmul.mubr.f32.vlgmr.msra.gmra.mrb[152].mxu1 %v11427_v51  ;;  %19673 = vmatprep.mubr.msk.f32.mxu0 %vm23118_vm1, %v27355_v46 }
 0x4cb   : > { %19853 = vmatprep.mubr.msk.f32.mxu1 %vm23118_vm1, %v27355_v46  ;;  %22125 = vmatpush3.bf16.msra.mxu1 %v22124_v22  ;;  %v14711_v22 = vld [vmem:[%s28916_s5 + $0x268] sm:$0xff] }
 0x4cc   : > { %22126 = vmatprep.subr.bf16.mxu1 %v28981_v40  ;;  %v22118_v51 = vpack.c.bf16 %v14711_v22, %v14710_v18  ;;  %v11774_v18 = vld [vmem:[%s23269_s22 + $0x12e] sm:$0xff]  ;;  %v14754_v22 = vld [vmem:[%s28916_s5 + $0x3c0] sm:$0xff] }
 0x4cd   : > { %19674 = vmatmul.mubr.f32.gmra.mrb[254].mxu0 %v10978_v35  ;;  %v11435_v35 = vld [vmem:[%s23269_s22 + $0x154] sm:$0xff] }
 0x4ce   : > { %19854 = vmatmul.mubr.f32.gmra.mrb[154].mxu1 %v11428_v45  ;;  %19779 = vmatprep.mubr.msk.f32.mxu0 %vm23118_vm1, %v27355_v46 }
 0x4cf   : > { %19856 = vmatprep.mubr.msk.f32.mxu1 %vm23118_vm1, %v27355_v46  ;;  %22128 = vmatpush3.bf16.msra.mxu1 %v22127_v17  ;;  %v14713_v17 = vld [vmem:[%s28916_s5 + $0x278] sm:$0xff] }
 0x4d0   : > { %22129 = vmatprep.subr.bf16.mxu1 %v28981_v40  ;;  %v22121_v45 = vpack.c.bf16 %v14713_v17, %v14712_v31  ;;  %v14736_v31 = vld [vmem:[%s28916_s5 + $0x330] sm:$0xff]  ;;  %v14737_v17 = vld [vmem:[%s28916_s5 + $0x338] sm:$0xff] }
 0x4d1   : > { %19780 = vmatmul.mubr.f32.vlgmr.msra.gmra.mrb[0].mxu0 %v27296_v4  ;;  %v14702_v4 = vld [vmem:[%s28916_s5 + $0x220] sm:$0xff] }
 0x4d2   : > { %19857 = vmatmul.mubr.f32.gmra.mrb[156].mxu1 %v11429_v47  ;;  %22101 = vmatpush3.bf16.msra.mxu0 %v22100_v1  ;;  %v22106_v52 = vpack.c.bf16 %v14703_v48, %v14702_v4  ;;  %v11263_v1 = vld [vmem:[%s23269_s22 + $0x142] sm:$0xff]  ;;  %v11265_v47 = vld [vmem:[%s23269_s22 + $0x152] sm:$0xff]  ;;  %v22172_v4 = vpack.c.bf16 %v14747_v57, %v14746_v2  ;;  %v11266_v48 = vld [vmem:[%s23269_s22 + $0x15a] sm:$0xff] }
 0x4d3   : > { %19859 = vmatprep.mubr.msk.f32.mxu1 %vm23118_vm1, %v27355_v46  ;;  %19782 = vmatprep.mubr.msk.f32.mxu0 %vm23118_vm1, %v27355_v46  ;;  %v11776_v57 = vld [vmem:[%s23269_s22 + $0x13e] sm:$0xff] }
 0x4d4   : > { %22102 = vmatprep.subr.bf16.mxu0 %v28981_v40  ;;  %22131 = vmatpush3.bf16.msra.mxu1 %v22130_v43  ;;  %v11438_v43 = vld [vmem:[%s23269_s22 + $0x16c] sm:$0xff] }
 0x4d5   : > { %19783 = vmatmul.mubr.f32.gmra.mrb[2].mxu0 %v27301_v19  ;;  %22132 = vmatprep.subr.bf16.mxu1 %v28981_v40  ;;  %v14704_v19 = vld [vmem:[%s28916_s5 + $0x230] sm:$0xff] }
 0x4d6   : > { %19860 = vmatmul.mubr.f32.gmra.mrb[158].mxu1 %v11430_v16  ;;  %19785 = vmatprep.mubr.msk.f32.mxu0 %vm23118_vm1, %v27355_v46  ;;  %v22109_v13 = vpack.c.bf16 %v14705_v11, %v14704_v19  ;;  %v14749_v16 = vld [vmem:[%s28916_s5 + $0x398] sm:$0xff]  ;;  %v27827_v11 = vpop.permute.xlu0 %8923 }
 0x4d7   : > { %19862 = vmatprep.mubr.msk.f32.mxu1 %vm23118_vm1, %v27355_v46  ;;  %22104 = vmatpush3.bf16.msra.mxu0 %v22103_v38  ;;  %v11439_v38 = vld [vmem:[%s23269_s22 + $0x174] sm:$0x3f] }
 0x4d8   : > { %22105 = vmatprep.subr.bf16.mxu0 %v28981_v40  ;;  %22134 = vmatpush3.bf16.msra.mxu1 %v22133_v0  ;;  %v14748_v0 = vld [vmem:[%s28916_s5 + $0x390] sm:$0xff] }
 0x4d9   : > { %19786 = vmatmul.mubr.f32.gmra.mrb[4].mxu0 %v27320_v53  ;;  %22135 = vmatprep.subr.bf16.mxu1 %v28981_v40  ;;  %v14706_v53 = vld [vmem:[%s28916_s5 + $0x240] sm:$0xff]  ;;  %v22175_v19 = vpack.c.bf16 %v14749_v16, %v14748_v0 }
 0x4da   : > { %19863 = vmatmul.mubr.f32.gmra.mrb[160].mxu1 %v11431_v21  ;;  %19788 = vmatprep.mubr.msk.f32.mxu0 %vm23118_vm1, %v27355_v46  ;;  %v22112_v20 = vpack.c.bf16 %v14707_v32, %v14706_v53  ;;  %v11772_v21 = vld [vmem:[%s23269_s22 + $0x11e] sm:$0xff]  ;;  %v11599_v32 = vld [vmem:[%s23269_s22 + $0x115] sm:$0xff] }
 0x4db   : > { %19865 = vmatprep.mubr.msk.f32.mxu1 %vm23118_vm1, %v27355_v46  ;;  %22107 = vmatpush3.bf16.msra.mxu0 %v22106_v52  ;;  %v14731_v52 = vld [vmem:[%s28916_s5 + $0x308] sm:$0xff] }
 0x4dc   : > { %22108 = vmatprep.subr.bf16.mxu0 %v28981_v40  ;;  %22137 = vmatpush3.bf16.msra.mxu1 %v22136_v15  ;;  %v11267_v15 = vld [vmem:[%s23269_s22 + $0x162] sm:$0x3f]  ;;  %v22148_v53 = vpack.c.bf16 %v14731_v52, %v14730_v61  ;;  %v14740_v61 = vld [vmem:[%s28916_s5 + $0x350] sm:$0xff]  ;;  %v14741_v52 = vld [vmem:[%s28916_s5 + $0x358] sm:$0xff] }
 0x4dd   : > { %19789 = vmatmul.mubr.f32.gmra.mrb[6].mxu0 %v27325_v33  ;;  %22138 = vmatprep.subr.bf16.mxu1 %v28981_v40  ;;  %v14708_v33 = vld [vmem:[%s28916_s5 + $0x250] sm:$0xff] }
 0x4de   : > { %19866 = vmatmul.mubr.f32.gmra.mrb[162].mxu1 %v11432_v63  ;;  %19791 = vmatprep.mubr.msk.f32.mxu0 %vm23118_vm1, %v27355_v46  ;;  %v14733_v63 = vld [vmem:[%s28916_s5 + $0x318] sm:$0xff] }
 0x4df   : > { %19868 = vmatprep.mubr.msk.f32.mxu1 %vm23118_vm1, %v27355_v46  ;;  %22110 = vmatpush3.bf16.msra.mxu0 %v22109_v13  ;;  %v27838_v13 = vpop.permute.xlu1 %8928 }
 0x4e0   : > { %22111 = vmatprep.subr.bf16.mxu0 %v28981_v40  ;;  %22140 = vmatpush3.bf16.msra.mxu1 %v22139_v62  ;;  %v14732_v62 = vld [vmem:[%s28916_s5 + $0x310] sm:$0xff] }
 0x4e1   : > { %19792 = vmatmul.mubr.f32.gmra.mrb[8].mxu0 %v27338_v37  ;;  %22141 = vmatprep.subr.bf16.mxu1 %v28981_v40  ;;  %v22115_v37 = vpack.c.bf16 %v14709_v44, %v14708_v33  ;;  %v14753_v33 = vld [vmem:[%s28916_s5 + $0x3b8] sm:$0xff]  ;;  %v27859_v44 = vpop.permute.xlu0 %8958 }
 0x4e2   : > { %19869 = vmatmul.mubr.f32.gmra.mrb[164].mxu1 %v11433_v60  ;;  %19794 = vmatprep.mubr.msk.f32.mxu0 %vm23118_vm1, %v27355_v46 }
 0x4e3   : > { %19871 = vmatprep.mubr.msk.f32.mxu1 %vm23118_vm1, %v27355_v46  ;;  %22113 = vmatpush3.bf16.msra.mxu0 %v22112_v20  ;;  %v14752_v20 = vld [vmem:[%s28916_s5 + $0x3b0] sm:$0xff]  ;;  %v27865_v60 = vpop.permute.xlu1 %8963 }
 0x4e4   : > { %22114 = vmatprep.subr.bf16.mxu0 %v28981_v40  ;;  %22143 = vmatpush3.bf16.msra.mxu1 %v22142_v30  ;;  %v22151_v30 = vpack.c.bf16 %v14733_v63, %v14732_v62  ;;  %v11604_v63 = vld [vmem:[%s23269_s22 + $0x13d] sm:$0xff] }
 0x4e5   : > { %19795 = vmatmul.mubr.f32.gmra.mrb[10].mxu0 %v11260_v6  ;;  %22144 = vmatprep.subr.bf16.mxu1 %v28981_v40  ;;  %v22181_v6 = vpack.c.bf16 %v14753_v33, %v14752_v20  ;;  %v11778_v33 = vld [vmem:[%s23269_s22 + $0x14e] sm:$0xff] }
 0x4e6   : > { %19872 = vmatmul.mubr.f32.gmra.mrb[166].mxu1 %v11434_v28  ;;  %19797 = vmatprep.mubr.msk.f32.mxu0 %vm23118_vm1, %v27355_v46 }
 0x4e7   : > { %19874 = vmatprep.mubr.msk.f32.mxu1 %vm23118_vm1, %v27355_v46  ;;  %22116 = vmatpush3.bf16.msra.mxu0 %v22115_v37  ;;  %v14735_v37 = vld [vmem:[%s28916_s5 + $0x328] sm:$0xff] }
 0x4e8   : > { %22117 = vmatprep.subr.bf16.mxu0 %v28981_v40  ;;  %22146 = vmatpush3.bf16.msra.mxu1 %v22145_v39  ;;  %v14755_v39 = vld [vmem:[%s28916_s5 + $0x3c8] sm:$0xff]  ;;  %v22154_v28 = vpack.c.bf16 %v14735_v37, %v14734_v54 }
 0x4e9   : > { %19798 = vmatmul.mubr.f32.gmra.mrb[12].mxu0 %v11261_v24  ;;  %22171 = vmatprep.subr.bf16.mxu1 %v28981_v40  ;;  %v11601_v24 = vld [vmem:[%s23269_s22 + $0x125] sm:$0xff] }
 0x4ea   : > { %19875 = vmatmul.mubr.f32.gmra.mrb[168].mxu1 %v11435_v35  ;;  %19800 = vmatprep.mubr.msk.f32.mxu0 %vm23118_vm1, %v27355_v46  ;;  %v22184_v35 = vpack.c.bf16 %v14755_v39, %v14754_v22  ;;  %v11605_v37 = vld [vmem:[%s23269_s22 + $0x145] sm:$0xff]  ;;  %v11779_v22 = vld [vmem:[%s23269_s22 + $0x156] sm:$0xff] }
 0x4eb   : > { %19877 = vmatprep.mubr.msk.f32.mxu1 %vm23118_vm1, %v27355_v46  ;;  %22119 = vmatpush3.bf16.msra.mxu0 %v22118_v51  ;;  %v27887_v51 = vpop.permute.xlu0 %8968 }
 0x4ec   : > { %22120 = vmatprep.subr.bf16.mxu0 %v28981_v40 }
 0x4ed   : > { %19801 = vmatmul.mubr.f32.gmra.mrb[14].mxu0 %v11262_v29  ;;  %v14756_v29 = vld [vmem:[%s28916_s5 + $0x3d0] sm:$0xff] }
 0x4ee   : > { %19878 = vmatmul.mubr.f32.gmra.mrb[170].mxu1 %v11436_v25  ;;  %19803 = vmatprep.mubr.msk.f32.mxu0 %vm23118_vm1, %v27355_v46  ;;  %v14757_v25 = vld [vmem:[%s28916_s5 + $0x3d8] sm:$0xff] }
 0x4ef   : > { %19880 = vmatprep.mubr.msk.f32.mxu1 %vm23118_vm1, %v27355_v46  ;;  %22122 = vmatpush3.bf16.msra.mxu0 %v22121_v45  ;;  %v11775_v45 = vld [vmem:[%s23269_s22 + $0x136] sm:$0xff]  ;;  %v22187_v2 = vpack.c.bf16 %v14757_v25, %v14756_v29  ;;  %v11781_v29 = vld [vmem:[%s23269_s22 + $0x166] sm:$0xff] }
 0x4f0   : > { %22147 = vmatprep.subr.bf16.mxu0 %v28981_v40 }
 0x4f1   : > { %19804 = vmatmul.mubr.f32.gmra.mrb[16].mxu0 %v11263_v1  ;;  %v27905_v1 = vpop.permute.xlu1 %8998 }
 0x4f2   : > { %19881 = vmatmul.mubr.f32.gmra.mrb[172].mxu1 %v11437_v50  ;;  %19806 = vmatprep.mubr.msk.f32.mxu0 %vm23118_vm1, %v27355_v46  ;;  %v22157_v50 = vpack.c.bf16 %v14737_v17, %v14736_v31  ;;  %v11606_v31 = vld [vmem:[%s23269_s22 + $0x14d] sm:$0xff]  ;;  %v11780_v17 = vld [vmem:[%s23269_s22 + $0x15e] sm:$0xff] }
 0x4f3   : > { %19883 = vmatprep.mubr.msk.f32.mxu1 %vm23118_vm1, %v27355_v46 }
 0x4f5   : > { %19807 = vmatmul.mubr.f32.gmra.mrb[18].mxu0 %v11264_v23  ;;  %v11602_v23 = vld [vmem:[%s23269_s22 + $0x12d] sm:$0xff]  ;;  %v27933_v16 = vpop.permute.xlu1 %10857 }
 0x4f6   : > { %19884 = vmatmul.mubr.f32.gmra.mrb[174].mxu1 %v11438_v43  ;;  %19809 = vmatprep.mubr.msk.f32.mxu0 %vm23118_vm1, %v27355_v46  ;;  %v14738_v43 = vld [vmem:[%s28916_s5 + $0x340] sm:$0xff] }
 0x4f7   : > { %19886 = vmatprep.mubr.msk.f32.mxu1 %vm23118_vm1, %v27355_v46 }
 0x4f9   : > { %19810 = vmatmul.mubr.f32.gmra.mrb[20].mxu0 %v11265_v47  ;;  %v14739_v47 = vld [vmem:[%s28916_s5 + $0x348] sm:$0xff] }
 0x4fa   : > { %19887 = vmatmul.mubr.f32.gmra.mrb[176].mxu1 %v11439_v38  ;;  %19812 = vmatprep.mubr.msk.f32.mxu0 %vm23118_vm1, %v27355_v46  ;;  %v14758_v38 = vld [vmem:[%s28916_s5 + $0x3e0] sm:$0xff]  ;;  %v22160_v0 = vpack.c.bf16 %v14739_v47, %v14738_v43 }
 0x4fb   : > { %19992 = vmatprep.mubr.msk.f32.mxu1 %vm23118_vm1, %v27355_v46 }
 0x4fd   : > { %19813 = vmatmul.mubr.f32.gmra.mrb[22].mxu0 %v11266_v48  ;;  %v27927_v48 = vpop.permute.xlu0 %10827 }
 0x4fe   : > { %19993 = vmatmul.mubr.f32.vlgmr.msra.gmra.mrb[178].mxu1 %v11771_v26  ;;  %19815 = vmatprep.mubr.msk.f32.mxu0 %vm23118_vm1, %v27355_v46  ;;  %v11603_v26 = vld [vmem:[%s23269_s22 + $0x135] sm:$0xff] }
 0x4ff   : > { %19995 = vmatprep.mubr.msk.f32.mxu1 %vm23118_vm1, %v27355_v46  ;;  %22173 = vmatpush3.bf16.msra.mxu1 %v22172_v4  ;;  %v14759_v4 = vld [vmem:[%s28916_s5 + $0x3e8] sm:$0xff] }
 0x500   : > { %22174 = vmatprep.subr.bf16.mxu1 %v28981_v40 }
 0x501   : > { %19816 = vmatmul.mubr.f32.gmra.mrb[24].mxu0 %v11267_v15  ;;  %v11777_v15 = vld [vmem:[%s23269_s22 + $0x146] sm:$0xff]  ;;  %v27961_v62 = vpop.permute.xlu0 %10862 }
 0x502   : > { %19996 = vmatmul.mubr.f32.gmra.mrb[180].mxu1 %v11772_v21  ;;  %19921 = vmatprep.mubr.msk.f32.mxu0 %vm23118_vm1, %v27355_v46  ;;  %v14760_v21 = vld [vmem:[%s28916_s5 + $0x3f0] sm:$0xff] }
 0x503   : > { %19998 = vmatprep.mubr.msk.f32.mxu1 %vm23118_vm1, %v27355_v46  ;;  %22176 = vmatpush3.bf16.msra.mxu1 %v22175_v19  ;;  %v22190_v19 = vpack.c.bf16 %v14759_v4, %v14758_v38  ;;  %v22193_v20 = vpack.c.bf16 %v14761_v56, %v14760_v21  ;;  %v14781_v38 = vld [vmem:[%s28918_s7 + $0x90] sm:$0xff]  ;;  %v14782_v4 = vld [vmem:[%s28918_s7 + $0x98] sm:$0xff]  ;;  %v14762_v21 = vld [vmem:[%s28916_s5 + $0x400] sm:$0xff] }
 0x504   : > { %22177 = vmatprep.subr.bf16.mxu1 %v28981_v40  ;;  %v14763_v56 = vld [vmem:[%s28916_s5 + $0x408] sm:$0xff] }
 0x505   : > { %19922 = vmatmul.mubr.f32.vlgmr.msra.gmra.mrb[26].mxu0 %v11599_v32  ;;  %v22163_v32 = vpack.c.bf16 %v14741_v52, %v14740_v61  ;;  %v27991_v39 = vpop.permute.xlu0 %10897  ;;  %v22223_v61 = vpack.c.bf16 %v14782_v4, %v14781_v38  ;;  %v14783_v52 = vld [vmem:[%s28918_s7 + $0xa0] sm:$0xff]  ;;  %v28141_v38 = vld [vmem:[%s28916_s5 + $0x458] sm:$0xff] }
 0x506   : > { %19999 = vmatmul.mubr.f32.gmra.mrb[182].mxu1 %v11773_v41  ;;  %22149 = vmatpush3.bf16.msra.mxu0 %v22148_v53  ;;  %v14780_v53 = vld [vmem:[%s28918_s7 + $0x88] sm:$0xff]  ;;  %v28147_v4 = vld [vmem:[%s28917_s6] ss:$0 sm:$0xff] }
 0x507   : > { %20001 = vmatprep.mubr.msk.f32.mxu1 %vm23118_vm1, %v27355_v46  ;;  %19924 = vmatprep.mubr.msk.f32.mxu0 %vm23118_vm1, %v27355_v46  ;;  %v14743_v41 = vld [vmem:[%s28916_s5 + $0x368] sm:$0xff] }
 0x508   : > { %22150 = vmatprep.subr.bf16.mxu0 %v28981_v40  ;;  %22179 = vmatpush3.bf16.msra.mxu1 %v22178_v3  ;;  %v14742_v3 = vld [vmem:[%s28916_s5 + $0x360] sm:$0xff] }
 0x509   : > { %19925 = vmatmul.mubr.f32.gmra.mrb[28].mxu0 %v11600_v5  ;;  %22180 = vmatprep.subr.bf16.mxu1 %v28981_v40  ;;  %v27975_v5 = vpop.permute.xlu1 %10867  ;;  %v22166_v54 = vpack.c.bf16 %v14743_v41, %v14742_v3  ;;  %v14786_v3 = vld [vmem:[%s28918_s7 + $0xb8] sm:$0xff] }
 0x50a   : > { %20002 = vmatmul.mubr.f32.gmra.mrb[184].mxu1 %v11774_v18  ;;  %19927 = vmatprep.mubr.msk.f32.mxu0 %vm23118_vm1, %v27355_v46  ;;  %v14745_v18 = vld [vmem:[%s28916_s5 + $0x378] sm:$0xff] }
 0x50b   : > { %20004 = vmatprep.mubr.msk.f32.mxu1 %vm23118_vm1, %v27355_v46  ;;  %22152 = vmatpush3.bf16.msra.mxu0 %v22151_v30  ;;  %v27973_v30 = vpack.c.bf16 %v14780_v53, %v14779_v7  ;;  %v11611_v7 = vld [vmem:[%s23269_s22 + $0x175] sm:$0x3f] }
 0x50c   : > { %22153 = vmatprep.subr.bf16.mxu0 %v28981_v40  ;;  %22182 = vmatpush3.bf16.msra.mxu1 %v22181_v6  ;;  %v14744_v6 = vld [vmem:[%s28916_s5 + $0x370] sm:$0xff] }
 0x50d   : > { %19928 = vmatmul.mubr.f32.gmra.mrb[30].mxu0 %v11601_v24  ;;  %22183 = vmatprep.subr.bf16.mxu1 %v28981_v40  ;;  %v27997_v24 = vpop.permute.xlu1 %10902 }
 0x50e   : > { %20005 = vmatmul.mubr.f32.gmra.mrb[186].mxu1 %v11775_v45  ;;  %19930 = vmatprep.mubr.msk.f32.mxu0 %vm23118_vm1, %v27355_v46  ;;  %v11607_v45 = vld [vmem:[%s23269_s22 + $0x155] sm:$0xff] }
 0x50f   : > { %20007 = vmatprep.mubr.msk.f32.mxu1 %vm23118_vm1, %v27355_v46  ;;  %22155 = vmatpush3.bf16.msra.mxu0 %v22154_v28  ;;  %v22169_v28 = vpack.c.bf16 %v14745_v18, %v14744_v6  ;;  %v14767_v6 = vld [vmem:[%s28916_s5 + $0x428] sm:$0xff] }
 0x510   : > { %22156 = vmatprep.subr.bf16.mxu0 %v28981_v40  ;;  %22185 = vmatpush3.bf16.msra.mxu1 %v22184_v35  ;;  %v28006_v35 = vpop.permute.xlu0 %12558 }
 0x511   : > { %19931 = vmatmul.mubr.f32.gmra.mrb[32].mxu0 %v11602_v23  ;;  %22186 = vmatprep.subr.bf16.mxu1 %v28981_v40  ;;  %v28011_v25 = vpop.permute.xlu1 %12563  ;;  %v11782_v23 = vld [vmem:[%s23269_s22 + $0x16e] sm:$0xff] }
 0x512   : > { %20008 = vmatmul.mubr.f32.gmra.mrb[188].mxu1 %v11776_v57  ;;  %19933 = vmatprep.mubr.msk.f32.mxu0 %vm23118_vm1, %v27355_v46  ;;  %v11783_v57 = vld [vmem:[%s23269_s22 + $0x176] sm:$0x3f] }
 0x513   : > { %20010 = vmatprep.mubr.msk.f32.mxu1 %vm23118_vm1, %v27355_v46  ;;  %22158 = vmatpush3.bf16.msra.mxu0 %v22157_v50  ;;  %v11608_v50 = vld [vmem:[%s23269_s22 + $0x15d] sm:$0xff] }
 0x514   : > { %22159 = vmatprep.subr.bf16.mxu0 %v28981_v40  ;;  %22188 = vmatpush3.bf16.msra.mxu1 %v22187_v2  ;;  %v28019_v43 = vpop.permute.xlu0 %12568  ;;  %v11609_v2 = vld [vmem:[%s23269_s22 + $0x165] sm:$0xff] }
 0x515   : > { %19934 = vmatmul.mubr.f32.gmra.mrb[34].mxu0 %v11603_v26  ;;  %22189 = vmatprep.subr.bf16.mxu1 %v28981_v40  ;;  %v8934_v47 = vpop.permute.xlu1 %8933  ;;  %v11610_v26 = vld [vmem:[%s23269_s22 + $0x16d] sm:$0xff] }
 0x516   : > { %20011 = vmatmul.mubr.f32.gmra.mrb[190].mxu1 %v11777_v15  ;;  %19936 = vmatprep.mubr.msk.f32.mxu0 %vm23118_vm1, %v27355_v46 }
 0x517   : > { %20013 = vmatprep.mubr.msk.f32.mxu1 %vm23118_vm1, %v27355_v46  ;;  %22161 = vmatpush3.bf16.msra.mxu0 %v22160_v0 }
 0x518   : > { %22162 = vmatprep.subr.bf16.mxu0 %v28981_v40  ;;  %22191 = vmatpush3.bf16.msra.mxu1 %v22190_v19  ;;  %v8939_v0 = vpop.permute.xlu0 %8938  ;;  %v14784_v19 = vld [vmem:[%s28918_s7 + $0xa8] sm:$0xff] }
 0x519   : > { %19937 = vmatmul.mubr.f32.gmra.mrb[36].mxu0 %v11604_v63  ;;  %22192 = vmatprep.subr.bf16.mxu1 %v28981_v40  ;;  %v8944_v15 = vpop.permute.xlu1 %8943  ;;  %v22227_v53 = vpack.c.bf16 %v14784_v19, %v14783_v52  ;;  %v14785_v63 = vld [vmem:[%s28918_s7 + $0xb0] sm:$0xff]  ;;  %v28152_v0 = vld [vmem:[%s28916_s5 + $0x460] sm:$0xff]  ;;  %v14794_v52 = vld [vmem:[%s28918_s7 + $0xf8] sm:$0xff] }
 0x51a   : > { %20014 = vmatmul.mubr.f32.gmra.mrb[192].mxu1 %v11778_v33  ;;  %19939 = vmatprep.mubr.msk.f32.mxu0 %vm23118_vm1, %v27355_v46  ;;  %v22231_v33 = vpack.c.bf16 %v14786_v3, %v14785_v63  ;;  %v28171_v19 = vld [vmem:[%s28916_s5 + $0x470] sm:$0xff]  ;;  %v28176_v15 = vld [vmem:[%s28916_s5 + $0x478] sm:$0xff]  ;;  %v12651_v63 = vld [vmem:[%s28918_s7 + $0x28] sm:$0xff] }
 0x51b   : > { %20016 = vmatprep.mubr.msk.f32.mxu1 %vm23118_vm1, %v27355_v46  ;;  %22164 = vmatpush3.bf16.msra.mxu0 %v22163_v32  ;;  %v28058_v32 = vld [vmem:[#allocation2] sm:$0xff] }
 0x51c   : > { %22165 = vmatprep.subr.bf16.mxu0 %v28981_v40  ;;  %22194 = vmatpush3.bf16.msra.mxu1 %v22193_v20  ;;  %v14765_v20 = vld [vmem:[%s28916_s5 + $0x418] sm:$0xff] }
 0x51d   : > { %19940 = vmatmul.mubr.f32.gmra.mrb[38].mxu0 %v11605_v37  ;;  %22220 = vmatprep.subr.bf16.mxu1 %v27973_v30  ;;  %v8954_v41 = vpop.permute.xlu1 %8953 }
 0x51e   : > { %20017 = vmatmul.mubr.f32.gmra.mrb[194].mxu1 %v11779_v22  ;;  %19942 = vmatprep.mubr.msk.f32.mxu0 %vm23118_vm1, %v27355_v46 }
 0x51f   : > { %20019 = vmatprep.mubr.msk.f32.mxu1 %vm23118_vm1, %v27355_v46  ;;  %22167 = vmatpush3.bf16.msra.mxu0 %v22166_v54  ;;  %v14788_v54 = vld [vmem:[%s28918_s7 + $0xc8] sm:$0xff] }
 0x520   : > { %22168 = vmatprep.subr.bf16.mxu0 %v28981_v40 }
 0x521   : > { %19943 = vmatmul.mubr.f32.gmra.mrb[40].mxu0 %v11606_v31  ;;  %v8979_v22 = vpop.permute.xlu1 %8978  ;;  %v14790_v31 = vld [vmem:[%s28918_s7 + $0xd8] sm:$0xff] }
 0x522   : > { %20020 = vmatmul.mubr.f32.gmra.mrb[196].mxu1 %v11780_v17  ;;  %19945 = vmatprep.mubr.msk.f32.mxu0 %vm23118_vm1, %v27355_v46  ;;  %v14769_v17 = vld [vmem:[%s28916_s5 + $0x438] sm:$0xff] }
 0x523   : > { %20022 = vmatprep.mubr.msk.f32.mxu1 %vm23118_vm1, %v27355_v46  ;;  %22170 = vmatpush3.bf16.msra.mxu0 %v22169_v28  ;;  %v14789_v28 = vld [vmem:[%s28918_s7 + $0xd0] sm:$0xff] }
 0x524   : > { %22195 = vmatprep.subr.bf16.mxu0 %v28981_v40 }
 0x525   : > { %19946 = vmatmul.mubr.f32.gmra.mrb[42].mxu0 %v11607_v45  ;;  %v22239_v45 = vpack.c.bf16 %v14790_v31, %v14789_v28  ;;  %v8989_v47 = vpop.permute.xlu1 %8988  ;;  %v14893_v31 = vld [vmem:[%s28918_s7 + $0x410] sm:$0xff] }
 0x526   : > { %20023 = vmatmul.mubr.f32.gmra.mrb[198].mxu1 %v11781_v29  ;;  %19948 = vmatprep.mubr.msk.f32.mxu0 %vm23118_vm1, %v27355_v46  ;;  %v14896_v47 = vld [vmem:[%s28918_s7 + $0x428] sm:$0xff] }
 0x527   : > { %20025 = vmatprep.mubr.msk.f32.mxu1 %vm23118_vm1, %v27355_v46 }
 0x529   : > { %19949 = vmatmul.mubr.f32.gmra.mrb[44].mxu0 %v11608_v50  ;;  %v14791_v50 = vld [vmem:[%s28918_s7 + $0xe0] sm:$0xff] }
 0x52a   : > { %20026 = vmatmul.mubr.f32.gmra.mrb[200].mxu1 %v11782_v23  ;;  %19951 = vmatprep.mubr.msk.f32.mxu0 %vm23118_vm1, %v27355_v46  ;;  %v14792_v23 = vld [vmem:[%s28918_s7 + $0xe8] sm:$0xff] }
 0x52b   : > { %20028 = vmatprep.mubr.msk.f32.mxu1 %vm23118_vm1, %v27355_v46 }
 0x52d   : > { %19952 = vmatmul.mubr.f32.gmra.mrb[46].mxu0 %v11609_v2  ;;  %v14771_v2 = vld [vmem:[%s28916_s5 + $0x448] sm:$0xff] }
 0x52e   : > { %20029 = vmatmul.mubr.f32.gmra.mrb[202].mxu1 %v11783_v57  ;;  %19954 = vmatprep.mubr.msk.f32.mxu0 %vm23118_vm1, %v27355_v46  ;;  %v28136_v57 = vld [vmem:[%s28916_s5 + $0x450] sm:$0xff] }
 0x52f   : > { %20134 = vmatprep.mubr.msk.f32.mxu1 %vm23118_vm1, %v27355_v46  ;;  %v22211_v41 = vpack.c.bf16 %v28141_v38, %v28136_v57  ;;  %v14897_v38 = vld [vmem:[%s28918_s7 + $0x430] sm:$0xff] }
 0x531   : > { %19955 = vmatmul.mubr.f32.gmra.mrb[48].mxu0 %v11610_v26  ;;  %v28157_v26 = vld [vmem:[%s28916_s5 + $0x468] sm:$0xff] }
 0x532   : > { %20135 = vmatmul.mubr.f32.vlgmr.msra.gmra.mrb[204].mxu1 %v27499_v14  ;;  %19957 = vmatprep.mubr.msk.f32.mxu0 %vm23118_vm1, %v27355_v46  ;;  %v8949_v14 = vpop.permute.xlu0 %8948 }
 0x533   : > { %20137 = vmatprep.mubr.msk.f32.mxu1 %vm23118_vm1, %v27355_v46  ;;  %22222 = vmatpush3.bf16.msra.mxu1 %v27973_v30  ;;  %v22196_v46 = vpack.c.bf16 %v14763_v56, %v14762_v21  ;;  %v14787_v30 = vld [vmem:[%s28918_s7 + $0xc0] sm:$0xff]  ;;  %v12647_v56 = vld [vmem:[%s28918_s7 + $0x8] sm:$0xff]  ;;  %v12649_v14 = vld [vmem:[%s28918_s7 + $0x18] sm:$0xff] }
 0x534   : > { %22224 = vmatprep.subr.bf16.mxu1 %v22223_v61  ;;  %v22235_v18 = vpack.c.bf16 %v14788_v54, %v14787_v30  ;;  %v12646_v21 = vld [vmem:[%s28918_s7] sm:$0xff]  ;;  %v10833_v54 = vpop.permute.xlu1 %10832 }
 0x535   : > { %19958 = vmatmul.mubr.f32.gmra.mrb[50].mxu0 %v11611_v7  ;;  %v12648_v7 = vld [vmem:[%s28918_s7 + $0x10] sm:$0xff]  ;;  %v12654_v30 = vld [vmem:[%s28918_s7 + $0x40] sm:$0xff]  ;;  %v28230_v22 = vpack.c.bf16 %v12647_v56, %v12646_v21 }
 0x536   : > { %20138 = vmatmul.mubr.f32.gmra.mrb[206].mxu1 %v27519_v59  ;;  %20063 = vmatprep.mubr.msk.f32.mxu0 %vm23118_vm1, %v28058_v32  ;;  %v14764_v59 = vld [vmem:[%s28916_s5 + $0x410] sm:$0xff]  ;;  %v28232_v28 = vpack.c.bf16 %v12649_v14, %v12648_v7  ;;  %v23105_v14 = vld [vmem:[%s23269_s22 + $0x158] sm:$0xff] }
 0x537   : > { %20140 = vmatprep.mubr.msk.f32.mxu1 %vm23118_vm1, %v28058_v32  ;;  %22226 = vmatpush3.bf16.msra.mxu1 %v22223_v61  ;;  %v22199_v37 = vpack.c.bf16 %v14765_v20, %v14764_v59  ;;  %v22243_v61 = vpack.c.bf16 %v14792_v23, %v14791_v50  ;;  %v12652_v20 = vld [vmem:[%s28918_s7 + $0x30] sm:$0xff] }
 0x538   : > { %22228 = vmatprep.subr.bf16.mxu1 %v22227_v53  ;;  %v12123_v7 = vld [vmem:[%s23269_s22 + $0x169] sm:$0xff] }
 0x539   : > { %20064 = vmatmul.mubr.f32.vlgmr.msra.gmra.mrb[52].mxu0 %v27460_v34  ;;  %v8974_v34 = vpop.permute.xlu0 %8973 }
 0x53a   : > { %20141 = vmatmul.mubr.f32.gmra.mrb[208].mxu1 %v27539_v58  ;;  %22197 = vmatpush3.bf16.msra.mxu0 %v22196_v46  ;;  %v14766_v58 = vld [vmem:[%s28916_s5 + $0x420] sm:$0xff]  ;;  %v22217_v34 = vpack.c.bf16 %v28176_v15, %v28171_v19 }
 0x53b   : > { %20143 = vmatprep.mubr.msk.f32.mxu1 %vm23118_vm1, %v28058_v32  ;;  %20066 = vmatprep.mubr.msk.f32.mxu0 %vm23118_vm1, %v28058_v32  ;;  %v12650_v46 = vld [vmem:[%s28918_s7 + $0x20] sm:$0xff] }
 0x53c   : > { %22198 = vmatprep.subr.bf16.mxu0 %v28981_v40  ;;  %22230 = vmatpush3.bf16.msra.mxu1 %v22227_v53 }
 0x53d   : > { %20067 = vmatmul.mubr.f32.gmra.mrb[54].mxu0 %v27483_v27  ;;  %22232 = vmatprep.subr.bf16.mxu1 %v22231_v33  ;;  %v22202_v27 = vpack.c.bf16 %v14767_v6, %v14766_v58  ;;  %v8984_v29 = vpop.permute.xlu0 %8983  ;;  %v12655_v58 = vld [vmem:[%s28918_s7 + $0x48] sm:$0xff]  ;;  %v14891_v6 = vld [vmem:[%s28918_s7 + $0x400] sm:$0xff] }
 0x53e   : > { %20144 = vmatmul.mubr.f32.gmra.mrb[210].mxu1 %v27552_v49  ;;  %20069 = vmatprep.mubr.msk.f32.mxu0 %vm23118_vm1, %v28058_v32  ;;  %v14768_v49 = vld [vmem:[%s28916_s5 + $0x430] sm:$0xff]  ;;  %v28247_v23 = vpack.c.bf16 %v12655_v58, %v12654_v30 }
 0x53f   : > { %20146 = vmatprep.mubr.msk.f32.mxu1 %vm23118_vm1, %v28058_v32  ;;  %22200 = vmatpush3.bf16.msra.mxu0 %v22199_v37  ;;  %v22214_v37 = vpack.c.bf16 %v28157_v26, %v28152_v0  ;;  %v14898_v0 = vld [vmem:[%s28918_s7 + $0x438] sm:$0xff] }
 0x540   : > { %22201 = vmatprep.subr.bf16.mxu0 %v28981_v40  ;;  %22234 = vmatpush3.bf16.msra.mxu1 %v22231_v33  ;;  %v12653_v33 = vld [vmem:[%s28918_s7 + $0x38] sm:$0xff] }
 0x541   : > { %20070 = vmatmul.mubr.f32.gmra.mrb[56].mxu0 %v27509_v12  ;;  %22236 = vmatprep.subr.bf16.mxu1 %v22235_v18  ;;  %v22205_v12 = vpack.c.bf16 %v14769_v17, %v14768_v49  ;;  %v8994_v53 = vpop.permute.xlu0 %8993  ;;  %v12122_v49 = vld [vmem:[%s23269_s22 + $0x161] sm:$0xff]  ;;  %v28242_v17 = vpack.c.bf16 %v12651_v63, %v12650_v46  ;;  %v28278_v46 = vpack.c.bf16 %v14898_v0, %v14897_v38  ;;  %v11952_v0 = vld [vmem:[%s23269_s22 + $0x170] sm:$0xff] }
 0x542   : > { %20147 = vmatmul.mubr.f32.gmra.mrb[212].mxu1 %v27565_v42  ;;  %20072 = vmatprep.mubr.msk.f32.mxu0 %vm23118_vm1, %v28058_v32  ;;  %v14770_v42 = vld [vmem:[%s28916_s5 + $0x440] sm:$0xff] }
 0x543   : > { %20149 = vmatprep.mubr.msk.f32.mxu1 %vm23118_vm1, %v28058_v32  ;;  %22203 = vmatpush3.bf16.msra.mxu0 %v22202_v27  ;;  %v14894_v27 = vld [vmem:[%s28918_s7 + $0x418] sm:$0xff] }
 0x544   : > { %22204 = vmatprep.subr.bf16.mxu0 %v28981_v40  ;;  %22238 = vmatpush3.bf16.msra.mxu1 %v22235_v18 }
 0x545   : > { %20073 = vmatmul.mubr.f32.gmra.mrb[58].mxu0 %v27529_v10  ;;  %22240 = vmatprep.subr.bf16.mxu1 %v22239_v45  ;;  %v14793_v10 = vld [vmem:[%s28918_s7 + $0xf0] sm:$0xff] }
 0x546   : > { %20150 = vmatmul.mubr.f32.gmra.mrb[214].mxu1 %v27574_v9  ;;  %20075 = vmatprep.mubr.msk.f32.mxu0 %vm23118_vm1, %v28058_v32  ;;  %v22208_v9 = vpack.c.bf16 %v14771_v2, %v14770_v42  ;;  %v22247_v59 = vpack.c.bf16 %v14794_v52, %v14793_v10  ;;  %v14895_v42 = vld [vmem:[%s28918_s7 + $0x420] sm:$0xff]  ;;  %v10838_v2 = vpop.permute.xlu0 %10837 }
 0x547   : > { %20152 = vmatprep.mubr.msk.f32.mxu1 %vm23118_vm1, %v28058_v32  ;;  %22206 = vmatpush3.bf16.msra.mxu0 %v22205_v12 }
 0x548   : > { %22207 = vmatprep.subr.bf16.mxu0 %v28981_v40  ;;  %22242 = vmatpush3.bf16.msra.mxu1 %v22239_v45  ;;  %v28244_v45 = vpack.c.bf16 %v12653_v33, %v12652_v20  ;;  %v11950_v20 = vld [vmem:[%s23269_s22 + $0x160] sm:$0xff] }
 0x549   : > { %v19583_v3 = vpop.f32.mrb[110].mxu1  ;;  %20076 = vmatmul.mubr.f32.gmra.mrb[60].mxu0 %v27543_v36  ;;  %22244 = vmatprep.subr.bf16.mxu1 %v22243_v61 }
 0x54a   : > { %v10643_v36 = vpop.f32.mrb[111].mxu1  ;;  %20153 = vmatmul.mubr.f32.gmra.mrb[216].mxu1 %v27589_v55  ;;  %20078 = vmatprep.mubr.msk.f32.mxu0 %vm23118_vm1, %v28058_v32  ;;  %v14892_v55 = vld [vmem:[%s28918_s7 + $0x408] sm:$0xff] }
 0x54b   : > { %v10745_v18 = vadd.f32 %v28147_v4, %v10643_v36  ;;  %20155 = vmatprep.mubr.msk.f32.mxu1 %vm23118_vm1, %v28058_v32  ;;  %22209 = vmatpush3.bf16.msra.mxu0 %v22208_v9  ;;  %v28249_v12 = vpack.c.bf16 %v14892_v55, %v14891_v6  ;;  %v28272_v9 = vpack.c.bf16 %v14896_v47, %v14895_v42  ;;  %v12124_v36 = vld [vmem:[%s23269_s22 + $0x171] sm:$0xff]  ;;  %v12125_v42 = vld [vmem:[%s23269_s22 + $0x179] sm:$0xff] }
 0x54c   : > { %22210 = vmatprep.subr.bf16.mxu0 %v28981_v40  ;;  %22246 = vmatpush3.bf16.msra.mxu1 %v22243_v61  ;;  %v10843_v61 = vpop.permute.xlu1 %10842 }
 0x54d   : > { %vm10761_vm2 = vcmp.ge.f32.partialorder %v10745_v18, 0.0  ;;  %v10777_v29 = vmul.f32 0.05, %v10745_v18  ;;  %v19586_v50 = vpop.f32.mrb[112].mxu1  ;;  %20079 = vmatmul.mubr.f32.gmra.mrb[62].mxu0 %v27556_v8  ;;  %22248 = vmatprep.subr.bf16.mxu1 %v22247_v59  ;;  %v28259_v8 = vpack.c.bf16 %v14894_v27, %v14893_v31 }
 0x54e   : > { %v10653_v57 = vpop.f32.mrb[113].mxu1  ;;  %20156 = vmatmul.mubr.f32.gmra.mrb[218].mxu1 %v12122_v49  ;;  %20081 = vmatprep.mubr.msk.f32.mxu0 %vm23118_vm1, %v28058_v32  ;;  %v11951_v49 = vld [vmem:[%s23269_s22 + $0x168] sm:$0xff] }
 0x54f   : > { %v10793_v26 = vsel %vm10761_vm2, %v10745_v18, %v10777_v29  ;;  %20158 = vmatprep.mubr.msk.f32.mxu1 %vm23118_vm1, %v28058_v32  ;;  %22212 = vmatpush3.bf16.msra.mxu0 %v22211_v41  ;;  %v10848_v41 = vpop.permute.xlu0 %10847 }
 0x550   : > { %v10905_v10 = vmul.f32 %v27927_v48, %v10793_v26  ;;  %v19079_v52 = vpop.f32.mrb[214].mxu0  ;;  %22213 = vmatprep.subr.bf16.mxu0 %v28981_v40  ;;  %22250 = vmatpush3.bf16.msra.mxu1 %v22247_v59  ;;  %v10853_v6 = vpop.permute.xlu1 %10852  ;;  %v12126_v26 = vld [vmem:[%s23269_s22 + $0x181] sm:$0xff] }
 0x551   : > { %v19589_v21 = vpop.f32.mrb[114].mxu1  ;;  %v8842_v56 = vadd.f32 %v19079_v52, %v28147_v4  ;;  %v8739_v53 = vpop.f32.mrb[215].mxu0  ;;  %20082 = vmatmul.mubr.f32.gmra.mrb[64].mxu0 %v23105_v14  ;;  %22252 = vmatprep.subr.bf16.mxu1 %v28230_v22 }
 0x552   : > { %10921 = vst [vmem:[#allocation3 + $0x95] sm:$0xff] %v10905_v10  ;;  %v10663_v48 = vpop.f32.mrb[115].mxu1  ;;  %20159 = vmatmul.mubr.f32.gmra.mrb[220].mxu1 %v12123_v7  ;;  %v8841_v63 = vadd.f32 %v28147_v4, %v8739_v53  ;;  %20084 = vmatprep.mubr.msk.f32.mxu0 %vm23118_vm1, %v28058_v32  ;;  %v12127_v7 = vld [vmem:[%s23269_s22 + $0x189] sm:$0x3f]  ;;  %v12662_v53 = vld [vmem:[%s27798_s29 + $0x1] sm:$0xff] }
 0x553   : > { %vm8858_vm3 = vcmp.ge.f32.partialorder %v8842_v56, 0.0  ;;  %v8874_v3 = vmul.f32 0.05, %v8842_v56  ;;  %20161 = vmatprep.mubr.msk.f32.mxu1 %vm23118_vm1, %v28058_v32  ;;  %22215 = vmatpush3.bf16.msra.mxu0 %v22214_v37 }
 0x554   : > { %v19082_v59 = vpop.f32.mrb[216].mxu0  ;;  %22216 = vmatprep.subr.bf16.mxu0 %v28981_v40  ;;  %vm8857_vm4 = vcmp.ge.f32.partialorder %v8841_v63, 0.0  ;;  %v8873_v30 = vmul.f32 0.05, %v8841_v63 }
 0x555   : > { %v8890_v33 = vsel %vm8858_vm3, %v8842_v56, %v8874_v3  ;;  %v19592_v54 = vpop.f32.mrb[116].mxu1  ;;  %v8749_v58 = vpop.f32.mrb[217].mxu0  ;;  %20085 = vmatmul.mubr.f32.gmra.mrb[66].mxu0 %v11950_v20  ;;  %v11954_v20 = vld [vmem:[%s23269_s22 + $0x180] sm:$0xff] }
 0x556   : > { %v9002_v55 = vmul.f32 %v27838_v13, %v8890_v33  ;;  %v10673_v18 = vpop.f32.mrb[117].mxu1  ;;  %20162 = vmatmul.mubr.f32.gmra.mrb[222].mxu1 %v12124_v36  ;;  %20087 = vmatprep.mubr.msk.f32.mxu0 %vm23118_vm1, %v28058_v32  ;;  %v8889_v37 = vsel %vm8857_vm4, %v8841_v63, %v8873_v30  ;;  %v10752_v40 = vadd.f32 %v19592_v54, %v28147_v4  ;;  %v10878_v36 = vpop.permute.xlu1 %10877 }
 0x557   : > { %20164 = vmatprep.mubr.msk.f32.mxu1 %vm23118_vm1, %v28058_v32  ;;  %22218 = vmatpush3.bf16.msra.mxu0 %v22217_v34  ;;  %v9001_v31 = vmul.f32 %v27827_v11, %v8889_v37  ;;  %v10751_v13 = vadd.f32 %v28147_v4, %v10673_v18  ;;  %v10873_v34 = vpop.permute.xlu0 %10872  ;;  %v14900_v36 = vld [vmem:[%s28918_s7 + $0x448] sm:$0xff] }
 0x558   : > { %9018 = vst [vmem:[#allocation3 + $0x1d] sm:$0xff] %v9002_v55  ;;  %v19085_v27 = vpop.f32.mrb[218].mxu0  ;;  %22476 = vmatprep.subr.bf16.mxu0 %v28249_v12  ;;  %vm10768_vm5 = vcmp.ge.f32.partialorder %v10752_v40, 0.0  ;;  %v10784_v29 = vmul.f32 0.05, %v10752_v40 }
 0x559   : > { %v19595_v50 = vpop.f32.mrb[118].mxu1  ;;  %v8759_v47 = vpop.f32.mrb[219].mxu0  ;;  %20088 = vmatmul.mubr.f32.gmra.mrb[68].mxu0 %v11951_v49  ;;  %9017 = vst [vmem:[#allocation3 + $0x15] sm:$0xff] %v9001_v31  ;;  %vm10767_vm6 = vcmp.ge.f32.partialorder %v10751_v13, 0.0  ;;  %v10783_v19 = vmul.f32 0.05, %v10751_v13 }
 0x55a   : > { %v10683_v15 = vpop.f32.mrb[119].mxu1  ;;  %20165 = vmatmul.mubr.f32.gmra.mrb[224].mxu1 %v12125_v42  ;;  %20090 = vmatprep.mubr.msk.f32.mxu0 %vm23118_vm1, %v28058_v32  ;;  %v10800_v11 = vsel %vm10768_vm5, %v10752_v40, %v10784_v29 }
 0x55b   : > { %20167 = vmatprep.mubr.msk.f32.mxu1 %vm23118_vm1, %v28058_v32  ;;  %v10912_v2 = vmul.f32 %v27961_v62, %v10800_v11  ;;  %v10799_v57 = vsel %vm10767_vm6, %v10751_v13, %v10783_v19  ;;  %v10753_v10 = vadd.f32 %v28147_v4, %v10683_v15  ;;  %v11953_v62 = vld [vmem:[%s23269_s22 + $0x178] sm:$0xff]  ;;  %v10883_v33 = vpop.permute.xlu0 %10882 }
 0x55c   : > { %v19088_v38 = vpop.f32.mrb[220].mxu0  ;;  %v10911_v61 = vmul.f32 %v27933_v16, %v10799_v57 }
 0x55d   : > { %v19598_v52 = vpop.f32.mrb[120].mxu1  ;;  %v8769_v21 = vpop.f32.mrb[221].mxu0  ;;  %20091 = vmatmul.mubr.f32.gmra.mrb[70].mxu0 %v11952_v0  ;;  %10928 = vst [vmem:[#allocation3 + $0xcd] sm:$0xff] %v10912_v2  ;;  %vm10769_vm7 = vcmp.ge.f32.partialorder %v10753_v10, 0.0  ;;  %v10785_v14 = vmul.f32 0.05, %v10753_v10  ;;  %v8848_v48 = vadd.f32 %v19088_v38, %v28147_v4 }
 0x55e   : > { %v10693_v56 = vpop.f32.mrb[121].mxu1  ;;  %20093 = vmatprep.mubr.msk.f32.mxu0 %vm23118_vm1, %v28058_v32  ;;  %10927 = vst [vmem:[#allocation3 + $0xc5] sm:$0xff] %v10911_v61  ;;  %20168 = vmatmul.mubr.f32.gmra.mrb[226].mxu1 %v12126_v26  ;;  %v10888_v2 = vpop.permute.xlu1 %10887 }
 0x55f   : > { %20170 = vmatprep.mubr.msk.f32.mxu1 %vm23118_vm1, %v28058_v32  ;;  %v10801_v3 = vsel %vm10769_vm7, %v10753_v10, %v10785_v14  ;;  %vm8864_vm8 = vcmp.ge.f32.partialorder %v8848_v48, 0.0  ;;  %v8880_v58 = vmul.f32 0.05, %v8848_v48  ;;  %v10893_v50 = vpop.permute.xlu0 %10892  ;;  %v12287_v10 = vld [vmem:[%s23269_s22 + $0x12a] sm:$0xff] }
 0x560   : > { %v12623_v16 = vld [vmem:[#allocation3 + $0x15] ss:$3 sm:$0x3f]  ;;  %v19091_v41 = vpop.f32.mrb[222].mxu0  ;;  %v10913_v30 = vmul.f32 %v27975_v5, %v10801_v3 }
 0x561   : > { %v19601_v63 = vpop.f32.mrb[122].mxu1  ;;  %20094 = vmatmul.mubr.f32.gmra.mrb[72].mxu0 %v11953_v62  ;;  %12624 = vst [vmem:[%s27798_s29 + $0x9] sm:$0x3f] %v12623_v16  ;;  %v8779_v54 = vpop.f32.mrb[223].mxu0  ;;  %v8850_v55 = vadd.f32 %v19091_v41, %v28147_v4  ;;  %v8896_v40 = vsel %vm8864_vm8, %v8848_v48, %v8880_v58  ;;  %v11955_v5 = vld [vmem:[%s23269_s22 + $0x188] sm:$0x3f] }
 0x562   : > { %v10703_v59 = vpop.f32.mrb[123].mxu1  ;;  %20096 = vmatprep.mubr.msk.f32.mxu0 %vm23118_vm1, %v28058_v32  ;;  %20171 = vmatmul.mubr.f32.gmra.mrb[228].mxu1 %v12127_v7  ;;  %10929 = vst [vmem:[#allocation3 + $0xd5] sm:$0xff] %v10913_v30  ;;  %v8849_v31 = vadd.f32 %v28147_v4, %v8779_v54  ;;  %v9008_v27 = vmul.f32 %v27859_v44, %v8896_v40  ;;  %v12288_v16 = vld [vmem:[%s23269_s22 + $0x132] sm:$0xff] }
 0x563   : > { %20276 = vmatprep.mubr.f32.mxu1 %v12662_v53  ;;  %vm8866_vm9 = vcmp.ge.f32.partialorder %v8850_v55, 0.0  ;;  %v8882_v49 = vmul.f32 0.05, %v8850_v55  ;;  %v12660_v2 = vld [vmem:[%s28918_s7 + $0x70] sm:$0xff] }
 0x564   : > { %v19094_v6 = vpop.f32.mrb[224].mxu0  ;;  %9024 = vst [vmem:[#allocation3 + $0x4d] sm:$0xff] %v9008_v27  ;;  %vm8865_vm10 = vcmp.ge.f32.partialorder %v8849_v31, 0.0  ;;  %v8881_v42 = vmul.f32 0.05, %v8849_v31 }
 0x565   : > { %v19604_v18 = vpop.f32.mrb[124].mxu1  ;;  %v8789_v37 = vpop.f32.mrb[225].mxu0  ;;  %20097 = vmatmul.mubr.f32.gmra.mrb[74].mxu0 %v11954_v20  ;;  %v8898_v47 = vsel %vm8866_vm9, %v8850_v55, %v8882_v49  ;;  %v12289_v20 = vld [vmem:[%s23269_s22 + $0x13a] sm:$0xff]  ;;  %v12656_v6 = vld [vmem:[%s28918_s7 + $0x50] sm:$0xff] }
 0x566   : > { %v10713_v13 = vpop.f32.mrb[125].mxu1  ;;  %20099 = vmatprep.mubr.msk.f32.mxu0 %vm23118_vm1, %v28058_v32  ;;  %v10760_v19 = vadd.f32 %v19604_v18, %v28147_v4  ;;  %v9010_v44 = vmul.f32 %v27887_v51, %v8898_v47  ;;  %v8897_v57 = vsel %vm8865_vm10, %v8849_v31, %v8881_v42  ;;  %v12290_v18 = vld [vmem:[%s23269_s22 + $0x142] sm:$0xff]  ;;  %v12291_v47 = vld [vmem:[%s23269_s22 + $0x14a] sm:$0xff] }
 0x567   : > { %v9009_v0 = vmul.f32 %v27865_v60, %v8897_v57  ;;  %v10759_v52 = vadd.f32 %v28147_v4, %v10713_v13  ;;  %v12658_v49 = vld [vmem:[%s28918_s7 + $0x60] sm:$0xff] }
 0x568   : > { %v19097_v29 = vpop.f32.mrb[226].mxu0  ;;  %v12663_v34 = vld [vmem:[%s27798_s29 + $0x9] sm:$0xff]  ;;  %vm10776_vm11 = vcmp.ge.f32.partialorder %v10760_v19, 0.0  ;;  %v10792_v26 = vmul.f32 0.05, %v10760_v19  ;;  %9026 = vst [vmem:[#allocation3 + $0x5d] sm:$0xff] %v9010_v44 }
 0x569   : > { %20100 = vmatmul.mubr.f32.gmra.mrb[76].mxu0 %v11955_v5  ;;  %v11191_v15 = vpop.f32.mrb[126].mxu1  ;;  %v8799_v11 = vpop.f32.mrb[227].mxu0  ;;  %20277 = vmatmul.mubr.f32.vlgmr.msra.gmra.mrb[230].mxu1 %v12663_v34  ;;  %9025 = vst [vmem:[#allocation3 + $0x55] sm:$0xff] %v9009_v0  ;;  %vm10775_vm12 = vcmp.ge.f32.partialorder %v10759_v52, 0.0  ;;  %v10791_v53 = vmul.f32 0.05, %v10759_v52 }
 0x56a   : > { %20205 = vmatprep.mubr.msk.f32.mxu0 %vm23118_vm1, %v28058_v32  ;;  %v19710_v38 = vpop.f32.mrb[127].mxu1  ;;  %22254 = vmatpush3.bf16.msra.mxu1 %v28230_v22  ;;  %v10808_v51 = vsel %vm10776_vm11, %v10760_v19, %v10792_v26  ;;  %v12632_v22 = vld [vmem:[#allocation3 + $0xc9] ss:$3 sm:$0x3f]  ;;  %v14901_v5 = vld [vmem:[%s28918_s7 + $0x450] sm:$0xff] }
 0x56b   : > { %22256 = vmatprep.subr.bf16.mxu1 %v28232_v28  ;;  %v10920_v62 = vmul.f32 %v27997_v24, %v10808_v51  ;;  %12633 = vst [vmem:[%s27798_s29 + $0x21] sm:$0x3f] %v12632_v22  ;;  %v12659_v29 = vld [vmem:[%s28918_s7 + $0x68] sm:$0xff]  ;;  %v12661_v26 = vld [vmem:[%s28918_s7 + $0x78] sm:$0xff] }
 0x56c   : > { %v19100_v61 = vpop.f32.mrb[228].mxu0  ;;  %v22275_v34 = vpack.c.bf16 %v12659_v29, %v12658_v49  ;;  %v14904_v44 = vld [vmem:[%s28918_s7 + $0x468] sm:$0xff]  ;;  %v22279_v51 = vpack.c.bf16 %v12661_v26, %v12660_v2 }
 0x56d   : > { %v11196_v21 = vpop.f32.mrb[128].mxu1  ;;  %v8809_v56 = vpop.f32.mrb[229].mxu0  ;;  %20206 = vmatmul.mubr.f32.vlgmr.msra.gmra.mrb[78].mxu0 %v12287_v10  ;;  %v8856_v60 = vadd.f32 %v19100_v61, %v28147_v4  ;;  %10936 = vst [vmem:[#allocation3 + $0x10d] sm:$0xff] %v10920_v62  ;;  %v10807_v4 = vsel %vm10775_vm12, %v10759_v52, %v10791_v53  ;;  %v12292_v10 = vld [vmem:[%s23269_s22 + $0x152] sm:$0xff]  ;;  %v14796_v22 = vld [vmem:[%s28918_s7 + $0x108] sm:$0xff] }
 0x56e   : > { %v19713_v7 = vpop.f32.mrb[129].mxu1  ;;  %20208 = vmatprep.mubr.msk.f32.mxu0 %vm23118_vm1, %v28058_v32  ;;  %22478 = vmatpush3.bf16.msra.mxu0 %v28249_v12  ;;  %v10919_v24 = vmul.f32 %v27991_v39, %v10807_v4  ;;  %v14899_v39 = vld [vmem:[%s28918_s7 + $0x440] sm:$0xff]  ;;  %v14905_v62 = vld [vmem:[%s28918_s7 + $0x470] sm:$0xff]  ;;  %v14906_v53 = vld [vmem:[%s28918_s7 + $0x478] sm:$0xff] }
 0x56f   : > { %22258 = vmatpush3.bf16.msra.mxu1 %v28232_v28  ;;  %22480 = vmatprep.subr.bf16.mxu0 %v28259_v8  ;;  %vm8872_vm13 = vcmp.ge.f32.partialorder %v8856_v60, 0.0  ;;  %v8888_v63 = vmul.f32 0.05, %v8856_v60  ;;  %v28378_v37 = vpack.c.bf16 %v14900_v36, %v14899_v39  ;;  %v14795_v7 = vld [vmem:[%s28918_s7 + $0x100] sm:$0xff]  ;;  %v14800_v49 = vld [vmem:[%s28918_s7 + $0x128] sm:$0xff] }
 0x570   : > { %v11061_v14 = vpop.f32.mrb[230].mxu0  ;;  %22260 = vmatprep.subr.bf16.mxu1 %v28242_v17  ;;  %10935 = vst [vmem:[#allocation3 + $0x105] sm:$0xff] %v10919_v24  ;;  %v22283_v24 = vpack.c.bf16 %v14796_v22, %v14795_v7  ;;  %v12294_v39 = vld [vmem:[%s23269_s22 + $0x162] sm:$0xff] }
 0x571   : > { %v11201_v48 = vpop.f32.mrb[130].mxu1  ;;  %20209 = vmatmul.mubr.f32.gmra.mrb[80].mxu0 %v12288_v16  ;;  %v19639_v41 = vpop.f32.mrb[231].mxu0  ;;  %v8904_v28 = vsel %vm8872_vm13, %v8856_v60, %v8888_v63  ;;  %v12293_v14 = vld [vmem:[%s23269_s22 + $0x15a] sm:$0xff]  ;;  %v14804_v7 = vld [vmem:[%s28918_s7 + $0x148] sm:$0xff] }
 0x572   : > { %v19716_v3 = vpop.f32.mrb[131].mxu1  ;;  %20211 = vmatprep.mubr.msk.f32.mxu0 %vm23118_vm1, %v28058_v32  ;;  %22482 = vmatpush3.bf16.msra.mxu0 %v28259_v8  ;;  %v9016_v33 = vmul.f32 %v27905_v1, %v8904_v28  ;;  %v12657_v1 = vld [vmem:[%s28918_s7 + $0x58] sm:$0xff]  ;;  %v28443_v41 = vld [vmem:[#allocation2] sm:$0xff]  ;;  %v28447_v28 = vpack.c.bf16 %v14906_v53, %v14905_v62 }
 0x573   : > { %22262 = vmatpush3.bf16.msra.mxu1 %v28242_v17  ;;  %v12626_v17 = vld [vmem:[#allocation3 + $0x51] ss:$3 sm:$0x3f]  ;;  %22484 = vmatprep.subr.bf16.mxu0 %v28272_v9  ;;  %v22271_v13 = vpack.c.bf16 %v12657_v1, %v12656_v6  ;;  %v14798_v6 = vld [vmem:[%s28918_s7 + $0x118] sm:$0xff] }
 0x574   : > { %v11066_v59 = vpop.f32.mrb[232].mxu0  ;;  %22264 = vmatprep.subr.bf16.mxu1 %v28244_v45  ;;  %9032 = vst [vmem:[#allocation3 + $0x8d] sm:$0xff] %v9016_v33  ;;  %12627 = vst [vmem:[%s27798_s29 + $0x11] sm:$0x3f] %v12626_v17  ;;  %v14797_v17 = vld [vmem:[%s28918_s7 + $0x110] sm:$0xff]  ;;  %v12875_v22 = vld [vmem:[%s27798_s29 + $0x2] sm:$0xff] }
 0x575   : > { %v11206_v30 = vpop.f32.mrb[132].mxu1  ;;  %v19642_v54 = vpop.f32.mrb[233].mxu0  ;;  %20212 = vmatmul.mubr.f32.gmra.mrb[82].mxu0 %v12289_v20  ;;  %v12666_v59 = vld [vmem:[%s27798_s29 + $0x21] sm:$0xff] }
 0x576   : > { %v19719_v58 = vpop.f32.mrb[133].mxu1  ;;  %20214 = vmatprep.mubr.msk.f32.mxu0 %vm23118_vm1, %v28058_v32  ;;  %22486 = vmatpush3.bf16.msra.mxu0 %v28272_v9 }
 0x577   : > { %22266 = vmatpush3.bf16.msra.mxu1 %v28244_v45  ;;  %22488 = vmatprep.subr.bf16.mxu0 %v28278_v46  ;;  %v14902_v45 = vld [vmem:[%s28918_s7 + $0x458] sm:$0xff] }
 0x578   : > { %v11071_v55 = vpop.f32.mrb[234].mxu0  ;;  %22268 = vmatprep.subr.bf16.mxu1 %v28247_v23  ;;  %v12635_v50 = vld [vmem:[#allocation3 + $0x105] ss:$3 sm:$0x3f]  ;;  %v28400_v19 = vpack.c.bf16 %v14902_v45, %v14901_v5  ;;  %v28470_v45 = vld [vmem:[%s27798_s29 + $0x8] sm:$0xff] }
 0x579   : > { %v11211_v40 = vpop.f32.mrb[134].mxu1  ;;  %v19645_v31 = vpop.f32.mrb[235].mxu0  ;;  %20215 = vmatmul.mubr.f32.gmra.mrb[84].mxu0 %v12290_v18  ;;  %12636 = vst [vmem:[%s27798_s29 + $0x29] sm:$0x3f] %v12635_v50  ;;  %v12295_v55 = vld [vmem:[%s23269_s22 + $0x16a] sm:$0xff] }
 0x57a   : > { %v19722_v27 = vpop.f32.mrb[135].mxu1  ;;  %20217 = vmatprep.mubr.msk.f32.mxu0 %vm23118_vm1, %v28058_v32  ;;  %22490 = vmatpush3.bf16.msra.mxu0 %v28278_v46 }
 0x57b   : > { %22270 = vmatpush3.bf16.msra.mxu1 %v28247_v23  ;;  %22492 = vmatprep.subr.bf16.mxu0 %v28378_v37  ;;  %v14903_v23 = vld [vmem:[%s28918_s7 + $0x460] sm:$0xff]  ;;  %v12664_v57 = vld [vmem:[%s27798_s29 + $0x11] sm:$0xff] }
 0x57c   : > { %v11076_v42 = vpop.f32.mrb[236].mxu0  ;;  %22272 = vmatprep.subr.bf16.mxu1 %v22271_v13  ;;  %v12629_v0 = vld [vmem:[#allocation3 + $0x8d] ss:$3 sm:$0x3f]  ;;  %20279 = vmatprep.mubr.f32.mxu1 %v12664_v57  ;;  %v28421_v52 = vpack.c.bf16 %v14904_v44, %v14903_v23  ;;  %v28482_v29 = vld [vmem:[%s27798_s29 + $0x10] sm:$0xff] }
 0x57d   : > { %v11216_v15 = vpop.f32.mrb[136].mxu1  ;;  %v19648_v11 = vpop.f32.mrb[237].mxu0  ;;  %20218 = vmatmul.mubr.f32.gmra.mrb[86].mxu0 %v12291_v47  ;;  %12630 = vst [vmem:[%s27798_s29 + $0x19] sm:$0x3f] %v12629_v0  ;;  %v14799_v27 = vld [vmem:[%s28918_s7 + $0x120] sm:$0xff]  ;;  %v12296_v42 = vld [vmem:[%s23269_s22 + $0x172] sm:$0xff] }
 0x57e   : > { %v19725_v38 = vpop.f32.mrb[137].mxu1  ;;  %20220 = vmatprep.mubr.msk.f32.mxu0 %vm23118_vm1, %v28058_v32  ;;  %22494 = vmatpush3.bf16.msra.mxu0 %v28378_v37  ;;  %v22291_v11 = vpack.c.bf16 %v14800_v49, %v14799_v27  ;;  %v14801_v23 = vld [vmem:[%s28918_s7 + $0x130] sm:$0xff]  ;;  %v14802_v44 = vld [vmem:[%s28918_s7 + $0x138] sm:$0xff]  ;;  %v28499_v57 = vld [vmem:[%s27798_s29 + $0x20] sm:$0xff] }
 0x57f   : > { %22274 = vmatpush3.bf16.msra.mxu1 %v22271_v13  ;;  %22496 = vmatprep.subr.bf16.mxu0 %v28400_v19  ;;  %v22287_v13 = vpack.c.bf16 %v14798_v6, %v14797_v17  ;;  %v12297_v0 = vld [vmem:[%s23269_s22 + $0x17a] sm:$0xff] }
 0x580   : > { %v11081_v61 = vpop.f32.mrb[238].mxu0  ;;  %22276 = vmatprep.subr.bf16.mxu1 %v22275_v34  ;;  %v12667_v58 = vld [vmem:[%s27798_s29 + $0x29] sm:$0x3f] }
 0x581   : > { %v11221_v21 = vpop.f32.mrb[138].mxu1  ;;  %v19651_v56 = vpop.f32.mrb[239].mxu0  ;;  %20221 = vmatmul.mubr.f32.gmra.mrb[88].mxu0 %v12292_v10  ;;  %v22295_v10 = vpack.c.bf16 %v14802_v44, %v14801_v23 }
 0x582   : > { %v19728_v60 = vpop.f32.mrb[139].mxu1  ;;  %20223 = vmatprep.mubr.msk.f32.mxu0 %vm23118_vm1, %v28058_v32  ;;  %22498 = vmatpush3.bf16.msra.mxu0 %v28400_v19 }
 0x583   : > { %22278 = vmatpush3.bf16.msra.mxu1 %v22275_v34  ;;  %22500 = vmatprep.subr.bf16.mxu0 %v28421_v52  ;;  %v14803_v60 = vld [vmem:[%s28918_s7 + $0x140] sm:$0xff] }
 0x584   : > { %v11086_v32 = vpop.f32.mrb[240].mxu0  ;;  %22280 = vmatprep.subr.bf16.mxu1 %v22279_v51  ;;  %v12665_v3 = vld [vmem:[%s27798_s29 + $0x19] sm:$0xff] }
 0x585   : > { %v11226_v16 = vpop.f32.mrb[140].mxu1  ;;  %v28440_v4 = vadd.f32 %v11216_v15, %v11086_v32  ;;  %v19654_v48 = vpop.f32.mrb[241].mxu0  ;;  %20224 = vmatmul.mubr.f32.gmra.mrb[90].mxu0 %v12293_v14  ;;  %20280 = vmatmul.mubr.f32.gmra.mrb[232].mxu1 %v12665_v3  ;;  %v28487_v2 = vld [vmem:[%s27798_s29 + $0x18] sm:$0xff]  ;;  %v22299_v14 = vpack.c.bf16 %v14804_v7, %v14803_v60  ;;  %v14815_v7 = vld [vmem:[%s28918_s7 + $0x1a0] sm:$0xff] }
 0x586   : > { %v19731_v63 = vpop.f32.mrb[141].mxu1  ;;  %20226 = vmatprep.mubr.msk.f32.mxu0 %vm23118_vm1, %v28443_v41  ;;  %22502 = vmatpush3.bf16.msra.mxu0 %v28421_v52  ;;  %v12299_v48 = vld [vmem:[%s23269_s22 + $0x18a] sm:$0x3f]  ;;  %v13620_v17 = vld [vmem:[%s27798_s29 + $0x1a] sm:$0xff] }
 0x587   : > { %20282 = vmatprep.mubr.f32.mxu1 %v12666_v59  ;;  %22282 = vmatpush3.bf16.msra.mxu1 %v22279_v51  ;;  %v12645_v51 = vld [vmem:[%s27798_s29 + $0x28] sm:$0x3f]  ;;  %v14806_v63 = vld [vmem:[%s28918_s7 + $0x158] sm:$0xff] }
 0x588   : > { %v11091_v20 = vpop.f32.mrb[242].mxu0  ;;  %22284 = vmatprep.subr.bf16.mxu1 %v22283_v24  ;;  %22504 = vmatprep.subr.bf16.mxu0 %v28447_v28 }
 0x589   : > { %v11231_v33 = vpop.f32.mrb[142].mxu1  ;;  %v28452_v30 = vadd.f32 %v11221_v21, %v11091_v20  ;;  %v19657_v54 = vpop.f32.mrb[243].mxu0  ;;  %20227 = vmatmul.mubr.f32.gmra.mrb[92].mxu0 %v12294_v39  ;;  %20283 = vmatmul.mubr.f32.gmra.mrb[234].mxu1 %v12667_v58  ;;  %v12298_v21 = vld [vmem:[%s23269_s22 + $0x182] sm:$0xff]  ;;  %v13619_v39 = vld [vmem:[%s27798_s29 + $0x12] sm:$0xff] }
 0x58a   : > { %v19734_v36 = vpop.f32.mrb[143].mxu1  ;;  %20229 = vmatprep.mubr.msk.f32.mxu0 %vm23118_vm1, %v28443_v41  ;;  %22506 = vmatpush3.bf16.msra.mxu0 %v28447_v28 }
 0x58b   : > { %20317 = vmatprep.mubr.f32.mxu1 %v28443_v41  ;;  %v14808_v36 = vld [vmem:[%s28918_s7 + $0x168] sm:$0xff] }
 0x58c   : > { %v11096_v1 = vpop.f32.mrb[244].mxu0 }
 0x58d   : > { %v11236_v18 = vpop.f32.mrb[144].mxu1  ;;  %v28467_v40 = vadd.f32 %v11226_v16, %v11096_v1  ;;  %v19660_v31 = vpop.f32.mrb[245].mxu0  ;;  %20230 = vmatmul.mubr.f32.gmra.mrb[94].mxu0 %v12295_v55  ;;  %20318 = vmatmul.mubr.f32.vlgmr.msra.gmra.mrb[230].mxu1 %v28470_v45 }
 0x58e   : > { %v19737_v5 = vpop.f32.mrb[145].mxu1  ;;  %20232 = vmatprep.mubr.msk.f32.mxu0 %vm23118_vm1, %v28443_v41  ;;  %22286 = vmatpush3.bf16.msra.mxu1 %v22283_v24  ;;  %v14805_v24 = vld [vmem:[%s28918_s7 + $0x150] sm:$0xff] }
 0x58f   : > { %20320 = vmatprep.mubr.f32.mxu1 %v28482_v29  ;;  %22288 = vmatprep.subr.bf16.mxu1 %v22287_v13  ;;  %v22303_v33 = vpack.c.bf16 %v14806_v63, %v14805_v24  ;;  %v14809_v31 = vld [vmem:[%s28918_s7 + $0x170] sm:$0xff]  ;;  %v14818_v24 = vld [vmem:[%s28918_s7 + $0x1b8] sm:$0xff]  ;;  %v28566_v63 = vld [vmem:[%s27798_s29 + $0x22] sm:$0xff] }
 0x590   : > { %v11101_v50 = vpop.f32.mrb[246].mxu0 }
 0x591   : > { %v11241_v47 = vpop.f32.mrb[146].mxu1  ;;  %v19663_v15 = vpop.f32.mrb[247].mxu0  ;;  %20233 = vmatmul.mubr.f32.gmra.mrb[96].mxu0 %v12296_v42  ;;  %20321 = vmatmul.mubr.f32.gmra.mrb[232].mxu1 %v28487_v2 }
 0x592   : > { %v19740_v34 = vpop.f32.mrb[147].mxu1  ;;  %20235 = vmatprep.mubr.msk.f32.mxu0 %vm23118_vm1, %v28443_v41  ;;  %22290 = vmatpush3.bf16.msra.mxu1 %v22287_v13  ;;  %v14810_v13 = vld [vmem:[%s28918_s7 + $0x178] sm:$0xff]  ;;  %v14811_v47 = vld [vmem:[%s28918_s7 + $0x180] sm:$0xff]  ;;  %v14812_v15 = vld [vmem:[%s28918_s7 + $0x188] sm:$0xff] }
 0x593   : > { %20323 = vmatprep.mubr.f32.mxu1 %v28499_v57  ;;  %22292 = vmatprep.subr.bf16.mxu1 %v22291_v11  ;;  %v22311_v50 = vpack.c.bf16 %v14810_v13, %v14809_v31  ;;  %v22315_v44 = vpack.c.bf16 %v14812_v15, %v14811_v47  ;;  %v14821_v31 = vld [vmem:[%s28918_s7 + $0x1d0] sm:$0xff]  ;;  %v14822_v13 = vld [vmem:[%s28918_s7 + $0x1d8] sm:$0xff]  ;;  %v14823_v47 = vld [vmem:[%s28918_s7 + $0x1e0] sm:$0xff] }
 0x594   : > { %v11106_v38 = vpop.f32.mrb[248].mxu0  ;;  %v14824_v15 = vld [vmem:[%s28918_s7 + $0x1e8] sm:$0xff] }
 0x595   : > { %v11246_v26 = vpop.f32.mrb[148].mxu1  ;;  %v19666_v61 = vpop.f32.mrb[249].mxu0  ;;  %20236 = vmatmul.mubr.f32.gmra.mrb[98].mxu0 %v12297_v0  ;;  %20324 = vmatmul.mubr.f32.gmra.mrb[234].mxu1 %v12645_v51  ;;  %v14813_v0 = vld [vmem:[%s28918_s7 + $0x190] sm:$0xff] }
 0x596   : > { %v19743_v56 = vpop.f32.mrb[149].mxu1  ;;  %20238 = vmatprep.mubr.msk.f32.mxu0 %vm23118_vm1, %v28443_v41  ;;  %22294 = vmatpush3.bf16.msra.mxu1 %v22291_v11  ;;  %v14814_v26 = vld [vmem:[%s28918_s7 + $0x198] sm:$0xff]  ;;  %v28550_v51 = vld [vmem:[%s27798_s29 + $0xa] sm:$0xff] }
 0x597   : > { %20358 = vmatprep.mubr.f32.mxu1 %v12875_v22  ;;  %22296 = vmatprep.subr.bf16.mxu1 %v22295_v10  ;;  %v22319_v56 = vpack.c.bf16 %v14814_v26, %v14813_v0  ;;  %v14816_v22 = vld [vmem:[%s28918_s7 + $0x1a8] sm:$0xff]  ;;  %v14825_v26 = vld [vmem:[%s28918_s7 + $0x1f0] sm:$0xff] }
 0x598   : > { %v11111_v62 = vpop.f32.mrb[250].mxu0 }
 0x599   : > { %v11251_v53 = vpop.f32.mrb[150].mxu1  ;;  %v19669_v32 = vpop.f32.mrb[251].mxu0  ;;  %20239 = vmatmul.mubr.f32.gmra.mrb[100].mxu0 %v12298_v21 }
 0x59a   : > { %v19746_v16 = vpop.f32.mrb[151].mxu1  ;;  %20241 = vmatprep.mubr.msk.f32.mxu0 %vm23118_vm1, %v28443_v41  ;;  %22298 = vmatpush3.bf16.msra.mxu1 %v22295_v10  ;;  %v14807_v41 = vld [vmem:[%s28918_s7 + $0x160] sm:$0xff] }
 0x59b   : > { %22300 = vmatprep.subr.bf16.mxu1 %v22299_v14  ;;  %v22307_v55 = vpack.c.bf16 %v14808_v36, %v14807_v41  ;;  %v14819_v41 = vld [vmem:[%s28918_s7 + $0x1c0] sm:$0xff]  ;;  %v14820_v36 = vld [vmem:[%s28918_s7 + $0x1c8] sm:$0xff] }
 0x59c   : > { %v11116_v3 = vpop.f32.mrb[252].mxu0 }
 0x59d   : > { %v11522_v59 = vpop.f32.mrb[152].mxu1  ;;  %v19672_v20 = vpop.f32.mrb[253].mxu0  ;;  %20242 = vmatmul.mubr.f32.gmra.mrb[102].mxu0 %v12299_v48  ;;  %v14817_v48 = vld [vmem:[%s28918_s7 + $0x1b0] sm:$0xff] }
 0x59e   : > { %v19852_v54 = vpop.f32.mrb[153].mxu1  ;;  %20604 = vmatprep.mubr.f32.mxu0 %v13619_v39  ;;  %22302 = vmatpush3.bf16.msra.mxu1 %v22299_v14  ;;  %v22323_v14 = vpack.c.bf16 %v14816_v22, %v14815_v7 }
 0x59f   : > { %22304 = vmatprep.subr.bf16.mxu1 %v22303_v33 }
 0x5a0   : > { %v11121_v58 = vpop.f32.mrb[254].mxu0 }
 0x5a1   : > { %v11527_v6 = vpop.f32.mrb[154].mxu1  ;;  %v19675_v1 = vpop.f32.mrb[255].mxu0  ;;  %20605 = vmatmul.mubr.f32.vlgmr.msra.gmra.mrb[104].mxu0 %v13620_v17 }
 0x5a2   : > { %v19855_v18 = vpop.f32.mrb[155].mxu1  ;;  %22306 = vmatpush3.bf16.msra.mxu1 %v22303_v33  ;;  %v12880_v33 = vld [vmem:[%s27798_s29 + $0x2a] sm:$0x3f] }
 0x5a3   : > { %22308 = vmatprep.subr.bf16.mxu1 %v22307_v55 }
 0x5a4   : > { %v11350_v5 = vpop.f32.mrb[0].mxu0 }
 0x5a5   : > { %v11532_v27 = vpop.f32.mrb[156].mxu1  ;;  %v19781_v49 = vpop.f32.mrb[1].mxu0 }
 0x5a6   : > { %v19858_v42 = vpop.f32.mrb[157].mxu1  ;;  %22310 = vmatpush3.bf16.msra.mxu1 %v22307_v55  ;;  %v22331_v55 = vpack.c.bf16 %v14820_v36, %v14819_v41 }
 0x5a7   : > { %22312 = vmatprep.subr.bf16.mxu1 %v22311_v50 }
 0x5a8   : > { %v11355_v11 = vpop.f32.mrb[2].mxu0 }
 0x5a9   : > { %v11537_v34 = vpop.f32.mrb[158].mxu1  ;;  %v19784_v23 = vpop.f32.mrb[3].mxu0 }
 0x5aa   : > { %v19861_v38 = vpop.f32.mrb[159].mxu1  ;;  %22314 = vmatpush3.bf16.msra.mxu1 %v22311_v50  ;;  %v22335_v50 = vpack.c.bf16 %v14822_v13, %v14821_v31 }
 0x5ab   : > { %22316 = vmatprep.subr.bf16.mxu1 %v22315_v44  ;;  %v22339_v38 = vpack.c.bf16 %v14824_v15, %v14823_v47 }
 0x5ac   : > { %v11360_v61 = vpop.f32.mrb[4].mxu0 }
 0x5ad   : > { %v11542_v10 = vpop.f32.mrb[160].mxu1  ;;  %v19787_v21 = vpop.f32.mrb[5].mxu0  ;;  %20359 = vmatmul.mubr.f32.vlgmr.msra.gmra.mrb[230].mxu1 %v28550_v51  ;;  %v14826_v61 = vld [vmem:[%s28918_s7 + $0x1f8] sm:$0xff] }
 0x5ae   : > { %v19864_v60 = vpop.f32.mrb[161].mxu1  ;;  %20361 = vmatprep.mubr.f32.mxu1 %v13619_v39  ;;  %22318 = vmatpush3.bf16.msra.mxu1 %v22315_v44  ;;  %v22327_v39 = vpack.c.bf16 %v14818_v24, %v14817_v48  ;;  %v22343_v7 = vpack.c.bf16 %v14826_v61, %v14825_v26 }
 0x5af   : > { %22320 = vmatprep.subr.bf16.mxu1 %v22319_v56 }
 0x5b0   : > { %v11365_v62 = vpop.f32.mrb[6].mxu0 }
 0x5b1   : > { %v11547_v53 = vpop.f32.mrb[162].mxu1  ;;  %v19790_v32 = vpop.f32.mrb[7].mxu0  ;;  %20362 = vmatmul.mubr.f32.gmra.mrb[232].mxu1 %v13620_v17 }
 0x5b2   : > { %v19867_v16 = vpop.f32.mrb[163].mxu1  ;;  %20364 = vmatprep.mubr.f32.mxu1 %v28566_v63  ;;  %22322 = vmatpush3.bf16.msra.mxu1 %v22319_v56 }
 0x5b3   : > { %22324 = vmatprep.subr.bf16.mxu1 %v22323_v14 }
 0x5b4   : > { %v11370_v3 = vpop.f32.mrb[8].mxu0 }
 0x5b5   : > { %v11552_v59 = vpop.f32.mrb[164].mxu1  ;;  %v19793_v20 = vpop.f32.mrb[9].mxu0  ;;  %20365 = vmatmul.mubr.f32.gmra.mrb[234].mxu1 %v12880_v33  ;;  %v28608_v33 = vld [vmem:[%s27798_s29 + $0x28] sm:$0xff] }
 0x5b6   : > { %v19870_v54 = vpop.f32.mrb[165].mxu1  ;;  %22326 = vmatpush3.bf16.msra.mxu1 %v22323_v14  ;;  %20399 = vmatprep.mubr.f32.mxu1 %v28470_v45 }
 0x5b7   : > { %22328 = vmatprep.subr.bf16.mxu1 %v22327_v39 }
 0x5b8   : > { %v11375_v58 = vpop.f32.mrb[10].mxu0 }
 0x5b9   : > { %v11557_v17 = vpop.f32.mrb[166].mxu1  ;;  %v11419_v6 = vadd.f32 %v11375_v58, %v28440_v4  ;;  %v19796_v1 = vpop.f32.mrb[11].mxu0 }
 0x5ba   : > { %v19873_v18 = vpop.f32.mrb[167].mxu1  ;;  %22330 = vmatpush3.bf16.msra.mxu1 %v22327_v39 }
 0x5bb   : > { %v28584_v5 = vadd.f32 %v11547_v53, %v11419_v6  ;;  %22332 = vmatprep.subr.bf16.mxu1 %v22331_v55 }
 0x5bc   : > { %v11380_v45 = vpop.f32.mrb[12].mxu0 }
 0x5bd   : > { %v11562_v27 = vpop.f32.mrb[168].mxu1  ;;  %v11420_v49 = vadd.f32 %v11380_v45, %v28452_v30  ;;  %v19799_v4 = vpop.f32.mrb[13].mxu0 }
 0x5be   : > { %v19876_v42 = vpop.f32.mrb[169].mxu1  ;;  %22334 = vmatpush3.bf16.msra.mxu1 %v22331_v55  ;;  %v14828_v4 = vld [vmem:[%s28918_s7 + $0x208] sm:$0xff] }
 0x5bf   : > { %v28593_v11 = vadd.f32 %v11552_v59, %v11420_v49  ;;  %22336 = vmatprep.subr.bf16.mxu1 %v22335_v50  ;;  %v14827_v49 = vld [vmem:[%s28918_s7 + $0x200] sm:$0xff] }
 0x5c0   : > { %v11385_v34 = vpop.f32.mrb[14].mxu0 }
 0x5c1   : > { %v11567_v23 = vpop.f32.mrb[170].mxu1  ;;  %v11421_v44 = vadd.f32 %v11385_v34, %v28467_v40  ;;  %v19802_v30 = vpop.f32.mrb[15].mxu0 }
 0x5c2   : > { %v19879_v0 = vpop.f32.mrb[171].mxu1  ;;  %22338 = vmatpush3.bf16.msra.mxu1 %v22335_v50  ;;  %v22347_v50 = vpack.c.bf16 %v14828_v4, %v14827_v49  ;;  %v14829_v23 = vld [vmem:[%s28918_s7 + $0x210] sm:$0xff] }
 0x5c3   : > { %v28602_v10 = vadd.f32 %v11557_v17, %v11421_v44  ;;  %22340 = vmatprep.subr.bf16.mxu1 %v22339_v38  ;;  %v14830_v44 = vld [vmem:[%s28918_s7 + $0x218] sm:$0xff]  ;;  %v14841_v49 = vld [vmem:[%s28918_s7 + $0x270] sm:$0xff] }
 0x5c4   : > { %v11390_v21 = vpop.f32.mrb[16].mxu0  ;;  %v22351_v30 = vpack.c.bf16 %v14830_v44, %v14829_v23 }
 0x5c5   : > { %v11572_v56 = vpop.f32.mrb[172].mxu1  ;;  %v19805_v60 = vpop.f32.mrb[17].mxu0  ;;  %v14831_v21 = vld [vmem:[%s28918_s7 + $0x220] sm:$0xff] }
 0x5c6   : > { %v19882_v40 = vpop.f32.mrb[173].mxu1  ;;  %22342 = vmatpush3.bf16.msra.mxu1 %v22339_v38  ;;  %v14832_v56 = vld [vmem:[%s28918_s7 + $0x228] sm:$0xff] }
 0x5c7   : > { %22344 = vmatprep.subr.bf16.mxu1 %v22343_v7  ;;  %v22355_v60 = vpack.c.bf16 %v14832_v56, %v14831_v21 }
 0x5c8   : > { %v11395_v22 = vpop.f32.mrb[18].mxu0 }
 0x5c9   : > { %v11577_v62 = vpop.f32.mrb[174].mxu1  ;;  %v19808_v53 = vpop.f32.mrb[19].mxu0 }
 0x5ca   : > { %v19885_v32 = vpop.f32.mrb[175].mxu1  ;;  %22346 = vmatpush3.bf16.msra.mxu1 %v22343_v7 }
 0x5cb   : > { %22348 = vmatprep.subr.bf16.mxu1 %v22347_v50  ;;  %v14833_v32 = vld [vmem:[%s28918_s7 + $0x230] sm:$0xff] }
 0x5cc   : > { %v11400_v14 = vpop.f32.mrb[20].mxu0 }
 0x5cd   : > { %v11582_v16 = vpop.f32.mrb[176].mxu1  ;;  %v19811_v48 = vpop.f32.mrb[21].mxu0  ;;  %20400 = vmatmul.mubr.f32.vlgmr.msra.gmra.mrb[230].mxu1 %v28482_v29  ;;  %v14834_v14 = vld [vmem:[%s28918_s7 + $0x238] sm:$0xff] }
 0x5ce   : > { %v19888_v24 = vpop.f32.mrb[177].mxu1  ;;  %20402 = vmatprep.mubr.f32.mxu1 %v28487_v2  ;;  %22350 = vmatpush3.bf16.msra.mxu1 %v22347_v50  ;;  %v22359_v48 = vpack.c.bf16 %v14834_v14, %v14833_v32  ;;  %v14842_v50 = vld [vmem:[%s28918_s7 + $0x278] sm:$0xff] }
 0x5cf   : > { %22352 = vmatprep.subr.bf16.mxu1 %v22351_v30 }
 0x5d0   : > { %v11405_v3 = vpop.f32.mrb[22].mxu0 }
 0x5d1   : > { %v11866_v59 = vpop.f32.mrb[178].mxu1  ;;  %v19814_v20 = vpop.f32.mrb[23].mxu0  ;;  %20403 = vmatmul.mubr.f32.gmra.mrb[232].mxu1 %v28499_v57 }
 0x5d2   : > { %v19994_v39 = vpop.f32.mrb[179].mxu1  ;;  %20405 = vmatprep.mubr.f32.mxu1 %v28608_v33  ;;  %22354 = vmatpush3.bf16.msra.mxu1 %v22351_v30 }
 0x5d3   : > { %22356 = vmatprep.subr.bf16.mxu1 %v22355_v60  ;;  %v14835_v39 = vld [vmem:[%s28918_s7 + $0x240] sm:$0xff] }
 0x5d4   : > { %v11410_v54 = vpop.f32.mrb[24].mxu0 }
 0x5d5   : > { %v11871_v41 = vpop.f32.mrb[180].mxu1  ;;  %v19817_v36 = vpop.f32.mrb[25].mxu0  ;;  %v14836_v54 = vld [vmem:[%s28918_s7 + $0x248] sm:$0xff] }
 0x5d6   : > { %v19997_v58 = vpop.f32.mrb[181].mxu1  ;;  %22358 = vmatpush3.bf16.msra.mxu1 %v22355_v60  ;;  %v22363_v36 = vpack.c.bf16 %v14836_v54, %v14835_v39 }
 0x5d7   : > { %22360 = vmatprep.subr.bf16.mxu1 %v22359_v48 }
 0x5d8   : > { %v11694_v17 = vpop.f32.mrb[26].mxu0 }
 0x5d9   : > { %v11876_v6 = vpop.f32.mrb[182].mxu1  ;;  %v19923_v1 = vpop.f32.mrb[27].mxu0 }
 0x5da   : > { %v20000_v29 = vpop.f32.mrb[183].mxu1  ;;  %22362 = vmatpush3.bf16.msra.mxu1 %v22359_v48 }
 0x5db   : > { %22364 = vmatprep.subr.bf16.mxu1 %v22363_v36  ;;  %v14837_v29 = vld [vmem:[%s28918_s7 + $0x250] sm:$0xff] }
 0x5dc   : > { %v11699_v55 = vpop.f32.mrb[28].mxu0 }
 0x5dd   : > { %v11881_v2 = vpop.f32.mrb[184].mxu1  ;;  %v19926_v18 = vpop.f32.mrb[29].mxu0  ;;  %v14838_v55 = vld [vmem:[%s28918_s7 + $0x258] sm:$0xff] }
 0x5de   : > { %v20003_v31 = vpop.f32.mrb[185].mxu1  ;;  %22366 = vmatpush3.bf16.msra.mxu1 %v22363_v36  ;;  %v22367_v18 = vpack.c.bf16 %v14838_v55, %v14837_v29 }
 0x5e0   : > { %v11704_v13 = vpop.f32.mrb[30].mxu0  ;;  %22368 = vmatprep.subr.bf16.mxu1 %v22367_v18 }
 0x5e1   : > { %v11886_v45 = vpop.f32.mrb[186].mxu1  ;;  %v19929_v27 = vpop.f32.mrb[31].mxu0 }
 0x5e2   : > { %v20006_v57 = vpop.f32.mrb[187].mxu1  ;;  %22370 = vmatpush3.bf16.msra.mxu1 %v22367_v18  ;;  %v14839_v27 = vld [vmem:[%s28918_s7 + $0x260] sm:$0xff] }
 0x5e3   : > { %v14840_v57 = vld [vmem:[%s28918_s7 + $0x268] sm:$0xff] }
 0x5e4   : > { %v11709_v42 = vpop.f32.mrb[32].mxu0  ;;  %v22371_v4 = vpack.c.bf16 %v14840_v57, %v14839_v27 }
 0x5e5   : > { %v11891_v47 = vpop.f32.mrb[188].mxu1  ;;  %v19932_v15 = vpop.f32.mrb[33].mxu0 }
 0x5e6   : > { %v20009_v34 = vpop.f32.mrb[189].mxu1  ;;  %v14843_v15 = vld [vmem:[%s28918_s7 + $0x280] sm:$0xff]  ;;  %22372 = vmatprep.subr.bf16.mxu1 %v22371_v4 }
 0x5e7   : > { %v14844_v34 = vld [vmem:[%s28918_s7 + $0x288] sm:$0xff]  ;;  %22374 = vmatpush3.bf16.msra.mxu1 %v22371_v4 }
 0x5e8   : > { %v11714_v38 = vpop.f32.mrb[34].mxu0 }
 0x5e9   : > { %v11896_v0 = vpop.f32.mrb[190].mxu1  ;;  %v19935_v26 = vpop.f32.mrb[35].mxu0  ;;  %v28674_v38 = vpack.c.bf16 %v14844_v34, %v14843_v15 }
 0x5ea   : > { %v20012_v61 = vpop.f32.mrb[191].mxu1 }
 0x5ec   : > { %v11719_v7 = vpop.f32.mrb[36].mxu0 }
 0x5ed   : > { %v11901_v40 = vpop.f32.mrb[192].mxu1  ;;  %v11763_v22 = vadd.f32 %v11719_v7, %v28584_v5  ;;  %v19938_v62 = vpop.f32.mrb[37].mxu0 }
 0x5ee   : > { %v20015_v53 = vpop.f32.mrb[193].mxu1 }
 0x5ef   : > { %v28636_v16 = vadd.f32 %v11891_v47, %v11763_v22  ;;  %v22375_v47 = vpack.c.bf16 %v14842_v50, %v14841_v49 }
 0x5f0   : > { %v11724_v24 = vpop.f32.mrb[38].mxu0 }
 0x5f1   : > { %v11906_v3 = vpop.f32.mrb[194].mxu1  ;;  %v11764_v59 = vadd.f32 %v11724_v24, %v28593_v11  ;;  %v19941_v5 = vpop.f32.mrb[39].mxu0  ;;  %22376 = vmatprep.subr.bf16.mxu1 %v22375_v47 }
 0x5f2   : > { %v20018_v20 = vpop.f32.mrb[195].mxu1  ;;  %22378 = vmatpush3.bf16.msra.mxu1 %v22375_v47 }
 0x5f3   : > { %v28645_v41 = vadd.f32 %v11896_v0, %v11764_v59  ;;  %22380 = vmatprep.subr.bf16.mxu1 %v28674_v38 }
 0x5f4   : > { %v11729_v58 = vpop.f32.mrb[40].mxu0 }
 0x5f5   : > { %v11911_v17 = vpop.f32.mrb[196].mxu1  ;;  %v11765_v6 = vadd.f32 %v11729_v58, %v28602_v10  ;;  %v19944_v11 = vpop.f32.mrb[41].mxu0 }
 0x5f6   : > { %v20021_v1 = vpop.f32.mrb[197].mxu1 }
 0x5f7   : > { %v28654_v2 = vadd.f32 %v11901_v40, %v11765_v6 }
 0x5f8   : > { %v11734_v31 = vpop.f32.mrb[42].mxu0 }
 0x5f9   : > { %v11916_v13 = vpop.f32.mrb[198].mxu1  ;;  %v19947_v45 = vpop.f32.mrb[43].mxu0 }
 0x5fa   : > { %v20024_v10 = vpop.f32.mrb[199].mxu1 }
 0x5fc   : > { %v11739_v42 = vpop.f32.mrb[44].mxu0 }
 0x5fd   : > { %v11921_v23 = vpop.f32.mrb[200].mxu1  ;;  %v19950_v44 = vpop.f32.mrb[45].mxu0 }
 0x5fe   : > { %v20027_v30 = vpop.f32.mrb[201].mxu1 }
 0x600   : > { %v11744_v0 = vpop.f32.mrb[46].mxu0 }
 0x601   : > { %v11926_v26 = vpop.f32.mrb[202].mxu1  ;;  %v19953_v61 = vpop.f32.mrb[47].mxu0 }
 0x602   : > { %v20030_v21 = vpop.f32.mrb[203].mxu1 }
 0x604   : > { %v11749_v56 = vpop.f32.mrb[48].mxu0 }
 0x605   : > { %v12210_v60 = vpop.f32.mrb[204].mxu1  ;;  %v19956_v7 = vpop.f32.mrb[49].mxu0 }
 0x606   : > { %v20136_v40 = vpop.f32.mrb[205].mxu1 }
 0x608   : > { %v11754_v22 = vpop.f32.mrb[50].mxu0 }
 0x609   : > { %v12215_v62 = vpop.f32.mrb[206].mxu1  ;;  %v19959_v53 = vpop.f32.mrb[51].mxu0 }
 0x60a   : > { %v20139_v32 = vpop.f32.mrb[207].mxu1 }
 0x60c   : > { %v12038_v14 = vpop.f32.mrb[52].mxu0 }
 0x60d   : > { %v12220_v48 = vpop.f32.mrb[208].mxu1  ;;  %v20065_v24 = vpop.f32.mrb[53].mxu0 }
 0x60e   : > { %v20142_v3 = vpop.f32.mrb[209].mxu1 }
 0x610   : > { %v12043_v59 = vpop.f32.mrb[54].mxu0 }
 0x611   : > { %v12225_v5 = vpop.f32.mrb[210].mxu1  ;;  %v20068_v20 = vpop.f32.mrb[55].mxu0 }
 0x612   : > { %v20145_v39 = vpop.f32.mrb[211].mxu1  ;;  %v14778_v20 = vld [vmem:[%s28917_s6] ss:$0 sm:$0xff] }
 0x614   : > { %v12048_v54 = vpop.f32.mrb[56].mxu0 }
 0x615   : > { %v12230_v36 = vpop.f32.mrb[212].mxu1  ;;  %v20071_v58 = vpop.f32.mrb[57].mxu0 }
 0x616   : > { %v20148_v17 = vpop.f32.mrb[213].mxu1  ;;  %v12534_v58 = vpop.permute.xlu1 %12533 }
 0x618   : > { %v12053_v6 = vpop.f32.mrb[58].mxu0 }
 0x619   : > { %v12235_v11 = vpop.f32.mrb[214].mxu1  ;;  %v20074_v1 = vpop.f32.mrb[59].mxu0 }
 0x61a   : > { %v20151_v29 = vpop.f32.mrb[215].mxu1 }
 0x61c   : > { %v12058_v55 = vpop.f32.mrb[60].mxu0 }
 0x61d   : > { %v12240_v18 = vpop.f32.mrb[216].mxu1  ;;  %v20077_v31 = vpop.f32.mrb[61].mxu0 }
 0x61e   : > { %v20154_v13 = vpop.f32.mrb[217].mxu1  ;;  %v12544_v55 = vpop.permute.xlu1 %12543 }
 0x61f   : > { %v28710_v55 = vld [vmem:[%s27798_s29 + $0x19] sm:$0xff] }
 0x620   : > { %v12063_v45 = vpop.f32.mrb[62].mxu0 }
 0x621   : > { %v12245_v10 = vpop.f32.mrb[218].mxu1  ;;  %v12107_v27 = vadd.f32 %v12063_v45, %v28636_v16  ;;  %v20080_v57 = vpop.f32.mrb[63].mxu0 }
 0x622   : > { %v20157_v49 = vpop.f32.mrb[219].mxu1  ;;  %v12554_v57 = vpop.permute.xlu1 %12553 }
 0x623   : > { %v12279_v4 = vadd.f32 %v12235_v11, %v12107_v27  ;;  %v12539_v11 = vpop.permute.xlu0 %12538  ;;  %v14851_v57 = vld [vmem:[%s28918_s7 + $0x2c0] sm:$0xff] }
 0x624   : > { %v12068_v50 = vpop.f32.mrb[64].mxu0  ;;  %v28700_v11 = vld [vmem:[%s27798_s29 + $0x11] sm:$0xff] }
 0x625   : > { %v12250_v42 = vpop.f32.mrb[220].mxu1  ;;  %v12108_v47 = vadd.f32 %v12068_v50, %v28645_v41  ;;  %v20083_v15 = vpop.f32.mrb[65].mxu0 }
 0x626   : > { %v20160_v34 = vpop.f32.mrb[221].mxu1 }
 0x627   : > { %v12280_v23 = vadd.f32 %v12240_v18, %v12108_v47  ;;  %v12549_v13 = vpop.permute.xlu0 %12548 }
 0x628   : > { %v12073_v44 = vpop.f32.mrb[66].mxu0  ;;  %v14849_v13 = vld [vmem:[%s28918_s7 + $0x2b0] sm:$0xff] }
 0x629   : > { %v12255_v30 = vpop.f32.mrb[222].mxu1  ;;  %v12109_v0 = vadd.f32 %v12073_v44, %v28654_v2  ;;  %v20086_v26 = vpop.f32.mrb[67].mxu0 }
 0x62a   : > { %v20163_v61 = vpop.f32.mrb[223].mxu1 }
 0x62b   : > { %v12281_v21 = vadd.f32 %v12245_v10, %v12109_v0 }
 0x62c   : > { %v12078_v56 = vpop.f32.mrb[68].mxu0 }
 0x62d   : > { %v12260_v60 = vpop.f32.mrb[224].mxu1  ;;  %v20089_v16 = vpop.f32.mrb[69].mxu0 }
 0x62e   : > { %v20166_v7 = vpop.f32.mrb[225].mxu1 }
 0x630   : > { %v12083_v40 = vpop.f32.mrb[70].mxu0 }
 0x631   : > { %v20092_v22 = vpop.f32.mrb[71].mxu0  ;;  %v12265_v62 = vpop.f32.mrb[226].mxu1 }
 0x632   : > { %v20169_v53 = vpop.f32.mrb[227].mxu1 }
 0x634   : > { %v12088_v32 = vpop.f32.mrb[72].mxu0 }
 0x635   : > { %v20095_v41 = vpop.f32.mrb[73].mxu0  ;;  %v12270_v14 = vpop.f32.mrb[228].mxu1 }
 0x636   : > { %v20172_v48 = vpop.f32.mrb[229].mxu1  ;;  %v12579_v14 = vpop.permute.xlu1 %12578 }
 0x638   : > { %v12093_v24 = vpop.f32.mrb[74].mxu0 }
 0x639   : > { %v20098_v3 = vpop.f32.mrb[75].mxu0 }
 0x63c   : > { %v12098_v59 = vpop.f32.mrb[76].mxu0 }
 0x63d   : > { %v20101_v5 = vpop.f32.mrb[77].mxu0 }
 0x640   : > { %v12382_v2 = vpop.f32.mrb[78].mxu0 }
 0x641   : > { %v20207_v39 = vpop.f32.mrb[79].mxu0  ;;  %v12589_v2 = vpop.permute.xlu1 %12588 }
 0x642   : > { %v14871_v2 = vld [vmem:[%s28918_s7 + $0x360] sm:$0xff] }
 0x644   : > { %v12387_v54 = vpop.f32.mrb[80].mxu0 }
 0x645   : > { %v20210_v36 = vpop.f32.mrb[81].mxu0  ;;  %v14845_v54 = vld [vmem:[%s28918_s7 + $0x290] sm:$0xff] }
 0x646   : > { %v14846_v36 = vld [vmem:[%s28918_s7 + $0x298] sm:$0xff] }
 0x648   : > { %v12392_v17 = vpop.f32.mrb[82].mxu0 }
 0x649   : > { %v20213_v6 = vpop.f32.mrb[83].mxu0  ;;  %v13123_v17 = vld [vmem:[%s27798_s29 + $0x9] sm:$0xff] }
 0x64a   : > { %v22383_v6 = vpack.c.bf16 %v14846_v36, %v14845_v54  ;;  %v14873_v36 = vld [vmem:[%s28918_s7 + $0x370] sm:$0xff] }
 0x64c   : > { %v12397_v1 = vpop.f32.mrb[84].mxu0 }
 0x64d   : > { %v20216_v29 = vpop.f32.mrb[85].mxu0  ;;  %v14847_v1 = vld [vmem:[%s28918_s7 + $0x2a0] sm:$0xff] }
 0x64e   : > { %v14848_v29 = vld [vmem:[%s28918_s7 + $0x2a8] sm:$0xff] }
 0x650   : > { %v12402_v18 = vpop.f32.mrb[86].mxu0 }
 0x651   : > { %v20219_v31 = vpop.f32.mrb[87].mxu0  ;;  %v22387_v18 = vpack.c.bf16 %v14848_v29, %v14847_v1  ;;  %v14876_v1 = vld [vmem:[%s28918_s7 + $0x388] sm:$0xff] }
 0x652   : > { %v28715_v31 = vld [vmem:[%s27798_s29 + $0x21] sm:$0xff] }
 0x654   : > { %v12407_v45 = vpop.f32.mrb[88].mxu0 }
 0x655   : > { %v12451_v10 = vadd.f32 %v12407_v45, %v12279_v4  ;;  %v20222_v27 = vpop.f32.mrb[89].mxu0  ;;  %v14850_v45 = vld [vmem:[%s28918_s7 + $0x2b8] sm:$0xff] }
 0x657   : > { %v12471_v49 = vadd.f32 %v14778_v20, %v12451_v10  ;;  %v28725_v10 = vld [vmem:[%s27798_s29 + $0x29] sm:$0xff] }
 0x658   : > { %v12412_v50 = vpop.f32.mrb[90].mxu0 }
 0x659   : > { %vm12484_vm1 = vcmp.ge.f32.partialorder %v12471_v49, 0.0  ;;  %v12497_v42 = vmul.f32 0.05, %v12471_v49  ;;  %v12452_v47 = vadd.f32 %v12412_v50, %v12280_v23  ;;  %v20225_v15 = vpop.f32.mrb[91].mxu0 }
 0x65b   : > { %v12510_v34 = vsel %vm12484_vm1, %v12471_v49, %v12497_v42  ;;  %v12472_v44 = vadd.f32 %v14778_v20, %v12452_v47  ;;  %v14852_v49 = vld [vmem:[%s28918_s7 + $0x2c8] sm:$0xff]  ;;  %v14853_v42 = vld [vmem:[%s28918_s7 + $0x2d0] sm:$0xff]  ;;  %v14854_v47 = vld [vmem:[%s28918_s7 + $0x2d8] sm:$0xff] }
 0x65c   : > { %v12601_v30 = vmul.f32 %v28006_v35, %v12510_v34  ;;  %v12417_v0 = vpop.f32.mrb[92].mxu0  ;;  %v22395_v50 = vpack.c.bf16 %v14852_v49, %v14851_v57  ;;  %v22399_v15 = vpack.c.bf16 %v14854_v47, %v14853_v42  ;;  %v14855_v34 = vld [vmem:[%s28918_s7 + $0x2e0] sm:$0xff]  ;;  %v14880_v57 = vld [vmem:[%s28918_s7 + $0x3a8] sm:$0xff]  ;;  %v14881_v42 = vld [vmem:[%s28918_s7 + $0x3b0] sm:$0xff] }
 0x65d   : > { %vm12485_vm14 = vcmp.ge.f32.partialorder %v12472_v44, 0.0  ;;  %v12498_v26 = vmul.f32 0.05, %v12472_v44  ;;  %v12453_v61 = vadd.f32 %v12417_v0, %v12281_v21  ;;  %v20228_v56 = vpop.f32.mrb[93].mxu0  ;;  %v12574_v21 = vpop.permute.xlu0 %12573  ;;  %v14858_v0 = vld [vmem:[%s28918_s7 + $0x2f8] sm:$0xff]  ;;  %v13373_v49 = vld [vmem:[%s27798_s29 + $0x20] sm:$0xff] }
 0x65e   : > { %12614 = vst [vmem:[#allocation3 + $0x13d] sm:$0xff] %v12601_v30  ;;  %v14857_v30 = vld [vmem:[%s28918_s7 + $0x2f0] sm:$0xff]  ;;  %v14860_v56 = vld [vmem:[%s28918_s7 + $0x308] sm:$0xff]  ;;  %v14866_v21 = vld [vmem:[%s28918_s7 + $0x338] sm:$0xff] }
 0x65f   : > { %v12511_v60 = vsel %vm12485_vm14, %v12472_v44, %v12498_v26  ;;  %v12473_v4 = vadd.f32 %v14778_v20, %v12453_v61  ;;  %v22407_v26 = vpack.c.bf16 %v14858_v0, %v14857_v30  ;;  %v14859_v61 = vld [vmem:[%s28918_s7 + $0x300] sm:$0xff]  ;;  %v14882_v47 = vld [vmem:[%s28918_s7 + $0x3b8] sm:$0xff]  ;;  %v14884_v30 = vld [vmem:[%s28918_s7 + $0x3c8] sm:$0xff] }
 0x660   : > { %v12602_v16 = vmul.f32 %v28011_v25, %v12511_v60  ;;  %v12422_v7 = vpop.f32.mrb[94].mxu0  ;;  %v22411_v60 = vpack.c.bf16 %v14860_v56, %v14859_v61  ;;  %v14885_v0 = vld [vmem:[%s28918_s7 + $0x3d0] sm:$0xff]  ;;  %v14887_v56 = vld [vmem:[%s28918_s7 + $0x3e0] sm:$0xff] }
 0x661   : > { %vm12486_vm15 = vcmp.ge.f32.partialorder %v12473_v4, 0.0  ;;  %v12499_v40 = vmul.f32 0.05, %v12473_v4  ;;  %v20231_v23 = vpop.f32.mrb[95].mxu0  ;;  %v12584_v3 = vpop.permute.xlu0 %12583 }
 0x662   : > { %12615 = vst [vmem:[#allocation3 + $0x145] sm:$0xff] %v12602_v16  ;;  %v14862_v16 = vld [vmem:[%s28918_s7 + $0x318] sm:$0xff]  ;;  %v14863_v23 = vld [vmem:[%s28918_s7 + $0x320] sm:$0xff]  ;;  %v14869_v3 = vld [vmem:[%s28918_s7 + $0x350] sm:$0xff] }
 0x663   : > { %v12512_v22 = vsel %vm12486_vm15, %v12473_v4, %v12499_v40  ;;  %v14861_v4 = vld [vmem:[%s28918_s7 + $0x310] sm:$0xff] }
 0x664   : > { %v12603_v62 = vmul.f32 %v28019_v43, %v12512_v22  ;;  %v12427_v35 = vpop.f32.mrb[96].mxu0  ;;  %v22415_v7 = vpack.c.bf16 %v14862_v16, %v14861_v4  ;;  %v13248_v40 = vld [vmem:[%s27798_s29 + $0x12] sm:$0xff]  ;;  %v14864_v22 = vld [vmem:[%s28918_s7 + $0x328] sm:$0xff] }
 0x665   : > { %v20234_v53 = vpop.f32.mrb[97].mxu0  ;;  %v12594_v58 = vpop.permute.xlu0 %12593  ;;  %v22419_v35 = vpack.c.bf16 %v14864_v22, %v14863_v23  ;;  %v14889_v4 = vld [vmem:[%s28918_s7 + $0x3f0] sm:$0xff]  ;;  %v14890_v16 = vld [vmem:[%s28918_s7 + $0x3f8] sm:$0xff]  ;;  %v13621_v22 = vld [vmem:[%s27798_s29 + $0x22] sm:$0xff] }
 0x666   : > { %12616 = vst [vmem:[#allocation3 + $0x14d] sm:$0xff] %v12603_v62  ;;  %v13249_v62 = vld [vmem:[%s27798_s29 + $0x1a] sm:$0xff]  ;;  %v14865_v53 = vld [vmem:[%s28918_s7 + $0x330] sm:$0xff] }
 0x667   : > { %v14874_v58 = vld [vmem:[%s28918_s7 + $0x378] sm:$0xff] }
 0x668   : > { %v12432_v32 = vpop.f32.mrb[98].mxu0  ;;  %v13500_v23 = vld [vmem:[%s27798_s29 + $0x39] sm:$0x3f] }
 0x669   : > { %v20237_v41 = vpop.f32.mrb[99].mxu0 }
 0x66a   : > { %v22423_v41 = vpack.c.bf16 %v14866_v21, %v14865_v53 }
 0x66c   : > { %v12437_v48 = vpop.f32.mrb[100].mxu0 }
 0x66d   : > { %v20240_v25 = vpop.f32.mrb[101].mxu0  ;;  %v12638_v24 = vld [vmem:[#allocation3 + $0x141] ss:$3 sm:$0x3f] }
 0x66e   : > { %12639 = vst [vmem:[%s27798_s29 + $0x31] sm:$0x3f] %v12638_v24  ;;  %v14867_v48 = vld [vmem:[%s28918_s7 + $0x340] sm:$0xff]  ;;  %v14868_v25 = vld [vmem:[%s28918_s7 + $0x348] sm:$0xff]  ;;  %v13371_v24 = vld [vmem:[%s27798_s29 + $0x10] sm:$0xff] }
 0x670   : > { %v12442_v59 = vpop.f32.mrb[102].mxu0 }
 0x671   : > { %v20243_v5 = vpop.f32.mrb[103].mxu0  ;;  %v14870_v59 = vld [vmem:[%s28918_s7 + $0x358] sm:$0xff] }
 0x672   : > { %v22431_v5 = vpack.c.bf16 %v14870_v59, %v14869_v3 }
 0x674   : > { %v28687_v43 = vpop.f32.mrb[104].mxu0 }
 0x675   : > { %v28689_v20 = vpop.f32.mrb[105].mxu0  ;;  %v13004_v39 = vld [vmem:[%s27798_s29 + $0x30] sm:$0x3f] }
 0x676   : > { %20406 = vmatmul.mubr.f32.gmra.mrb[234].mxu1 %v13004_v39  ;;  %v13128_v27 = vld [vmem:[%s27798_s29 + $0x31] sm:$0x3f]  ;;  %v14872_v39 = vld [vmem:[%s28918_s7 + $0x368] sm:$0xff] }
 0x677   : > { %20440 = vmatprep.mubr.f32.mxu1 %v13123_v17  ;;  %v28782_v32 = vld [vmem:[%s27798_s29 + $0x2a] sm:$0xff]  ;;  %v13252_v14 = vld [vmem:[%s27798_s29 + $0x32] sm:$0x3f]  ;;  %v22435_v54 = vpack.c.bf16 %v14872_v39, %v14871_v2  ;;  %v22439_v17 = vpack.c.bf16 %v14874_v58, %v14873_v36 }
 0x67a   : > { %20441 = vmatmul.mubr.f32.vlgmr.msra.gmra.mrb[230].mxu1 %v28700_v11 }
 0x67b   : > { %22382 = vmatpush3.bf16.msra.mxu1 %v28674_v38  ;;  %20443 = vmatprep.mubr.f32.mxu1 %v28710_v55  ;;  %v22391_v38 = vpack.c.bf16 %v14850_v45, %v14849_v13  ;;  %v14878_v13 = vld [vmem:[%s28918_s7 + $0x398] sm:$0xff] }
 0x67c   : > { %22384 = vmatprep.subr.bf16.mxu1 %v22383_v6 }
 0x67e   : > { %20444 = vmatmul.mubr.f32.gmra.mrb[232].mxu1 %v28715_v31 }
 0x67f   : > { %22386 = vmatpush3.bf16.msra.mxu1 %v22383_v6  ;;  %20446 = vmatprep.mubr.f32.mxu1 %v28725_v10  ;;  %v14875_v6 = vld [vmem:[%s28918_s7 + $0x380] sm:$0xff] }
 0x680   : > { %22388 = vmatprep.subr.bf16.mxu1 %v22387_v18  ;;  %v22443_v29 = vpack.c.bf16 %v14876_v1, %v14875_v6 }
 0x682   : > { %20447 = vmatmul.mubr.f32.gmra.mrb[234].mxu1 %v13128_v27  ;;  %v14879_v27 = vld [vmem:[%s28918_s7 + $0x3a0] sm:$0xff] }
 0x683   : > { %22390 = vmatpush3.bf16.msra.mxu1 %v22387_v18  ;;  %20481 = vmatprep.mubr.f32.mxu1 %v28550_v51  ;;  %v14856_v51 = vld [vmem:[%s28918_s7 + $0x2e8] sm:$0xff]  ;;  %v14877_v18 = vld [vmem:[%s28918_s7 + $0x390] sm:$0xff] }
 0x684   : > { %22392 = vmatprep.subr.bf16.mxu1 %v22391_v38  ;;  %v22403_v44 = vpack.c.bf16 %v14856_v51, %v14855_v34  ;;  %v22447_v45 = vpack.c.bf16 %v14878_v13, %v14877_v18  ;;  %v13376_v34 = vld [vmem:[%s27798_s29 + $0x38] sm:$0x3f]  ;;  %v22455_v51 = vpack.c.bf16 %v14882_v47, %v14881_v42 }
 0x687   : > { %22394 = vmatpush3.bf16.msra.mxu1 %v22391_v38  ;;  %v13372_v38 = vld [vmem:[%s27798_s29 + $0x18] sm:$0xff] }
 0x688   : > { %22396 = vmatprep.subr.bf16.mxu1 %v22395_v50 }
 0x68b   : > { %22398 = vmatpush3.bf16.msra.mxu1 %v22395_v50  ;;  %v22451_v50 = vpack.c.bf16 %v14880_v57, %v14879_v27 }
 0x68c   : > { %22400 = vmatprep.subr.bf16.mxu1 %v22399_v15 }
 0x68f   : > { %22402 = vmatpush3.bf16.msra.mxu1 %v22399_v15  ;;  %v13375_v15 = vld [vmem:[%s27798_s29 + $0x30] sm:$0xff] }
 0x690   : > { %22404 = vmatprep.subr.bf16.mxu1 %v22403_v44 }
 0x693   : > { %22406 = vmatpush3.bf16.msra.mxu1 %v22403_v44  ;;  %v14883_v44 = vld [vmem:[%s28918_s7 + $0x3c0] sm:$0xff] }
 0x694   : > { %22408 = vmatprep.subr.bf16.mxu1 %v22407_v26 }
 0x697   : > { %22410 = vmatpush3.bf16.msra.mxu1 %v22407_v26  ;;  %v14886_v26 = vld [vmem:[%s28918_s7 + $0x3d8] sm:$0xff] }
 0x698   : > { %22412 = vmatprep.subr.bf16.mxu1 %v22411_v60  ;;  %v22463_v61 = vpack.c.bf16 %v14886_v26, %v14885_v0 }
 0x69a   : > { %20482 = vmatmul.mubr.f32.vlgmr.msra.gmra.mrb[230].mxu1 %v13248_v40  ;;  %v13499_v40 = vld [vmem:[%s27798_s29 + $0x31] sm:$0xff] }
 0x69b   : > { %20484 = vmatprep.mubr.f32.mxu1 %v13249_v62  ;;  %22414 = vmatpush3.bf16.msra.mxu1 %v22411_v60  ;;  %v13788_v62 = vpop.permute.xlu0 %13787 }
 0x69c   : > { %22416 = vmatprep.subr.bf16.mxu1 %v22415_v7 }
 0x69e   : > { %20485 = vmatmul.mubr.f32.gmra.mrb[232].mxu1 %v28566_v63  ;;  %v22427_v63 = vpack.c.bf16 %v14868_v25, %v14867_v48 }
 0x69f   : > { %20487 = vmatprep.mubr.f32.mxu1 %v28782_v32  ;;  %22418 = vmatpush3.bf16.msra.mxu1 %v22415_v7  ;;  %v22471_v7 = vpack.c.bf16 %v14890_v16, %v14889_v4  ;;  %v13798_v25 = vpop.permute.xlu0 %13797 }
 0x6a0   : > { %22420 = vmatprep.subr.bf16.mxu1 %v22419_v35 }
 0x6a2   : > { %20488 = vmatmul.mubr.f32.gmra.mrb[234].mxu1 %v13252_v14 }
 0x6a3   : > { %22422 = vmatpush3.bf16.msra.mxu1 %v22419_v35  ;;  %20522 = vmatprep.mubr.f32.mxu1 %v13371_v24 }
 0x6a4   : > { %22424 = vmatprep.subr.bf16.mxu1 %v22423_v41 }
 0x6a7   : > { %22426 = vmatpush3.bf16.msra.mxu1 %v22423_v41 }
 0x6a8   : > { %22428 = vmatprep.subr.bf16.mxu1 %v22427_v63 }
 0x6ab   : > { %22430 = vmatpush3.bf16.msra.mxu1 %v22427_v63 }
 0x6ac   : > { %22432 = vmatprep.subr.bf16.mxu1 %v22431_v5 }
 0x6af   : > { %22434 = vmatpush3.bf16.msra.mxu1 %v22431_v5 }
 0x6b0   : > { %22436 = vmatprep.subr.bf16.mxu1 %v22435_v54 }
 0x6b3   : > { %22438 = vmatpush3.bf16.msra.mxu1 %v22435_v54 }
 0x6b4   : > { %22440 = vmatprep.subr.bf16.mxu1 %v22439_v17 }
 0x6b7   : > { %22442 = vmatpush3.bf16.msra.mxu1 %v22439_v17 }
 0x6b8   : > { %22444 = vmatprep.subr.bf16.mxu1 %v22443_v29 }
 0x6ba   : > { %20523 = vmatmul.mubr.f32.vlgmr.msra.gmra.mrb[230].mxu1 %v13372_v38 }
 0x6bb   : > { %20525 = vmatprep.mubr.f32.mxu1 %v13373_v49  ;;  %22446 = vmatpush3.bf16.msra.mxu1 %v22443_v29  ;;  %v13808_v29 = vpop.permute.xlu0 %13807 }
 0x6bc   : > { %22448 = vmatprep.subr.bf16.mxu1 %v22447_v45 }
 0x6be   : > { %20526 = vmatmul.mubr.f32.gmra.mrb[232].mxu1 %v28608_v33  ;;  %v22459_v33 = vpack.c.bf16 %v14884_v30, %v14883_v44 }
 0x6bf   : > { %20528 = vmatprep.mubr.f32.mxu1 %v13375_v15  ;;  %22450 = vmatpush3.bf16.msra.mxu1 %v22447_v45 }
 0x6c0   : > { %22452 = vmatprep.subr.bf16.mxu1 %v22451_v50 }
 0x6c2   : > { %20529 = vmatmul.mubr.f32.gmra.mrb[234].mxu1 %v13376_v34 }
 0x6c3   : > { %22454 = vmatpush3.bf16.msra.mxu1 %v22451_v50  ;;  %20563 = vmatprep.mubr.f32.mxu1 %v28700_v11  ;;  %v14888_v11 = vld [vmem:[%s28918_s7 + $0x3e8] sm:$0xff] }
 0x6c4   : > { %22456 = vmatprep.subr.bf16.mxu1 %v22455_v51  ;;  %v22467_v60 = vpack.c.bf16 %v14888_v11, %v14887_v56 }
 0x6c7   : > { %22458 = vmatpush3.bf16.msra.mxu1 %v22455_v51 }
 0x6c8   : > { %22460 = vmatprep.subr.bf16.mxu1 %v22459_v33 }
 0x6cb   : > { %22462 = vmatpush3.bf16.msra.mxu1 %v22459_v33 }
 0x6cc   : > { %22464 = vmatprep.subr.bf16.mxu1 %v22463_v61 }
 0x6cf   : > { %22466 = vmatpush3.bf16.msra.mxu1 %v22463_v61 }
 0x6d0   : > { %22468 = vmatprep.subr.bf16.mxu1 %v22467_v60 }
 0x6d3   : > { %22470 = vmatpush3.bf16.msra.mxu1 %v22467_v60 }
 0x6d4   : > { %22472 = vmatprep.subr.bf16.mxu1 %v22471_v7 }
 0x6d7   : > { %22474 = vmatpush3.bf16.msra.mxu1 %v22471_v7 }
 0x6d8   : > { %22507 = vmatprep.subr.bf16.mxu1 %v28249_v12 }
 0x6da   : > { %20564 = vmatmul.mubr.f32.vlgmr.msra.gmra.mrb[230].mxu1 %v28710_v55 }
 0x6db   : > { %20566 = vmatprep.mubr.f32.mxu1 %v28715_v31  ;;  %22515 = vmatpush3.bf16.msra.mxu1 %v28249_v12  ;;  %v13623_v12 = vld [vmem:[%s27798_s29 + $0x32] sm:$0xff] }
 0x6dc   : > { %22508 = vmatprep.subr.bf16.mxu1 %v28259_v8 }
 0x6de   : > { %20567 = vmatmul.mubr.f32.gmra.mrb[232].mxu1 %v28725_v10 }
 0x6df   : > { %20569 = vmatprep.mubr.f32.mxu1 %v13499_v40  ;;  %22516 = vmatpush3.bf16.msra.mxu1 %v28259_v8  ;;  %v13624_v8 = vld [vmem:[%s27798_s29 + $0x3a] sm:$0x3f] }
 0x6e0   : > { %22509 = vmatprep.subr.bf16.mxu1 %v28272_v9 }
 0x6e2   : > { %20570 = vmatmul.mubr.f32.gmra.mrb[234].mxu1 %v13500_v23 }
 0x6e3   : > { %22517 = vmatpush3.bf16.msra.mxu1 %v28272_v9  ;;  %20607 = vmatprep.mubr.f32.mxu1 %v13621_v22 }
 0x6e4   : > { %22510 = vmatprep.subr.bf16.mxu1 %v28278_v46 }
 0x6e7   : > { %22518 = vmatpush3.bf16.msra.mxu1 %v28278_v46  ;;  %v14907_v46 = vld [vmem:[%s28919_s8] ss:$0 sm:$0xff] }
 0x6e8   : > { %22511 = vmatprep.subr.bf16.mxu1 %v28378_v37 }
 0x6eb   : > { %22519 = vmatpush3.bf16.msra.mxu1 %v28378_v37 }
 0x6ec   : > { %22512 = vmatprep.subr.bf16.mxu1 %v28400_v19 }
 0x6ef   : > { %22520 = vmatpush3.bf16.msra.mxu1 %v28400_v19 }
 0x6f0   : > { %22513 = vmatprep.subr.bf16.mxu1 %v28421_v52 }
 0x6f3   : > { %22521 = vmatpush3.bf16.msra.mxu1 %v28421_v52 }
 0x6f4   : > { %22514 = vmatprep.subr.bf16.mxu1 %v28447_v28 }
 0x6f7   : > { %22522 = vmatpush3.bf16.msra.mxu1 %v28447_v28 }
 0x6fa   : > { %20608 = vmatmul.mubr.f32.vlgmr.msra.gmra.mrb[232].mxu1 %v28782_v32 }
 0x6fb   : > { %20610 = vmatprep.mubr.f32.mxu1 %v13623_v12 }
 0x6fe   : > { %20611 = vmatmul.mubr.f32.gmra.mrb[234].mxu1 %v13624_v8 }
 0x7ad   : > { %v20565_v9 = vpop.f32.mrb[230].mxu1 }
 0x7ae   : > { %v22523_v37 = vadd.f32 %v28687_v43, %v20565_v9  ;;  %v13584_v19 = vpop.f32.mrb[231].mxu1  ;;  %v13783_v43 = vpop.permute.xlu1 %13782 }
 0x7af   : > { %v22524_v52 = vadd.f32 %v28689_v20, %v13584_v19 }
 0x7b0   : > { %v13751_v55 = vadd.f32 %v22523_v37, %v14907_v46 }
 0x7b1   : > { %v13750_v31 = vadd.f32 %v22524_v52, %v14907_v46 }
 0x7b2   : > { %vm13757_vm0 = vcmp.ge.f32.partialorder %v13751_v55, 0.0  ;;  %v13763_v28 = vmul.f32 0.05, %v13751_v55  ;;  %v13793_v63 = vpop.permute.xlu1 %13792 }
 0x7b3   : > { %vm13756_vm2 = vcmp.ge.f32.partialorder %v13750_v31, 0.0  ;;  %v13762_v10 = vmul.f32 0.05, %v13750_v31 }
 0x7b4   : > { %v13769_v35 = vsel %vm13757_vm0, %v13751_v55, %v13763_v28 }
 0x7b5   : > { %v13811_v53 = vmul.f32 %v13788_v62, %v13769_v35  ;;  %v13768_v21 = vsel %vm13756_vm2, %v13750_v31, %v13762_v10 }
 0x7b6   : > { %v13810_v20 = vmul.f32 %v13783_v43, %v13768_v21  ;;  %v13803_v13 = vpop.permute.xlu1 %13802 }
 0x7b7   : > { %13817 = vst [vmem:[%s28900_s24 + $0x11] sm:$0xff] %v13811_v53 }
 0x7b8   : > { %13816 = vst [vmem:[%s28900_s24 + $0x9] sm:$0xff] %v13810_v20 }
 0x7cd   : > { %v20609_v32 = vpop.f32.mrb[232].mxu1 }
 0x7ce   : > { %v13753_v41 = vadd.f32 %v20609_v32, %v14907_v46  ;;  %v13718_v14 = vpop.f32.mrb[233].mxu1 }
 0x7cf   : > { %v13752_v48 = vadd.f32 %v14907_v46, %v13718_v14 }
 0x7d0   : > { %vm13759_vm3 = vcmp.ge.f32.partialorder %v13753_v41, 0.0  ;;  %v13765_v24 = vmul.f32 0.05, %v13753_v41 }
 0x7d1   : > { %vm13758_vm4 = vcmp.ge.f32.partialorder %v13752_v48, 0.0  ;;  %v13764_v3 = vmul.f32 0.05, %v13752_v48  ;;  %v20612_v59 = vpop.f32.mrb[234].mxu1 }
 0x7d2   : > { %v13771_v5 = vsel %vm13759_vm3, %v13753_v41, %v13765_v24  ;;  %v13755_v2 = vadd.f32 %v20612_v59, %v14907_v46  ;;  %v13728_v39 = vpop.f32.mrb[235].mxu1 }
 0x7d3   : > { %v13813_v54 = vmul.f32 %v13798_v25, %v13771_v5  ;;  %v13770_v36 = vsel %vm13758_vm4, %v13752_v48, %v13764_v3  ;;  %v13754_v58 = vadd.f32 %v14907_v46, %v13728_v39 }
 0x7d4   : > { %v13812_v17 = vmul.f32 %v13793_v63, %v13770_v36  ;;  %vm13761_vm5 = vcmp.ge.f32.partialorder %v13755_v2, 0.0  ;;  %v13767_v6 = vmul.f32 0.05, %v13755_v2 }
 0x7d5   : > { %13819 = vst [vmem:[%s28900_s24 + $0x21] sm:$0xff] %v13813_v54  ;;  %vm13760_vm6 = vcmp.ge.f32.partialorder %v13754_v58, 0.0  ;;  %v13766_v1 = vmul.f32 0.05, %v13754_v58 }
 0x7d6   : > { %13818 = vst [vmem:[%s28900_s24 + $0x19] sm:$0xff] %v13812_v17  ;;  %v13773_v18 = vsel %vm13761_vm5, %v13755_v2, %v13767_v6 }
 0x7d7   : > { %v13815_v45 = vmul.f32 %v13808_v29, %v13773_v18  ;;  %v13772_v38 = vsel %vm13760_vm6, %v13754_v58, %v13766_v1 }
 0x7d8   : > { %v13814_v27 = vmul.f32 %v13803_v13, %v13772_v38 }
 0x7d9   : > { %13821 = vst [vmem:[%s28900_s24 + $0x31] sm:$0x3f] %v13815_v45 }
 0x7da   : > { %13820 = vst [vmem:[%s28900_s24 + $0x29] sm:$0xff] %v13814_v27 }
 0x7db PF: > { %s24_s25 = sadd.s32 1, %s23113_s25  }
 0x7dc   : > { %p21_p5 = scmp.ge.s32.totalorder %s24_s25, 4  }
 0x7de   :  { %23 = sbr.rel (!%p21_p5) target bundleno = 1 (0x1), region = 148 }

</bundles_post_ra>
